<compile_context>
chip_gen: v7x
topology: tpu7x:2x2x1
jax: 0.10.0
libtpu: 0.0.40
codegen_flags: <defaults>
</compile_context>

<pallas_src>
import functools
import math

import jax
import jax.numpy as jnp
from jax.experimental import pallas as pl
from jax.experimental.pallas import tpu as pltpu

NEG_SLOPE = 0.2
DTYPE = jnp.bfloat16                      # storage dtype (activations, weights)


# ----------------------------------------------------------------------------
# Small helpers / capability probes
# ----------------------------------------------------------------------------
def _rup(x, m):
    return ((int(x) + m - 1) // m) * m


def _vmem_capacity_bytes():
    try:
        return int(pltpu.get_tpu_info().vmem_capacity_bytes)
    except Exception:
        return 64 * 1024 * 1024           # conservative fallback (v7x per-core)


@functools.lru_cache(maxsize=1)
def _single_buffer_mode():
    """Return pl.Buffered(1) if single-buffered pipelined inputs work here."""
    try:
        try:
            mode = pl.Buffered(1)
        except TypeError:
            mode = pl.Buffered(buffer_count=1)

        def k(x_ref, o_ref):
            o_ref[...] = x_ref[...] + jnp.float32(1.0)

        x = jnp.arange(2 * 8 * 128, dtype=jnp.float32).reshape(2, 8, 128)
        out = pl.pallas_call(
            k,
            out_shape=jax.ShapeDtypeStruct((2, 8, 128), jnp.float32),
            grid=(2, 2),
            in_specs=[pl.BlockSpec((1, 8, 128), lambda n, i: (n, 0, 0),
                                   pipeline_mode=mode)],
            out_specs=pl.BlockSpec((1, 8, 128), lambda n, i: (n, 0, 0)),
        )(x)
        jax.block_until_ready(out)
        if not bool(jnp.allclose(out, x + 1.0)):
            return None
        return mode
    except Exception:
        return None


@functools.lru_cache(maxsize=1)
def _lane_dense_reshape_ok():
    """Probe the (th*W, C) -> (1, th, W*C) value reshape used for lane-dense
    output stores (a lane-merging relayout inside the kernel)."""
    try:
        th, w, c = 8, 16, 3

        def k(x_ref, o_ref):
            o_ref[...] = x_ref[...].reshape(1, th, w * c)

        x = jnp.arange(th * w * c, dtype=jnp.float32).reshape(th * w, c)
        out = pl.pallas_call(
            k, out_shape=jax.ShapeDtypeStruct((1, th, w * c), jnp.float32))(x)
        jax.block_until_ready(out)
        return bool(jnp.array_equal(out.reshape(-1), x.reshape(-1)))
    except Exception:
        return False


# ----------------------------------------------------------------------------
# Pallas kernel: fused multi-input 3x3 conv (stride 1, pad 1)
#   out = act(conv3x3(concat(inputs), W) + b) * out_scale
#         + sum_i res_scale[i] * residual[i]
# K-chunked per kernel-row (dy); double-buffered col scratch; f32 accumulate.
# ----------------------------------------------------------------------------
def _fused_conv3x3_kernel(*refs, H, W, th, cins, Cout, lrelu, out_scale,
                          res_scales, lane_dense):
    ns, nr = len(cins), len(res_scales)
    x_refs = refs[:ns]                     # each (1, H, W, cins[s])  resident
    w_ref = refs[ns]                       # (3, 3*Ctot, Cout)        bf16
    b_ref = refs[ns + 1]                   # (1, Cout)                f32
    res_refs = refs[ns + 2:ns + 2 + nr]    # residual tiles
    o_ref = refs[ns + 2 + nr]              # output tile
    col_ref = refs[ns + 3 + nr]            # (2, th, W, 3*Ctot)       scratch
    Ctot = sum(cins)
    Kc = 3 * Ctot

    i = pl.program_id(1)
    nh = pl.num_programs(1)
    pt = i * th
    if th % 8 == 0:
        pt = pl.multiple_of(pt, 8)

    # Zero the never-written left/right halo columns of both col slots.
    # (Done every iteration: robust to the grid being split across cores,
    #  since scratch is per-core and uninitialised at that core's first step.)
    zcol = jnp.zeros((th, 1, Ctot), DTYPE)
    for sl in range(2):
        col_ref[sl, :, 0:1, 0:Ctot] = zcol                       # dx=0 slab, w=0
        col_ref[sl, :, W - 1:W, 2 * Ctot:3 * Ctot] = zcol        # dx=2 slab, w=W-1

    # Per-dx (dst_w0, dst_w1, src_w0, src_w1) windows for the 1-pixel W shift.
    wslices = ((1, W, 0, W - 1), (0, W, 0, W), (0, W - 1, 1, W))

    def stage_rows(sl, dst0, dst1, src_start, n_rows):
        """Copy n_rows input rows (starting at absolute row src_start) into
        col rows [dst0, dst1) for every (dx, segment) — the VMEM 'concat'."""
        for dx, (d0, d1, s0, s1) in enumerate(wslices):
            off = 0
            for s in range(ns):
                c = cins[s]
                k0 = dx * Ctot + off
                col_ref[sl, dst0:dst1, d0:d1, k0:k0 + c] = (
                    x_refs[s][0, pl.ds(src_start, n_rows), s0:s1, :])
                off += c

    zrow = jnp.zeros((1, W, Kc), DTYPE)
    acc = None
    for dy in range(3):
        sl = dy % 2

        if dy == 0:                                    # source rows pt-1 ..
            @pl.when(i == 0)
            def _():
                col_ref[sl, 0:1, :, :] = zrow          # global row -1 -> zero
                if th > 1:
                    stage_rows(sl, 1, th, 0, th - 1)

            @pl.when(i > 0)
            def _():
                stage_rows(sl, 0, th, pt - 1, th)

        elif dy == 1:                                  # source rows pt ..
            stage_rows(sl, 0, th, pt, th)

        else:                                          # source rows pt+1 ..
            @pl.when(i == nh - 1)
            def _():
                col_ref[sl, th - 1:th, :, :] = zrow    # global row H -> zero
                if th > 1:
                    stage_rows(sl, 0, th - 1, pt + 1, th - 1)

            @pl.when(i < nh - 1)
            def _():
                stage_rows(sl, 0, th, pt + 1, th)

        lhs = col_ref[sl].reshape(th * W, Kc)          # free (leading-dim merge)
        part = jnp.dot(lhs, w_ref[dy], preferred_element_type=jnp.float32)
        acc = part if acc is None else acc + part

    # ---- fused epilogue: bias, LeakyReLU, scale, residual adds ---------------
    acc = acc + b_ref[...].astype(jnp.float32)
    if lrelu:
        acc = jnp.where(acc > 0, acc, jnp.float32(NEG_SLOPE) * acc)
    if out_scale != 1.0:
        acc = acc * jnp.float32(out_scale)

    if lane_dense:
        acc = acc.reshape(1, th, W * Cout)             # lane-dense store layout
        for r_ref, s in zip(res_refs, res_scales):
            r = r_ref[...].astype(jnp.float32)
            acc = acc + (r * jnp.float32(s) if s != 1.0 else r)
        o_ref[...] = acc.astype(o_ref.dtype)
    else:
        for r_ref, s in zip(res_refs, res_scales):
            r = r_ref[...].reshape(th * W, Cout).astype(jnp.float32)
            acc = acc + (r * jnp.float32(s) if s != 1.0 else r)
        o_ref[...] = acc.reshape(1, th, W, Cout).astype(o_ref.dtype)


# ----------------------------------------------------------------------------
# VMEM budgeting / tile picking
# ----------------------------------------------------------------------------
def _conv_vmem_bytes(th, H, W, cins, Cout, n_res, out_itm, in_bufs):
    bf = 2
    Ctot = sum(cins)
    total = 0
    for c in cins:                                            # resident inputs
        total += in_bufs * H * _rup(W, 8) * _rup(c, 128) * bf
    total += in_bufs * 3 * _rup(3 * Ctot, 8) * _rup(Cout, 128) * bf    # weights
    total += in_bufs * 8 * _rup(Cout, 128) * 4                         # bias
    blk = max(_rup(th, 8) * _rup(W * Cout, 128),              # lane-dense tile
              th * _rup(W, 8) * _rup(Cout, 128))              # NHWC tile
    total += 2 * n_res * blk * bf                             # residual tiles
    total += 2 * blk * out_itm                                # output tile
    total += 2 * th * _rup(W, 8) * _rup(3 * Ctot, 128) * bf   # col scratch (x2)
    total += _rup(th * W, 8) * _rup(Cout, 128) * 4            # f32 accumulator
    return int(total)


def _pick_tile_h(H, W, cins, Cout, n_res, out_itm, in_bufs, max_tile_h=None):
    budget = int(0.80 * _vmem_capacity_bytes())
    cap = H if max_tile_h is None else max(1, min(H, int(max_tile_h)))
    cands = [d for d in range(8, cap + 1, 8) if H % d == 0]   # sublane aligned
    if H <= cap:
        cands.append(H)
    cands = sorted(set(cands), reverse=True)
    if not cands:
        cands = [H]
    chosen = cands[-1]
    for th in cands:
        if _conv_vmem_bytes(th, H, W, cins, Cout, n_res, out_itm, in_bufs) <= budget:
            chosen = th
            break
    need = _conv_vmem_bytes(chosen, H, W, cins, Cout, n_res, out_itm, in_bufs)
    return chosen, need


# ----------------------------------------------------------------------------
# Wrapper
# ----------------------------------------------------------------------------
def fused_conv3x3(inputs, w, b, *, lrelu, out_scale=1.0, residuals=(),
                  out_dtype=DTYPE, max_tile_h=None):
    """3x3 'same' conv over the channel-concat of `inputs` (NHWC), with fused
    bias, optional LeakyReLU(0.2), output scale and residual adds.

    inputs:    list of (N, H, W, Cin_s) arrays (conceptually concatenated)
    w:         (9*sum(Cin_s), Cout), row index = tap*Ctot + concat_channel
    b:         (1, Cout) bias (float32)
    residuals: sequence of (array, scale); each array is (N, H, W, Cout)
    """
    inputs = [x if x.dtype == DTYPE else x.astype(DTYPE) for x in inputs]
    w = w if w.dtype == DTYPE else w.astype(DTYPE)
    b = b.astype(jnp.float32).reshape(1, -1)
    N, H, W, _ = inputs[0].shape
    cins = tuple(int(x.shape[-1]) for x in inputs)
    Ctot = sum(cins)
    Cout = int(w.shape[-1])
    assert int(w.shape[0]) == 9 * Ctot
    w3 = w.reshape(3, 3 * Ctot, Cout)                 # per-dy weight chunks

    res_arrays = tuple(r if r.dtype == DTYPE else r.astype(DTYPE)
                       for r, _ in residuals)
    res_scales = tuple(float(s) for _, s in residuals)
    out_itm = jnp.dtype(out_dtype).itemsize

    sbuf_mode = _single_buffer_mode()                 # Buffered(1) or None
    lane_dense = (Cout % 128 != 0) and _lane_dense_reshape_ok()
    in_bufs = 1 if sbuf_mode is not None else 2

    th, vmem_need = _pick_tile_h(H, W, cins, Cout, len(res_arrays), out_itm,
                                 in_bufs, max_tile_h)
    nh = H // th

    kern = functools.partial(
        _fused_conv3x3_kernel, H=H, W=W, th=th, cins=cins, Cout=Cout,
        lrelu=lrelu, out_scale=float(out_scale), res_scales=res_scales,
        lane_dense=lane_dense)

    def _resident_spec(shape, idx_map):
        if sbuf_mode is not None:
            return pl.BlockSpec(shape, idx_map, pipeline_mode=sbuf_mode)
        return pl.BlockSpec(shape, idx_map)

    in_specs = [_resident_spec((1, H, W, c), lambda n, i: (n, 0, 0, 0))
                for c in cins]
    in_specs.append(_resident_spec((3, 3 * Ctot, Cout), lambda n, i: (0, 0, 0)))
    in_specs.append(_resident_spec((1, Cout), lambda n, i: (0, 0)))

    if lane_dense:
        res_in = tuple(r.reshape(N, H, W * Cout) for r in res_arrays)  # free
        in_specs.extend(pl.BlockSpec((1, th, W * Cout), lambda n, i: (n, i, 0))
                        for _ in res_arrays)
        out_spec = pl.BlockSpec((1, th, W * Cout), lambda n, i: (n, i, 0))
        out_arr_shape = (N, H, W * Cout)
    else:
        res_in = res_arrays
        in_specs.extend(pl.BlockSpec((1, th, W, Cout), lambda n, i: (n, i, 0, 0))
                        for _ in res_arrays)
        out_spec = pl.BlockSpec((1, th, W, Cout), lambda n, i: (n, i, 0, 0))
        out_arr_shape = (N, H, W, Cout)

    cap = _vmem_capacity_bytes()
    vmem_limit = int(min(int(0.98 * cap),
                         max(vmem_need + vmem_need // 4, 32 * 1024 * 1024)))

    itm = 2
    cost = pl.CostEstimate(
        flops=2 * N * H * W * 9 * Ctot * Cout,
        transcendentals=0,
        bytes_accessed=int(N * H * W * Ctot * itm
                           + 9 * Ctot * Cout * itm + Cout * 4
                           + len(res_arrays) * N * H * W * Cout * itm
                           + N * H * W * Cout * out_itm))

    out = pl.pallas_call(
        kern,
        out_shape=jax.ShapeDtypeStruct(out_arr_shape, out_dtype),
        grid_spec=pltpu.PrefetchScalarGridSpec(
            num_scalar_prefetch=0,
            grid=(N, nh),
            in_specs=in_specs,
            out_specs=out_spec,
            scratch_shapes=[pltpu.VMEM((2, th, W, 3 * Ctot), DTYPE)]),
        compiler_params=pltpu.CompilerParams(
            dimension_semantics=("parallel", "parallel"),
            vmem_limit_bytes=vmem_limit),
        cost_estimate=cost,
    )(*inputs, w3, b, *res_in)

    if lane_dense:
        out = out.reshape(N, H, W, Cout)              # free XLA reshape
    return out


# ----------------------------------------------------------------------------
# Plain-JAX reference for the fused conv (used only by the self-check)
# ----------------------------------------------------------------------------
def _reference_conv3x3(inputs, w, b, *, lrelu, out_scale=1.0, residuals=()):
    x = jnp.concatenate([t.astype(jnp.float32) for t in inputs], axis=-1)
    N, H, W, _ = x.shape
    xp = jnp.pad(x, ((0, 0), (1, 1), (1, 1), (0, 0)))
    cols = [xp[:, dy:dy + H, dx:dx + W, :]
            for dy in range(3) for dx in range(3)]
    col = jnp.concatenate(cols, axis=-1)          # tap-major over concat chans
    out = jnp.einsum("nhwk,ko->nhwo", col, w.astype(jnp.float32),
                     precision=jax.lax.Precision.HIGHEST)
    out = out + b.astype(jnp.float32)
    if lrelu:
        out = jnp.where(out > 0, out, NEG_SLOPE * out)
    out = out * out_scale
    for r, s in residuals:
        out = out + s * r.astype(jnp.float32)
    return out


# ----------------------------------------------------------------------------
# Parameter initialization (kaiming_normal, fan_out, leaky_relu; bias = 0)
# ----------------------------------------------------------------------------
def _kaiming(key, cin, cout):
    gain = math.sqrt(2.0 / (1.0 + NEG_SLOPE ** 2))
    std = gain / math.sqrt(cout * 9)              # fan_out mode, 3x3 kernel
    w = (jax.random.normal(key, (9 * cin, cout), jnp.float32) * std).astype(DTYPE)
    b = jnp.zeros((1, cout), jnp.float32)
    return {"w": w, "b": b}


def init_dense_block(key, nf, gc):
    ks = jax.random.split(key, 5)
    return {
        "c1": _kaiming(ks[0], nf, gc),
        "c2": _kaiming(ks[1], nf + gc, gc),
        "c3": _kaiming(ks[2], nf + 2 * gc, gc),
        "c4": _kaiming(ks[3], nf + 3 * gc, gc),
        "c5": _kaiming(ks[4], nf + 4 * gc, nf),
    }


def init_rrdb(key, nf, gc):
    ks = jax.random.split(key, 3)
    return {"rdb1": init_dense_block(ks[0], nf, gc),
            "rdb2": init_dense_block(ks[1], nf, gc),
            "rdb3": init_dense_block(ks[2], nf, gc)}


def init_realesrgan(key, num_in_ch, num_out_ch, nf, nb, gc):
    keys = jax.random.split(key, nb + 8)
    return {
        "conv_first": _kaiming(keys[0], num_in_ch, nf),
        "body": [init_rrdb(keys[1 + i], nf, gc) for i in range(nb)],
        "conv_body": _kaiming(keys[nb + 1], nf, nf),
        "up_ps1": _kaiming(keys[nb + 2], nf, nf * 4),   # PixelShuffleUpsampler.conv1
        "up_ps2": _kaiming(keys[nb + 3], nf, nf * 4),   # PixelShuffleUpsampler.conv2
        "conv_up1": _kaiming(keys[nb + 4], nf, nf),
        "conv_up2": _kaiming(keys[nb + 5], nf, nf),
        "conv_hr": _kaiming(keys[nb + 6], nf, nf),
        "conv_last": _kaiming(keys[nb + 7], nf, num_out_ch),
    }


# ----------------------------------------------------------------------------
# Forward pass (mirrors RealESRGAN.forward, scale_factor = 4)
# ----------------------------------------------------------------------------
def _conv(inputs, p, **kw):
    return fused_conv3x3(inputs, p["w"], p["b"], **kw)


def pixel_shuffle_nhwc(x, r):
    # Matches torch.nn.PixelShuffle semantics (channel index = c*r*r + i*r + j).
    N, H, W, C = x.shape
    c = C // (r * r)
    x = x.reshape(N, H, W, c, r, r)
    x = x.transpose(0, 1, 4, 2, 5, 3)
    return x.reshape(N, H * r, W * r, c)


def dense_block_fwd(x, p, tail_scale=1.0, tail_res=()):
    """Returns tail_scale * (conv5(...)*0.2 + x) + sum(s*r for (r, s) in tail_res)."""
    x1 = _conv([x], p["c1"], lrelu=True)
    x2 = _conv([x, x1], p["c2"], lrelu=True)
    x3 = _conv([x, x1, x2], p["c3"], lrelu=True)
    x4 = _conv([x, x1, x2, x3], p["c4"], lrelu=True)
    res = ((x, tail_scale),) + tuple(tail_res)
    return _conv([x, x1, x2, x3, x4], p["c5"], lrelu=False,
                 out_scale=0.2 * tail_scale, residuals=res)


def rrdb_fwd(x, p):
    d1 = dense_block_fwd(x, p["rdb1"])
    d2 = dense_block_fwd(d1, p["rdb2"])
    # RDB3(d2)*0.2 + x  ==  conv5*0.04 + 0.2*d2 + x  (fused into RDB3's conv5)
    return dense_block_fwd(d2, p["rdb3"], tail_scale=0.2, tail_res=((x, 1.0),))


def real_esrgan_forward(params, x_nchw):
    # NCHW (PyTorch) at the boundary, NHWC bf16 inside.
    x = jnp.transpose(x_nchw, (0, 2, 3, 1)).astype(DTYPE)

    feat = _conv([x], params["conv_first"], lrelu=False)
    body = feat
    for blk in params["body"]:
        body = rrdb_fwd(body, blk)
    # feat = feat + conv_body(body)  (residual fused into the conv epilogue)
    feat = _conv([body], params["conv_body"], lrelu=False,
                 residuals=((feat, 1.0),))

    # PixelShuffleUpsampler (scale 4): conv -> shuffle -> lrelu, twice.
    # LeakyReLU commutes with the pixel-shuffle permutation, so it is fused
    # into the conv kernel (numerically identical).
    t = _conv([feat], params["up_ps1"], lrelu=True)
    feat = pixel_shuffle_nhwc(t, 2)
    t = _conv([feat], params["up_ps2"], lrelu=True)
    feat = pixel_shuffle_nhwc(t, 2)

    feat = _conv([feat], params["conv_up1"], lrelu=True)
    feat = _conv([feat], params["conv_up2"], lrelu=True)
    feat = _conv([feat], params["conv_hr"], lrelu=True)
    out = _conv([feat], params["conv_last"], lrelu=False, out_dtype=jnp.float32)

    return jnp.transpose(out, (0, 3, 1, 2))


# ----------------------------------------------------------------------------
if __name__ == "__main__":
    num_in_ch, num_out_ch = 3, 3
    num_feat, num_grow_ch = 32, 16
    num_block = 2
    scale_factor = 4  # scale-4 PixelShuffleUpsampler branch (2x conv+shuffle)

    key = jax.random.PRNGKey(0)
    pkey, xkey, ckey = jax.random.split(key, 3)

    # --- numerical self-check of the fused conv kernel ------------------------
    # (multi-segment VMEM concat, H-tiling with halo rows, K-chunked matmul,
    #  lane-dense output, fused lrelu+scale+residual)
    ck = jax.random.split(ckey, 4)
    seg_a = jax.random.normal(ck[0], (1, 32, 8, 5), jnp.float32).astype(DTYPE)
    seg_b = jax.random.normal(ck[1], (1, 32, 8, 7), jnp.float32).astype(DTYPE)
    resid = jax.random.normal(ck[2], (1, 32, 8, 11), jnp.float32).astype(DTYPE)
    wp = _kaiming(ck[3], 12, 11)
    y = fused_conv3x3([seg_a, seg_b], wp["w"], wp["b"], lrelu=True,
                      out_scale=0.3, residuals=((resid, 0.7),),
                      out_dtype=jnp.float32, max_tile_h=16)   # -> 2 H-tiles
    y_ref = _reference_conv3x3([seg_a, seg_b], wp["w"], wp["b"], lrelu=True,
                               out_scale=0.3, residuals=((resid, 0.7),))
    err = float(jnp.max(jnp.abs(y - y_ref)))
    assert err < 2e-2, f"fused conv3x3 self-check failed, max abs err = {err}"

    # --- full forward pass -----------------------------------------------------
    params = init_realesrgan(pkey, num_in_ch, num_out_ch,
                             num_feat, num_block, num_grow_ch)
    x = jax.random.normal(xkey, (2, num_in_ch, 8, 8), jnp.float32)  # NCHW

    fwd = jax.jit(real_esrgan_forward)
    out = fwd(params, x)
    jax.block_until_ready(out)

    assert out.shape == (2, num_out_ch, 8 * scale_factor, 8 * scale_factor), out.shape
    assert bool(jnp.all(jnp.isfinite(out)))
    print("KERNEL_OK")
</pallas_src>

<mosaic_0001>
module attributes {stable_mosaic.version = 11 : i64} {
  func.func @k(%arg0: i32, %arg1: i32, %arg2: memref<1x8x128xf32, #tpu.memory_space<vmem>>, %arg3: memref<1x8x128xf32, #tpu.memory_space<vmem>>) attributes {dimension_semantics = [#tpu.dimension_semantics<arbitrary>, #tpu.dimension_semantics<arbitrary>], iteration_bounds = array<i64: 2, 2>, scalar_prefetch = 0 : i64, scratch_operands = 0 : i64, tpu.core_type = #tpu.core_type<tc>, window_params = [{pipeline_mode = #tpu.pipeline_mode<synchronous>, transform_indices = @transform_0, window_bounds = array<i64: 1, 8, 128>}, {transform_indices = @transform_1, window_bounds = array<i64: 1, 8, 128>}]} {
    %c0 = arith.constant 0 : index
    %c0_0 = arith.constant 0 : index
    %c0_1 = arith.constant 0 : index
    %0 = vector.load %arg2[%c0, %c0_0, %c0_1] : memref<1x8x128xf32, #tpu.memory_space<vmem>>, vector<1x8x128xf32>
    %cst = arith.constant 1.000000e+00 : f32
    %1 = vector.broadcast %cst : f32 to vector<1x8x128xf32>
    %2 = arith.addf %0, %1 : vector<1x8x128xf32>
    %c0_2 = arith.constant 0 : index
    %c0_3 = arith.constant 0 : index
    %c0_4 = arith.constant 0 : index
    %3 = vector.load %arg3[%c0_2, %c0_3, %c0_4] : memref<1x8x128xf32, #tpu.memory_space<vmem>>, vector<1x8x128xf32>
    tpu.vector_store %arg3[%c0_2, %c0_3, %c0_4], %2 {strides = array<i32>} : memref<1x8x128xf32, #tpu.memory_space<vmem>>, vector<1x8x128xf32>,
    return
  }
  func.func @transform_0(%arg0: i32, %arg1: i32) -> (i32, i32, i32) {
    %c0_i32 = arith.constant 0 : i32
    %c0_i32_0 = arith.constant 0 : i32
    %c0_i32_1 = arith.constant 0 : i32
    return %arg0, %c0_i32, %c0_i32_0 : i32, i32, i32
  }
  func.func @transform_1(%arg0: i32, %arg1: i32) -> (i32, i32, i32) {
    %c0_i32 = arith.constant 0 : i32
    %c0_i32_0 = arith.constant 0 : i32
    %c0_i32_1 = arith.constant 0 : i32
    return %arg0, %c0_i32, %c0_i32_0 : i32, i32, i32
  }
}

module attributes {stable_mosaic.version = 11 : i64} {
  func.func @k(%arg0: memref<128x3xf32, #tpu.memory_space<vmem>>, %arg1: memref<1x8x48xf32, #tpu.memory_space<vmem>>) attributes {dimension_semantics = [], scalar_prefetch = 0 : i64, scratch_operands = 0 : i64, tpu.core_type = #tpu.core_type<tc>} {
    %c0 = arith.constant 0 : index
    %c0_0 = arith.constant 0 : index
    %0 = vector.load %arg0[%c0, %c0_0] : memref<128x3xf32, #tpu.memory_space<vmem>>, vector<128x3xf32>
    %1 = vector.shape_cast %0 : vector<128x3xf32> to vector<1x8x48xf32>
    %c0_1 = arith.constant 0 : index
    %c0_2 = arith.constant 0 : index
    %c0_3 = arith.constant 0 : index
    %2 = vector.load %arg1[%c0_1, %c0_2, %c0_3] : memref<1x8x48xf32, #tpu.memory_space<vmem>>, vector<1x8x48xf32>
    tpu.vector_store %arg1[%c0_1, %c0_2, %c0_3], %1 {strides = array<i32>} : memref<1x8x48xf32, #tpu.memory_space<vmem>>, vector<1x8x48xf32>,
    return
  }
}

module attributes {stable_mosaic.version = 11 : i64} {
  func.func @_fused_conv3x3_kernel(%arg0: i32, %arg1: i32, %arg2: memref<1x32x8x5xbf16, #tpu.memory_space<vmem>>, %arg3: memref<1x32x8x7xbf16, #tpu.memory_space<vmem>>, %arg4: memref<3x36x11xbf16, #tpu.memory_space<vmem>>, %arg5: memref<1x11xf32, #tpu.memory_space<vmem>>, %arg6: memref<1x16x8x11xbf16, #tpu.memory_space<vmem>>, %arg7: memref<1x16x8x11xf32, #tpu.memory_space<vmem>>, %arg8: memref<2x16x8x36xbf16, #tpu.memory_space<vmem>>) attributes {dimension_semantics = [#tpu.dimension_semantics<parallel>, #tpu.dimension_semantics<parallel>], iteration_bounds = array<i64: 1, 2>, scalar_prefetch = 0 : i64, scratch_operands = 1 : i64, tpu.core_type = #tpu.core_type<tc>, window_params = [{transform_indices = @transform_0, window_bounds = array<i64: 1, 32, 8, 5>}, {transform_indices = @transform_1, window_bounds = array<i64: 1, 32, 8, 7>}, {pipeline_mode = #tpu.pipeline_mode<synchronous>, transform_indices = @transform_2, window_bounds = array<i64: 3, 36, 11>}, {pipeline_mode = #tpu.pipeline_mode<synchronous>, transform_indices = @transform_3, window_bounds = array<i64: 1, 11>}, {transform_indices = @transform_4, window_bounds = array<i64: 1, 16, 8, 11>}, {transform_indices = @transform_5, window_bounds = array<i64: 1, 16, 8, 11>}]} {
    %c16_i32 = arith.constant 16 : i32
    %0 = arith.muli %arg1, %c16_i32 : i32
    %1 = tpu.assume_multiple %0, 8 : i32
    %cst = arith.constant 0.000000e+00 : bf16
    %2 = vector.broadcast %cst : bf16 to vector<16x1x12xbf16>
    %c0 = arith.constant 0 : index
    %c0_0 = arith.constant 0 : index
    %c0_1 = arith.constant 0 : index
    %c0_2 = arith.constant 0 : index
    %3 = vector.load %arg8[%c0, %c0_0, %c0_1, %c0_2] : memref<2x16x8x36xbf16, #tpu.memory_space<vmem>>, vector<1x16x1x12xbf16>
    %4 = vector.shape_cast %3 : vector<1x16x1x12xbf16> to vector<16x1x12xbf16>
    %5 = vector.shape_cast %2 : vector<16x1x12xbf16> to vector<1x16x1x12xbf16>
    tpu.vector_store %arg8[%c0, %c0_0, %c0_1, %c0_2], %5 {strides = array<i32>} : memref<2x16x8x36xbf16, #tpu.memory_space<vmem>>, vector<1x16x1x12xbf16>,
    %c0_3 = arith.constant 0 : index
    %c0_4 = arith.constant 0 : index
    %c7 = arith.constant 7 : index
    %c24 = arith.constant 24 : index
    %6 = vector.load %arg8[%c0_3, %c0_4, %c7, %c24] : memref<2x16x8x36xbf16, #tpu.memory_space<vmem>>, vector<1x16x1x12xbf16>
    %7 = vector.shape_cast %6 : vector<1x16x1x12xbf16> to vector<16x1x12xbf16>
    %8 = vector.shape_cast %2 : vector<16x1x12xbf16> to vector<1x16x1x12xbf16>
    tpu.vector_store %arg8[%c0_3, %c0_4, %c7, %c24], %8 {strides = array<i32>} : memref<2x16x8x36xbf16, #tpu.memory_space<vmem>>, vector<1x16x1x12xbf16>,
    %c1 = arith.constant 1 : index
    %c0_5 = arith.constant 0 : index
    %c0_6 = arith.constant 0 : index
    %c0_7 = arith.constant 0 : index
    %9 = vector.load %arg8[%c1, %c0_5, %c0_6, %c0_7] : memref<2x16x8x36xbf16, #tpu.memory_space<vmem>>, vector<1x16x1x12xbf16>
    %10 = vector.shape_cast %9 : vector<1x16x1x12xbf16> to vector<16x1x12xbf16>
    %11 = vector.shape_cast %2 : vector<16x1x12xbf16> to vector<1x16x1x12xbf16>
    tpu.vector_store %arg8[%c1, %c0_5, %c0_6, %c0_7], %11 {strides = array<i32>} : memref<2x16x8x36xbf16, #tpu.memory_space<vmem>>, vector<1x16x1x12xbf16>,
    %c1_8 = arith.constant 1 : index
    %c0_9 = arith.constant 0 : index
    %c7_10 = arith.constant 7 : index
    %c24_11 = arith.constant 24 : index
    %12 = vector.load %arg8[%c1_8, %c0_9, %c7_10, %c24_11] : memref<2x16x8x36xbf16, #tpu.memory_space<vmem>>, vector<1x16x1x12xbf16>
    %13 = vector.shape_cast %12 : vector<1x16x1x12xbf16> to vector<16x1x12xbf16>
    %14 = vector.shape_cast %2 : vector<16x1x12xbf16> to vector<1x16x1x12xbf16>
    tpu.vector_store %arg8[%c1_8, %c0_9, %c7_10, %c24_11], %14 {strides = array<i32>} : memref<2x16x8x36xbf16, #tpu.memory_space<vmem>>, vector<1x16x1x12xbf16>,
    %cst_12 = arith.constant 0.000000e+00 : bf16
    %15 = vector.broadcast %cst_12 : bf16 to vector<1x8x36xbf16>
    %c0_i32 = arith.constant 0 : i32
    %16 = arith.cmpi eq, %arg1, %c0_i32 : i32
    %17 = arith.extui %16 : i1 to i32
    %c0_i32_13 = arith.constant 0 : i32
    %18 = arith.cmpi ne, %17, %c0_i32_13 : i32
    scf.if %18 {
      %c0_94 = arith.constant 0 : index
      %c0_95 = arith.constant 0 : index
      %c0_96 = arith.constant 0 : index
      %c0_97 = arith.constant 0 : index
      %102 = vector.load %arg8[%c0_94, %c0_95, %c0_96, %c0_97] : memref<2x16x8x36xbf16, #tpu.memory_space<vmem>>, vector<1x1x8x36xbf16>
      %103 = vector.shape_cast %102 : vector<1x1x8x36xbf16> to vector<1x8x36xbf16>
      %104 = vector.shape_cast %15 : vector<1x8x36xbf16> to vector<1x1x8x36xbf16>
      tpu.vector_store %arg8[%c0_94, %c0_95, %c0_96, %c0_97], %104 {strides = array<i32>} : memref<2x16x8x36xbf16, #tpu.memory_space<vmem>>, vector<1x1x8x36xbf16>,
      %c0_98 = arith.constant 0 : index
      %c0_99 = arith.constant 0 : index
      %c0_100 = arith.constant 0 : index
      %c0_101 = arith.constant 0 : index
      %105 = vector.load %arg2[%c0_98, %c0_99, %c0_100, %c0_101] : memref<1x32x8x5xbf16, #tpu.memory_space<vmem>>, vector<1x15x7x5xbf16>
      %106 = vector.shape_cast %105 : vector<1x15x7x5xbf16> to vector<15x7x5xbf16>
      %c0_102 = arith.constant 0 : index
      %c1_103 = arith.constant 1 : index
      %c1_104 = arith.constant 1 : index
      %c0_105 = arith.constant 0 : index
      %107 = vector.load %arg8[%c0_102, %c1_103, %c1_104, %c0_105] : memref<2x16x8x36xbf16, #tpu.memory_space<vmem>>, vector<1x15x7x5xbf16>
      %108 = vector.shape_cast %107 : vector<1x15x7x5xbf16> to vector<15x7x5xbf16>
      %109 = vector.shape_cast %106 : vector<15x7x5xbf16> to vector<1x15x7x5xbf16>
      tpu.vector_store %arg8[%c0_102, %c1_103, %c1_104, %c0_105], %109 {strides = array<i32>} : memref<2x16x8x36xbf16, #tpu.memory_space<vmem>>, vector<1x15x7x5xbf16>,
      %c0_106 = arith.constant 0 : index
      %c0_107 = arith.constant 0 : index
      %c0_108 = arith.constant 0 : index
      %c0_109 = arith.constant 0 : index
      %110 = vector.load %arg3[%c0_106, %c0_107, %c0_108, %c0_109] : memref<1x32x8x7xbf16, #tpu.memory_space<vmem>>, vector<1x15x7x7xbf16>
      %111 = vector.shape_cast %110 : vector<1x15x7x7xbf16> to vector<15x7x7xbf16>
      %c0_110 = arith.constant 0 : index
      %c1_111 = arith.constant 1 : index
      %c1_112 = arith.constant 1 : index
      %c5_113 = arith.constant 5 : index
      %112 = vector.load %arg8[%c0_110, %c1_111, %c1_112, %c5_113] : memref<2x16x8x36xbf16, #tpu.memory_space<vmem>>, vector<1x15x7x7xbf16>
      %113 = vector.shape_cast %112 : vector<1x15x7x7xbf16> to vector<15x7x7xbf16>
      %114 = vector.shape_cast %111 : vector<15x7x7xbf16> to vector<1x15x7x7xbf16>
      tpu.vector_store %arg8[%c0_110, %c1_111, %c1_112, %c5_113], %114 {strides = array<i32>} : memref<2x16x8x36xbf16, #tpu.memory_space<vmem>>, vector<1x15x7x7xbf16>,
      %c0_114 = arith.constant 0 : index
      %c0_115 = arith.constant 0 : index
      %c0_116 = arith.constant 0 : index
      %c0_117 = arith.constant 0 : index
      %115 = vector.load %arg2[%c0_114, %c0_115, %c0_116, %c0_117] : memref<1x32x8x5xbf16, #tpu.memory_space<vmem>>, vector<1x15x8x5xbf16>
      %116 = vector.shape_cast %115 : vector<1x15x8x5xbf16> to vector<15x8x5xbf16>
      %c0_118 = arith.constant 0 : index
      %c1_119 = arith.constant 1 : index
      %c0_120 = arith.constant 0 : index
      %c12_121 = arith.constant 12 : index
      %117 = vector.load %arg8[%c0_118, %c1_119, %c0_120, %c12_121] : memref<2x16x8x36xbf16, #tpu.memory_space<vmem>>, vector<1x15x8x5xbf16>
      %118 = vector.shape_cast %117 : vector<1x15x8x5xbf16> to vector<15x8x5xbf16>
      %119 = vector.shape_cast %116 : vector<15x8x5xbf16> to vector<1x15x8x5xbf16>
      tpu.vector_store %arg8[%c0_118, %c1_119, %c0_120, %c12_121], %119 {strides = array<i32>} : memref<2x16x8x36xbf16, #tpu.memory_space<vmem>>, vector<1x15x8x5xbf16>,
      %c0_122 = arith.constant 0 : index
      %c0_123 = arith.constant 0 : index
      %c0_124 = arith.constant 0 : index
      %c0_125 = arith.constant 0 : index
      %120 = vector.load %arg3[%c0_122, %c0_123, %c0_124, %c0_125] : memref<1x32x8x7xbf16, #tpu.memory_space<vmem>>, vector<1x15x8x7xbf16>
      %121 = vector.shape_cast %120 : vector<1x15x8x7xbf16> to vector<15x8x7xbf16>
      %c0_126 = arith.constant 0 : index
      %c1_127 = arith.constant 1 : index
      %c0_128 = arith.constant 0 : index
      %c17_129 = arith.constant 17 : index
      %122 = vector.load %arg8[%c0_126, %c1_127, %c0_128, %c17_129] : memref<2x16x8x36xbf16, #tpu.memory_space<vmem>>, vector<1x15x8x7xbf16>
      %123 = vector.shape_cast %122 : vector<1x15x8x7xbf16> to vector<15x8x7xbf16>
      %124 = vector.shape_cast %121 : vector<15x8x7xbf16> to vector<1x15x8x7xbf16>
      tpu.vector_store %arg8[%c0_126, %c1_127, %c0_128, %c17_129], %124 {strides = array<i32>} : memref<2x16x8x36xbf16, #tpu.memory_space<vmem>>, vector<1x15x8x7xbf16>,
      %c0_130 = arith.constant 0 : index
      %c0_131 = arith.constant 0 : index
      %c1_132 = arith.constant 1 : index
      %c0_133 = arith.constant 0 : index
      %125 = vector.load %arg2[%c0_130, %c0_131, %c1_132, %c0_133] : memref<1x32x8x5xbf16, #tpu.memory_space<vmem>>, vector<1x15x7x5xbf16>
      %126 = vector.shape_cast %125 : vector<1x15x7x5xbf16> to vector<15x7x5xbf16>
      %c0_134 = arith.constant 0 : index
      %c1_135 = arith.constant 1 : index
      %c0_136 = arith.constant 0 : index
      %c24_137 = arith.constant 24 : index
      %127 = vector.load %arg8[%c0_134, %c1_135, %c0_136, %c24_137] : memref<2x16x8x36xbf16, #tpu.memory_space<vmem>>, vector<1x15x7x5xbf16>
      %128 = vector.shape_cast %127 : vector<1x15x7x5xbf16> to vector<15x7x5xbf16>
      %129 = vector.shape_cast %126 : vector<15x7x5xbf16> to vector<1x15x7x5xbf16>
      tpu.vector_store %arg8[%c0_134, %c1_135, %c0_136, %c24_137], %129 {strides = array<i32>} : memref<2x16x8x36xbf16, #tpu.memory_space<vmem>>, vector<1x15x7x5xbf16>,
      %c0_138 = arith.constant 0 : index
      %c0_139 = arith.constant 0 : index
      %c1_140 = arith.constant 1 : index
      %c0_141 = arith.constant 0 : index
      %130 = vector.load %arg3[%c0_138, %c0_139, %c1_140, %c0_141] : memref<1x32x8x7xbf16, #tpu.memory_space<vmem>>, vector<1x15x7x7xbf16>
      %131 = vector.shape_cast %130 : vector<1x15x7x7xbf16> to vector<15x7x7xbf16>
      %c0_142 = arith.constant 0 : index
      %c1_143 = arith.constant 1 : index
      %c0_144 = arith.constant 0 : index
      %c29_145 = arith.constant 29 : index
      %132 = vector.load %arg8[%c0_142, %c1_143, %c0_144, %c29_145] : memref<2x16x8x36xbf16, #tpu.memory_space<vmem>>, vector<1x15x7x7xbf16>
      %133 = vector.shape_cast %132 : vector<1x15x7x7xbf16> to vector<15x7x7xbf16>
      %134 = vector.shape_cast %131 : vector<15x7x7xbf16> to vector<1x15x7x7xbf16>
      tpu.vector_store %arg8[%c0_142, %c1_143, %c0_144, %c29_145], %134 {strides = array<i32>} : memref<2x16x8x36xbf16, #tpu.memory_space<vmem>>, vector<1x15x7x7xbf16>,
    } else {
    }
    %c0_i32_14 = arith.constant 0 : i32
    %19 = arith.cmpi sgt, %arg1, %c0_i32_14 : i32
    %20 = arith.extui %19 : i1 to i32
    %c0_i32_15 = arith.constant 0 : i32
    %21 = arith.cmpi ne, %20, %c0_i32_15 : i32
    scf.if %21 {
      %c1_i32_94 = arith.constant 1 : i32
      %102 = arith.subi %1, %c1_i32_94 : i32
      %c0_95 = arith.constant 0 : index
      %103 = arith.index_cast %102 : i32 to index
      %c0_96 = arith.constant 0 : index
      %c0_97 = arith.constant 0 : index
      %104 = vector.load %arg2[%c0_95, %103, %c0_96, %c0_97] : memref<1x32x8x5xbf16, #tpu.memory_space<vmem>>, vector<1x16x7x5xbf16>
      %105 = vector.shape_cast %104 : vector<1x16x7x5xbf16> to vector<16x7x5xbf16>
      %c0_98 = arith.constant 0 : index
      %c0_99 = arith.constant 0 : index
      %c1_100 = arith.constant 1 : index
      %c0_101 = arith.constant 0 : index
      %106 = vector.load %arg8[%c0_98, %c0_99, %c1_100, %c0_101] : memref<2x16x8x36xbf16, #tpu.memory_space<vmem>>, vector<1x16x7x5xbf16>
      %107 = vector.shape_cast %106 : vector<1x16x7x5xbf16> to vector<16x7x5xbf16>
      %108 = vector.shape_cast %105 : vector<16x7x5xbf16> to vector<1x16x7x5xbf16>
      tpu.vector_store %arg8[%c0_98, %c0_99, %c1_100, %c0_101], %108 {strides = array<i32>} : memref<2x16x8x36xbf16, #tpu.memory_space<vmem>>, vector<1x16x7x5xbf16>,
      %c0_102 = arith.constant 0 : index
      %109 = arith.index_cast %102 : i32 to index
      %c0_103 = arith.constant 0 : index
      %c0_104 = arith.constant 0 : index
      %110 = vector.load %arg3[%c0_102, %109, %c0_103, %c0_104] : memref<1x32x8x7xbf16, #tpu.memory_space<vmem>>, vector<1x16x7x7xbf16>
      %111 = vector.shape_cast %110 : vector<1x16x7x7xbf16> to vector<16x7x7xbf16>
      %c0_105 = arith.constant 0 : index
      %c0_106 = arith.constant 0 : index
      %c1_107 = arith.constant 1 : index
      %c5_108 = arith.constant 5 : index
      %112 = vector.load %arg8[%c0_105, %c0_106, %c1_107, %c5_108] : memref<2x16x8x36xbf16, #tpu.memory_space<vmem>>, vector<1x16x7x7xbf16>
      %113 = vector.shape_cast %112 : vector<1x16x7x7xbf16> to vector<16x7x7xbf16>
      %114 = vector.shape_cast %111 : vector<16x7x7xbf16> to vector<1x16x7x7xbf16>
      tpu.vector_store %arg8[%c0_105, %c0_106, %c1_107, %c5_108], %114 {strides = array<i32>} : memref<2x16x8x36xbf16, #tpu.memory_space<vmem>>, vector<1x16x7x7xbf16>,
      %c0_109 = arith.constant 0 : index
      %115 = arith.index_cast %102 : i32 to index
      %c0_110 = arith.constant 0 : index
      %c0_111 = arith.constant 0 : index
      %116 = vector.load %arg2[%c0_109, %115, %c0_110, %c0_111] : memref<1x32x8x5xbf16, #tpu.memory_space<vmem>>, vector<1x16x8x5xbf16>
      %117 = vector.shape_cast %116 : vector<1x16x8x5xbf16> to vector<16x8x5xbf16>
      %c0_112 = arith.constant 0 : index
      %c0_113 = arith.constant 0 : index
      %c0_114 = arith.constant 0 : index
      %c12_115 = arith.constant 12 : index
      %118 = vector.load %arg8[%c0_112, %c0_113, %c0_114, %c12_115] : memref<2x16x8x36xbf16, #tpu.memory_space<vmem>>, vector<1x16x8x5xbf16>
      %119 = vector.shape_cast %118 : vector<1x16x8x5xbf16> to vector<16x8x5xbf16>
      %120 = vector.shape_cast %117 : vector<16x8x5xbf16> to vector<1x16x8x5xbf16>
      tpu.vector_store %arg8[%c0_112, %c0_113, %c0_114, %c12_115], %120 {strides = array<i32>} : memref<2x16x8x36xbf16, #tpu.memory_space<vmem>>, vector<1x16x8x5xbf16>,
      %c0_116 = arith.constant 0 : index
      %121 = arith.index_cast %102 : i32 to index
      %c0_117 = arith.constant 0 : index
      %c0_118 = arith.constant 0 : index
      %122 = vector.load %arg3[%c0_116, %121, %c0_117, %c0_118] : memref<1x32x8x7xbf16, #tpu.memory_space<vmem>>, vector<1x16x8x7xbf16>
      %123 = vector.shape_cast %122 : vector<1x16x8x7xbf16> to vector<16x8x7xbf16>
      %c0_119 = arith.constant 0 : index
      %c0_120 = arith.constant 0 : index
      %c0_121 = arith.constant 0 : index
      %c17_122 = arith.constant 17 : index
      %124 = vector.load %arg8[%c0_119, %c0_120, %c0_121, %c17_122] : memref<2x16x8x36xbf16, #tpu.memory_space<vmem>>, vector<1x16x8x7xbf16>
      %125 = vector.shape_cast %124 : vector<1x16x8x7xbf16> to vector<16x8x7xbf16>
      %126 = vector.shape_cast %123 : vector<16x8x7xbf16> to vector<1x16x8x7xbf16>
      tpu.vector_store %arg8[%c0_119, %c0_120, %c0_121, %c17_122], %126 {strides = array<i32>} : memref<2x16x8x36xbf16, #tpu.memory_space<vmem>>, vector<1x16x8x7xbf16>,
      %c0_123 = arith.constant 0 : index
      %127 = arith.index_cast %102 : i32 to index
      %c1_124 = arith.constant 1 : index
      %c0_125 = arith.constant 0 : index
      %128 = vector.load %arg2[%c0_123, %127, %c1_124, %c0_125] : memref<1x32x8x5xbf16, #tpu.memory_space<vmem>>, vector<1x16x7x5xbf16>
      %129 = vector.shape_cast %128 : vector<1x16x7x5xbf16> to vector<16x7x5xbf16>
      %c0_126 = arith.constant 0 : index
      %c0_127 = arith.constant 0 : index
      %c0_128 = arith.constant 0 : index
      %c24_129 = arith.constant 24 : index
      %130 = vector.load %arg8[%c0_126, %c0_127, %c0_128, %c24_129] : memref<2x16x8x36xbf16, #tpu.memory_space<vmem>>, vector<1x16x7x5xbf16>
      %131 = vector.shape_cast %130 : vector<1x16x7x5xbf16> to vector<16x7x5xbf16>
      %132 = vector.shape_cast %129 : vector<16x7x5xbf16> to vector<1x16x7x5xbf16>
      tpu.vector_store %arg8[%c0_126, %c0_127, %c0_128, %c24_129], %132 {strides = array<i32>} : memref<2x16x8x36xbf16, #tpu.memory_space<vmem>>, vector<1x16x7x5xbf16>,
      %c0_130 = arith.constant 0 : index
      %133 = arith.index_cast %102 : i32 to index
      %c1_131 = arith.constant 1 : index
      %c0_132 = arith.constant 0 : index
      %134 = vector.load %arg3[%c0_130, %133, %c1_131, %c0_132] : memref<1x32x8x7xbf16, #tpu.memory_space<vmem>>, vector<1x16x7x7xbf16>
      %135 = vector.shape_cast %134 : vector<1x16x7x7xbf16> to vector<16x7x7xbf16>
      %c0_133 = arith.constant 0 : index
      %c0_134 = arith.constant 0 : index
      %c0_135 = arith.constant 0 : index
      %c29_136 = arith.constant 29 : index
      %136 = vector.load %arg8[%c0_133, %c0_134, %c0_135, %c29_136] : memref<2x16x8x36xbf16, #tpu.memory_space<vmem>>, vector<1x16x7x7xbf16>
      %137 = vector.shape_cast %136 : vector<1x16x7x7xbf16> to vector<16x7x7xbf16>
      %138 = vector.shape_cast %135 : vector<16x7x7xbf16> to vector<1x16x7x7xbf16>
      tpu.vector_store %arg8[%c0_133, %c0_134, %c0_135, %c29_136], %138 {strides = array<i32>} : memref<2x16x8x36xbf16, #tpu.memory_space<vmem>>, vector<1x16x7x7xbf16>,
    } else {
    }
    %c0_16 = arith.constant 0 : index
    %c0_17 = arith.constant 0 : index
    %c0_18 = arith.constant 0 : index
    %c0_19 = arith.constant 0 : index
    %22 = vector.load %arg8[%c0_16, %c0_17, %c0_18, %c0_19] : memref<2x16x8x36xbf16, #tpu.memory_space<vmem>>, vector<1x16x8x36xbf16>
    %23 = vector.shape_cast %22 : vector<1x16x8x36xbf16> to vector<16x8x36xbf16>
    %24 = vector.shape_cast %23 : vector<16x8x36xbf16> to vector<128x36xbf16>
    %c0_20 = arith.constant 0 : index
    %c0_21 = arith.constant 0 : index
    %c0_22 = arith.constant 0 : index
    %25 = vector.load %arg4[%c0_20, %c0_21, %c0_22] : memref<3x36x11xbf16, #tpu.memory_space<vmem>>, vector<1x36x11xbf16>
    %26 = vector.shape_cast %25 : vector<1x36x11xbf16> to vector<36x11xbf16>
    %cst_23 = arith.constant dense<0.000000e+00> : vector<128x11xf32>
    %27 = tpu.matmul %24, %26, %cst_23 {dimension_numbers = #tpu.dot_dimension_numbers<[1], [0], [0], [1], [0, 0, 1, 1], [], []>} : vector<128x36xbf16>, vector<36x11xbf16>, vector<128x11xf32> -> vector<128x11xf32>
    %c0_24 = arith.constant 0 : index
    %28 = arith.index_cast %1 : i32 to index
    %c0_25 = arith.constant 0 : index
    %c0_26 = arith.constant 0 : index
    %29 = vector.load %arg2[%c0_24, %28, %c0_25, %c0_26] : memref<1x32x8x5xbf16, #tpu.memory_space<vmem>>, vector<1x16x7x5xbf16>
    %30 = vector.shape_cast %29 : vector<1x16x7x5xbf16> to vector<16x7x5xbf16>
    %c1_27 = arith.constant 1 : index
    %c0_28 = arith.constant 0 : index
    %c1_29 = arith.constant 1 : index
    %c0_30 = arith.constant 0 : index
    %31 = vector.load %arg8[%c1_27, %c0_28, %c1_29, %c0_30] : memref<2x16x8x36xbf16, #tpu.memory_space<vmem>>, vector<1x16x7x5xbf16>
    %32 = vector.shape_cast %31 : vector<1x16x7x5xbf16> to vector<16x7x5xbf16>
    %33 = vector.shape_cast %30 : vector<16x7x5xbf16> to vector<1x16x7x5xbf16>
    tpu.vector_store %arg8[%c1_27, %c0_28, %c1_29, %c0_30], %33 {strides = array<i32>} : memref<2x16x8x36xbf16, #tpu.memory_space<vmem>>, vector<1x16x7x5xbf16>,
    %c0_31 = arith.constant 0 : index
    %34 = arith.index_cast %1 : i32 to index
    %c0_32 = arith.constant 0 : index
    %c0_33 = arith.constant 0 : index
    %35 = vector.load %arg3[%c0_31, %34, %c0_32, %c0_33] : memref<1x32x8x7xbf16, #tpu.memory_space<vmem>>, vector<1x16x7x7xbf16>
    %36 = vector.shape_cast %35 : vector<1x16x7x7xbf16> to vector<16x7x7xbf16>
    %c1_34 = arith.constant 1 : index
    %c0_35 = arith.constant 0 : index
    %c1_36 = arith.constant 1 : index
    %c5 = arith.constant 5 : index
    %37 = vector.load %arg8[%c1_34, %c0_35, %c1_36, %c5] : memref<2x16x8x36xbf16, #tpu.memory_space<vmem>>, vector<1x16x7x7xbf16>
    %38 = vector.shape_cast %37 : vector<1x16x7x7xbf16> to vector<16x7x7xbf16>
    %39 = vector.shape_cast %36 : vector<16x7x7xbf16> to vector<1x16x7x7xbf16>
    tpu.vector_store %arg8[%c1_34, %c0_35, %c1_36, %c5], %39 {strides = array<i32>} : memref<2x16x8x36xbf16, #tpu.memory_space<vmem>>, vector<1x16x7x7xbf16>,
    %c0_37 = arith.constant 0 : index
    %40 = arith.index_cast %1 : i32 to index
    %c0_38 = arith.constant 0 : index
    %c0_39 = arith.constant 0 : index
    %41 = vector.load %arg2[%c0_37, %40, %c0_38, %c0_39] : memref<1x32x8x5xbf16, #tpu.memory_space<vmem>>, vector<1x16x8x5xbf16>
    %42 = vector.shape_cast %41 : vector<1x16x8x5xbf16> to vector<16x8x5xbf16>
    %c1_40 = arith.constant 1 : index
    %c0_41 = arith.constant 0 : index
    %c0_42 = arith.constant 0 : index
    %c12 = arith.constant 12 : index
    %43 = vector.load %arg8[%c1_40, %c0_41, %c0_42, %c12] : memref<2x16x8x36xbf16, #tpu.memory_space<vmem>>, vector<1x16x8x5xbf16>
    %44 = vector.shape_cast %43 : vector<1x16x8x5xbf16> to vector<16x8x5xbf16>
    %45 = vector.shape_cast %42 : vector<16x8x5xbf16> to vector<1x16x8x5xbf16>
    tpu.vector_store %arg8[%c1_40, %c0_41, %c0_42, %c12], %45 {strides = array<i32>} : memref<2x16x8x36xbf16, #tpu.memory_space<vmem>>, vector<1x16x8x5xbf16>,
    %c0_43 = arith.constant 0 : index
    %46 = arith.index_cast %1 : i32 to index
    %c0_44 = arith.constant 0 : index
    %c0_45 = arith.constant 0 : index
    %47 = vector.load %arg3[%c0_43, %46, %c0_44, %c0_45] : memref<1x32x8x7xbf16, #tpu.memory_space<vmem>>, vector<1x16x8x7xbf16>
    %48 = vector.shape_cast %47 : vector<1x16x8x7xbf16> to vector<16x8x7xbf16>
    %c1_46 = arith.constant 1 : index
    %c0_47 = arith.constant 0 : index
    %c0_48 = arith.constant 0 : index
    %c17 = arith.constant 17 : index
    %49 = vector.load %arg8[%c1_46, %c0_47, %c0_48, %c17] : memref<2x16x8x36xbf16, #tpu.memory_space<vmem>>, vector<1x16x8x7xbf16>
    %50 = vector.shape_cast %49 : vector<1x16x8x7xbf16> to vector<16x8x7xbf16>
    %51 = vector.shape_cast %48 : vector<16x8x7xbf16> to vector<1x16x8x7xbf16>
    tpu.vector_store %arg8[%c1_46, %c0_47, %c0_48, %c17], %51 {strides = array<i32>} : memref<2x16x8x36xbf16, #tpu.memory_space<vmem>>, vector<1x16x8x7xbf16>,
    %c0_49 = arith.constant 0 : index
    %52 = arith.index_cast %1 : i32 to index
    %c1_50 = arith.constant 1 : index
    %c0_51 = arith.constant 0 : index
    %53 = vector.load %arg2[%c0_49, %52, %c1_50, %c0_51] : memref<1x32x8x5xbf16, #tpu.memory_space<vmem>>, vector<1x16x7x5xbf16>
    %54 = vector.shape_cast %53 : vector<1x16x7x5xbf16> to vector<16x7x5xbf16>
    %c1_52 = arith.constant 1 : index
    %c0_53 = arith.constant 0 : index
    %c0_54 = arith.constant 0 : index
    %c24_55 = arith.constant 24 : index
    %55 = vector.load %arg8[%c1_52, %c0_53, %c0_54, %c24_55] : memref<2x16x8x36xbf16, #tpu.memory_space<vmem>>, vector<1x16x7x5xbf16>
    %56 = vector.shape_cast %55 : vector<1x16x7x5xbf16> to vector<16x7x5xbf16>
    %57 = vector.shape_cast %54 : vector<16x7x5xbf16> to vector<1x16x7x5xbf16>
    tpu.vector_store %arg8[%c1_52, %c0_53, %c0_54, %c24_55], %57 {strides = array<i32>} : memref<2x16x8x36xbf16, #tpu.memory_space<vmem>>, vector<1x16x7x5xbf16>,
    %c0_56 = arith.constant 0 : index
    %58 = arith.index_cast %1 : i32 to index
    %c1_57 = arith.constant 1 : index
    %c0_58 = arith.constant 0 : index
    %59 = vector.load %arg3[%c0_56, %58, %c1_57, %c0_58] : memref<1x32x8x7xbf16, #tpu.memory_space<vmem>>, vector<1x16x7x7xbf16>
    %60 = vector.shape_cast %59 : vector<1x16x7x7xbf16> to vector<16x7x7xbf16>
    %c1_59 = arith.constant 1 : index
    %c0_60 = arith.constant 0 : index
    %c0_61 = arith.constant 0 : index
    %c29 = arith.constant 29 : index
    %61 = vector.load %arg8[%c1_59, %c0_60, %c0_61, %c29] : memref<2x16x8x36xbf16, #tpu.memory_space<vmem>>, vector<1x16x7x7xbf16>
    %62 = vector.shape_cast %61 : vector<1x16x7x7xbf16> to vector<16x7x7xbf16>
    %63 = vector.shape_cast %60 : vector<16x7x7xbf16> to vector<1x16x7x7xbf16>
    tpu.vector_store %arg8[%c1_59, %c0_60, %c0_61, %c29], %63 {strides = array<i32>} : memref<2x16x8x36xbf16, #tpu.memory_space<vmem>>, vector<1x16x7x7xbf16>,
    %c1_62 = arith.constant 1 : index
    %c0_63 = arith.constant 0 : index
    %c0_64 = arith.constant 0 : index
    %c0_65 = arith.constant 0 : index
    %64 = vector.load %arg8[%c1_62, %c0_63, %c0_64, %c0_65] : memref<2x16x8x36xbf16, #tpu.memory_space<vmem>>, vector<1x16x8x36xbf16>
    %65 = vector.shape_cast %64 : vector<1x16x8x36xbf16> to vector<16x8x36xbf16>
    %66 = vector.shape_cast %65 : vector<16x8x36xbf16> to vector<128x36xbf16>
    %c1_66 = arith.constant 1 : index
    %c0_67 = arith.constant 0 : index
    %c0_68 = arith.constant 0 : index
    %67 = vector.load %arg4[%c1_66, %c0_67, %c0_68] : memref<3x36x11xbf16, #tpu.memory_space<vmem>>, vector<1x36x11xbf16>
    %68 = vector.shape_cast %67 : vector<1x36x11xbf16> to vector<36x11xbf16>
    %cst_69 = arith.constant dense<0.000000e+00> : vector<128x11xf32>
    %69 = tpu.matmul %66, %68, %cst_69 {dimension_numbers = #tpu.dot_dimension_numbers<[1], [0], [0], [1], [0, 0, 1, 1], [], []>} : vector<128x36xbf16>, vector<36x11xbf16>, vector<128x11xf32> -> vector<128x11xf32>
    %70 = arith.addf %27, %69 : vector<128x11xf32>
    %c1_i32 = arith.constant 1 : i32
    %71 = arith.cmpi eq, %arg1, %c1_i32 : i32
    %72 = arith.extui %71 : i1 to i32
    %c0_i32_70 = arith.constant 0 : i32
    %73 = arith.cmpi ne, %72, %c0_i32_70 : i32
    scf.if %73 {
      %c0_94 = arith.constant 0 : index
      %c15 = arith.constant 15 : index
      %c0_95 = arith.constant 0 : index
      %c0_96 = arith.constant 0 : index
      %102 = vector.load %arg8[%c0_94, %c15, %c0_95, %c0_96] : memref<2x16x8x36xbf16, #tpu.memory_space<vmem>>, vector<1x1x8x36xbf16>
      %103 = vector.shape_cast %102 : vector<1x1x8x36xbf16> to vector<1x8x36xbf16>
      %104 = vector.shape_cast %15 : vector<1x8x36xbf16> to vector<1x1x8x36xbf16>
      tpu.vector_store %arg8[%c0_94, %c15, %c0_95, %c0_96], %104 {strides = array<i32>} : memref<2x16x8x36xbf16, #tpu.memory_space<vmem>>, vector<1x1x8x36xbf16>,
      %c1_i32_97 = arith.constant 1 : i32
      %105 = arith.addi %1, %c1_i32_97 : i32
      %c0_98 = arith.constant 0 : index
      %106 = arith.index_cast %105 : i32 to index
      %c0_99 = arith.constant 0 : index
      %c0_100 = arith.constant 0 : index
      %107 = vector.load %arg2[%c0_98, %106, %c0_99, %c0_100] : memref<1x32x8x5xbf16, #tpu.memory_space<vmem>>, vector<1x15x7x5xbf16>
      %108 = vector.shape_cast %107 : vector<1x15x7x5xbf16> to vector<15x7x5xbf16>
      %c0_101 = arith.constant 0 : index
      %c0_102 = arith.constant 0 : index
      %c1_103 = arith.constant 1 : index
      %c0_104 = arith.constant 0 : index
      %109 = vector.load %arg8[%c0_101, %c0_102, %c1_103, %c0_104] : memref<2x16x8x36xbf16, #tpu.memory_space<vmem>>, vector<1x15x7x5xbf16>
      %110 = vector.shape_cast %109 : vector<1x15x7x5xbf16> to vector<15x7x5xbf16>
      %111 = vector.shape_cast %108 : vector<15x7x5xbf16> to vector<1x15x7x5xbf16>
      tpu.vector_store %arg8[%c0_101, %c0_102, %c1_103, %c0_104], %111 {strides = array<i32>} : memref<2x16x8x36xbf16, #tpu.memory_space<vmem>>, vector<1x15x7x5xbf16>,
      %c0_105 = arith.constant 0 : index
      %112 = arith.index_cast %105 : i32 to index
      %c0_106 = arith.constant 0 : index
      %c0_107 = arith.constant 0 : index
      %113 = vector.load %arg3[%c0_105, %112, %c0_106, %c0_107] : memref<1x32x8x7xbf16, #tpu.memory_space<vmem>>, vector<1x15x7x7xbf16>
      %114 = vector.shape_cast %113 : vector<1x15x7x7xbf16> to vector<15x7x7xbf16>
      %c0_108 = arith.constant 0 : index
      %c0_109 = arith.constant 0 : index
      %c1_110 = arith.constant 1 : index
      %c5_111 = arith.constant 5 : index
      %115 = vector.load %arg8[%c0_108, %c0_109, %c1_110, %c5_111] : memref<2x16x8x36xbf16, #tpu.memory_space<vmem>>, vector<1x15x7x7xbf16>
      %116 = vector.shape_cast %115 : vector<1x15x7x7xbf16> to vector<15x7x7xbf16>
      %117 = vector.shape_cast %114 : vector<15x7x7xbf16> to vector<1x15x7x7xbf16>
      tpu.vector_store %arg8[%c0_108, %c0_109, %c1_110, %c5_111], %117 {strides = array<i32>} : memref<2x16x8x36xbf16, #tpu.memory_space<vmem>>, vector<1x15x7x7xbf16>,
      %c0_112 = arith.constant 0 : index
      %118 = arith.index_cast %105 : i32 to index
      %c0_113 = arith.constant 0 : index
      %c0_114 = arith.constant 0 : index
      %119 = vector.load %arg2[%c0_112, %118, %c0_113, %c0_114] : memref<1x32x8x5xbf16, #tpu.memory_space<vmem>>, vector<1x15x8x5xbf16>
      %120 = vector.shape_cast %119 : vector<1x15x8x5xbf16> to vector<15x8x5xbf16>
      %c0_115 = arith.constant 0 : index
      %c0_116 = arith.constant 0 : index
      %c0_117 = arith.constant 0 : index
      %c12_118 = arith.constant 12 : index
      %121 = vector.load %arg8[%c0_115, %c0_116, %c0_117, %c12_118] : memref<2x16x8x36xbf16, #tpu.memory_space<vmem>>, vector<1x15x8x5xbf16>
      %122 = vector.shape_cast %121 : vector<1x15x8x5xbf16> to vector<15x8x5xbf16>
      %123 = vector.shape_cast %120 : vector<15x8x5xbf16> to vector<1x15x8x5xbf16>
      tpu.vector_store %arg8[%c0_115, %c0_116, %c0_117, %c12_118], %123 {strides = array<i32>} : memref<2x16x8x36xbf16, #tpu.memory_space<vmem>>, vector<1x15x8x5xbf16>,
      %c0_119 = arith.constant 0 : index
      %124 = arith.index_cast %105 : i32 to index
      %c0_120 = arith.constant 0 : index
      %c0_121 = arith.constant 0 : index
      %125 = vector.load %arg3[%c0_119, %124, %c0_120, %c0_121] : memref<1x32x8x7xbf16, #tpu.memory_space<vmem>>, vector<1x15x8x7xbf16>
      %126 = vector.shape_cast %125 : vector<1x15x8x7xbf16> to vector<15x8x7xbf16>
      %c0_122 = arith.constant 0 : index
      %c0_123 = arith.constant 0 : index
      %c0_124 = arith.constant 0 : index
      %c17_125 = arith.constant 17 : index
      %127 = vector.load %arg8[%c0_122, %c0_123, %c0_124, %c17_125] : memref<2x16x8x36xbf16, #tpu.memory_space<vmem>>, vector<1x15x8x7xbf16>
      %128 = vector.shape_cast %127 : vector<1x15x8x7xbf16> to vector<15x8x7xbf16>
      %129 = vector.shape_cast %126 : vector<15x8x7xbf16> to vector<1x15x8x7xbf16>
      tpu.vector_store %arg8[%c0_122, %c0_123, %c0_124, %c17_125], %129 {strides = array<i32>} : memref<2x16x8x36xbf16, #tpu.memory_space<vmem>>, vector<1x15x8x7xbf16>,
      %c0_126 = arith.constant 0 : index
      %130 = arith.index_cast %105 : i32 to index
      %c1_127 = arith.constant 1 : index
      %c0_128 = arith.constant 0 : index
      %131 = vector.load %arg2[%c0_126, %130, %c1_127, %c0_128] : memref<1x32x8x5xbf16, #tpu.memory_space<vmem>>, vector<1x15x7x5xbf16>
      %132 = vector.shape_cast %131 : vector<1x15x7x5xbf16> to vector<15x7x5xbf16>
      %c0_129 = arith.constant 0 : index
      %c0_130 = arith.constant 0 : index
      %c0_131 = arith.constant 0 : index
      %c24_132 = arith.constant 24 : index
      %133 = vector.load %arg8[%c0_129, %c0_130, %c0_131, %c24_132] : memref<2x16x8x36xbf16, #tpu.memory_space<vmem>>, vector<1x15x7x5xbf16>
      %134 = vector.shape_cast %133 : vector<1x15x7x5xbf16> to vector<15x7x5xbf16>
      %135 = vector.shape_cast %132 : vector<15x7x5xbf16> to vector<1x15x7x5xbf16>
      tpu.vector_store %arg8[%c0_129, %c0_130, %c0_131, %c24_132], %135 {strides = array<i32>} : memref<2x16x8x36xbf16, #tpu.memory_space<vmem>>, vector<1x15x7x5xbf16>,
      %c0_133 = arith.constant 0 : index
      %136 = arith.index_cast %105 : i32 to index
      %c1_134 = arith.constant 1 : index
      %c0_135 = arith.constant 0 : index
      %137 = vector.load %arg3[%c0_133, %136, %c1_134, %c0_135] : memref<1x32x8x7xbf16, #tpu.memory_space<vmem>>, vector<1x15x7x7xbf16>
      %138 = vector.shape_cast %137 : vector<1x15x7x7xbf16> to vector<15x7x7xbf16>
      %c0_136 = arith.constant 0 : index
      %c0_137 = arith.constant 0 : index
      %c0_138 = arith.constant 0 : index
      %c29_139 = arith.constant 29 : index
      %139 = vector.load %arg8[%c0_136, %c0_137, %c0_138, %c29_139] : memref<2x16x8x36xbf16, #tpu.memory_space<vmem>>, vector<1x15x7x7xbf16>
      %140 = vector.shape_cast %139 : vector<1x15x7x7xbf16> to vector<15x7x7xbf16>
      %141 = vector.shape_cast %138 : vector<15x7x7xbf16> to vector<1x15x7x7xbf16>
      tpu.vector_store %arg8[%c0_136, %c0_137, %c0_138, %c29_139], %141 {strides = array<i32>} : memref<2x16x8x36xbf16, #tpu.memory_space<vmem>>, vector<1x15x7x7xbf16>,
    } else {
    }
    %c1_i32_71 = arith.constant 1 : i32
    %74 = arith.cmpi slt, %arg1, %c1_i32_71 : i32
    %75 = arith.extui %74 : i1 to i32
    %c0_i32_72 = arith.constant 0 : i32
    %76 = arith.cmpi ne, %75, %c0_i32_72 : i32
    scf.if %76 {
      %c1_i32_94 = arith.constant 1 : i32
      %102 = arith.addi %1, %c1_i32_94 : i32
      %c0_95 = arith.constant 0 : index
      %103 = arith.index_cast %102 : i32 to index
      %c0_96 = arith.constant 0 : index
      %c0_97 = arith.constant 0 : index
      %104 = vector.load %arg2[%c0_95, %103, %c0_96, %c0_97] : memref<1x32x8x5xbf16, #tpu.memory_space<vmem>>, vector<1x16x7x5xbf16>
      %105 = vector.shape_cast %104 : vector<1x16x7x5xbf16> to vector<16x7x5xbf16>
      %c0_98 = arith.constant 0 : index
      %c0_99 = arith.constant 0 : index
      %c1_100 = arith.constant 1 : index
      %c0_101 = arith.constant 0 : index
      %106 = vector.load %arg8[%c0_98, %c0_99, %c1_100, %c0_101] : memref<2x16x8x36xbf16, #tpu.memory_space<vmem>>, vector<1x16x7x5xbf16>
      %107 = vector.shape_cast %106 : vector<1x16x7x5xbf16> to vector<16x7x5xbf16>
      %108 = vector.shape_cast %105 : vector<16x7x5xbf16> to vector<1x16x7x5xbf16>
      tpu.vector_store %arg8[%c0_98, %c0_99, %c1_100, %c0_101], %108 {strides = array<i32>} : memref<2x16x8x36xbf16, #tpu.memory_space<vmem>>, vector<1x16x7x5xbf16>,
      %c0_102 = arith.constant 0 : index
      %109 = arith.index_cast %102 : i32 to index
      %c0_103 = arith.constant 0 : index
      %c0_104 = arith.constant 0 : index
      %110 = vector.load %arg3[%c0_102, %109, %c0_103, %c0_104] : memref<1x32x8x7xbf16, #tpu.memory_space<vmem>>, vector<1x16x7x7xbf16>
      %111 = vector.shape_cast %110 : vector<1x16x7x7xbf16> to vector<16x7x7xbf16>
      %c0_105 = arith.constant 0 : index
      %c0_106 = arith.constant 0 : index
      %c1_107 = arith.constant 1 : index
      %c5_108 = arith.constant 5 : index
      %112 = vector.load %arg8[%c0_105, %c0_106, %c1_107, %c5_108] : memref<2x16x8x36xbf16, #tpu.memory_space<vmem>>, vector<1x16x7x7xbf16>
      %113 = vector.shape_cast %112 : vector<1x16x7x7xbf16> to vector<16x7x7xbf16>
      %114 = vector.shape_cast %111 : vector<16x7x7xbf16> to vector<1x16x7x7xbf16>
      tpu.vector_store %arg8[%c0_105, %c0_106, %c1_107, %c5_108], %114 {strides = array<i32>} : memref<2x16x8x36xbf16, #tpu.memory_space<vmem>>, vector<1x16x7x7xbf16>,
      %c0_109 = arith.constant 0 : index
      %115 = arith.index_cast %102 : i32 to index
      %c0_110 = arith.constant 0 : index
      %c0_111 = arith.constant 0 : index
      %116 = vector.load %arg2[%c0_109, %115, %c0_110, %c0_111] : memref<1x32x8x5xbf16, #tpu.memory_space<vmem>>, vector<1x16x8x5xbf16>
      %117 = vector.shape_cast %116 : vector<1x16x8x5xbf16> to vector<16x8x5xbf16>
      %c0_112 = arith.constant 0 : index
      %c0_113 = arith.constant 0 : index
      %c0_114 = arith.constant 0 : index
      %c12_115 = arith.constant 12 : index
      %118 = vector.load %arg8[%c0_112, %c0_113, %c0_114, %c12_115] : memref<2x16x8x36xbf16, #tpu.memory_space<vmem>>, vector<1x16x8x5xbf16>
      %119 = vector.shape_cast %118 : vector<1x16x8x5xbf16> to vector<16x8x5xbf16>
      %120 = vector.shape_cast %117 : vector<16x8x5xbf16> to vector<1x16x8x5xbf16>
      tpu.vector_store %arg8[%c0_112, %c0_113, %c0_114, %c12_115], %120 {strides = array<i32>} : memref<2x16x8x36xbf16, #tpu.memory_space<vmem>>, vector<1x16x8x5xbf16>,
      %c0_116 = arith.constant 0 : index
      %121 = arith.index_cast %102 : i32 to index
      %c0_117 = arith.constant 0 : index
      %c0_118 = arith.constant 0 : index
      %122 = vector.load %arg3[%c0_116, %121, %c0_117, %c0_118] : memref<1x32x8x7xbf16, #tpu.memory_space<vmem>>, vector<1x16x8x7xbf16>
      %123 = vector.shape_cast %122 : vector<1x16x8x7xbf16> to vector<16x8x7xbf16>
      %c0_119 = arith.constant 0 : index
      %c0_120 = arith.constant 0 : index
      %c0_121 = arith.constant 0 : index
      %c17_122 = arith.constant 17 : index
      %124 = vector.load %arg8[%c0_119, %c0_120, %c0_121, %c17_122] : memref<2x16x8x36xbf16, #tpu.memory_space<vmem>>, vector<1x16x8x7xbf16>
      %125 = vector.shape_cast %124 : vector<1x16x8x7xbf16> to vector<16x8x7xbf16>
      %126 = vector.shape_cast %123 : vector<16x8x7xbf16> to vector<1x16x8x7xbf16>
      tpu.vector_store %arg8[%c0_119, %c0_120, %c0_121, %c17_122], %126 {strides = array<i32>} : memref<2x16x8x36xbf16, #tpu.memory_space<vmem>>, vector<1x16x8x7xbf16>,
      %c0_123 = arith.constant 0 : index
      %127 = arith.index_cast %102 : i32 to index
      %c1_124 = arith.constant 1 : index
      %c0_125 = arith.constant 0 : index
      %128 = vector.load %arg2[%c0_123, %127, %c1_124, %c0_125] : memref<1x32x8x5xbf16, #tpu.memory_space<vmem>>, vector<1x16x7x5xbf16>
      %129 = vector.shape_cast %128 : vector<1x16x7x5xbf16> to vector<16x7x5xbf16>
      %c0_126 = arith.constant 0 : index
      %c0_127 = arith.constant 0 : index
      %c0_128 = arith.constant 0 : index
      %c24_129 = arith.constant 24 : index
      %130 = vector.load %arg8[%c0_126, %c0_127, %c0_128, %c24_129] : memref<2x16x8x36xbf16, #tpu.memory_space<vmem>>, vector<1x16x7x5xbf16>
      %131 = vector.shape_cast %130 : vector<1x16x7x5xbf16> to vector<16x7x5xbf16>
      %132 = vector.shape_cast %129 : vector<16x7x5xbf16> to vector<1x16x7x5xbf16>
      tpu.vector_store %arg8[%c0_126, %c0_127, %c0_128, %c24_129], %132 {strides = array<i32>} : memref<2x16x8x36xbf16, #tpu.memory_space<vmem>>, vector<1x16x7x5xbf16>,
      %c0_130 = arith.constant 0 : index
      %133 = arith.index_cast %102 : i32 to index
      %c1_131 = arith.constant 1 : index
      %c0_132 = arith.constant 0 : index
      %134 = vector.load %arg3[%c0_130, %133, %c1_131, %c0_132] : memref<1x32x8x7xbf16, #tpu.memory_space<vmem>>, vector<1x16x7x7xbf16>
      %135 = vector.shape_cast %134 : vector<1x16x7x7xbf16> to vector<16x7x7xbf16>
      %c0_133 = arith.constant 0 : index
      %c0_134 = arith.constant 0 : index
      %c0_135 = arith.constant 0 : index
      %c29_136 = arith.constant 29 : index
      %136 = vector.load %arg8[%c0_133, %c0_134, %c0_135, %c29_136] : memref<2x16x8x36xbf16, #tpu.memory_space<vmem>>, vector<1x16x7x7xbf16>
      %137 = vector.shape_cast %136 : vector<1x16x7x7xbf16> to vector<16x7x7xbf16>
      %138 = vector.shape_cast %135 : vector<16x7x7xbf16> to vector<1x16x7x7xbf16>
      tpu.vector_store %arg8[%c0_133, %c0_134, %c0_135, %c29_136], %138 {strides = array<i32>} : memref<2x16x8x36xbf16, #tpu.memory_space<vmem>>, vector<1x16x7x7xbf16>,
    } else {
    }
    %c0_73 = arith.constant 0 : index
    %c0_74 = arith.constant 0 : index
    %c0_75 = arith.constant 0 : index
    %c0_76 = arith.constant 0 : index
    %77 = vector.load %arg8[%c0_73, %c0_74, %c0_75, %c0_76] : memref<2x16x8x36xbf16, #tpu.memory_space<vmem>>, vector<1x16x8x36xbf16>
    %78 = vector.shape_cast %77 : vector<1x16x8x36xbf16> to vector<16x8x36xbf16>
    %79 = vector.shape_cast %78 : vector<16x8x36xbf16> to vector<128x36xbf16>
    %c2 = arith.constant 2 : index
    %c0_77 = arith.constant 0 : index
    %c0_78 = arith.constant 0 : index
    %80 = vector.load %arg4[%c2, %c0_77, %c0_78] : memref<3x36x11xbf16, #tpu.memory_space<vmem>>, vector<1x36x11xbf16>
    %81 = vector.shape_cast %80 : vector<1x36x11xbf16> to vector<36x11xbf16>
    %cst_79 = arith.constant dense<0.000000e+00> : vector<128x11xf32>
    %82 = tpu.matmul %79, %81, %cst_79 {dimension_numbers = #tpu.dot_dimension_numbers<[1], [0], [0], [1], [0, 0, 1, 1], [], []>} : vector<128x36xbf16>, vector<36x11xbf16>, vector<128x11xf32> -> vector<128x11xf32>
    %83 = arith.addf %70, %82 : vector<128x11xf32>
    %c0_80 = arith.constant 0 : index
    %c0_81 = arith.constant 0 : index
    %84 = vector.load %arg5[%c0_80, %c0_81] : memref<1x11xf32, #tpu.memory_space<vmem>>, vector<1x11xf32>
    %85 = vector.broadcast %84 : vector<1x11xf32> to vector<128x11xf32>
    %86 = arith.addf %83, %85 : vector<128x11xf32>
    %cst_82 = arith.constant 0.000000e+00 : f32
    %87 = vector.broadcast %cst_82 : f32 to vector<128x11xf32>
    %88 = arith.cmpf ogt, %86, %87 : vector<128x11xf32>
    %cst_83 = arith.constant 2.000000e-01 : f32
    %89 = vector.broadcast %cst_83 : f32 to vector<128x11xf32>
    %90 = arith.mulf %89, %86 : vector<128x11xf32>
    %91 = arith.select %88, %86, %90 : vector<128x11xi1>, vector<128x11xf32>
    %cst_84 = arith.constant 3.000000e-01 : f32
    %92 = vector.broadcast %cst_84 : f32 to vector<128x11xf32>
    %93 = arith.mulf %91, %92 : vector<128x11xf32>
    %c0_85 = arith.constant 0 : index
    %c0_86 = arith.constant 0 : index
    %c0_87 = arith.constant 0 : index
    %c0_88 = arith.constant 0 : index
    %94 = vector.load %arg6[%c0_85, %c0_86, %c0_87, %c0_88] : memref<1x16x8x11xbf16, #tpu.memory_space<vmem>>, vector<1x16x8x11xbf16>
    %95 = vector.shape_cast %94 : vector<1x16x8x11xbf16> to vector<128x11xbf16>
    %96 = arith.extf %95 : vector<128x11xbf16> to vector<128x11xf32>
    %cst_89 = arith.constant 0.699999988 : f32
    %97 = vector.broadcast %cst_89 : f32 to vector<128x11xf32>
    %98 = arith.mulf %96, %97 : vector<128x11xf32>
    %99 = arith.addf %93, %98 : vector<128x11xf32>
    %100 = vector.shape_cast %99 : vector<128x11xf32> to vector<1x16x8x11xf32>
    %c0_90 = arith.constant 0 : index
    %c0_91 = arith.constant 0 : index
    %c0_92 = arith.constant 0 : index
    %c0_93 = arith.constant 0 : index
    %101 = vector.load %arg7[%c0_90, %c0_91, %c0_92, %c0_93] : memref<1x16x8x11xf32, #tpu.memory_space<vmem>>, vector<1x16x8x11xf32>
    tpu.vector_store %arg7[%c0_90, %c0_91, %c0_92, %c0_93], %100 {strides = array<i32>} : memref<1x16x8x11xf32, #tpu.memory_space<vmem>>, vector<1x16x8x11xf32>,
    return
  }
  func.func @transform_0(%arg0: i32, %arg1: i32) -> (i32, i32, i32, i32) {
    %c0_i32 = arith.constant 0 : i32
    %c0_i32_0 = arith.constant 0 : i32
    %c0_i32_1 = arith.constant 0 : i32
    %c0_i32_2 = arith.constant 0 : i32
    return %arg0, %c0_i32, %c0_i32_0, %c0_i32_1 : i32, i32, i32, i32
  }
  func.func @transform_1(%arg0: i32, %arg1: i32) -> (i32, i32, i32, i32) {
    %c0_i32 = arith.constant 0 : i32
    %c0_i32_0 = arith.constant 0 : i32
    %c0_i32_1 = arith.constant 0 : i32
    %c0_i32_2 = arith.constant 0 : i32
    return %arg0, %c0_i32, %c0_i32_0, %c0_i32_1 : i32, i32, i32, i32
  }
  func.func @transform_2(%arg0: i32, %arg1: i32) -> (i32, i32, i32) {
    %c0_i32 = arith.constant 0 : i32
    %c0_i32_0 = arith.constant 0 : i32
    %c0_i32_1 = arith.constant 0 : i32
    %c0_i32_2 = arith.constant 0 : i32
    return %c0_i32, %c0_i32_0, %c0_i32_1 : i32, i32, i32
  }
  func.func @transform_3(%arg0: i32, %arg1: i32) -> (i32, i32) {
    %c0_i32 = arith.constant 0 : i32
    %c0_i32_0 = arith.constant 0 : i32
    %c0_i32_1 = arith.constant 0 : i32
    return %c0_i32, %c0_i32_0 : i32, i32
  }
  func.func @transform_4(%arg0: i32, %arg1: i32) -> (i32, i32, i32, i32) {
    %c0_i32 = arith.constant 0 : i32
    %c0_i32_0 = arith.constant 0 : i32
    %c0_i32_1 = arith.constant 0 : i32
    return %arg0, %arg1, %c0_i32, %c0_i32_0 : i32, i32, i32, i32
  }
  func.func @transform_5(%arg0: i32, %arg1: i32) -> (i32, i32, i32, i32) {
    %c0_i32 = arith.constant 0 : i32
    %c0_i32_0 = arith.constant 0 : i32
    %c0_i32_1 = arith.constant 0 : i32
    return %arg0, %arg1, %c0_i32, %c0_i32_0 : i32, i32, i32, i32
  }
}

</mosaic_0001>

<bundles_post_ra>
// kernel: tpu_custom_call.1
= control target key start
LH: loop header
LB: loop body
LE: loop exit
PB: predicated region body
PF: predicated region fallthrough
CT: control target
= control target key end

     0   :  { %6 = vsyncpa [#allocation3], 0  ;;  %s594_s0 = inlined_call_operand.hbm [shape: f32[2,8,128], index: 0, kind: input, shape index: {}]   ;;  %s595_s1 = inlined_call_operand.hbm [shape: f32[2,8,128], index: 1, kind: output, shape index: {}]  }
   0x1   :  { %7 = vsyncpa [#allocation4], 0 }
   0x2   :  { %9 = vsyncpa [#allocation4 + $0x1], 0  ;;  %s427_s6 = smov 0   ;;  %s429_s7 = smov 0  }
   0x3   :  { %s431_s8 = smov 0   ;;  %s433_s9 = smov 0  }
   0x4   :  { %s435_s10 = smov 0   ;;  %s437_s11 = smov 0  }
   0x5   :  { %s439_s12 = smov 0  }
   0x6 LB: > { %s213_s13 = sadd.s32 4294967295, %s413_s12   ;;  %s214_s14 = sadd.s32 4294967294, %s413_s12   ;;  %s413_s12 = sphi %s439_s12, %s15_s12   ;;  %s409_s11 = sphi %s437_s11, %s614_s11   ;;  %s405_s10 = sphi %s435_s10, %s613_s10   ;;  %s401_s9 = sphi %s433_s9, %s612_s9   ;;  %s397_s8 = sphi %s431_s8, %s611_s8   ;;  %s393_s7 = sphi %s429_s7, %s610_s7   ;;  %s389_s6 = sphi %s427_s6, %s609_s6  }
   0x7   : > { %s24_s15 = sadd.s32 1, %s405_s10  ;;  %s27_s16 = sadd.s32 1, %s409_s11 }
   0x8   : > { %p25_p0 = scmp.ge.s32.totalorder %s24_s15, 2  ;;  %s34_s17 = sadd.s32 1, %s397_s8 }
   0x9   : > { %p47_p1 = scmp.ne.s32.totalorder %s393_s7, %s389_s6  ;;  %p48_p2 = scmp.eq.s32.totalorder %s213_s13, 0 }
   0xa   : > { %s616_s15 = smov (%p25_p0, %s24_s15), 0  ;;  %s618_s16 = smov (!%p25_p0, %s27_s16), %s409_s11 }
   0xb   : > { %p70_p3 = scmp.ne.s32.totalorder %s397_s8, %s393_s7  ;;  %p29_p4 = scmp.ge.s32.totalorder %s618_s16, 2 }
   0xc   : > { %p71_p5 = scmp.eq.s32.totalorder %s213_s13, 3  ;;  %p77_p6 = scmp.eq.s32.totalorder %s214_s14, 3 }
   0xd   : > { %p215_p7 = scmp.ge.s32.totalorder %s413_s12, 1  ;;  %s620_s16 = smov (%p29_p4, %s618_s16), 0 }
   0xe   : > { %p474_p8 = por %p71_p5, %p70_p3  ;;  %p481_p9 = por %p77_p6, %p47_p1 }
   0xf   : > { %s31_s20 = ssub.s32 %s409_s11, %s620_s16  ;;  %p84_p10 = scmp.lt.s32.totalorder %s413_s12, 5 }
  0x10   : > { %s600_s18 = scalar_select %p474_p8, 1, 0 }
  0x11   : > { %s601_s19 = scalar_select %p481_p9, 1, 0 }
  0x12   : > { %p32_p11 = scmp.eq.s32.totalorder %s31_s20, 0  ;;  %p491_p12 = por %p48_p2, %p47_p1 }
  0x13   : > { %p495_p13 = pnand %p215_p7, %p84_p10  ;;  %s216_s23 = sshll.u32 %s401_s9, 7 }
  0x14   : > { %s602_s21 = scalar_select %p491_p12, 1, 0 }
  0x15   : > { %s603_s22 = scalar_select %p495_p13, 1, 0 }
  0x16   : > { %s501_s24 = scalar_select %p32_p11, %s397_s8, %s34_s17  }
  0x17   : > { %p227_p0 = pneg %p495_p13  ;;  %s97_s27 = scalar_lea.hbm %s594_s0, %s216_s23 }
  0x18   : > { %s415_s28 = smov [#allocation2]   ;;  %s293_s2 = scalar_lea.hbm %s97_s27, 128 }
  0x19   : > { %s99_s29 = sshll.u32 %s415_s28, 4  ;;  %p512_p1 = pnand %p227_p0, %p491_p12  ;;  %s100_s29 = int_to_ptr.vmem [resolvable:$true] %s99_s29 }
  0x1a   : > { %p294_p2 = scmp.ne.s32.totalorder %s97_s27, %s293_s2  ;;  %s298_s5 = scalar_lea.hbm %s594_s0, 256 }
  0x1b   : > { %p295_p3 = pneg %p512_p1  ;;  %p299_p6 = scmp.lt.u32.totalorder %s97_s27, %s594_s0 }
  0x1c   : > { %p300_p7 = scmp.lt.u32.totalorder %s298_s5, %s293_s2  ;;  %p302_p11 = scmp.lt.u32.totalorder %s293_s2, %s97_s27 }
  0x1d   : > { %p296_p4 = pnand %p295_p3, %p294_p2 }
  0x1e   : > { %p301_p10 = por %p300_p7, %p299_p6 }
  0x1f   : > { %p297_p5 = pneg %p296_p4 }
  0x20   : > { %p303_p0 = por %p302_p11, %p301_p10 }
  0x22   : > { %p304_p9 = pnand %p303_p0, %p297_p5 }
  0x24   : > { %307 = shalt.err (!%p304_p9)
}
  0x25   : > { %s308_s14 = scalar_lea.vmem %s100_s29, 128  ;;  %p316_p12 = scmp.lt.s32.totalorder %s100_s29, %s100_s29 }
  0x26   : > { %p309_p8 = scmp.ne.s32.totalorder %s100_s29, %s308_s14  ;;  %p317_p13 = scmp.lt.s32.totalorder %s308_s14, %s308_s14 }
  0x28   : > { %p311_p2 = pnand %p309_p8, %p295_p3  ;;  %p318_p6 = por %p317_p13, %p316_p12 }
  0x2a   : > { %p312_p4 = pneg %p311_p2 }
  0x2c   : > { %p319_p7 = pnand %p318_p6, %p312_p4 }
  0x2e   : > { %322 = shalt.err (!%p319_p7)
}
  0x2f   : > { %230 = dma.hbm_to_vmem [thread:$0]  (!%p512_p1), %s97_s27, 128, %s100_s29, [#allocation3]  }
  0x30   : > { %p605_p10 = scmp.ne.s32.totalorder %s603_s22, 0 }
  0x31   : > { %p606_p9 = scmp.ne.s32.totalorder (!%p605_p10), %s602_s21, 0 }
  0x32   : > { %112 = sbr.rel (%p605_p10) target bundleno = 84 (0x54), region = 24 }
  0x39   : > { %380 = dma.done.wait (%p606_p9), [#allocation3], 128  }
  0x3a   : > { %382 = vsyncadd (%p606_p9), [#allocation3], 4294967168  ;;  %s124_s17 = sand.u32 1, %s393_s7   ;;  %v127_v0 = vld [vmem:[#allocation2] sm:$0xff]  ;;  %s544_s22 = scalar_lea.hbm %s595_s1, %s216_s23 }
  0x3b   : > { %s218_s20 = sshll.u32 %s124_s17, 3  ;;  %v128_v1 = vadd.f32 1.0, %v127_v0  ;;  %s131_s21 = scalar_lea.sflag [#allocation4], %s124_s17 }
  0x3c   : > { %s126_s25 = scalar_lea.vmem [#allocation5], %s218_s20  ;;  %p607_p12 = scmp.ne.s32.totalorder %s600_s18, 0 }
  0x3d   : > { %s144_s26 = sshll.u32 %s126_s25, 4  ;;  %129 = vst [vmem:[%s126_s25] sm:$0xff] %v128_v1  ;;  %s416_s30 = smov [#allocation5]   ;;  %s546_s26 = int_to_ptr.vmem [resolvable:$true] %s144_s26 }
  0x3e   : > { %s323_s29 = scalar_lea.vmem %s546_s26, 128  ;;  %s327_s9 = sshll.u32 %s416_s30, 4  ;;  %s328_s9 = int_to_ptr.vmem [resolvable:$false] %s327_s9 }
  0x3f   : > { %p324_p8 = scmp.ne.s32.totalorder %s546_s26, %s323_s29  ;;  %s329_s2 = scalar_lea.vmem %s328_s9, 256 }
  0x40   : > { %p330_p3 = scmp.lt.s32.totalorder %s546_s26, %s328_s9  ;;  %p331_p5 = scmp.lt.s32.totalorder %s329_s2, %s323_s29 }
  0x41   : > { %p325_p13 = pnand %p324_p8, %p607_p12 }
  0x42   : > { %p332_p11 = por %p331_p5, %p330_p3 }
  0x43   : > { %p326_p1 = pneg %p325_p13 }
  0x45   : > { %p333_p0 = pnand %p332_p11, %p326_p1 }
  0x47   : > { %336 = shalt.err (!%p333_p0)
}
  0x48   : > { %s337_s23 = scalar_lea.hbm %s544_s22, 128  ;;  %s341_s5 = scalar_lea.hbm %s595_s1, 256 }
  0x49   : > { %p338_p2 = scmp.ne.s32.totalorder %s544_s22, %s337_s23  ;;  %p342_p7 = scmp.lt.u32.totalorder %s544_s22, %s595_s1 }
  0x4a   : > { %p343_p10 = scmp.lt.u32.totalorder %s341_s5, %s337_s23  ;;  %p345_p8 = scmp.lt.u32.totalorder %s337_s23, %s544_s22 }
  0x4b   : > { %p339_p4 = pnand %p338_p2, %p607_p12 }
  0x4c   : > { %p344_p9 = por %p343_p10, %p342_p7 }
  0x4d   : > { %p340_p6 = pneg %p339_p4 }
  0x4e   : > { %p346_p13 = por %p345_p8, %p344_p9 }
  0x50   : > { %p347_p1 = pnand %p346_p13, %p340_p6 }
  0x52   : > { %350 = shalt.err (!%p347_p1)
}
  0x53   : > { %225 = dma.vmem_to_hbm [thread:$0]  (%p607_p12), %s546_s26, 128, %s544_s22, %s131_s21  }
  0x54 PF: > { %p235_p3 = scmp.ge.s32.totalorder %s413_s12, 2  ;;  %s156_s14 = sand.u32 1, %s389_s6  }
  0x55   : > { %p608_p5 = scmp.ne.s32.totalorder %s601_s19, 0  ;;  %s157_s17 = scalar_lea.sflag [#allocation4], %s156_s14 }
  0x57   : > { %p232_p11 = pnand %p235_p3, %p608_p5 }
  0x59   : > { %384 = dma.done.wait (!%p232_p11), %s157_s17, 128  }
  0x5a   : > { %386 = vsyncadd (!%p232_p11), %s157_s17, 4294967168  ;;  %s15_s12 = sadd.s32 1, %s413_s12   ;;  %s609_s6 = smov %s393_s7 }
  0x5b   : > { %p12_p0 = scmp.ge.s32.totalorder %s15_s12, 6   ;;  %s610_s7 = smov %s397_s8 }
  0x5c   : > { %s611_s8 = smov %s501_s24  ;;  %s612_s9 = smov %s409_s11 }
  0x5d   : > { %s613_s10 = smov %s616_s15  ;;  %s614_s11 = smov %s620_s16 }
  0x5e   :  { %14 = sbr.rel (!%p12_p0) target bundleno = 6 (0x6), region = 62 }
  0x65   :  { %162 = vsyncpa [#allocation3], 1 }
  0x66   :  { %164 = vsyncpa [#allocation3 + $0x1], 1 }
  0x67   :  { %165 = vsyncpa [#allocation4], 1 }
  0x68   :  { %167 = vsyncpa [#allocation4 + $0x1], 1 }

// kernel: tpu_custom_call.1
= control target key start
LH: loop header
LB: loop body
LE: loop exit
PB: predicated region body
PF: predicated region fallthrough
CT: control target
= control target key end

     0   :  { %s7607_s18 = smov 0   ;;  %s7609_s19 = smov 0   ;;  %s9972_s0 = inlined_call_operand.vmem [shape: bf16[1,32,8,5], index: 0, kind: input, shape index: {}]   ;;  %s9973_s1 = inlined_call_operand.vmem [shape: bf16[1,32,8,7], index: 1, kind: input, shape index: {}]   ;;  %s9974_s2 = inlined_call_operand.vmem [shape: bf16[3,36,11], index: 2, kind: input, shape index: {}]   ;;  %s9975_s3 = inlined_call_operand.vmem [shape: f32[1,11], index: 3, kind: input, shape index: {}]   ;;  %s9976_s4 = inlined_call_operand.vmem [shape: bf16[1,32,8,11], index: 4, kind: input, shape index: {}]   ;;  %s9977_s5 = inlined_call_operand.vmem [shape: f32[1,32,8,11], index: 5, kind: output, shape index: {}]  }
   0x1   :  { %s7611_s20 = smov 0  }
   0x2 LB: > { %s24_s21 = sadd.s32 1, %s7544_s19  ;;  %p6977_p0 = scmp.ge.s32.totalorder %s7548_s20, 1  ;;  %s7548_s20 = sphi %s7611_s20, %s15_s20   ;;  %s7544_s19 = sphi %s7609_s19, %s10007_s19   ;;  %s7540_s18 = sphi %s7607_s18, %s10006_s18  }
   0x3   : > { %p25_p1 = scmp.ge.s32.totalorder %s24_s21, 2  ;;  %p228_p2 = scmp.lt.s32.totalorder %s7548_s20, 3 }
   0x5   : > { %s10009_s21 = smov (%p25_p1, %s24_s21), 0  ;;  %p229_p3 = pnand %p6977_p0, %p228_p2 }
   0x6   : > { %s7628_s22 = sshll.u32 (!%p229_p3), %s7540_s18, 4  ;;  %vm306_vm0 = vcmask (!%p229_p3), 90112   ;;  %vm307_vm1 = vsmask.f32 (!%p229_p3), 256  ;;  %v309_v0 = vld [vmem:[#allocation2] sm:$0x1] (!%p229_p3) }
   0x7   : > { %232 = sbr.rel (%p229_p3) target bundleno = 1719 (0x6b7), region = 40  ;;  %p287_p4 = scmp.lt.s32.totalorder (!%p229_p3), %s7628_s22, 31  ;;  %vm7631_vm2 = vmand (!%p229_p3), %vm306_vm0, %vm307_vm1  ;;  %v312_v2 = vld [vmem:[#allocation2 + $0x4] sm:$0x1] (!%p229_p3)  ;;  %v315_v3 = vld [vmem:[#allocation2 + $0x8] sm:$0x1] (!%p229_p3) }
   0x8   : > { %v310_v4 = vsel (!%p229_p3), %vm7631_vm2, 0, %v309_v0  ;;  %v313_v5 = vsel (!%p229_p3), %vm7631_vm2, 0, %v312_v2  ;;  %v316_v6 = vsel (!%p229_p3), %vm7631_vm2, 0, %v315_v3  ;;  %v318_v7 = vld [vmem:[#allocation2 + $0xc] sm:$0x1] (!%p229_p3)  ;;  %vm357_vm3 = vcmask (!%p229_p3), 289987  }
   0x9   : > { %311 = vst [vmem:[#allocation2] sm:$0x1] (!%p229_p3), %v310_v4  ;;  %314 = vst [vmem:[#allocation2 + $0x4] sm:$0x1] (!%p229_p3), %v313_v5  ;;  %v319_v8 = vsel (!%p229_p3), %vm7631_vm2, 0, %v318_v7  ;;  %p6983_p5 = scmp.ne.s32.totalorder (!%p229_p3), %s7540_s18, 0 }
   0xa   : > { %317 = vst [vmem:[#allocation2 + $0x8] sm:$0x1] (!%p229_p3), %v316_v6  ;;  %v321_v9 = vld [vmem:[#allocation2 + $0x10] sm:$0x1] (!%p229_p3)  ;;  %v324_v10 = vld [vmem:[#allocation2 + $0x14] sm:$0x1] (!%p229_p3) }
   0xb   : > { %320 = vst [vmem:[#allocation2 + $0xc] sm:$0x1] (!%p229_p3), %v319_v8  ;;  %v322_v11 = vsel (!%p229_p3), %vm7631_vm2, 0, %v321_v9  ;;  %v325_v12 = vsel (!%p229_p3), %vm7631_vm2, 0, %v324_v10  ;;  %v327_v13 = vld [vmem:[#allocation2 + $0x18] sm:$0x1] (!%p229_p3) }
   0xc   : > { %v330_v14 = vld [vmem:[#allocation2 + $0x1c] sm:$0x1] (!%p229_p3)  ;;  %323 = vst [vmem:[#allocation2 + $0x10] sm:$0x1] (!%p229_p3), %v322_v11  ;;  %326 = vst [vmem:[#allocation2 + $0x14] sm:$0x1] (!%p229_p3), %v325_v12 }
   0xd   : > { %v328_v15 = vsel (!%p229_p3), %vm7631_vm2, 0, %v327_v13  ;;  %v331_v16 = vsel (!%p229_p3), %vm7631_vm2, 0, %v330_v14  ;;  %v333_v17 = vld [vmem:[#allocation2 + $0x20] sm:$0x1] (!%p229_p3)  ;;  %v336_v19 = vld [vmem:[#allocation2 + $0x24] sm:$0x1] (!%p229_p3) }
   0xe   : > { %s288_s23 = scalar_select %p287_p4, %s7628_s22, 31  ;;  %329 = vst [vmem:[#allocation2 + $0x18] sm:$0x1] %v328_v15  ;;  %332 = vst [vmem:[#allocation2 + $0x1c] sm:$0x1] %v331_v16  ;;  %v334_v18 = vsel %vm7631_vm2, 0, %v333_v17 }
   0xf   : > { %v339_v20 = vld [vmem:[#allocation2 + $0x28] sm:$0x1]  ;;  %335 = vst [vmem:[#allocation2 + $0x20] sm:$0x1] %v334_v18  ;;  %v337_v21 = vsel %vm7631_vm2, 0, %v336_v19  ;;  %s7550_s29 = smov (!%p6983_p5), 5  }
  0x10   : > { %s6979_s24 = sshll.u32 %s288_s23, 2  ;;  %s6981_s25 = sshll.u32 %s288_s23, 3  ;;  %v340_v22 = vsel %vm7631_vm2, 0, %v339_v20  ;;  %v342_v23 = vld [vmem:[#allocation2 + $0x2c] sm:$0x1]  ;;  %vm647_vm6 = vcmask (!%p6983_p5), 35840  }
  0x11   : > { %s7655_s28 = scalar_lea.vmem %s9976_s4, %s6979_s24  ;;  %s7660_s6 = scalar_lea.vmem %s9977_s5, %s6981_s25  ;;  %v345_v24 = vld [vmem:[#allocation2 + $0x30] sm:$0x1]  ;;  %338 = vst [vmem:[#allocation2 + $0x24] sm:$0x1] %v337_v21  ;;  %341 = vst [vmem:[#allocation2 + $0x28] sm:$0x1] %v340_v22 }
  0x12   : > { %v343_v25 = vsel %vm7631_vm2, 0, %v342_v23  ;;  %v346_v26 = vsel %vm7631_vm2, 0, %v345_v24  ;;  %v348_v27 = vld [vmem:[#allocation2 + $0x34] sm:$0x1]  ;;  %v351_v28 = vld [vmem:[#allocation2 + $0x38] sm:$0x1] }
  0x13   : > { %344 = vst [vmem:[#allocation2 + $0x2c] sm:$0x1] %v343_v25  ;;  %347 = vst [vmem:[#allocation2 + $0x30] sm:$0x1] %v346_v26  ;;  %v349_v29 = vsel %vm7631_vm2, 0, %v348_v27  ;;  %v352_v30 = vsel %vm7631_vm2, 0, %v351_v28 }
  0x14   : > { %v354_v31 = vld [vmem:[#allocation2 + $0x3c] sm:$0x1]  ;;  %vm358_vm4 = vsmask.f32 7950  ;;  %350 = vst [vmem:[#allocation2 + $0x34] sm:$0x1] %v349_v29 }
  0x15   : > { %353 = vst [vmem:[#allocation2 + $0x38] sm:$0x1] %v352_v30  ;;  %v355_v32 = vsel %vm7631_vm2, 0, %v354_v31  ;;  %vm7679_vm5 = vmand %vm357_vm3, %vm358_vm4  ;;  %v360_v34 = vld [vmem:[#allocation2] sm:$0x8]  ;;  %s7551_s27 = smov (!%p6983_p5), 12  }
  0x16   : > { %v363_v35 = vld [vmem:[#allocation2 + $0x4] sm:$0x8]  ;;  %356 = vst [vmem:[#allocation2 + $0x3c] sm:$0x1] %v355_v32  ;;  %v361_v36 = vsel %vm7679_vm5, 0, %v360_v34  ;;  %vm860_vm9 = vcmask (!%p6983_p5), 93224  }
  0x17   : > { %v364_v37 = vsel %vm7679_vm5, 0, %v363_v35  ;;  %v366_v38 = vld [vmem:[#allocation2 + $0x8] sm:$0x8]  ;;  %v369_v39 = vld [vmem:[#allocation2 + $0xc] sm:$0x8]  ;;  %s7554_s11 = smov (!%p6983_p5), 29  }
  0x18   : > { %362 = vst [vmem:[#allocation2] sm:$0x8] %v361_v36  ;;  %365 = vst [vmem:[#allocation2 + $0x4] sm:$0x8] %v364_v37  ;;  %v367_v40 = vsel %vm7679_vm5, 0, %v366_v38  ;;  %v370_v41 = vsel %vm7679_vm5, 0, %v369_v39 }
  0x19   : > { %v372_v42 = vld [vmem:[#allocation2 + $0x10] sm:$0x8]  ;;  %v375_v43 = vld [vmem:[#allocation2 + $0x14] sm:$0x8]  ;;  %368 = vst [vmem:[#allocation2 + $0x8] sm:$0x8] %v367_v40 }
  0x1a   : > { %371 = vst [vmem:[#allocation2 + $0xc] sm:$0x8] %v370_v41  ;;  %v373_v44 = vsel %vm7679_vm5, 0, %v372_v42  ;;  %v376_v45 = vsel %vm7679_vm5, 0, %v375_v43  ;;  %v378_v46 = vld [vmem:[#allocation2 + $0x18] sm:$0x8] }
  0x1b   : > { %v381_v47 = vld [vmem:[#allocation2 + $0x1c] sm:$0x8]  ;;  %374 = vst [vmem:[#allocation2 + $0x10] sm:$0x8] %v373_v44  ;;  %377 = vst [vmem:[#allocation2 + $0x14] sm:$0x8] %v376_v45 }
  0x1c   : > { %v379_v48 = vsel %vm7679_vm5, 0, %v378_v46  ;;  %v382_v49 = vsel %vm7679_vm5, 0, %v381_v47  ;;  %v384_v50 = vld [vmem:[#allocation2 + $0x20] sm:$0x8]  ;;  %v387_v51 = vld [vmem:[#allocation2 + $0x24] sm:$0x8] }
  0x1d   : > { %380 = vst [vmem:[#allocation2 + $0x18] sm:$0x8] %v379_v48  ;;  %383 = vst [vmem:[#allocation2 + $0x1c] sm:$0x8] %v382_v49  ;;  %v385_v52 = vsel %vm7679_vm5, 0, %v384_v50  ;;  %v388_v53 = vsel %vm7679_vm5, 0, %v387_v51 }
  0x1e   : > { %v390_v54 = vld [vmem:[#allocation2 + $0x28] sm:$0x8]  ;;  %v393_v55 = vld [vmem:[#allocation2 + $0x2c] sm:$0x8]  ;;  %386 = vst [vmem:[#allocation2 + $0x20] sm:$0x8] %v385_v52 }
  0x1f   : > { %389 = vst [vmem:[#allocation2 + $0x24] sm:$0x8] %v388_v53  ;;  %v391_v56 = vsel %vm7679_vm5, 0, %v390_v54  ;;  %v394_v57 = vsel %vm7679_vm5, 0, %v393_v55  ;;  %v396_v58 = vld [vmem:[#allocation2 + $0x30] sm:$0x8] }
  0x20   : > { %v399_v59 = vld [vmem:[#allocation2 + $0x34] sm:$0x8]  ;;  %392 = vst [vmem:[#allocation2 + $0x28] sm:$0x8] %v391_v56  ;;  %395 = vst [vmem:[#allocation2 + $0x2c] sm:$0x8] %v394_v57 }
  0x21   : > { %v397_v60 = vsel %vm7679_vm5, 0, %v396_v58  ;;  %v400_v61 = vsel %vm7679_vm5, 0, %v399_v59  ;;  %v402_v62 = vld [vmem:[#allocation2 + $0x38] sm:$0x8]  ;;  %v405_v63 = vld [vmem:[#allocation2 + $0x3c] sm:$0x8] }
  0x22   : > { %398 = vst [vmem:[#allocation2 + $0x30] sm:$0x8] %v397_v60  ;;  %401 = vst [vmem:[#allocation2 + $0x34] sm:$0x8] %v400_v61  ;;  %v403_v0 = vsel %vm7679_vm5, 0, %v402_v62  ;;  %v406_v2 = vsel %vm7679_vm5, 0, %v405_v63 }
  0x23   : > { %v409_v3 = vld [vmem:[#allocation2 + $0x40] sm:$0x1]  ;;  %v412_v4 = vld [vmem:[#allocation2 + $0x44] sm:$0x1]  ;;  %404 = vst [vmem:[#allocation2 + $0x38] sm:$0x8] %v403_v0 }
  0x24   : > { %407 = vst [vmem:[#allocation2 + $0x3c] sm:$0x8] %v406_v2  ;;  %v410_v5 = vsel %vm7631_vm2, 0, %v409_v3  ;;  %v413_v6 = vsel %vm7631_vm2, 0, %v412_v4  ;;  %v415_v7 = vld [vmem:[#allocation2 + $0x48] sm:$0x1] }
  0x25   : > { %v418_v8 = vld [vmem:[#allocation2 + $0x4c] sm:$0x1]  ;;  %411 = vst [vmem:[#allocation2 + $0x40] sm:$0x1] %v410_v5  ;;  %414 = vst [vmem:[#allocation2 + $0x44] sm:$0x1] %v413_v6 }
  0x26   : > { %v416_v9 = vsel %vm7631_vm2, 0, %v415_v7  ;;  %v419_v10 = vsel %vm7631_vm2, 0, %v418_v8  ;;  %v421_v11 = vld [vmem:[#allocation2 + $0x50] sm:$0x1]  ;;  %v424_v12 = vld [vmem:[#allocation2 + $0x54] sm:$0x1] }
  0x27   : > { %417 = vst [vmem:[#allocation2 + $0x48] sm:$0x1] %v416_v9  ;;  %420 = vst [vmem:[#allocation2 + $0x4c] sm:$0x1] %v419_v10  ;;  %v422_v13 = vsel %vm7631_vm2, 0, %v421_v11  ;;  %v425_v14 = vsel %vm7631_vm2, 0, %v424_v12 }
  0x28   : > { %v427_v15 = vld [vmem:[#allocation2 + $0x58] sm:$0x1]  ;;  %v430_v16 = vld [vmem:[#allocation2 + $0x5c] sm:$0x1]  ;;  %423 = vst [vmem:[#allocation2 + $0x50] sm:$0x1] %v422_v13 }
  0x29   : > { %426 = vst [vmem:[#allocation2 + $0x54] sm:$0x1] %v425_v14  ;;  %v428_v17 = vsel %vm7631_vm2, 0, %v427_v15  ;;  %v431_v18 = vsel %vm7631_vm2, 0, %v430_v16  ;;  %v433_v19 = vld [vmem:[#allocation2 + $0x60] sm:$0x1] }
  0x2a   : > { %v436_v20 = vld [vmem:[#allocation2 + $0x64] sm:$0x1]  ;;  %429 = vst [vmem:[#allocation2 + $0x58] sm:$0x1] %v428_v17  ;;  %432 = vst [vmem:[#allocation2 + $0x5c] sm:$0x1] %v431_v18 }
  0x2b   : > { %v434_v21 = vsel %vm7631_vm2, 0, %v433_v19  ;;  %v437_v22 = vsel %vm7631_vm2, 0, %v436_v20  ;;  %v439_v23 = vld [vmem:[#allocation2 + $0x68] sm:$0x1]  ;;  %v442_v24 = vld [vmem:[#allocation2 + $0x6c] sm:$0x1] }
  0x2c   : > { %435 = vst [vmem:[#allocation2 + $0x60] sm:$0x1] %v434_v21  ;;  %438 = vst [vmem:[#allocation2 + $0x64] sm:$0x1] %v437_v22  ;;  %v440_v25 = vsel %vm7631_vm2, 0, %v439_v23  ;;  %v443_v26 = vsel %vm7631_vm2, 0, %v442_v24 }
  0x2d   : > { %v445_v27 = vld [vmem:[#allocation2 + $0x70] sm:$0x1]  ;;  %v448_v28 = vld [vmem:[#allocation2 + $0x74] sm:$0x1]  ;;  %441 = vst [vmem:[#allocation2 + $0x68] sm:$0x1] %v440_v25 }
  0x2e   : > { %444 = vst [vmem:[#allocation2 + $0x6c] sm:$0x1] %v443_v26  ;;  %v446_v29 = vsel %vm7631_vm2, 0, %v445_v27  ;;  %v449_v30 = vsel %vm7631_vm2, 0, %v448_v28  ;;  %v451_v31 = vld [vmem:[#allocation2 + $0x78] sm:$0x1] }
  0x2f   : > { %v454_v32 = vld [vmem:[#allocation2 + $0x7c] sm:$0x1]  ;;  %447 = vst [vmem:[#allocation2 + $0x70] sm:$0x1] %v446_v29  ;;  %450 = vst [vmem:[#allocation2 + $0x74] sm:$0x1] %v449_v30 }
  0x30   : > { %v452_v34 = vsel %vm7631_vm2, 0, %v451_v31  ;;  %v455_v35 = vsel %vm7631_vm2, 0, %v454_v32  ;;  %v457_v36 = vld [vmem:[#allocation2 + $0x40] sm:$0x8]  ;;  %v460_v37 = vld [vmem:[#allocation2 + $0x44] sm:$0x8] }
  0x31   : > { %453 = vst [vmem:[#allocation2 + $0x78] sm:$0x1] %v452_v34  ;;  %456 = vst [vmem:[#allocation2 + $0x7c] sm:$0x1] %v455_v35  ;;  %v458_v38 = vsel %vm7679_vm5, 0, %v457_v36  ;;  %v461_v39 = vsel %vm7679_vm5, 0, %v460_v37 }
  0x32   : > { %v463_v40 = vld [vmem:[#allocation2 + $0x48] sm:$0x8]  ;;  %v466_v41 = vld [vmem:[#allocation2 + $0x4c] sm:$0x8]  ;;  %459 = vst [vmem:[#allocation2 + $0x40] sm:$0x8] %v458_v38 }
  0x33   : > { %462 = vst [vmem:[#allocation2 + $0x44] sm:$0x8] %v461_v39  ;;  %v464_v42 = vsel %vm7679_vm5, 0, %v463_v40  ;;  %v467_v1 = vsel %vm7679_vm5, 0, %v466_v41  ;;  %v469_v43 = vld [vmem:[#allocation2 + $0x50] sm:$0x8] }
  0x34   : > { %v472_v44 = vld [vmem:[#allocation2 + $0x54] sm:$0x8]  ;;  %465 = vst [vmem:[#allocation2 + $0x48] sm:$0x8] %v464_v42  ;;  %468 = vst [vmem:[#allocation2 + $0x4c] sm:$0x8] %v467_v1 }
  0x35   : > { %v470_v45 = vsel %vm7679_vm5, 0, %v469_v43  ;;  %v473_v46 = vsel %vm7679_vm5, 0, %v472_v44  ;;  %v475_v47 = vld [vmem:[#allocation2 + $0x58] sm:$0x8]  ;;  %v478_v48 = vld [vmem:[#allocation2 + $0x5c] sm:$0x8] }
  0x36   : > { %471 = vst [vmem:[#allocation2 + $0x50] sm:$0x8] %v470_v45  ;;  %474 = vst [vmem:[#allocation2 + $0x54] sm:$0x8] %v473_v46  ;;  %v476_v49 = vsel %vm7679_vm5, 0, %v475_v47  ;;  %v479_v50 = vsel %vm7679_vm5, 0, %v478_v48 }
  0x37   : > { %v481_v51 = vld [vmem:[#allocation2 + $0x60] sm:$0x8]  ;;  %v484_v52 = vld [vmem:[#allocation2 + $0x64] sm:$0x8]  ;;  %477 = vst [vmem:[#allocation2 + $0x58] sm:$0x8] %v476_v49 }
  0x38   : > { %480 = vst [vmem:[#allocation2 + $0x5c] sm:$0x8] %v479_v50  ;;  %v482_v53 = vsel %vm7679_vm5, 0, %v481_v51  ;;  %v485_v54 = vsel %vm7679_vm5, 0, %v484_v52  ;;  %v487_v55 = vld [vmem:[#allocation2 + $0x68] sm:$0x8] }
  0x39   : > { %v490_v56 = vld [vmem:[#allocation2 + $0x6c] sm:$0x8]  ;;  %483 = vst [vmem:[#allocation2 + $0x60] sm:$0x8] %v482_v53  ;;  %486 = vst [vmem:[#allocation2 + $0x64] sm:$0x8] %v485_v54 }
  0x3a   : > { %v488_v57 = vsel %vm7679_vm5, 0, %v487_v55  ;;  %v491_v58 = vsel %vm7679_vm5, 0, %v490_v56  ;;  %v493_v59 = vld [vmem:[#allocation2 + $0x70] sm:$0x8]  ;;  %v496_v60 = vld [vmem:[#allocation2 + $0x74] sm:$0x8] }
  0x3b   : > { %489 = vst [vmem:[#allocation2 + $0x68] sm:$0x8] %v488_v57  ;;  %492 = vst [vmem:[#allocation2 + $0x6c] sm:$0x8] %v491_v58  ;;  %v494_v61 = vsel %vm7679_vm5, 0, %v493_v59  ;;  %v497_v62 = vsel %vm7679_vm5, 0, %v496_v60 }
  0x3c   : > { %v499_v63 = vld [vmem:[#allocation2 + $0x78] sm:$0x8]  ;;  %v502_v0 = vld [vmem:[#allocation2 + $0x7c] sm:$0x8]  ;;  %495 = vst [vmem:[#allocation2 + $0x70] sm:$0x8] %v494_v61 }
  0x3d   : > { %498 = vst [vmem:[#allocation2 + $0x74] sm:$0x8] %v497_v62  ;;  %v500_v2 = vsel %vm7679_vm5, 0, %v499_v63  ;;  %v503_v3 = vsel %vm7679_vm5, 0, %v502_v0  ;;  %508 = sbr.rel (%p6983_p5) target bundleno = 335 (0x14f), region = 44  ;;  %vm509_vm11 = vcmask (!%p6983_p5), 289792  }
  0x3e   : > { %501 = vst [vmem:[#allocation2 + $0x78] sm:$0x8] %v500_v2  ;;  %504 = vst [vmem:[#allocation2 + $0x7c] sm:$0x8] %v503_v3  ;;  %v697_v4 = vld [vmem:[%s9973_s1 + $0x8] sm:$0xf] (!%p6983_p5) }
  0x3f   : > { %v695_v5 = vld [vmem:[%s9973_s1] sm:$0xf] (!%p6983_p5)  ;;  %v725_v6 = vshrl.u32 (!%p6983_p5), %v697_v4, 16  ;;  %v728_v7 = vshll.u32 (!%p6983_p5), %v697_v4, 16  ;;  %v698_v33 = vld [vmem:[%s9973_s1 + $0xc] sm:$0xf] (!%p6983_p5) }
  0x40   : > { %v711_v8 = vshrl.u32 (!%p6983_p5), %v695_v5, 16  ;;  %v714_v9 = vshll.u32 (!%p6983_p5), %v695_v5, 16  ;;  %v732_v10 = vshrl.u32 (!%p6983_p5), %v698_v33, 16  ;;  %v735_v11 = vshll.u32 (!%p6983_p5), %v698_v33, 16  ;;  %v696_v12 = vld [vmem:[%s9973_s1 + $0x4] sm:$0xf] (!%p6983_p5) }
  0x41   : > { %v700_v13 = vld [vmem:[%s9973_s1 + $0x14] sm:$0xf] (!%p6983_p5)  ;;  %v727_v14 = vrot.slane (!%p6983_p5), %v725_v6, 7  ;;  %v718_v16 = vshrl.u32 (!%p6983_p5), %v696_v12, 16  ;;  %v721_v17 = vshll.u32 (!%p6983_p5), %v696_v12, 16  ;;  %vm982_vm12 = vcmask (!%p6983_p5), 134240  }
  0x42   : > { %v713_v15 = vrot.slane (!%p6983_p5), %v711_v8, 7  ;;  %v699_v18 = vld [vmem:[%s9973_s1 + $0x10] sm:$0xf] (!%p6983_p5)  ;;  %v734_v19 = vrot.slane (!%p6983_p5), %v732_v10, 7  ;;  %v746_v20 = vshrl.u32 (!%p6983_p5), %v700_v13, 16  ;;  %v749_v29 = vshll.u32 (!%p6983_p5), %v700_v13, 16 }
  0x43   : > { %v739_v21 = vshrl.u32 (!%p6983_p5), %v699_v18, 16  ;;  %v702_v22 = vld [vmem:[%s9973_s1 + $0x1c] sm:$0xf] (!%p6983_p5)  ;;  %v730_v23 = vor.u32 (!%p6983_p5), %v728_v7, %v727_v14  ;;  %v720_v25 = vrot.slane (!%p6983_p5), %v718_v16, 7  ;;  %v701_v26 = vld [vmem:[%s9973_s1 + $0x18] sm:$0xf] (!%p6983_p5) }
  0x44   : > { %v716_v24 = vor.u32 %v714_v9, %v713_v15  ;;  %v737_v27 = vor.u32 %v735_v11, %v734_v19  ;;  %v748_v28 = vrot.slane %v746_v20, 7  ;;  %v742_v30 = vshll.u32 %v699_v18, 16  ;;  %v704_v36 = vld [vmem:[%s9973_s1 + $0x24] sm:$0xf]  ;;  %v703_v37 = vld [vmem:[%s9973_s1 + $0x20] sm:$0xf] }
  0x45   : > { %819 = vrot.lane.b32.xlu1 %v730_v23, %s7550_s29  ;;  %v723_v31 = vor.u32 %v721_v17, %v720_v25  ;;  %v741_v32 = vrot.slane %v739_v21, 7  ;;  %v760_v34 = vshrl.u32 %v702_v22, 16  ;;  %v753_v35 = vshrl.u32 %v701_v26, 16  ;;  %v706_v45 = vld [vmem:[%s9973_s1 + $0x2c] sm:$0xf] }
  0x46   : > { %815 = vrot.lane.b32.xlu0 %v716_v24, %s7550_s29  ;;  %v751_v38 = vor.u32 %v749_v29, %v748_v28  ;;  %v763_v39 = vshll.u32 %v702_v22, 16  ;;  %v756_v40 = vshll.u32 %v701_v26, 16  ;;  %v774_v41 = vshrl.u32 %v704_v36, 16  ;;  %v705_v46 = vld [vmem:[%s9973_s1 + $0x28] sm:$0xf] }
  0x47   : > { %v744_v42 = vor.u32 %v742_v30, %v741_v32  ;;  %v762_v1 = vrot.slane %v760_v34, 7  ;;  %v755_v43 = vrot.slane %v753_v35, 7  ;;  %v767_v44 = vshrl.u32 %v703_v37, 16  ;;  %v708_v55 = vld [vmem:[%s9973_s1 + $0x34] sm:$0xf] }
  0x48   : > { %v776_v47 = vrot.slane %v774_v41, 7  ;;  %v777_v48 = vshll.u32 %v704_v36, 16  ;;  %v770_v49 = vshll.u32 %v703_v37, 16  ;;  %v788_v50 = vshrl.u32 %v706_v45, 16  ;;  %v707_v56 = vld [vmem:[%s9973_s1 + $0x30] sm:$0xf] }
  0x49   : > { %821 = vrot.lane.b32.xlu1 %v737_v27, %s7550_s29  ;;  %v765_v51 = vor.u32 %v763_v39, %v762_v1  ;;  %v758_v52 = vor.u32 %v756_v40, %v755_v43  ;;  %v769_v53 = vrot.slane %v767_v44, 7  ;;  %v781_v54 = vshrl.u32 %v705_v46, 16  ;;  %v709_v2 = vld [vmem:[%s9973_s1 + $0x38] sm:$0xf]  ;;  %v907_v14 = vld [vmem:[%s9972_s0] sm:$0xf] }
  0x4a   : > { %817 = vrot.lane.b32.xlu0 %v723_v31, %s7550_s29  ;;  %v779_v57 = vor.u32 %v777_v48, %v776_v47  ;;  %v790_v58 = vrot.slane %v788_v50, 7  ;;  %v791_v59 = vshll.u32 %v706_v45, 16  ;;  %v784_v60 = vshll.u32 %v705_v46, 16  ;;  %v909_v15 = vld [vmem:[%s9972_s0 + $0x8] sm:$0xf] }
  0x4b   : > { %v772_v61 = vor.u32 %v770_v49, %v769_v53  ;;  %v783_v62 = vrot.slane %v781_v54, 7  ;;  %v802_v63 = vshrl.u32 %v708_v55, 16  ;;  %v795_v0 = vshrl.u32 %v707_v56, 16  ;;  %v908_v16 = vld [vmem:[%s9972_s0 + $0x4] sm:$0xf] }
  0x4c   : > { %v793_v3 = vor.u32 %v791_v59, %v790_v58  ;;  %v805_v4 = vshll.u32 %v708_v55, 16  ;;  %v798_v5 = vshll.u32 %v707_v56, 16  ;;  %v809_v9 = vshrl.u32 %v709_v2, 16  ;;  %v911_v17 = vld [vmem:[%s9972_s0 + $0x10] sm:$0xf] }
  0x4d   : > { %825 = vrot.lane.b32.xlu1 %v751_v38, %s7550_s29  ;;  %v786_v6 = vor.u32 %v784_v60, %v783_v62  ;;  %v804_v7 = vrot.slane %v802_v63, 7  ;;  %v797_v8 = vrot.slane %v795_v0, 7  ;;  %v812_v12 = vshll.u32 %v709_v2, 16  ;;  %v910_v18 = vld [vmem:[%s9972_s0 + $0xc] sm:$0xf] }
  0x4e   : > { %823 = vrot.lane.b32.xlu0 %v744_v42, %s7550_s29  ;;  %v811_v11 = vrot.slane %v809_v9, 7  ;;  %v513_v19 = vld [vmem:[%s9972_s0 + $0x8] sm:$0xf]  ;;  %v511_v20 = vld [vmem:[%s9972_s0] sm:$0xf]  ;;  %vm1073_vm13 = vcmask 191624  }
  0x4f   : > { %v807_v33 = vor.u32 %v805_v4, %v804_v7  ;;  %v800_v10 = vor.u32 %v798_v5, %v797_v8  ;;  %v913_v21 = vld [vmem:[%s9972_s0 + $0x18] sm:$0xf]  ;;  %v912_v22 = vld [vmem:[%s9972_s0 + $0x14] sm:$0xf]  ;;  %v541_v23 = vshrl.u32 %v513_v19, 16  ;;  %v544_v24 = vshll.u32 %v513_v19, 16 }
  0x50   : > { %v814_v13 = vor.u32 %v812_v12, %v811_v11  ;;  %vm648_vm7 = vsmask.f32 7938  ;;  %v527_v25 = vshrl.u32 %v511_v20, 16  ;;  %v530_v27 = vshll.u32 %v511_v20, 16  ;;  %v656_v28 = vld [vmem:[#allocation2 + $0xc] sm:$0xf] }
  0x51   : > { %829 = vrot.lane.b32.xlu1 %v765_v51, %s7550_s29  ;;  %v543_v26 = vrot.slane %v541_v23, 7  ;;  %v514_v30 = vld [vmem:[%s9972_s0 + $0xc] sm:$0xf]  ;;  %vm7878_vm8 = vmand %vm647_vm6, %vm648_vm7  ;;  %v650_v34 = vld [vmem:[#allocation2 + $0x4] sm:$0xf]  ;;  %vm1284_vm14 = vcmask 232640  }
  0x52   : > { %827 = vrot.lane.b32.xlu0 %v758_v52, %s7550_s29  ;;  %v529_v29 = vrot.slane %v527_v25, 7  ;;  %v512_v35 = vld [vmem:[%s9972_s0 + $0x4] sm:$0xf]  ;;  %v915_v36 = vld [vmem:[%s9972_s0 + $0x20] sm:$0xf]  ;;  %v548_v40 = vshrl.u32 %v514_v30, 16  ;;  %vm8128_vm10 = vmand %vm860_vm9, %vm648_vm7 }
  0x53   : > { %v546_v31 = vor.u32 %v544_v24, %v543_v26  ;;  %v914_v37 = vld [vmem:[%s9972_s0 + $0x1c] sm:$0xf]  ;;  %v917_v41 = vld [vmem:[%s9972_s0 + $0x28] sm:$0xf]  ;;  %v551_v1 = vshll.u32 %v514_v30, 16  ;;  %v534_v43 = vshrl.u32 %v512_v35, 16 }
  0x54   : > { %v532_v38 = vor.u32 %v530_v27, %v529_v29  ;;  %v916_v44 = vld [vmem:[%s9972_s0 + $0x24] sm:$0xf]  ;;  %v550_v45 = vrot.slane %v548_v40, 7  ;;  %v537_v46 = vshll.u32 %v512_v35, 16  ;;  %v516_v47 = vld [vmem:[%s9972_s0 + $0x14] sm:$0xf] }
  0x55   : > { %833 = vrot.lane.b32.xlu1 %v779_v57, %s7550_s29  ;;  %v657_v39 = vsel %vm7878_vm8, %v546_v31, %v656_v28  ;;  %v659_v48 = vld [vmem:[#allocation2 + $0x10] sm:$0xf]  ;;  %v536_v49 = vrot.slane %v534_v43, 7  ;;  %v653_v52 = vld [vmem:[#allocation2 + $0x8] sm:$0xf]  ;;  %v562_v54 = vshrl.u32 %v516_v47, 16 }
  0x56   : > { %831 = vrot.lane.b32.xlu0 %v772_v61, %s7550_s29  ;;  %658 = vst [vmem:[#allocation2 + $0xc] sm:$0xf] %v657_v39  ;;  %v651_v42 = vsel %vm7878_vm8, %v532_v38, %v650_v34  ;;  %v515_v50 = vld [vmem:[%s9972_s0 + $0x10] sm:$0xf]  ;;  %v553_v51 = vor.u32 %v551_v1, %v550_v45  ;;  %v565_v56 = vshll.u32 %v516_v47, 16  ;;  %vm1527_vm1 = vcmask 290024  }
  0x57   : > { %652 = vst [vmem:[#allocation2 + $0x4] sm:$0xf] %v651_v42  ;;  %v539_v53 = vor.u32 %v537_v46, %v536_v49  ;;  %v555_v57 = vshrl.u32 %v515_v50, 16  ;;  %v919_v58 = vld [vmem:[%s9972_s0 + $0x30] sm:$0xf]  ;;  %v564_v61 = vrot.slane %v562_v54, 7 }
  0x58   : > { %v660_v55 = vsel %vm7878_vm8, %v553_v51, %v659_v48  ;;  %v918_v59 = vld [vmem:[%s9972_s0 + $0x2c] sm:$0xf]  ;;  %v558_v62 = vshll.u32 %v515_v50, 16  ;;  %v665_v63 = vld [vmem:[#allocation2 + $0x18] sm:$0xf] }
  0x59   : > { %837 = vrot.lane.b32.xlu1 %v793_v3, %s7550_s29  ;;  %661 = vst [vmem:[#allocation2 + $0x10] sm:$0xf] %v660_v55  ;;  %v654_v60 = vsel %vm7878_vm8, %v539_v53, %v653_v52  ;;  %v557_v0 = vrot.slane %v555_v57, 7  ;;  %v518_v2 = vld [vmem:[%s9972_s0 + $0x1c] sm:$0xf]  ;;  %v567_v3 = vor.u32 %v565_v56, %v564_v61 }
  0x5a   : > { %835 = vrot.lane.b32.xlu0 %v786_v6, %s7550_s29  ;;  %655 = vst [vmem:[#allocation2 + $0x8] sm:$0xf] %v654_v60  ;;  %v662_v4 = vld [vmem:[#allocation2 + $0x14] sm:$0xf]  ;;  %v517_v5 = vld [vmem:[%s9972_s0 + $0x18] sm:$0xf] }
  0x5b   : > { %v560_v6 = vor.u32 %v558_v62, %v557_v0  ;;  %v921_v7 = vld [vmem:[%s9972_s0 + $0x38] sm:$0xf]  ;;  %v920_v8 = vld [vmem:[%s9972_s0 + $0x34] sm:$0xf]  ;;  %v666_v9 = vsel %vm7878_vm8, %v567_v3, %v665_v63  ;;  %v579_v11 = vshll.u32 %v518_v2, 16  ;;  %v569_v12 = vshrl.u32 %v517_v5, 16 }
  0x5c   : > { %667 = vst [vmem:[#allocation2 + $0x18] sm:$0xf] %v666_v9  ;;  %v999_v19 = vld [vmem:[%s9973_s1 + $0x4] sm:$0xf]  ;;  %v998_v20 = vld [vmem:[%s9973_s1] sm:$0xf] }
  0x5d   : > { %841 = vrot.lane.b32.xlu1 %v807_v33, %s7550_s29  ;;  %v576_v33 = vshrl.u32 %v518_v2, 16  ;;  %v1001_v28 = vld [vmem:[%s9973_s1 + $0xc] sm:$0xf]  ;;  %v1000_v29 = vld [vmem:[%s9973_s1 + $0x8] sm:$0xf] }
  0x5e   : > { %839 = vrot.lane.b32.xlu0 %v800_v10, %s7550_s29  ;;  %v663_v10 = vsel %vm7878_vm8, %v560_v6, %v662_v4  ;;  %v677_v35 = vld [vmem:[#allocation2 + $0x28] sm:$0xf]  ;;  %v674_v39 = vld [vmem:[#allocation2 + $0x24] sm:$0xf]  ;;  %v1003_v43 = vld [vmem:[%s9973_s1 + $0x14] sm:$0xf] }
  0x5f   : > { %664 = vst [vmem:[#allocation2 + $0x14] sm:$0xf] %v663_v10  ;;  %v1089_v48 = vld [vmem:[%s9972_s0] sm:$0xf]  ;;  %v524_v51 = vld [vmem:[%s9972_s0 + $0x34] sm:$0xf] }
  0x60   : > { %v683_v52 = vld [vmem:[#allocation2 + $0x30] sm:$0xf]  ;;  %v1005_v54 = vld [vmem:[%s9973_s1 + $0x1c] sm:$0xf]  ;;  %v1004_v55 = vld [vmem:[%s9973_s1 + $0x18] sm:$0xf] }
  0x61   : > { %937 = vrot.lane.b32.xlu1 %v907_v14, %s7551_s27  ;;  %v572_v14 = vshll.u32 %v517_v5, 16  ;;  %v680_v57 = vld [vmem:[#allocation2 + $0x2c] sm:$0xf]  ;;  %v1091_v60 = vld [vmem:[%s9972_s0 + $0x8] sm:$0xf]  ;;  %v618_v62 = vshrl.u32 %v524_v51, 16 }
  0x62   : > { %843 = vrot.lane.b32.xlu0 %v814_v13, %s7550_s29  ;;  %v578_v13 = vrot.slane %v576_v33, 7  ;;  %v621_v0 = vshll.u32 %v524_v51, 16  ;;  %v523_v2 = vld [vmem:[%s9972_s0 + $0x30] sm:$0xf]  ;;  %v1007_v3 = vld [vmem:[%s9973_s1 + $0x24] sm:$0xf] }
  0x63   : > { %v1006_v4 = vld [vmem:[%s9973_s1 + $0x20] sm:$0xf]  ;;  %v1090_v5 = vld [vmem:[%s9972_s0 + $0x4] sm:$0xf]  ;;  %v1123_v9 = vshrl.u32 %v1091_v60, 16  ;;  %v1126_v33 = vshll.u32 %v1091_v60, 16 }
  0x64   : > { %v689_v10 = vld [vmem:[#allocation2 + $0x38] sm:$0xf]  ;;  %s7553_s29 = smov 24   ;;  %vm1285_vm15 = vsmask.f32 3328 }
  0x65   : > { %941 = vrot.lane.b32.xlu1 %v909_v15, %s7551_s27  ;;  %v520_v15 = vld [vmem:[%s9972_s0 + $0x24] sm:$0xf]  ;;  %vm8232_vm0 = vmand %vm1284_vm14, %vm1285_vm15 }
  0x66   : > { %939 = vrot.lane.b32.xlu0 %v908_v16, %s7551_s27  ;;  %v671_v16 = vld [vmem:[#allocation2 + $0x20] sm:$0xf]  ;;  %v590_v24 = vshrl.u32 %v520_v15, 16  ;;  %v593_v26 = vshll.u32 %v520_v15, 16  ;;  %vm8268_vm2 = vmand %vm1527_vm1, %vm1285_vm15 }
  0x68   : > { %v592_v31 = vrot.slane %v590_v24, 7  ;;  %v1009_v24 = vld [vmem:[%s9973_s1 + $0x2c] sm:$0xf] }
  0x69   : > { %945 = vrot.lane.b32.xlu1 %v911_v17, %s7551_s27  ;;  %v571_v17 = vrot.slane %v569_v12, 7 }
  0x6a   : > { %943 = vrot.lane.b32.xlu0 %v910_v18, %s7551_s27  ;;  %v519_v18 = vld [vmem:[%s9972_s0 + $0x20] sm:$0xf]  ;;  %v595_v38 = vor.u32 %v593_v26, %v592_v31  ;;  %v1125_v26 = vrot.slane %v1123_v9, 4 }
  0x6b   : > { %v574_v23 = vor.u32 %v572_v14, %v571_v17  ;;  %v583_v27 = vshrl.u32 %v519_v18, 16  ;;  %v586_v34 = vshll.u32 %v519_v18, 16  ;;  %v1093_v14 = vld [vmem:[%s9972_s0 + $0x10] sm:$0xf]  ;;  %v1114_v17 = vshrl.u32 %v1090_v5, 16 }
  0x6c   : > { %v678_v42 = vsel %vm7878_vm8, %v595_v38, %v677_v35  ;;  %v1117_v18 = vshll.u32 %v1090_v5, 16  ;;  %v1144_v38 = vshll.u32 %v1093_v14, 16 }
  0x6d   : > { %949 = vrot.lane.b32.xlu1 %v913_v21, %s7551_s27  ;;  %v581_v21 = vor.u32 %v579_v11, %v578_v13  ;;  %679 = vst [vmem:[#allocation2 + $0x28] sm:$0xf] %v678_v42  ;;  %v614_v11 = vshll.u32 %v523_v2, 16 }
  0x6e   : > { %947 = vrot.lane.b32.xlu0 %v912_v22, %s7551_s27  ;;  %v668_v22 = vld [vmem:[#allocation2 + $0x1c] sm:$0xf] }
  0x6f   : > { %v672_v25 = vsel %vm7878_vm8, %v581_v21, %v671_v16  ;;  %v669_v30 = vsel %vm7878_vm8, %v574_v23, %v668_v22 }
  0x70   : > { %673 = vst [vmem:[#allocation2 + $0x20] sm:$0xf] %v672_v25  ;;  %670 = vst [vmem:[#allocation2 + $0x1c] sm:$0xf] %v669_v30  ;;  %v1008_v25 = vld [vmem:[%s9973_s1 + $0x28] sm:$0xf] }
  0x71   : > { %953 = vrot.lane.b32.xlu1 %v915_v36, %s7551_s27  ;;  %v585_v36 = vrot.slane %v583_v27, 7  ;;  %v1092_v30 = vld [vmem:[%s9972_s0 + $0xc] sm:$0xf] }
  0x72   : > { %951 = vrot.lane.b32.xlu0 %v914_v37, %s7551_s27  ;;  %v522_v37 = vld [vmem:[%s9972_s0 + $0x2c] sm:$0xf]  ;;  %v1135_v42 = vshll.u32 %v1092_v30, 16 }
  0x73   : > { %v588_v40 = vor.u32 %v586_v34, %v585_v36  ;;  %v604_v1 = vshrl.u32 %v522_v37, 16  ;;  %v607_v46 = vshll.u32 %v522_v37, 16  ;;  %v1116_v36 = vrot.slane %v1114_v17, 4 }
  0x74   : > { %v1119_v37 = vrot.slane %v1117_v18, 5  ;;  %v1137_v32 = vrot.slane %v1135_v42, 5  ;;  %v1333_v42 = vld [vmem:[%s9973_s1 + $0x4] sm:$0xf] }
  0x75   : > { %957 = vrot.lane.b32.xlu1 %v917_v41, %s7551_s27  ;;  %v521_v41 = vld [vmem:[%s9972_s0 + $0x28] sm:$0xf]  ;;  %v675_v45 = vsel %vm7878_vm8, %v588_v40, %v674_v39  ;;  %v606_v49 = vrot.slane %v604_v1, 7  ;;  %v692_v39 = vld [vmem:[#allocation2 + $0x3c] sm:$0xf] }
  0x76   : > { %955 = vrot.lane.b32.xlu0 %v916_v44, %s7551_s27  ;;  %v1002_v44 = vld [vmem:[%s9973_s1 + $0x10] sm:$0xf]  ;;  %v597_v47 = vshrl.u32 %v521_v41, 16  ;;  %676 = vst [vmem:[#allocation2 + $0x24] sm:$0xf] %v675_v45  ;;  %v600_v50 = vshll.u32 %v521_v41, 16 }
  0x77   : > { %v609_v56 = vor.u32 %v607_v46, %v606_v49  ;;  %v1132_v41 = vshrl.u32 %v1092_v30, 16  ;;  %v1095_v1 = vld [vmem:[%s9972_s0 + $0x18] sm:$0xf]  ;;  %v1010_v45 = vld [vmem:[%s9973_s1 + $0x30] sm:$0xf] }
  0x78   : > { %v599_v53 = vrot.slane %v597_v47, 7  ;;  %v1097_v47 = vld [vmem:[%s9972_s0 + $0x20] sm:$0xf] }
  0x79   : > { %961 = vrot.lane.b32.xlu1 %v919_v58, %s7551_s27  ;;  %v1105_v58 = vshrl.u32 %v1089_v48, 16  ;;  %v684_v63 = vsel %vm7878_vm8, %v609_v56, %v683_v52  ;;  %v1146_v52 = vrot.slane %v1144_v38, 5  ;;  %v1180_v60 = vshll.u32 %v1097_v47, 16  ;;  %v1103_v38 = vld [vmem:[%s9972_s0 + $0x38] sm:$0xf] }
  0x7a   : > { %959 = vrot.lane.b32.xlu0 %v918_v59, %s7551_s27  ;;  %v1108_v59 = vshll.u32 %v1089_v48, 16  ;;  %v602_v61 = vor.u32 %v600_v50, %v599_v53  ;;  %685 = vst [vmem:[#allocation2 + $0x30] sm:$0xf] %v684_v63  ;;  %v1120_v50 = vor.u32 %v1119_v37, %v1116_v36  ;;  %v1096_v53 = vld [vmem:[%s9972_s0 + $0x1c] sm:$0xf] }
  0x7b   : > { %v1107_v12 = vrot.slane %v1105_v58, 4  ;;  %v1134_v58 = vrot.slane %v1132_v41, 4  ;;  %v1171_v63 = vshll.u32 %v1096_v53, 16 }
  0x7c   : > { %v681_v6 = vsel %vm7878_vm8, %v602_v61, %v680_v57  ;;  %v1110_v13 = vrot.slane %v1108_v59, 5  ;;  %v1177_v59 = vshrl.u32 %v1097_v47, 16  ;;  %v1012_v61 = vld [vmem:[%s9973_s1 + $0x38] sm:$0xf]  ;;  %v1121_v9 = vrot.slane %v1120_v50, 4 }
  0x7d   : > { %965 = vrot.lane.b32.xlu1 %v921_v7, %s7551_s27  ;;  %v620_v7 = vrot.slane %v618_v62, 7  ;;  %682 = vst [vmem:[#allocation2 + $0x2c] sm:$0xf] %v681_v6  ;;  %v1168_v62 = vshrl.u32 %v1096_v53, 16  ;;  %v1231_v47 = vshrl.u32 %v1103_v38, 16  ;;  %v1357_v53 = vshrl.u32 %v1333_v42, 16 }
  0x7e   : > { %963 = vrot.lane.b32.xlu0 %v920_v8, %s7551_s27  ;;  %s7552_s27 = smov 17   ;;  %v611_v8 = vshrl.u32 %v523_v2, 16  ;;  %v1111_v35 = vor.u32 %v1110_v13, %v1107_v12  ;;  %v1173_v13 = vrot.slane %v1171_v63, 5  ;;  %v1334_v63 = vld [vmem:[%s9973_s1 + $0x8] sm:$0xf] }
  0x7f   : > { %v623_v15 = vor.u32 %v621_v0, %v620_v7  ;;  %v1170_v12 = vrot.slane %v1168_v62, 4 }
  0x80   : > { %v613_v16 = vrot.slane %v611_v8, 7  ;;  %v1112_v49 = vrot.slane %v1111_v35, 4  ;;  %v1098_v8 = vld [vmem:[%s9972_s0 + $0x24] sm:$0xf] }
  0x81   : > { %1030 = vrot.lane.b32.xlu1 %v999_v19, %s7552_s27  ;;  %v686_v19 = vld [vmem:[#allocation2 + $0x34] sm:$0xf]  ;;  %v690_v21 = vsel %vm7878_vm8, %v623_v15, %v689_v10  ;;  %v1179_v10 = vrot.slane %v1177_v59, 4  ;;  %v1189_v17 = vshll.u32 %v1098_v8, 16  ;;  %v1233_v59 = vrot.slane %v1231_v47, 4 }
  0x82   : > { %1028 = vrot.lane.b32.xlu0 %v998_v20, %s7552_s27  ;;  %v525_v20 = vld [vmem:[%s9972_s0 + $0x38] sm:$0xf]  ;;  %v616_v22 = vor.u32 %v614_v11, %v613_v16  ;;  %691 = vst [vmem:[#allocation2 + $0x38] sm:$0xf] %v690_v21  ;;  %v1182_v11 = vrot.slane %v1180_v60, 5  ;;  %v1186_v16 = vshrl.u32 %v1098_v8, 16 }
  0x83   : > { %v625_v23 = vshrl.u32 %v525_v20, 16  ;;  %v628_v27 = vshll.u32 %v525_v20, 16  ;;  %v1101_v20 = vld [vmem:[%s9972_s0 + $0x30] sm:$0xf]  ;;  %v1340_v47 = vld [vmem:[%s9973_s1 + $0x20] sm:$0xf] }
  0x84   : > { %v687_v31 = vsel %vm7878_vm8, %v616_v22, %v686_v19  ;;  %v1213_v30 = vshrl.u32 %v1101_v20, 16 }
  0x85   : > { %1034 = vrot.lane.b32.xlu1 %v1001_v28, %s7552_s27  ;;  %v1128_v28 = vrot.slane %v1126_v33, 5  ;;  %v627_v34 = vrot.slane %v625_v23, 7  ;;  %688 = vst [vmem:[#allocation2 + $0x34] sm:$0xf] %v687_v31  ;;  %v1138_v33 = vor.u32 %v1137_v32, %v1134_v58  ;;  %v1183_v23 = vor.u32 %v1182_v11, %v1179_v10  ;;  %v1335_v32 = vld [vmem:[%s9973_s1 + $0xc] sm:$0xf] }
  0x86   : > { %1032 = vrot.lane.b32.xlu0 %v1000_v29, %s7552_s27  ;;  %v1141_v29 = vshrl.u32 %v1093_v14, 16  ;;  %v1216_v31 = vshll.u32 %v1101_v20, 16  ;;  %v1378_v8 = vshll.u32 %v1335_v32, 16  ;;  %v1339_v20 = vld [vmem:[%s9973_s1 + $0x1c] sm:$0xf] }
  0x87   : > { %v630_v40 = vor.u32 %v628_v27, %v627_v34  ;;  %v1129_v46 = vor.u32 %v1128_v28, %v1125_v26  ;;  %v1139_v22 = vrot.slane %v1138_v33, 4  ;;  %v1100_v27 = vld [vmem:[%s9972_s0 + $0x2c] sm:$0xf]  ;;  %v1188_v28 = vrot.slane %v1186_v16, 4 }
  0x88   : > { %v1143_v51 = vrot.slane %v1141_v29, 4  ;;  %v1191_v29 = vrot.slane %v1189_v17, 5  ;;  %v1204_v36 = vshrl.u32 %v1100_v27, 16  ;;  %v1207_v37 = vshll.u32 %v1100_v27, 16 }
  0x89   : > { %1038 = vrot.lane.b32.xlu1 %v1003_v43, %s7552_s27  ;;  %v1094_v43 = vld [vmem:[%s9972_s0 + $0x14] sm:$0xf]  ;;  %v693_v48 = vsel %vm7878_vm8, %v630_v40, %v692_v39  ;;  %v1130_v0 = vrot.slane %v1129_v46, 4  ;;  %v1184_v40 = vrot.slane %v1183_v23, 4  ;;  %v1332_v46 = vld [vmem:[%s9973_s1] sm:$0xf] }
  0x8a   : > { %1036 = vrot.lane.b32.xlu0 %v1002_v44, %s7552_s27  ;;  %v1011_v44 = vld [vmem:[%s9973_s1 + $0x34] sm:$0xf]  ;;  %694 = vst [vmem:[#allocation2 + $0x3c] sm:$0xf] %v693_v48  ;;  %v1150_v56 = vshrl.u32 %v1094_v43, 16  ;;  %v1153_v57 = vshll.u32 %v1094_v43, 16  ;;  %v1147_v2 = vor.u32 %v1146_v52, %v1143_v51  ;;  %v1192_v43 = vor.u32 %v1191_v29, %v1188_v28 }
  0x8b   : > { %v1102_v39 = vld [vmem:[%s9972_s0 + $0x34] sm:$0xf]  ;;  %v1234_v48 = vshll.u32 %v1103_v38, 16  ;;  %v1206_v51 = vrot.slane %v1204_v36, 4  ;;  %v1209_v52 = vrot.slane %v1207_v37, 5  ;;  %v1369_v33 = vshll.u32 %v1334_v63, 16 }
  0x8c   : > { %v1152_v6 = vrot.slane %v1150_v56, 4  ;;  %v1155_v7 = vrot.slane %v1153_v57, 5  ;;  %v1148_v21 = vrot.slane %v1147_v2, 4  ;;  %v1225_v50 = vshll.u32 %v1102_v39, 16 }
  0x8d   : > { %1042 = vrot.lane.b32.xlu1 %v1005_v54, %s7552_s27  ;;  %v1159_v54 = vshrl.u32 %v1095_v1, 16  ;;  %v1351_v56 = vshll.u32 %v1332_v46, 16  ;;  %v1193_v58 = vrot.slane %v1192_v43, 4  ;;  %v1236_v60 = vrot.slane %v1234_v48, 5 }
  0x8e   : > { %1040 = vrot.lane.b32.xlu0 %v1004_v55, %s7552_s27  ;;  %v1162_v55 = vshll.u32 %v1095_v1, 16  ;;  %v1156_v19 = vor.u32 %v1155_v7, %v1152_v6  ;;  %v1227_v62 = vrot.slane %v1225_v50, 5  ;;  %v1210_v2 = vor.u32 %v1209_v52, %v1206_v51  ;;  %v871_v50 = vld [vmem:[#allocation2 + $0x10] sm:$0xf] }
  0x8f   : > { %v1353_v6 = vrot.slane %v1351_v56, 5  ;;  %v1375_v7 = vshrl.u32 %v1335_v32, 16  ;;  %v1237_v10 = vor.u32 %v1236_v60, %v1233_v59  ;;  %v1371_v23 = vrot.slane %v1369_v33, 5 }
  0x90   : > { %v1164_v5 = vrot.slane %v1162_v55, 5  ;;  %v1157_v35 = vrot.slane %v1156_v19, 4  ;;  %v1348_v55 = vshrl.u32 %v1332_v46, 16  ;;  %v8116_v19 = vrot.slane %v1378_v8, 5  ;;  %v1341_v46 = vld [vmem:[%s9973_s1 + $0x24] sm:$0xf] }
  0x91   : > { %1046 = vrot.lane.b32.xlu1 %v1007_v3, %s7552_s27  ;;  %v1099_v3 = vld [vmem:[%s9972_s0 + $0x28] sm:$0xf]  ;;  %v1238_v27 = vrot.slane %v1237_v10, 4  ;;  %v1414_v36 = vshll.u32 %v1339_v20, 16  ;;  %v1432_v32 = vshll.u32 %v1341_v46, 16  ;;  %v1420_v59 = vshrl.u32 %v1340_v47, 16 }
  0x92   : > { %1044 = vrot.lane.b32.xlu0 %v1006_v4, %s7552_s27  ;;  %v1161_v4 = vrot.slane %v1159_v54, 4  ;;  %v1195_v14 = vshrl.u32 %v1099_v3, 16  ;;  %v1198_v15 = vshll.u32 %v1099_v3, 16  ;;  %v1360_v54 = vshll.u32 %v1333_v42, 16 }
  0x93   : > { %v1359_v3 = vrot.slane %v1357_v53, 4  ;;  %v865_v53 = vld [vmem:[#allocation2 + $0x8] sm:$0xf]  ;;  %v1423_v60 = vshll.u32 %v1340_v47, 16 }
  0x94   : > { %v1165_v18 = vor.u32 %v1164_v5, %v1161_v4  ;;  %v1200_v26 = vrot.slane %v1198_v15, 5  ;;  %v1362_v4 = vrot.slane %v1360_v54, 5  ;;  %v1350_v5 = vrot.slane %v1348_v55, 4  ;;  %v1336_v15 = vld [vmem:[%s9973_s1 + $0x10] sm:$0xf] }
  0x95   : > { %1050 = vrot.lane.b32.xlu1 %v1009_v24, %s7552_s27  ;;  %v1174_v24 = vor.u32 %v1173_v13, %v1170_v12  ;;  %v1337_v12 = vld [vmem:[%s9973_s1 + $0x14] sm:$0xf]  ;;  %v1384_v29 = vshrl.u32 %v1336_v15, 16  ;;  %v1416_v55 = vrot.slane %v1414_v36, 5 }
  0x96   : > { %1048 = vrot.lane.b32.xlu0 %v1008_v25, %s7552_s27  ;;  %v1197_v25 = vrot.slane %v1195_v14, 4  ;;  %v1166_v34 = vrot.slane %v1165_v18, 4  ;;  %v1211_v14 = vrot.slane %v1210_v2, 4  ;;  %v1363_v16 = vor.u32 %v1362_v4, %v1359_v3  ;;  %v1343_v4 = vld [vmem:[%s9973_s1 + $0x2c] sm:$0xf] }
  0x97   : > { %v1175_v41 = vrot.slane %v1174_v24, 4  ;;  %v1354_v17 = vor.u32 %v1353_v6, %v1350_v5  ;;  %v8114_v18 = vrot.slane %v1375_v7, 4  ;;  %v1393_v24 = vshrl.u32 %v1337_v12, 16  ;;  %v1342_v5 = vld [vmem:[%s9973_s1 + $0x28] sm:$0xf] }
  0x98   : > { %v1201_v1 = vor.u32 %v1200_v26, %v1197_v25  ;;  %v1396_v25 = vshll.u32 %v1337_v12, 16  ;;  %v868_v26 = vld [vmem:[#allocation2 + $0xc] sm:$0xf]  ;;  %v1386_v51 = vrot.slane %v1384_v29, 4  ;;  %v877_v6 = vld [vmem:[#allocation2 + $0x18] sm:$0xf] }
  0x99   : > { %1054 = vrot.lane.b32.xlu1 %v1011_v44, %s7552_s27  ;;  %v1215_v44 = vrot.slane %v1213_v30, 4  ;;  %v1387_v30 = vshll.u32 %v1336_v15, 16  ;;  %v874_v7 = vld [vmem:[#allocation2 + $0x14] sm:$0xf]  ;;  %v1434_v12 = vrot.slane %v1432_v32, 5 }
  0x9a   : > { %1052 = vrot.lane.b32.xlu0 %v1010_v45, %s7552_s27  ;;  %v1218_v45 = vrot.slane %v1216_v31, 5  ;;  %v1202_v57 = vrot.slane %v1201_v1, 4  ;;  %v1381_v1 = vor.u32 %v8116_v19, %v8114_v18  ;;  %v1450_v18 = vshll.u32 %v1343_v4, 16 }
  0x9b   : > { %v1389_v52 = vrot.slane %v1387_v30, 5  ;;  %v1438_v19 = vshrl.u32 %v1342_v5, 16 }
  0x9c   : > { %v1382_v8 = vrot.slane %v1381_v1, 4 }
  0x9d   : > { %1239 = vrot.lane.b32.xlu1 %v1112_v49, %s7553_s29  ;;  %v1222_v49 = vshrl.u32 %v1102_v39, 16  ;;  %v1364_v39 = vrot.slane %v1363_v16, 4  ;;  %v1390_v3 = vor.u32 %v1389_v52, %v1386_v51 }
  0x9e   : > { %1056 = vrot.lane.b32.xlu0 %v1012_v61, %s7552_s27 }
  0x9f   : > { %v1224_v61 = vrot.slane %v1222_v49, 4 }
  0xa1   : > { %1243 = vrot.lane.b32.xlu1 %v1130_v0, %s7553_s29  ;;  %v1219_v0 = vor.u32 %v1218_v45, %v1215_v44  ;;  %v1228_v11 = vor.u32 %v1227_v62, %v1224_v61  ;;  %v1395_v44 = vrot.slane %v1393_v24, 4  ;;  %v1398_v45 = vrot.slane %v1396_v25, 5  ;;  %v883_v25 = vld [vmem:[#allocation2 + $0x20] sm:$0xf] }
  0xa2   : > { %1241 = vrot.lane.b32.xlu0 %v1121_v9, %s7553_s29  ;;  %v1366_v9 = vshrl.u32 %v1334_v63, 16  ;;  %v1391_v24 = vrot.slane %v1390_v3, 4 }
  0xa3   : > { %v1220_v13 = vrot.slane %v1219_v0, 4  ;;  %v1229_v28 = vrot.slane %v1228_v11, 4  ;;  %v1399_v2 = vor.u32 %v1398_v45, %v1395_v44  ;;  %v889_v45 = vld [vmem:[#allocation2 + $0x28] sm:$0xf] }
  0xa5   : > { %1247 = vrot.lane.b32.xlu1 %v1148_v21, %s7553_s29  ;;  %v1338_v21 = vld [vmem:[%s9973_s1 + $0x18] sm:$0xf] }
  0xa6   : > { %1245 = vrot.lane.b32.xlu0 %v1139_v22, %s7553_s29  ;;  %v1368_v22 = vrot.slane %v1366_v9, 4  ;;  %v1402_v37 = vshrl.u32 %v1338_v21, 16  ;;  %v1405_v38 = vshll.u32 %v1338_v21, 16 }
  0xa8   : > { %v1372_v43 = vor.u32 %v1371_v23, %v1368_v22  ;;  %v1404_v56 = vrot.slane %v1402_v37, 4  ;;  %v1400_v23 = vrot.slane %v1399_v2, 4 }
  0xa9   : > { %1251 = vrot.lane.b32.xlu1 %v1166_v34, %s7553_s29  ;;  %v862_v34 = vld [vmem:[#allocation2 + $0x4] sm:$0xf] }
  0xaa   : > { %1249 = vrot.lane.b32.xlu0 %v1157_v35, %s7553_s29  ;;  %v1411_v35 = vshrl.u32 %v1339_v20, 16  ;;  %v1373_v9 = vrot.slane %v1372_v43, 4  ;;  %v1441_v20 = vshll.u32 %v1342_v5, 16 }
  0xac   : > { %v1413_v54 = vrot.slane %v1411_v35, 4  ;;  %v1344_v35 = vld [vmem:[%s9973_s1 + $0x30] sm:$0xf] }
  0xad   : > { %1255 = vrot.lane.b32.xlu1 %v1184_v40, %s7553_s29  ;;  %v1355_v40 = vrot.slane %v1354_v17, 4  ;;  %v1447_v17 = vshrl.u32 %v1343_v4, 16  ;;  %v1456_v47 = vshrl.u32 %v1344_v35, 16 }
  0xae   : > { %1253 = vrot.lane.b32.xlu0 %v1175_v41, %s7553_s29  ;;  %v1417_v33 = vor.u32 %v1416_v55, %v1413_v54 }
  0xb1   : > { %1259 = vrot.lane.b32.xlu1 %v1202_v57, %s7553_s29  ;;  %v1407_v57 = vrot.slane %v1405_v38, 5  ;;  %v1449_v38 = vrot.slane %v1447_v17, 4 }
  0xb2   : > { %1257 = vrot.lane.b32.xlu0 %v1193_v58, %s7553_s29  ;;  %v1429_v58 = vshrl.u32 %v1341_v46, 16  ;;  %v886_v46 = vld [vmem:[#allocation2 + $0x24] sm:$0xf] }
  0xb3   : > { %v1408_v10 = vor.u32 %v1407_v57, %v1404_v56 }
  0xb4   : > { %v1431_v11 = vrot.slane %v1429_v58, 4  ;;  %v895_v58 = vld [vmem:[#allocation2 + $0x30] sm:$0xf] }
  0xb5   : > { %1263 = vrot.lane.b32.xlu1 %v1220_v13, %s7553_s29  ;;  %v1422_v13 = vrot.slane %v1420_v59, 4  ;;  %v1409_v29 = vrot.slane %v1408_v10, 4 }
  0xb6   : > { %1261 = vrot.lane.b32.xlu0 %v1211_v14, %s7553_s29  ;;  %v1425_v14 = vrot.slane %v1423_v60, 5  ;;  %v1435_v30 = vor.u32 %v1434_v12, %v1431_v11  ;;  %v892_v60 = vld [vmem:[#allocation2 + $0x2c] sm:$0xf] }
  0xb7   : > { %v820_v41 = vpop.permute.xlu1 %819 }
  0xb8   : > { %v816_v42 = vpop.permute.xlu0 %815  ;;  %v869_v48 = vsel %vm8128_vm10, %v820_v41, %v868_v26  ;;  %v880_v26 = vld [vmem:[#allocation2 + $0x1c] sm:$0xf]  ;;  %v1443_v41 = vrot.slane %v1441_v20, 5  ;;  %v1436_v52 = vrot.slane %v1435_v30, 4 }
  0xb9   : > { %v863_v49 = vsel %vm8128_vm10, %v816_v42, %v862_v34  ;;  %870 = vst [vmem:[#allocation2 + $0xc] sm:$0xf] %v869_v48  ;;  %1267 = vrot.lane.b32.xlu1 %v1238_v27, %s7553_s29  ;;  %v1345_v27 = vld [vmem:[%s9973_s1 + $0x34] sm:$0xf]  ;;  %v1426_v34 = vor.u32 %v1425_v14, %v1422_v13  ;;  %v1459_v48 = vshll.u32 %v1344_v35, 16  ;;  %v7555_v13 = vmov 0  }
  0xba   : > { %864 = vst [vmem:[#allocation2 + $0x4] sm:$0xf] %v863_v49  ;;  %1265 = vrot.lane.b32.xlu0 %v1229_v28, %s7553_s29  ;;  %v1418_v28 = vrot.slane %v1417_v33, 4  ;;  %v1465_v43 = vshrl.u32 %v1345_v27, 16  ;;  %v1468_v44 = vshll.u32 %v1345_v27, 16 }
  0xbb   : > { %v822_v61 = vpop.permute.xlu1 %821  ;;  %v1346_v49 = vld [vmem:[%s9973_s1 + $0x38] sm:$0xf]  ;;  %510 = vst.msk [vmem:[#allocation2] sm:$0xf] %vm509_vm11, %v7555_v13 }
  0xbc   : > { %v818_v62 = vpop.permute.xlu0 %817  ;;  %v872_v63 = vsel %vm8128_vm10, %v822_v61, %v871_v50  ;;  %v1467_v32 = vrot.slane %v1465_v43, 4  ;;  %v1470_v59 = vrot.slane %v1468_v44, 5  ;;  %v1458_v61 = vrot.slane %v1456_v47, 4 }
  0xbd   : > { %v866_v0 = vsel %vm8128_vm10, %v818_v62, %v865_v53  ;;  %873 = vst [vmem:[#allocation2 + $0x10] sm:$0xf] %v872_v63  ;;  %1484 = vrot.lane.b32.xlu1 %v1364_v39, %s7554_s11  ;;  %v1452_v39 = vrot.slane %v1450_v18, 5  ;;  %v1427_v53 = vrot.slane %v1426_v34, 4  ;;  %v1461_v62 = vrot.slane %v1459_v48, 5 }
  0xbe   : > { %867 = vst [vmem:[#allocation2 + $0x8] sm:$0xf] %v866_v0  ;;  %1482 = vrot.lane.b32.xlu0 %v1355_v40, %s7554_s11  ;;  %v1440_v40 = vrot.slane %v1438_v19, 4  ;;  %v1474_v63 = vshrl.u32 %v1346_v49, 16  ;;  %v1477_v0 = vshll.u32 %v1346_v49, 16  ;;  %v1471_v33 = vor.u32 %v1470_v59, %v1467_v32 }
  0xbf   : > { %v826_v15 = vpop.permute.xlu1 %825  ;;  %v1453_v54 = vor.u32 %v1452_v39, %v1449_v38  ;;  %v1462_v10 = vor.u32 %v1461_v62, %v1458_v61  ;;  %v904_v18 = vld [vmem:[#allocation2 + $0x3c] sm:$0xf] }
  0xc0   : > { %v824_v16 = vpop.permute.xlu0 %823  ;;  %v878_v21 = vsel %vm8128_vm10, %v826_v15, %v877_v6  ;;  %v1444_v55 = vor.u32 %v1443_v41, %v1440_v40  ;;  %v1476_v11 = vrot.slane %v1474_v63, 4  ;;  %v1479_v12 = vrot.slane %v1477_v0, 5 }
  0xc1   : > { %v875_v22 = vsel %vm8128_vm10, %v824_v16, %v874_v7  ;;  %879 = vst [vmem:[#allocation2 + $0x18] sm:$0xf] %v878_v21  ;;  %1488 = vrot.lane.b32.xlu1 %v1382_v8, %s7554_s11  ;;  %v1454_v4 = vrot.slane %v1453_v54, 4  ;;  %v901_v8 = vld [vmem:[#allocation2 + $0x38] sm:$0xf]  ;;  %v1472_v19 = vrot.slane %v1471_v33, 4 }
  0xc2   : > { %876 = vst [vmem:[#allocation2 + $0x14] sm:$0xf] %v875_v22  ;;  %1486 = vrot.lane.b32.xlu0 %v1373_v9, %s7554_s11  ;;  %v1445_v5 = vrot.slane %v1444_v55, 4  ;;  %v898_v9 = vld [vmem:[#allocation2 + $0x34] sm:$0xf]  ;;  %v1463_v20 = vrot.slane %v1462_v10, 4  ;;  %v1480_v21 = vor.u32 %v1479_v12, %v1476_v11 }
  0xc3   : > { %v830_v36 = vpop.permute.xlu1 %829 }
  0xc4   : > { %v828_v37 = vpop.permute.xlu0 %827  ;;  %v884_v42 = vsel %vm8128_vm10, %v830_v36, %v883_v25  ;;  %v1481_v25 = vrot.slane %v1480_v21, 4 }
  0xc5   : > { %v881_v1 = vsel %vm8128_vm10, %v828_v37, %v880_v26  ;;  %885 = vst [vmem:[#allocation2 + $0x20] sm:$0xf] %v884_v42  ;;  %1492 = vrot.lane.b32.xlu1 %v1400_v23, %s7554_s11 }
  0xc6   : > { %882 = vst [vmem:[#allocation2 + $0x1c] sm:$0xf] %v881_v1  ;;  %1490 = vrot.lane.b32.xlu0 %v1391_v24, %s7554_s11 }
  0xc7   : > { %v834_v50 = vpop.permute.xlu1 %833 }
  0xc8   : > { %v832_v51 = vpop.permute.xlu0 %831  ;;  %v890_v56 = vsel %vm8128_vm10, %v834_v50, %v889_v45 }
  0xc9   : > { %v887_v57 = vsel %vm8128_vm10, %v832_v51, %v886_v46  ;;  %891 = vst [vmem:[#allocation2 + $0x28] sm:$0xf] %v890_v56  ;;  %1496 = vrot.lane.b32.xlu1 %v1418_v28, %s7554_s11 }
  0xca   : > { %888 = vst [vmem:[#allocation2 + $0x24] sm:$0xf] %v887_v57  ;;  %1494 = vrot.lane.b32.xlu0 %v1409_v29, %s7554_s11 }
  0xcb   : > { %v838_v2 = vpop.permute.xlu1 %837 }
  0xcc   : > { %v836_v3 = vpop.permute.xlu0 %835  ;;  %v896_v6 = vsel %vm8128_vm10, %v838_v2, %v895_v58 }
  0xcd   : > { %v893_v7 = vsel %vm8128_vm10, %v836_v3, %v892_v60  ;;  %897 = vst [vmem:[#allocation2 + $0x30] sm:$0xf] %v896_v6  ;;  %1500 = vrot.lane.b32.xlu1 %v1436_v52, %s7554_s11 }
  0xce   : > { %894 = vst [vmem:[#allocation2 + $0x2c] sm:$0xf] %v893_v7  ;;  %1498 = vrot.lane.b32.xlu0 %v1427_v53, %s7554_s11 }
  0xcf   : > { %v842_v14 = vpop.permute.xlu1 %841 }
  0xd0   : > { %v840_v15 = vpop.permute.xlu0 %839  ;;  %v902_v16 = vsel %vm8128_vm10, %v842_v14, %v901_v8 }
  0xd1   : > { %v899_v17 = vsel %vm8128_vm10, %v840_v15, %v898_v9  ;;  %903 = vst [vmem:[#allocation2 + $0x38] sm:$0xf] %v902_v16  ;;  %1504 = vrot.lane.b32.xlu1 %v1454_v4, %s7554_s11 }
  0xd2   : > { %900 = vst [vmem:[#allocation2 + $0x34] sm:$0xf] %v899_v17  ;;  %1502 = vrot.lane.b32.xlu0 %v1445_v5, %s7554_s11 }
  0xd3   : > { %v938_v22 = vpop.permute.xlu1 %937 }
  0xd4   : > { %v844_v23 = vpop.permute.xlu0 %843  ;;  %983 = vst.msk [vmem:[#allocation2 + $0x4] sm:$0xf] %vm982_vm12, %v938_v22 }
  0xd5   : > { %v905_v24 = vsel %vm8128_vm10, %v844_v23, %v904_v18  ;;  %1508 = vrot.lane.b32.xlu1 %v1472_v19, %s7554_s11 }
  0xd6   : > { %906 = vst [vmem:[#allocation2 + $0x3c] sm:$0xf] %v905_v24  ;;  %1506 = vrot.lane.b32.xlu0 %v1463_v20, %s7554_s11 }
  0xd7   : > { %v942_v26 = vpop.permute.xlu1 %941 }
  0xd8   : > { %v940_v27 = vpop.permute.xlu0 %939  ;;  %985 = vst.msk [vmem:[#allocation2 + $0xc] sm:$0xf] %vm982_vm12, %v942_v26 }
  0xd9   : > { %984 = vst.msk [vmem:[#allocation2 + $0x8] sm:$0xf] %vm982_vm12, %v940_v27 }
  0xda   : > { %1510 = vrot.lane.b32.xlu0 %v1481_v25, %s7554_s11 }
  0xdb   : > { %v946_v28 = vpop.permute.xlu1 %945 }
  0xdc   : > { %v944_v29 = vpop.permute.xlu0 %943  ;;  %987 = vst.msk [vmem:[#allocation2 + $0x14] sm:$0xf] %vm982_vm12, %v946_v28 }
  0xdd   : > { %986 = vst.msk [vmem:[#allocation2 + $0x10] sm:$0xf] %vm982_vm12, %v944_v29 }
  0xdf   : > { %v950_v31 = vpop.permute.xlu1 %949 }
  0xe0   : > { %v948_v30 = vpop.permute.xlu0 %947  ;;  %989 = vst.msk [vmem:[#allocation2 + $0x1c] sm:$0xf] %vm982_vm12, %v950_v31 }
  0xe1   : > { %988 = vst.msk [vmem:[#allocation2 + $0x18] sm:$0xf] %vm982_vm12, %v948_v30 }
  0xe3   : > { %v954_v34 = vpop.permute.xlu1 %953 }
  0xe4   : > { %v952_v35 = vpop.permute.xlu0 %951  ;;  %991 = vst.msk [vmem:[#allocation2 + $0x24] sm:$0xf] %vm982_vm12, %v954_v34 }
  0xe5   : > { %990 = vst.msk [vmem:[#allocation2 + $0x20] sm:$0xf] %vm982_vm12, %v952_v35 }
  0xe7   : > { %v958_v36 = vpop.permute.xlu1 %957 }
  0xe8   : > { %v956_v37 = vpop.permute.xlu0 %955  ;;  %993 = vst.msk [vmem:[#allocation2 + $0x2c] sm:$0xf] %vm982_vm12, %v958_v36 }
  0xe9   : > { %992 = vst.msk [vmem:[#allocation2 + $0x28] sm:$0xf] %vm982_vm12, %v956_v37 }
  0xeb   : > { %v962_v38 = vpop.permute.xlu1 %961 }
  0xec   : > { %v960_v39 = vpop.permute.xlu0 %959  ;;  %995 = vst.msk [vmem:[#allocation2 + $0x34] sm:$0xf] %vm982_vm12, %v962_v38 }
  0xed   : > { %994 = vst.msk [vmem:[#allocation2 + $0x30] sm:$0xf] %vm982_vm12, %v960_v39 }
  0xef   : > { %v966_v40 = vpop.permute.xlu1 %965 }
  0xf0   : > { %v964_v41 = vpop.permute.xlu0 %963  ;;  %997 = vst.msk [vmem:[#allocation2 + $0x3c] sm:$0xf] %vm982_vm12, %v966_v40 }
  0xf1   : > { %996 = vst.msk [vmem:[#allocation2 + $0x38] sm:$0xf] %vm982_vm12, %v964_v41 }
  0xf3   : > { %v1031_v42 = vpop.permute.xlu1 %1030 }
  0xf4   : > { %v1029_v1 = vpop.permute.xlu0 %1028  ;;  %1075 = vst.msk [vmem:[#allocation2 + $0x8] sm:$0xf] %vm1073_vm13, %v1031_v42 }
  0xf5   : > { %1074 = vst.msk [vmem:[#allocation2 + $0x4] sm:$0xf] %vm1073_vm13, %v1029_v1 }
  0xf7   : > { %v1035_v43 = vpop.permute.xlu1 %1034 }
  0xf8   : > { %v1033_v44 = vpop.permute.xlu0 %1032  ;;  %1077 = vst.msk [vmem:[#allocation2 + $0x10] sm:$0xf] %vm1073_vm13, %v1035_v43 }
  0xf9   : > { %1076 = vst.msk [vmem:[#allocation2 + $0xc] sm:$0xf] %vm1073_vm13, %v1033_v44 }
  0xfb   : > { %v1039_v45 = vpop.permute.xlu1 %1038  ;;  %v1290_v62 = vld [vmem:[#allocation2 + $0x8] sm:$0xf] }
  0xfc   : > { %v1037_v46 = vpop.permute.xlu0 %1036  ;;  %1079 = vst.msk [vmem:[#allocation2 + $0x18] sm:$0xf] %vm1073_vm13, %v1039_v45  ;;  %v1287_v57 = vld [vmem:[#allocation2 + $0x4] sm:$0xf] }
  0xfd   : > { %1078 = vst.msk [vmem:[#allocation2 + $0x14] sm:$0xf] %vm1073_vm13, %v1037_v46 }
  0xff   : > { %v1043_v47 = vpop.permute.xlu1 %1042  ;;  %v1296_v5 = vld [vmem:[#allocation2 + $0x10] sm:$0xf] }
 0x100   : > { %v1041_v48 = vpop.permute.xlu0 %1040  ;;  %1081 = vst.msk [vmem:[#allocation2 + $0x20] sm:$0xf] %vm1073_vm13, %v1043_v47  ;;  %v1293_v60 = vld [vmem:[#allocation2 + $0xc] sm:$0xf] }
 0x101   : > { %1080 = vst.msk [vmem:[#allocation2 + $0x1c] sm:$0xf] %vm1073_vm13, %v1041_v48 }
 0x103   : > { %v1047_v49 = vpop.permute.xlu1 %1046  ;;  %v1302_v10 = vld [vmem:[#allocation2 + $0x18] sm:$0xf] }
 0x104   : > { %v1045_v50 = vpop.permute.xlu0 %1044  ;;  %1083 = vst.msk [vmem:[#allocation2 + $0x28] sm:$0xf] %vm1073_vm13, %v1047_v49  ;;  %v1299_v3 = vld [vmem:[#allocation2 + $0x14] sm:$0xf] }
 0x105   : > { %1082 = vst.msk [vmem:[#allocation2 + $0x24] sm:$0xf] %vm1073_vm13, %v1045_v50 }
 0x107   : > { %v1051_v51 = vpop.permute.xlu1 %1050  ;;  %v1308_v16 = vld [vmem:[#allocation2 + $0x20] sm:$0xf] }
 0x108   : > { %v1049_v52 = vpop.permute.xlu0 %1048  ;;  %1085 = vst.msk [vmem:[#allocation2 + $0x30] sm:$0xf] %vm1073_vm13, %v1051_v51  ;;  %v1305_v9 = vld [vmem:[#allocation2 + $0x1c] sm:$0xf] }
 0x109   : > { %1084 = vst.msk [vmem:[#allocation2 + $0x2c] sm:$0xf] %vm1073_vm13, %v1049_v52 }
 0x10b   : > { %v1055_v53 = vpop.permute.xlu1 %1054  ;;  %v1314_v22 = vld [vmem:[#allocation2 + $0x28] sm:$0xf] }
 0x10c   : > { %v1053_v54 = vpop.permute.xlu0 %1052  ;;  %1087 = vst.msk [vmem:[#allocation2 + $0x38] sm:$0xf] %vm1073_vm13, %v1055_v53  ;;  %v1311_v14 = vld [vmem:[#allocation2 + $0x24] sm:$0xf] }
 0x10d   : > { %1086 = vst.msk [vmem:[#allocation2 + $0x34] sm:$0xf] %vm1073_vm13, %v1053_v54 }
 0x10f   : > { %v1240_v56 = vpop.permute.xlu1 %1239  ;;  %v1320_v28 = vld [vmem:[#allocation2 + $0x30] sm:$0xf] }
 0x110   : > { %v1057_v58 = vpop.permute.xlu0 %1056  ;;  %v1288_v32 = vsel %vm8232_vm0, %v1240_v56, %v1287_v57  ;;  %v1317_v20 = vld [vmem:[#allocation2 + $0x2c] sm:$0xf] }
 0x111   : > { %1088 = vst.msk [vmem:[#allocation2 + $0x3c] sm:$0xf] %vm1073_vm13, %v1057_v58  ;;  %1289 = vst [vmem:[#allocation2 + $0x4] sm:$0xf] %v1288_v32 }
 0x113   : > { %v1244_v59 = vpop.permute.xlu1 %1243  ;;  %v1326_v36 = vld [vmem:[#allocation2 + $0x38] sm:$0xf] }
 0x114   : > { %v1242_v61 = vpop.permute.xlu0 %1241  ;;  %v1294_v63 = vsel %vm8232_vm0, %v1244_v59, %v1293_v60  ;;  %v1323_v26 = vld [vmem:[#allocation2 + $0x34] sm:$0xf] }
 0x115   : > { %v1291_v0 = vsel %vm8232_vm0, %v1242_v61, %v1290_v62  ;;  %1295 = vst [vmem:[#allocation2 + $0xc] sm:$0xf] %v1294_v63 }
 0x116   : > { %1292 = vst [vmem:[#allocation2 + $0x8] sm:$0xf] %v1291_v0 }
 0x117   : > { %v1248_v2 = vpop.permute.xlu1 %1247 }
 0x118   : > { %v1246_v4 = vpop.permute.xlu0 %1245  ;;  %v1300_v6 = vsel %vm8232_vm0, %v1248_v2, %v1299_v3  ;;  %v1329_v34 = vld [vmem:[#allocation2 + $0x3c] sm:$0xf]  ;;  %v1529_v1 = vld [vmem:[#allocation2 + $0x4] sm:$0xf] }
 0x119   : > { %v1297_v7 = vsel %vm8232_vm0, %v1246_v4, %v1296_v5  ;;  %1301 = vst [vmem:[#allocation2 + $0x14] sm:$0xf] %v1300_v6 }
 0x11a   : > { %1298 = vst [vmem:[#allocation2 + $0x10] sm:$0xf] %v1297_v7 }
 0x11b   : > { %v1252_v8 = vpop.permute.xlu1 %1251 }
 0x11c   : > { %v1250_v33 = vpop.permute.xlu0 %1249  ;;  %v1306_v11 = vsel %vm8232_vm0, %v1252_v8, %v1305_v9  ;;  %v1535_v48 = vld [vmem:[#allocation2 + $0xc] sm:$0xf] }
 0x11d   : > { %v1303_v12 = vsel %vm8232_vm0, %v1250_v33, %v1302_v10  ;;  %1307 = vst [vmem:[#allocation2 + $0x1c] sm:$0xf] %v1306_v11  ;;  %v1532_v41 = vld [vmem:[#allocation2 + $0x8] sm:$0xf] }
 0x11e   : > { %1304 = vst [vmem:[#allocation2 + $0x18] sm:$0xf] %v1303_v12 }
 0x11f   : > { %v1256_v13 = vpop.permute.xlu1 %1255 }
 0x120   : > { %v1254_v15 = vpop.permute.xlu0 %1253  ;;  %v1312_v17 = vsel %vm8232_vm0, %v1256_v13, %v1311_v14  ;;  %v1541_v54 = vld [vmem:[#allocation2 + $0x14] sm:$0xf] }
 0x121   : > { %v1309_v18 = vsel %vm8232_vm0, %v1254_v15, %v1308_v16  ;;  %1313 = vst [vmem:[#allocation2 + $0x24] sm:$0xf] %v1312_v17  ;;  %v1538_v46 = vld [vmem:[#allocation2 + $0x10] sm:$0xf] }
 0x122   : > { %1310 = vst [vmem:[#allocation2 + $0x20] sm:$0xf] %v1309_v18 }
 0x123   : > { %v1260_v19 = vpop.permute.xlu1 %1259 }
 0x124   : > { %v1258_v21 = vpop.permute.xlu0 %1257  ;;  %v1318_v23 = vsel %vm8232_vm0, %v1260_v19, %v1317_v20  ;;  %v1547_v59 = vld [vmem:[#allocation2 + $0x1c] sm:$0xf] }
 0x125   : > { %v1315_v24 = vsel %vm8232_vm0, %v1258_v21, %v1314_v22  ;;  %1319 = vst [vmem:[#allocation2 + $0x2c] sm:$0xf] %v1318_v23  ;;  %v1544_v52 = vld [vmem:[#allocation2 + $0x18] sm:$0xf] }
 0x126   : > { %1316 = vst [vmem:[#allocation2 + $0x28] sm:$0xf] %v1315_v24 }
 0x127   : > { %v1264_v25 = vpop.permute.xlu1 %1263 }
 0x128   : > { %v1262_v27 = vpop.permute.xlu0 %1261  ;;  %v1324_v29 = vsel %vm8232_vm0, %v1264_v25, %v1323_v26  ;;  %v1553_v2 = vld [vmem:[#allocation2 + $0x24] sm:$0xf] }
 0x129   : > { %v1321_v31 = vsel %vm8232_vm0, %v1262_v27, %v1320_v28  ;;  %1325 = vst [vmem:[#allocation2 + $0x34] sm:$0xf] %v1324_v29  ;;  %v1550_v58 = vld [vmem:[#allocation2 + $0x20] sm:$0xf] }
 0x12a   : > { %1322 = vst [vmem:[#allocation2 + $0x30] sm:$0xf] %v1321_v31 }
 0x12b   : > { %v1268_v30 = vpop.permute.xlu1 %1267 }
 0x12c   : > { %v1266_v35 = vpop.permute.xlu0 %1265  ;;  %v1330_v37 = vsel %vm8232_vm0, %v1268_v30, %v1329_v34  ;;  %v1559_v8 = vld [vmem:[#allocation2 + $0x2c] sm:$0xf] }
 0x12d   : > { %v1327_v38 = vsel %vm8232_vm0, %v1266_v35, %v1326_v36  ;;  %1331 = vst [vmem:[#allocation2 + $0x3c] sm:$0xf] %v1330_v37  ;;  %v1556_v63 = vld [vmem:[#allocation2 + $0x28] sm:$0xf] }
 0x12e   : > { %1328 = vst [vmem:[#allocation2 + $0x38] sm:$0xf] %v1327_v38 }
 0x12f   : > { %v1485_v40 = vpop.permute.xlu1 %1484 }
 0x130   : > { %v1483_v42 = vpop.permute.xlu0 %1482  ;;  %v1533_v43 = vsel %vm8268_vm2, %v1485_v40, %v1532_v41  ;;  %v1565_v13 = vld [vmem:[#allocation2 + $0x34] sm:$0xf] }
 0x131   : > { %v1530_v44 = vsel %vm8268_vm2, %v1483_v42, %v1529_v1  ;;  %1534 = vst [vmem:[#allocation2 + $0x8] sm:$0xf] %v1533_v43  ;;  %v1562_v6 = vld [vmem:[#allocation2 + $0x30] sm:$0xf] }
 0x132   : > { %1531 = vst [vmem:[#allocation2 + $0x4] sm:$0xf] %v1530_v44 }
 0x133   : > { %v1489_v45 = vpop.permute.xlu1 %1488 }
 0x134   : > { %v1487_v47 = vpop.permute.xlu0 %1486  ;;  %v1539_v49 = vsel %vm8268_vm2, %v1489_v45, %v1538_v46  ;;  %v1571_v17 = vld [vmem:[#allocation2 + $0x3c] sm:$0xf] }
 0x135   : > { %v1536_v50 = vsel %vm8268_vm2, %v1487_v47, %v1535_v48  ;;  %1540 = vst [vmem:[#allocation2 + $0x10] sm:$0xf] %v1539_v49  ;;  %v1568_v11 = vld [vmem:[#allocation2 + $0x38] sm:$0xf] }
 0x136   : > { %1537 = vst [vmem:[#allocation2 + $0xc] sm:$0xf] %v1536_v50 }
 0x137   : > { %v1493_v51 = vpop.permute.xlu1 %1492 }
 0x138   : > { %v1491_v53 = vpop.permute.xlu0 %1490  ;;  %v1545_v55 = vsel %vm8268_vm2, %v1493_v51, %v1544_v52 }
 0x139   : > { %v1542_v56 = vsel %vm8268_vm2, %v1491_v53, %v1541_v54  ;;  %1546 = vst [vmem:[#allocation2 + $0x18] sm:$0xf] %v1545_v55 }
 0x13a   : > { %1543 = vst [vmem:[#allocation2 + $0x14] sm:$0xf] %v1542_v56 }
 0x13b   : > { %v1497_v57 = vpop.permute.xlu1 %1496 }
 0x13c   : > { %v1495_v32 = vpop.permute.xlu0 %1494  ;;  %v1551_v60 = vsel %vm8268_vm2, %v1497_v57, %v1550_v58 }
 0x13d   : > { %v1548_v61 = vsel %vm8268_vm2, %v1495_v32, %v1547_v59  ;;  %1552 = vst [vmem:[#allocation2 + $0x20] sm:$0xf] %v1551_v60 }
 0x13e   : > { %1549 = vst [vmem:[#allocation2 + $0x1c] sm:$0xf] %v1548_v61 }
 0x13f   : > { %v1501_v62 = vpop.permute.xlu1 %1500 }
 0x140   : > { %v1499_v0 = vpop.permute.xlu0 %1498  ;;  %v1557_v3 = vsel %vm8268_vm2, %v1501_v62, %v1556_v63 }
 0x141   : > { %v1554_v4 = vsel %vm8268_vm2, %v1499_v0, %v1553_v2  ;;  %1558 = vst [vmem:[#allocation2 + $0x28] sm:$0xf] %v1557_v3 }
 0x142   : > { %1555 = vst [vmem:[#allocation2 + $0x24] sm:$0xf] %v1554_v4 }
 0x143   : > { %v1505_v5 = vpop.permute.xlu1 %1504 }
 0x144   : > { %v1503_v7 = vpop.permute.xlu0 %1502  ;;  %v1563_v9 = vsel %vm8268_vm2, %v1505_v5, %v1562_v6 }
 0x145   : > { %v1560_v33 = vsel %vm8268_vm2, %v1503_v7, %v1559_v8  ;;  %1564 = vst [vmem:[#allocation2 + $0x30] sm:$0xf] %v1563_v9 }
 0x146   : > { %1561 = vst [vmem:[#allocation2 + $0x2c] sm:$0xf] %v1560_v33 }
 0x147   : > { %v1509_v10 = vpop.permute.xlu1 %1508 }
 0x148   : > { %v1507_v12 = vpop.permute.xlu0 %1506  ;;  %v1569_v14 = vsel %vm8268_vm2, %v1509_v10, %v1568_v11 }
 0x149   : > { %v1566_v15 = vsel %vm8268_vm2, %v1507_v12, %v1565_v13  ;;  %1570 = vst [vmem:[#allocation2 + $0x38] sm:$0xf] %v1569_v14 }
 0x14a   : > { %1567 = vst [vmem:[#allocation2 + $0x34] sm:$0xf] %v1566_v15 }
 0x14c   : > { %v1511_v16 = vpop.permute.xlu0 %1510 }
 0x14d   : > { %v1572_v18 = vsel %vm8268_vm2, %v1511_v16, %v1571_v17 }
 0x14e   : > { %1573 = vst [vmem:[#allocation2 + $0x3c] sm:$0xf] %v1572_v18 }
 0x14f PF: > { %p6984_p6 = scmp.le.s32.totalorder %s7540_s18, 0 }
 0x150   : > { %s6985_s17 = sadd.s32 (!%p6984_p6), 4294967295, %s7628_s22  ;;  %s7556_s22 = smov (!%p6984_p6), 5   ;;  %vm1725_vm3 = vcmask (!%p6984_p6), 35840   ;;  %vm1726_vm4 = vsmask.f32 (!%p6984_p6), 7938  ;;  %vm1954_vm6 = vcmask (!%p6984_p6), 93224  }
 0x151   : > { %1577 = sbr.rel (%p6984_p6) target bundleno = 619 (0x26b), region = 48  ;;  %s8304_s23 = sshll.u32 (!%p6984_p6), %s6985_s17, 2  ;;  %vm8360_vm5 = vmand (!%p6984_p6), %vm1725_vm3, %vm1726_vm4  ;;  %vm2084_vm8 = vcmask (!%p6984_p6), 134240   ;;  %vm2181_vm9 = vcmask (!%p6984_p6), 191624   ;;  %vm2406_vm10 = vcmask (!%p6984_p6), 232640   ;;  %vm2665_vm13 = vcmask (!%p6984_p6), 290024  }
 0x152   : > { %s8310_s26 = scalar_lea.vmem (!%p6984_p6), %s9973_s1, %s8304_s23  ;;  %s8346_s29 = scalar_lea.vmem (!%p6984_p6), %s9972_s0, %s8304_s23  ;;  %vm8498_vm7 = vmand (!%p6984_p6), %vm1954_vm6, %vm1726_vm4  ;;  %vm2407_vm11 = vsmask.f32 (!%p6984_p6), 3328 }
 0x153   : > { %v1780_v19 = vld [vmem:[%s8310_s26 + $0x8] sm:$0xf] (!%p6984_p6)  ;;  %v1778_v20 = vld [vmem:[%s8310_s26] sm:$0xf] (!%p6984_p6)  ;;  %v1781_v21 = vld [vmem:[%s8310_s26 + $0xc] sm:$0xf] (!%p6984_p6) }
 0x154   : > { %v1809_v22 = vshrl.u32 (!%p6984_p6), %v1780_v19, 16  ;;  %v1812_v23 = vshll.u32 (!%p6984_p6), %v1780_v19, 16  ;;  %v1795_v24 = vshrl.u32 (!%p6984_p6), %v1778_v20, 16  ;;  %v1798_v25 = vshll.u32 (!%p6984_p6), %v1778_v20, 16  ;;  %v1779_v26 = vld [vmem:[%s8310_s26 + $0x4] sm:$0xf] (!%p6984_p6)  ;;  %vm8604_vm12 = vmand (!%p6984_p6), %vm2406_vm10, %vm2407_vm11 }
 0x155   : > { %v1816_v27 = vshrl.u32 (!%p6984_p6), %v1781_v21, 16  ;;  %v1819_v28 = vshll.u32 (!%p6984_p6), %v1781_v21, 16  ;;  %v1802_v29 = vshrl.u32 (!%p6984_p6), %v1779_v26, 16  ;;  %v1783_v31 = vld [vmem:[%s8310_s26 + $0x14] sm:$0xf] (!%p6984_p6)  ;;  %v1805_v35 = vshll.u32 (!%p6984_p6), %v1779_v26, 16  ;;  %vm8641_vm14 = vmand (!%p6984_p6), %vm2665_vm13, %vm2407_vm11 }
 0x156   : > { %v1811_v30 = vrot.slane (!%p6984_p6), %v1809_v22, 7  ;;  %v1797_v34 = vrot.slane (!%p6984_p6), %v1795_v24, 7  ;;  %v1830_v36 = vshrl.u32 (!%p6984_p6), %v1783_v31, 16  ;;  %v1782_v37 = vld [vmem:[%s8310_s26 + $0x10] sm:$0xf] (!%p6984_p6)  ;;  %v1833_v45 = vshll.u32 (!%p6984_p6), %v1783_v31, 16 }
 0x157   : > { %v1818_v38 = vrot.slane (!%p6984_p6), %v1816_v27, 7  ;;  %v1804_v39 = vrot.slane (!%p6984_p6), %v1802_v29, 7  ;;  %v1823_v40 = vshrl.u32 (!%p6984_p6), %v1782_v37, 16  ;;  %v1785_v41 = vld [vmem:[%s8310_s26 + $0x1c] sm:$0xf] (!%p6984_p6)  ;;  %v1826_v46 = vshll.u32 (!%p6984_p6), %v1782_v37, 16 }
 0x158   : > { %v1814_v42 = vor.u32 %v1812_v23, %v1811_v30  ;;  %v1800_v1 = vor.u32 %v1798_v25, %v1797_v34  ;;  %v1784_v43 = vld [vmem:[%s8310_s26 + $0x18] sm:$0xf]  ;;  %v1832_v44 = vrot.slane %v1830_v36, 7  ;;  %v1844_v47 = vshrl.u32 %v1785_v41, 16  ;;  %v1787_v52 = vld [vmem:[%s8310_s26 + $0x24] sm:$0xf] }
 0x159   : > { %v1821_v48 = vor.u32 %v1819_v28, %v1818_v38  ;;  %v1807_v49 = vor.u32 %v1805_v35, %v1804_v39  ;;  %v1825_v50 = vrot.slane %v1823_v40, 7  ;;  %v1837_v51 = vshrl.u32 %v1784_v43, 16  ;;  %v1786_v53 = vld [vmem:[%s8310_s26 + $0x20] sm:$0xf]  ;;  %v1789_v61 = vld [vmem:[%s8310_s26 + $0x2c] sm:$0xf] }
 0x15a   : > { %1910 = vrot.lane.b32.xlu1 %v1814_v42, %s7556_s22  ;;  %1906 = vrot.lane.b32.xlu0 %v1800_v1, %s7556_s22  ;;  %v1835_v54 = vor.u32 %v1833_v45, %v1832_v44  ;;  %v1846_v55 = vrot.slane %v1844_v47, 7  ;;  %v1847_v56 = vshll.u32 %v1785_v41, 16  ;;  %v1840_v57 = vshll.u32 %v1784_v43, 16  ;;  %v1788_v62 = vld [vmem:[%s8310_s26 + $0x28] sm:$0xf]  ;;  %s7557_s8 = smov 12  }
 0x15b   : > { %v1828_v58 = vor.u32 %v1826_v46, %v1825_v50  ;;  %v1839_v32 = vrot.slane %v1837_v51, 7  ;;  %v1858_v59 = vshrl.u32 %v1787_v52, 16  ;;  %v1851_v60 = vshrl.u32 %v1786_v53, 16  ;;  %v1791_v8 = vld [vmem:[%s8310_s26 + $0x34] sm:$0xf]  ;;  %s7558_s9 = smov 17  }
 0x15c   : > { %v1849_v63 = vor.u32 %v1847_v56, %v1846_v55  ;;  %v1861_v0 = vshll.u32 %v1787_v52, 16  ;;  %v1854_v2 = vshll.u32 %v1786_v53, 16  ;;  %v1872_v3 = vshrl.u32 %v1789_v61, 16  ;;  %v1790_v9 = vld [vmem:[%s8310_s26 + $0x30] sm:$0xf]  ;;  %s7559_s10 = smov 24  }
 0x15d   : > { %v1842_v4 = vor.u32 %v1840_v57, %v1839_v32  ;;  %v1860_v5 = vrot.slane %v1858_v59, 7  ;;  %v1853_v6 = vrot.slane %v1851_v60, 7  ;;  %v1865_v7 = vshrl.u32 %v1788_v62, 16  ;;  %v1793_v17 = vld [vmem:[%s8310_s26 + $0x3c] sm:$0xf]  ;;  %s7560_s11 = smov 29  }
 0x15e   : > { %1912 = vrot.lane.b32.xlu1 %v1821_v48, %s7556_s22  ;;  %1908 = vrot.lane.b32.xlu0 %v1807_v49, %s7556_s22  ;;  %v1874_v33 = vrot.slane %v1872_v3, 7  ;;  %v1875_v10 = vshll.u32 %v1789_v61, 16  ;;  %v1868_v11 = vshll.u32 %v1788_v62, 16  ;;  %v1886_v12 = vshrl.u32 %v1791_v8, 16  ;;  %v1792_v18 = vld [vmem:[%s8310_s26 + $0x38] sm:$0xf] }
 0x15f   : > { %v1863_v13 = vor.u32 %v1861_v0, %v1860_v5  ;;  %v1856_v14 = vor.u32 %v1854_v2, %v1853_v6  ;;  %v1867_v15 = vrot.slane %v1865_v7, 7  ;;  %v1879_v16 = vshrl.u32 %v1790_v9, 16  ;;  %v2005_v37 = vld [vmem:[%s8346_s29 + $0x4] sm:$0xf]  ;;  %v2004_v38 = vld [vmem:[%s8346_s29] sm:$0xf] }
 0x160   : > { %v1877_v19 = vor.u32 %v1875_v10, %v1874_v33  ;;  %v1888_v20 = vrot.slane %v1886_v12, 7  ;;  %v1889_v21 = vshll.u32 %v1791_v8, 16  ;;  %v1882_v22 = vshll.u32 %v1790_v9, 16  ;;  %v1583_v39 = vld [vmem:[%s8346_s29 + $0x8] sm:$0xf] }
 0x161   : > { %v1870_v23 = vor.u32 %v1868_v11, %v1867_v15  ;;  %v1881_v24 = vrot.slane %v1879_v16, 7  ;;  %v1900_v25 = vshrl.u32 %v1793_v17, 16  ;;  %v1893_v26 = vshrl.u32 %v1792_v18, 16  ;;  %v1581_v40 = vld [vmem:[%s8346_s29] sm:$0xf] }
 0x162   : > { %1916 = vrot.lane.b32.xlu1 %v1835_v54, %s7556_s22  ;;  %1914 = vrot.lane.b32.xlu0 %v1828_v58, %s7556_s22  ;;  %v1891_v27 = vor.u32 %v1889_v21, %v1888_v20  ;;  %v1903_v28 = vshll.u32 %v1793_v17, 16  ;;  %v1896_v34 = vshll.u32 %v1792_v18, 16  ;;  %v1612_v41 = vshrl.u32 %v1583_v39, 16  ;;  %v2007_v1 = vld [vmem:[%s8346_s29 + $0xc] sm:$0xf] }
 0x163   : > { %v1884_v29 = vor.u32 %v1882_v22, %v1881_v24  ;;  %v1902_v31 = vrot.slane %v1900_v25, 7  ;;  %v1895_v30 = vrot.slane %v1893_v26, 7  ;;  %v1615_v42 = vshll.u32 %v1583_v39, 16  ;;  %v2006_v43 = vld [vmem:[%s8346_s29 + $0x8] sm:$0xf] }
 0x164   : > { %v1598_v44 = vshrl.u32 %v1581_v40, 16  ;;  %v1614_v45 = vrot.slane %v1612_v41, 7  ;;  %v1601_v46 = vshll.u32 %v1581_v40, 16  ;;  %v1584_v47 = vld [vmem:[%s8346_s29 + $0xc] sm:$0xf] }
 0x165   : > { %v1905_v35 = vor.u32 %v1903_v28, %v1902_v31  ;;  %v1898_v36 = vor.u32 %v1896_v34, %v1895_v30  ;;  %v1734_v49 = vld [vmem:[#allocation2 + $0x8] sm:$0xf]  ;;  %v2009_v51 = vld [vmem:[%s8346_s29 + $0x14] sm:$0xf]  ;;  %v1728_v53 = vld [vmem:[#allocation2] sm:$0xf] }
 0x166   : > { %1920 = vrot.lane.b32.xlu1 %v1849_v63, %s7556_s22  ;;  %1918 = vrot.lane.b32.xlu0 %v1842_v4, %s7556_s22  ;;  %v1600_v50 = vrot.slane %v1598_v44, 7  ;;  %v1617_v52 = vor.u32 %v1615_v42, %v1614_v45  ;;  %v2008_v54 = vld [vmem:[%s8346_s29 + $0x10] sm:$0xf]  ;;  %v1619_v56 = vshrl.u32 %v1584_v47, 16  ;;  %v1582_v57 = vld [vmem:[%s8346_s29 + $0x4] sm:$0xf] }
 0x167   : > { %v1622_v60 = vshll.u32 %v1584_v47, 16  ;;  %v1737_v61 = vld [vmem:[#allocation2 + $0xc] sm:$0xf]  ;;  %v1605_v62 = vshrl.u32 %v1582_v57, 16  ;;  %v1608_v63 = vshll.u32 %v1582_v57, 16 }
 0x168   : > { %v1603_v55 = vor.u32 %v1601_v46, %v1600_v50  ;;  %v1735_v58 = vsel %vm8360_vm5, %v1617_v52, %v1734_v49  ;;  %v1621_v59 = vrot.slane %v1619_v56, 7  ;;  %v1586_v0 = vld [vmem:[%s8346_s29 + $0x14] sm:$0xf]  ;;  %v2011_v2 = vld [vmem:[%s8346_s29 + $0x1c] sm:$0xf] }
 0x169   : > { %1736 = vst [vmem:[#allocation2 + $0x8] sm:$0xf] %v1735_v58  ;;  %v2010_v3 = vld [vmem:[%s8346_s29 + $0x18] sm:$0xf]  ;;  %v1585_v5 = vld [vmem:[%s8346_s29 + $0x10] sm:$0xf] }
 0x16a   : > { %1924 = vrot.lane.b32.xlu1 %v1863_v13, %s7556_s22  ;;  %1922 = vrot.lane.b32.xlu0 %v1856_v14, %s7556_s22  ;;  %v1729_v32 = vsel %vm8360_vm5, %v1603_v55, %v1728_v53  ;;  %v1624_v4 = vor.u32 %v1622_v60, %v1621_v59  ;;  %v1607_v6 = vrot.slane %v1605_v62, 7  ;;  %v1731_v8 = vld [vmem:[#allocation2 + $0x4] sm:$0xf]  ;;  %v1633_v9 = vshrl.u32 %v1586_v0, 16  ;;  %v2012_v13 = vld [vmem:[%s8346_s29 + $0x20] sm:$0xf] }
 0x16b   : > { %1730 = vst [vmem:[#allocation2] sm:$0xf] %v1729_v32  ;;  %v1636_v10 = vshll.u32 %v1586_v0, 16  ;;  %v1626_v11 = vshrl.u32 %v1585_v5, 16  ;;  %v2013_v12 = vld [vmem:[%s8346_s29 + $0x24] sm:$0xf] }
 0x16c   : > { %v1738_v7 = vsel %vm8360_vm5, %v1624_v4, %v1737_v61  ;;  %v1610_v33 = vor.u32 %v1608_v63, %v1607_v6  ;;  %v1635_v14 = vrot.slane %v1633_v9, 7  ;;  %v1629_v15 = vshll.u32 %v1585_v5, 16  ;;  %v1743_v17 = vld [vmem:[#allocation2 + $0x14] sm:$0xf]  ;;  %v1740_v21 = vld [vmem:[#allocation2 + $0x10] sm:$0xf] }
 0x16d   : > { %1739 = vst [vmem:[#allocation2 + $0xc] sm:$0xf] %v1738_v7  ;;  %v1628_v18 = vrot.slane %v1626_v11, 7  ;;  %v1587_v22 = vld [vmem:[%s8346_s29 + $0x18] sm:$0xf] }
 0x16e   : > { %1928 = vrot.lane.b32.xlu1 %v1877_v19, %s7556_s22  ;;  %1926 = vrot.lane.b32.xlu0 %v1870_v23, %s7556_s22  ;;  %v1732_v16 = vsel %vm8360_vm5, %v1610_v33, %v1731_v8  ;;  %v1588_v19 = vld [vmem:[%s8346_s29 + $0x1c] sm:$0xf]  ;;  %v1638_v20 = vor.u32 %v1636_v10, %v1635_v14  ;;  %v2015_v24 = vld [vmem:[%s8346_s29 + $0x2c] sm:$0xf]  ;;  %v1640_v31 = vshrl.u32 %v1587_v22, 16  ;;  %v1643_v34 = vshll.u32 %v1587_v22, 16 }
 0x16f   : > { %1733 = vst [vmem:[#allocation2 + $0x4] sm:$0xf] %v1732_v16  ;;  %v1631_v23 = vor.u32 %v1629_v15, %v1628_v18  ;;  %v2014_v25 = vld [vmem:[%s8346_s29 + $0x28] sm:$0xf]  ;;  %v1650_v28 = vshll.u32 %v1588_v19, 16 }
 0x170   : > { %v1744_v26 = vsel %vm8360_vm5, %v1638_v20, %v1743_v17  ;;  %v2016_v39 = vld [vmem:[%s8346_s29 + $0x30] sm:$0xf]  ;;  %v1746_v41 = vld [vmem:[#allocation2 + $0x18] sm:$0xf]  ;;  %v1589_v42 = vld [vmem:[%s8346_s29 + $0x20] sm:$0xf] }
 0x171   : > { %1745 = vst [vmem:[#allocation2 + $0x14] sm:$0xf] %v1744_v26  ;;  %v1654_v49 = vshrl.u32 %v1589_v42, 16  ;;  %v1657_v50 = vshll.u32 %v1589_v42, 16  ;;  %v2019_v52 = vld [vmem:[%s8346_s29 + $0x3c] sm:$0xf] }
 0x172   : > { %1932 = vrot.lane.b32.xlu1 %v1891_v27, %s7556_s22  ;;  %1930 = vrot.lane.b32.xlu0 %v1884_v29, %s7556_s22  ;;  %v1647_v27 = vshrl.u32 %v1588_v19, 16  ;;  %v1741_v29 = vsel %vm8360_vm5, %v1631_v23, %v1740_v21  ;;  %v2018_v53 = vld [vmem:[%s8346_s29 + $0x38] sm:$0xf]  ;;  %v1591_v57 = vld [vmem:[%s8346_s29 + $0x28] sm:$0xf] }
 0x173   : > { %1742 = vst [vmem:[#allocation2 + $0x10] sm:$0xf] %v1741_v29  ;;  %v1656_v56 = vrot.slane %v1654_v49, 7  ;;  %v1752_v58 = vld [vmem:[#allocation2 + $0x20] sm:$0xf]  ;;  %v1671_v5 = vshll.u32 %v1591_v57, 16 }
 0x174   : > { %v1649_v30 = vrot.slane %v1647_v27, 7  ;;  %v2102_v59 = vld [vmem:[%s8310_s26 + $0x4] sm:$0xf]  ;;  %v2101_v62 = vld [vmem:[%s8310_s26] sm:$0xf] }
 0x175   : > { %v1659_v61 = vor.u32 %v1657_v50, %v1656_v56  ;;  %v1761_v4 = vld [vmem:[#allocation2 + $0x2c] sm:$0xf]  ;;  %v1594_v6 = vld [vmem:[%s8346_s29 + $0x34] sm:$0xf]  ;;  %v1593_v9 = vld [vmem:[%s8346_s29 + $0x30] sm:$0xf] }
 0x176   : > { %1936 = vrot.lane.b32.xlu1 %v1905_v35, %s7556_s22  ;;  %1934 = vrot.lane.b32.xlu0 %v1898_v36, %s7556_s22  ;;  %v1590_v35 = vld [vmem:[%s8346_s29 + $0x24] sm:$0xf]  ;;  %v2017_v36 = vld [vmem:[%s8346_s29 + $0x34] sm:$0xf]  ;;  %v1652_v40 = vor.u32 %v1650_v28, %v1649_v30  ;;  %v1758_v33 = vld [vmem:[#allocation2 + $0x28] sm:$0xf] }
 0x177   : > { %v1664_v45 = vshll.u32 %v1590_v35, 16  ;;  %v2104_v10 = vld [vmem:[%s8310_s26 + $0xc] sm:$0xf]  ;;  %v2103_v11 = vld [vmem:[%s8310_s26 + $0x8] sm:$0xf]  ;;  %v1689_v14 = vshrl.u32 %v1594_v6, 16 }
 0x178   : > { %v1692_v15 = vshll.u32 %v1594_v6, 16  ;;  %v1682_v16 = vshrl.u32 %v1593_v9, 16  ;;  %v2106_v17 = vld [vmem:[%s8310_s26 + $0x14] sm:$0xf]  ;;  %v1685_v20 = vshll.u32 %v1593_v9, 16 }
 0x179   : > { %v1691_v19 = vrot.slane %v1689_v14, 7  ;;  %v1767_v21 = vld [vmem:[#allocation2 + $0x34] sm:$0xf]  ;;  %v1596_v23 = vld [vmem:[%s8346_s29 + $0x3c] sm:$0xf] }
 0x17a   : > { %2038 = vrot.lane.b32.xlu1 %v2005_v37, %s7557_s8  ;;  %2036 = vrot.lane.b32.xlu0 %v2004_v38, %s7557_s8  ;;  %v1749_v37 = vld [vmem:[#allocation2 + $0x1c] sm:$0xf]  ;;  %v1642_v38 = vrot.slane %v1640_v31, 7  ;;  %v1684_v22 = vrot.slane %v1682_v16, 7  ;;  %v1764_v26 = vld [vmem:[#allocation2 + $0x30] sm:$0xf] }
 0x17b   : > { %v1750_v44 = vsel %vm8360_vm5, %v1652_v40, %v1749_v37  ;;  %v1595_v27 = vld [vmem:[%s8346_s29 + $0x38] sm:$0xf]  ;;  %v1703_v31 = vshrl.u32 %v1596_v23, 16  ;;  %v2199_v40 = vld [vmem:[%s8346_s29 + $0x4] sm:$0xf] }
 0x17c   : > { %1751 = vst [vmem:[#allocation2 + $0x1c] sm:$0xf] %v1750_v44  ;;  %v1687_v28 = vor.u32 %v1685_v20, %v1684_v22  ;;  %v2107_v37 = vld [vmem:[%s8310_s26 + $0x18] sm:$0xf]  ;;  %v2224_v49 = vshrl.u32 %v2199_v40, 16  ;;  %v2227_v50 = vshll.u32 %v2199_v40, 16 }
 0x17d   : > { %v1770_v44 = vld [vmem:[#allocation2 + $0x38] sm:$0xf]  ;;  %v2203_v48 = vld [vmem:[%s8346_s29 + $0x14] sm:$0xf] }
 0x17e   : > { %2042 = vrot.lane.b32.xlu1 %v2007_v1, %s7557_s8  ;;  %2040 = vrot.lane.b32.xlu0 %v2006_v43, %s7557_s8  ;;  %v1645_v1 = vor.u32 %v1643_v34, %v1642_v38  ;;  %v1661_v43 = vshrl.u32 %v1590_v35, 16  ;;  %v1765_v30 = vsel %vm8360_vm5, %v1687_v28, %v1764_v26  ;;  %v1706_v34 = vshll.u32 %v1596_v23, 16  ;;  %v2115_v16 = vld [vmem:[%s8310_s26 + $0x38] sm:$0xf]  ;;  %v2207_v23 = vld [vmem:[%s8346_s29 + $0x24] sm:$0xf] }
 0x17f   : > { %v1696_v35 = vshrl.u32 %v1595_v27, 16  ;;  %1766 = vst [vmem:[#allocation2 + $0x30] sm:$0xf] %v1765_v30  ;;  %v1705_v38 = vrot.slane %v1703_v31, 7 }
 0x180   : > { %v1747_v46 = vsel %vm8360_vm5, %v1645_v1, %v1746_v41  ;;  %v1663_v47 = vrot.slane %v1661_v43, 7  ;;  %v1773_v41 = vld [vmem:[#allocation2 + $0x3c] sm:$0xf]  ;;  %v2198_v1 = vld [vmem:[%s8346_s29] sm:$0xf] }
 0x181   : > { %1748 = vst [vmem:[#allocation2 + $0x18] sm:$0xf] %v1747_v46  ;;  %v1698_v42 = vrot.slane %v1696_v35, 7  ;;  %v1708_v43 = vor.u32 %v1706_v34, %v1705_v38  ;;  %v2296_v35 = vshrl.u32 %v2207_v23, 16 }
 0x182   : > { %2046 = vrot.lane.b32.xlu1 %v2009_v51, %s7557_s8  ;;  %2044 = vrot.lane.b32.xlu0 %v2008_v54, %s7557_s8  ;;  %v1592_v51 = vld [vmem:[%s8346_s29 + $0x2c] sm:$0xf]  ;;  %v1755_v54 = vld [vmem:[#allocation2 + $0x24] sm:$0xf]  ;;  %v1666_v55 = vor.u32 %v1664_v45, %v1663_v47  ;;  %v2109_v47 = vld [vmem:[%s8310_s26 + $0x20] sm:$0xf] }
 0x183   : > { %v1675_v32 = vshrl.u32 %v1592_v51, 16  ;;  %v1678_v0 = vshll.u32 %v1592_v51, 16  ;;  %v2110_v45 = vld [vmem:[%s8310_s26 + $0x24] sm:$0xf]  ;;  %v2201_v51 = vld [vmem:[%s8346_s29 + $0xc] sm:$0xf] }
 0x184   : > { %v1756_v60 = vsel %vm8360_vm5, %v1666_v55, %v1755_v54  ;;  %v2218_v54 = vshll.u32 %v2198_v1, 16  ;;  %v2200_v55 = vld [vmem:[%s8346_s29 + $0x8] sm:$0xf] }
 0x185   : > { %1757 = vst [vmem:[#allocation2 + $0x24] sm:$0xf] %v1756_v60  ;;  %v1677_v63 = vrot.slane %v1675_v32, 7  ;;  %v2245_v32 = vshll.u32 %v2201_v51, 16  ;;  %v2226_v60 = vrot.slane %v2224_v49, 4  ;;  %v2298_v49 = vrot.slane %v2296_v35, 4 }
 0x186   : > { %2050 = vrot.lane.b32.xlu1 %v2011_v2, %s7557_s8  ;;  %2048 = vrot.lane.b32.xlu0 %v2010_v3, %s7557_s8  ;;  %v1668_v2 = vshrl.u32 %v1591_v57, 16  ;;  %v1753_v3 = vsel %vm8360_vm5, %v1659_v61, %v1752_v58  ;;  %v2112_v57 = vld [vmem:[%s8310_s26 + $0x2c] sm:$0xf]  ;;  %v2242_v58 = vshrl.u32 %v2201_v51, 16  ;;  %v2229_v61 = vrot.slane %v2227_v50, 5 }
 0x187   : > { %1754 = vst [vmem:[#allocation2 + $0x20] sm:$0xf] %v1753_v3  ;;  %v1680_v7 = vor.u32 %v1678_v0, %v1677_v63  ;;  %v2236_v63 = vshll.u32 %v2200_v55, 16  ;;  %v2202_v3 = vld [vmem:[%s8346_s29 + $0x10] sm:$0xf]  ;;  %v2247_v6 = vrot.slane %v2245_v32, 5 }
 0x188   : > { %v1670_v8 = vrot.slane %v1668_v2, 7  ;;  %v2220_v2 = vrot.slane %v2218_v54, 5  ;;  %v2254_v14 = vshll.u32 %v2202_v3, 16  ;;  %v2211_v32 = vld [vmem:[%s8346_s29 + $0x34] sm:$0xf] }
 0x189   : > { %v2460_v35 = vld [vmem:[%s8310_s26 + $0xc] sm:$0xf] }
 0x18a   : > { %2054 = vrot.lane.b32.xlu1 %v2013_v12, %s7557_s8  ;;  %2052 = vrot.lane.b32.xlu0 %v2012_v13, %s7557_s8  ;;  %v1762_v12 = vsel %vm8360_vm5, %v1680_v7, %v1761_v4  ;;  %v1673_v13 = vor.u32 %v1671_v5, %v1670_v8  ;;  %v2114_v4 = vld [vmem:[%s8310_s26 + $0x34] sm:$0xf]  ;;  %v2244_v5 = vrot.slane %v2242_v58, 4  ;;  %v2113_v7 = vld [vmem:[%s8310_s26 + $0x30] sm:$0xf]  ;;  %v2230_v8 = vor.u32 %v2229_v61, %v2226_v60 }
 0x18b   : > { %1763 = vst [vmem:[#allocation2 + $0x2c] sm:$0xf] %v1762_v12  ;;  %v2263_v12 = vshll.u32 %v2203_v48, 16  ;;  %v2256_v28 = vrot.slane %v2254_v14, 5 }
 0x18c   : > { %v1759_v18 = vsel %vm8360_vm5, %v1673_v13, %v1758_v33  ;;  %v2238_v33 = vrot.slane %v2236_v63, 5  ;;  %v2251_v13 = vshrl.u32 %v2202_v3, 16  ;;  %v2248_v20 = vor.u32 %v2247_v6, %v2244_v5 }
 0x18d   : > { %1760 = vst [vmem:[#allocation2 + $0x28] sm:$0xf] %v1759_v18  ;;  %v2204_v18 = vld [vmem:[%s8346_s29 + $0x18] sm:$0xf]  ;;  %v2265_v26 = vrot.slane %v2263_v12, 5  ;;  %v2335_v5 = vshll.u32 %v2211_v32, 16 }
 0x18e   : > { %2058 = vrot.lane.b32.xlu1 %v2015_v24, %s7557_s8  ;;  %2056 = vrot.lane.b32.xlu0 %v2014_v25, %s7557_s8  ;;  %v2105_v24 = vld [vmem:[%s8310_s26 + $0x10] sm:$0xf]  ;;  %v1694_v25 = vor.u32 %v1692_v15, %v1691_v19  ;;  %v2116_v15 = vld [vmem:[%s8310_s26 + $0x3c] sm:$0xf]  ;;  %v2231_v19 = vrot.slane %v2230_v8, 4  ;;  %v2269_v30 = vshrl.u32 %v2204_v18, 16 }
 0x18f   : > { %v2272_v34 = vshll.u32 %v2204_v18, 16  ;;  %v2337_v18 = vrot.slane %v2335_v5, 5 }
 0x190   : > { %v1768_v29 = vsel %vm8360_vm5, %v1694_v25, %v1767_v21 }
 0x191   : > { %1769 = vst [vmem:[#allocation2 + $0x34] sm:$0xf] %v1768_v29 }
 0x192   : > { %2062 = vrot.lane.b32.xlu1 %v2017_v36, %s7557_s8  ;;  %2060 = vrot.lane.b32.xlu0 %v2016_v39, %s7557_s8  ;;  %v2108_v36 = vld [vmem:[%s8310_s26 + $0x1c] sm:$0xf]  ;;  %v1699_v39 = vshll.u32 %v1595_v27, 16  ;;  %v2253_v27 = vrot.slane %v2251_v13, 4 }
 0x194   : > { %v1701_v46 = vor.u32 %v1699_v39, %v1698_v42  ;;  %v2249_v39 = vrot.slane %v2248_v20, 4  ;;  %v2257_v42 = vor.u32 %v2256_v28, %v2253_v27 }
 0x196   : > { %2066 = vrot.lane.b32.xlu1 %v2019_v52, %s7557_s8  ;;  %2064 = vrot.lane.b32.xlu0 %v2018_v53, %s7557_s8  ;;  %v1774_v52 = vsel %vm8360_vm5, %v1708_v43, %v1773_v41  ;;  %v2215_v53 = vshrl.u32 %v2198_v1, 16  ;;  %v1771_v56 = vsel %vm8360_vm5, %v1701_v46, %v1770_v44  ;;  %v2209_v1 = vld [vmem:[%s8346_s29 + $0x2c] sm:$0xf]  ;;  %v2208_v43 = vld [vmem:[%s8346_s29 + $0x28] sm:$0xf]  ;;  %v2271_v46 = vrot.slane %v2269_v30, 4 }
 0x197   : > { %1775 = vst [vmem:[#allocation2 + $0x3c] sm:$0xf] %v1774_v52  ;;  %1772 = vst [vmem:[#allocation2 + $0x38] sm:$0xf] %v1771_v56  ;;  %v2317_v54 = vshll.u32 %v2209_v1, 16  ;;  %v2308_v56 = vshll.u32 %v2208_v43, 16 }
 0x198   : > { %v2217_v0 = vrot.slane %v2215_v53, 4  ;;  %v2314_v53 = vshrl.u32 %v2209_v1, 16  ;;  %v2258_v60 = vrot.slane %v2257_v42, 4  ;;  %v1956_v1 = vld [vmem:[#allocation2] sm:$0xf] }
 0x199   : > { %v2310_v3 = vrot.slane %v2308_v56, 5 }
 0x19a   : > { %2135 = vrot.lane.b32.xlu1 %v2102_v59, %s7558_s9  ;;  %2133 = vrot.lane.b32.xlu0 %v2101_v62, %s7558_s9  ;;  %v2111_v59 = vld [vmem:[%s8310_s26 + $0x28] sm:$0xf]  ;;  %v2233_v62 = vshrl.u32 %v2200_v55, 16  ;;  %v2305_v55 = vshrl.u32 %v2208_v43, 16 }
 0x19c   : > { %v2235_v9 = vrot.slane %v2233_v62, 4 }
 0x19e   : > { %2139 = vrot.lane.b32.xlu1 %v2104_v10, %s7558_s9  ;;  %2137 = vrot.lane.b32.xlu0 %v2103_v11, %s7558_s9  ;;  %v2260_v10 = vshrl.u32 %v2203_v48, 16  ;;  %v2221_v11 = vor.u32 %v2220_v2, %v2217_v0  ;;  %v2239_v21 = vor.u32 %v2238_v33, %v2235_v9  ;;  %v2316_v0 = vrot.slane %v2314_v53, 4  ;;  %v2213_v33 = vld [vmem:[%s8346_s29 + $0x3c] sm:$0xf] }
 0x19f   : > { %v2319_v2 = vrot.slane %v2317_v54, 5  ;;  %v2307_v48 = vrot.slane %v2305_v55, 4 }
 0x1a0   : > { %v2262_v22 = vrot.slane %v2260_v10, 4  ;;  %v2222_v25 = vrot.slane %v2221_v11, 4  ;;  %v2240_v40 = vrot.slane %v2239_v21, 4  ;;  %v2212_v10 = vld [vmem:[%s8346_s29 + $0x38] sm:$0xf]  ;;  %v2350_v21 = vshrl.u32 %v2213_v33, 16 }
 0x1a1   : > { %v2320_v13 = vor.u32 %v2319_v2, %v2316_v0  ;;  %v2311_v14 = vor.u32 %v2310_v3, %v2307_v48 }
 0x1a2   : > { %2143 = vrot.lane.b32.xlu1 %v2106_v17, %s7558_s9  ;;  %2141 = vrot.lane.b32.xlu0 %v2105_v24, %s7558_s9  ;;  %v2205_v17 = vld [vmem:[%s8346_s29 + $0x1c] sm:$0xf]  ;;  %v2206_v24 = vld [vmem:[%s8346_s29 + $0x20] sm:$0xf]  ;;  %v2266_v41 = vor.u32 %v2265_v26, %v2262_v22  ;;  %v2353_v22 = vshll.u32 %v2213_v33, 16 }
 0x1a3   : > { %v2278_v29 = vshrl.u32 %v2205_v17, 16  ;;  %v2281_v31 = vshll.u32 %v2205_v17, 16  ;;  %v2290_v38 = vshll.u32 %v2206_v24, 16 }
 0x1a5   : > { %v2280_v44 = vrot.slane %v2278_v29, 4  ;;  %v2292_v52 = vrot.slane %v2290_v38, 5  ;;  %v2321_v29 = vrot.slane %v2320_v13, 4  ;;  %v2352_v38 = vrot.slane %v2350_v21, 4  ;;  %v2463_v21 = vld [vmem:[%s8310_s26 + $0x18] sm:$0xf] }
 0x1a6   : > { %2147 = vrot.lane.b32.xlu1 %v2108_v36, %s7558_s9  ;;  %2145 = vrot.lane.b32.xlu0 %v2107_v37, %s7558_s9  ;;  %v2299_v36 = vshll.u32 %v2207_v23, 16  ;;  %v2287_v37 = vshrl.u32 %v2206_v24, 16  ;;  %v2341_v23 = vshrl.u32 %v2212_v10, 16  ;;  %v2344_v24 = vshll.u32 %v2212_v10, 16 }
 0x1a8   : > { %v2301_v50 = vrot.slane %v2299_v36, 5  ;;  %v2289_v51 = vrot.slane %v2287_v37, 4  ;;  %v2459_v36 = vld [vmem:[%s8310_s26 + $0x8] sm:$0xf] }
 0x1a9   : > { %v1962_v37 = vld [vmem:[#allocation2 + $0x8] sm:$0xf] }
 0x1aa   : > { %2151 = vrot.lane.b32.xlu1 %v2110_v45, %s7558_s9  ;;  %2149 = vrot.lane.b32.xlu0 %v2109_v47, %s7558_s9  ;;  %v2283_v45 = vrot.slane %v2281_v31, 5  ;;  %v2274_v47 = vrot.slane %v2272_v34, 5  ;;  %v2302_v62 = vor.u32 %v2301_v50, %v2298_v49  ;;  %v2293_v63 = vor.u32 %v2292_v52, %v2289_v51 }
 0x1ab   : > { %v2312_v31 = vrot.slane %v2311_v14, 4  ;;  %v2504_v49 = vshll.u32 %v2460_v35, 16  ;;  %v2492_v50 = vshrl.u32 %v2459_v36, 16  ;;  %v2495_v51 = vshll.u32 %v2459_v36, 16  ;;  %v1971_v14 = vld [vmem:[#allocation2 + $0x14] sm:$0xf] }
 0x1ac   : > { %v2284_v58 = vor.u32 %v2283_v45, %v2280_v44  ;;  %v2275_v61 = vor.u32 %v2274_v47, %v2271_v46  ;;  %v2303_v11 = vrot.slane %v2302_v62, 4  ;;  %v2294_v12 = vrot.slane %v2293_v63, 4 }
 0x1ad   : > { %v2501_v47 = vshrl.u32 %v2460_v35, 16  ;;  %v2506_v48 = vrot.slane %v2504_v49, 5  ;;  %v2494_v3 = vrot.slane %v2492_v50, 4 }
 0x1ae   : > { %2155 = vrot.lane.b32.xlu1 %v2112_v57, %s7558_s9  ;;  %2153 = vrot.lane.b32.xlu0 %v2111_v59, %s7558_s9  ;;  %v2267_v57 = vrot.slane %v2266_v41, 4  ;;  %v2210_v59 = vld [vmem:[%s8346_s29 + $0x30] sm:$0xf]  ;;  %v2285_v8 = vrot.slane %v2284_v58, 4  ;;  %v2276_v9 = vrot.slane %v2275_v61, 4  ;;  %v2346_v41 = vrot.slane %v2344_v24, 5 }
 0x1af   : > { %v2323_v6 = vshrl.u32 %v2210_v59, 16  ;;  %v2462_v58 = vld [vmem:[%s8310_s26 + $0x14] sm:$0xf]  ;;  %v2503_v2 = vrot.slane %v2501_v47, 4 }
 0x1b2   : > { %2159 = vrot.lane.b32.xlu1 %v2114_v4, %s7558_s9  ;;  %2157 = vrot.lane.b32.xlu0 %v2113_v7, %s7558_s9  ;;  %v2332_v4 = vshrl.u32 %v2211_v32, 16  ;;  %v2326_v7 = vshll.u32 %v2210_v59, 16  ;;  %v2461_v32 = vld [vmem:[%s8310_s26 + $0x10] sm:$0xf]  ;;  %v1965_v59 = vld [vmem:[#allocation2 + $0xc] sm:$0xf] }
 0x1b3   : > { %v2513_v33 = vshll.u32 %v2461_v32, 16 }
 0x1b4   : > { %v2334_v17 = vrot.slane %v2332_v4, 4  ;;  %v2328_v20 = vrot.slane %v2326_v7, 5  ;;  %v2497_v4 = vrot.slane %v2495_v51, 5  ;;  %v2519_v7 = vshrl.u32 %v2462_v58, 16  ;;  %v2468_v51 = vld [vmem:[%s8310_s26 + $0x2c] sm:$0xf] }
 0x1b6   : > { %2163 = vrot.lane.b32.xlu1 %v2116_v15, %s7558_s9  ;;  %2161 = vrot.lane.b32.xlu0 %v2115_v16, %s7558_s9  ;;  %v2458_v15 = vld [vmem:[%s8310_s26 + $0x4] sm:$0xf]  ;;  %v2457_v16 = vld [vmem:[%s8310_s26] sm:$0xf]  ;;  %v2338_v30 = vor.u32 %v2337_v18, %v2334_v17 }
 0x1b7   : > { %v2486_v26 = vshll.u32 %v2458_v15, 16  ;;  %v2474_v27 = vshrl.u32 %v2457_v16, 16  ;;  %v2477_v28 = vshll.u32 %v2457_v16, 16  ;;  %v2464_v16 = vld [vmem:[%s8310_s26 + $0x1c] sm:$0xf] }
 0x1b8   : > { %v2339_v61 = vrot.slane %v2338_v30, 4  ;;  %v2537_v35 = vshrl.u32 %v2464_v16, 16  ;;  %v2540_v36 = vshll.u32 %v2464_v16, 16 }
 0x1b9   : > { %v2488_v44 = vrot.slane %v2486_v26, 5  ;;  %v2476_v45 = vrot.slane %v2474_v27, 4  ;;  %v2479_v46 = vrot.slane %v2477_v28, 5  ;;  %v2515_v28 = vrot.slane %v2513_v33, 5  ;;  %v2469_v33 = vld [vmem:[%s8310_s26 + $0x30] sm:$0xf] }
 0x1ba   : > { %2360 = vrot.lane.b32.xlu1 %v2231_v19, %s7559_s10  ;;  %2358 = vrot.lane.b32.xlu0 %v2222_v25, %s7559_s10  ;;  %v2325_v19 = vrot.slane %v2323_v6, 4  ;;  %v2483_v25 = vshrl.u32 %v2458_v15, 16  ;;  %v1968_v15 = vld [vmem:[#allocation2 + $0x10] sm:$0xf] }
 0x1bb   : > { %v2480_v0 = vor.u32 %v2479_v46, %v2476_v45 }
 0x1bc   : > { %v2329_v34 = vor.u32 %v2328_v20, %v2325_v19  ;;  %v2485_v43 = vrot.slane %v2483_v25, 4  ;;  %v2507_v19 = vor.u32 %v2506_v48, %v2503_v2  ;;  %v2498_v20 = vor.u32 %v2497_v4, %v2494_v3 }
 0x1bd   : > { %v2481_v18 = vrot.slane %v2480_v0, 4  ;;  %v8519_v25 = vrot.slane %v2519_v7, 4  ;;  %v2573_v0 = vshrl.u32 %v2468_v51, 16  ;;  %v2576_v2 = vshll.u32 %v2468_v51, 16 }
 0x1be   : > { %2364 = vrot.lane.b32.xlu1 %v2249_v39, %s7559_s10  ;;  %2362 = vrot.lane.b32.xlu0 %v2240_v40, %s7559_s10  ;;  %v2355_v39 = vrot.slane %v2353_v22, 5  ;;  %v2343_v40 = vrot.slane %v2341_v23, 4  ;;  %v2330_v62 = vrot.slane %v2329_v34, 4  ;;  %v2489_v63 = vor.u32 %v2488_v44, %v2485_v43  ;;  %v2466_v22 = vld [vmem:[%s8310_s26 + $0x24] sm:$0xf] }
 0x1bf   : > { %v1977_v34 = vld [vmem:[#allocation2 + $0x1c] sm:$0xf]  ;;  %v2508_v46 = vrot.slane %v2507_v19, 4  ;;  %v2499_v47 = vrot.slane %v2498_v20, 4 }
 0x1c0   : > { %v2356_v56 = vor.u32 %v2355_v39, %v2352_v38  ;;  %v2490_v17 = vrot.slane %v2489_v63, 4  ;;  %v2528_v38 = vshrl.u32 %v2463_v21, 16  ;;  %v2531_v39 = vshll.u32 %v2463_v21, 16 }
 0x1c2   : > { %2368 = vrot.lane.b32.xlu1 %v2267_v57, %s7559_s10  ;;  %2366 = vrot.lane.b32.xlu0 %v2258_v60, %s7559_s10  ;;  %v2347_v57 = vor.u32 %v2346_v41, %v2343_v40  ;;  %v1959_v60 = vld [vmem:[#allocation2 + $0x4] sm:$0xf]  ;;  %v2555_v40 = vshrl.u32 %v2466_v22, 16  ;;  %v2558_v41 = vshll.u32 %v2466_v22, 16 }
 0x1c4   : > { %v2348_v13 = vrot.slane %v2347_v57, 4  ;;  %v2467_v57 = vld [vmem:[%s8310_s26 + $0x28] sm:$0xf] }
 0x1c5   : > { %v2564_v4 = vshrl.u32 %v2467_v57, 16 }
 0x1c6   : > { %2372 = vrot.lane.b32.xlu1 %v2285_v8, %s7559_s10  ;;  %2370 = vrot.lane.b32.xlu0 %v2276_v9, %s7559_s10  ;;  %v2522_v8 = vshll.u32 %v2462_v58, 16  ;;  %v2510_v9 = vshrl.u32 %v2461_v32, 16  ;;  %v1980_v58 = vld [vmem:[#allocation2 + $0x20] sm:$0xf]  ;;  %v2530_v32 = vrot.slane %v2528_v38, 4 }
 0x1c7   : > { %v2566_v22 = vrot.slane %v2564_v4, 4 }
 0x1c8   : > { %v2524_v26 = vrot.slane %v2522_v8, 5  ;;  %v2512_v27 = vrot.slane %v2510_v9, 4 }
 0x1ca   : > { %2376 = vrot.lane.b32.xlu1 %v2303_v11, %s7559_s10  ;;  %2374 = vrot.lane.b32.xlu0 %v2294_v12, %s7559_s10  ;;  %v2357_v12 = vrot.slane %v2356_v56, 4  ;;  %v2525_v49 = vor.u32 %v2524_v26, %v8519_v25  ;;  %v2516_v50 = vor.u32 %v2515_v28, %v2512_v27  ;;  %v2542_v56 = vrot.slane %v2540_v36, 5 }
 0x1cb   : > { %v2582_v25 = vshrl.u32 %v2469_v33, 16  ;;  %v2585_v36 = vshll.u32 %v2469_v33, 16 }
 0x1cc   : > { %v1911_v52 = vpop.permute.xlu1 %1910  ;;  %v1907_v53 = vpop.permute.xlu0 %1906 }
 0x1cd   : > { %v1963_v54 = vsel %vm8498_vm7, %v1911_v52, %v1962_v37  ;;  %v1957_v55 = vsel %vm8498_vm7, %v1907_v53, %v1956_v1  ;;  %v1974_v37 = vld [vmem:[#allocation2 + $0x18] sm:$0xf] }
 0x1ce   : > { %1964 = vst [vmem:[#allocation2 + $0x8] sm:$0xf] %v1963_v54  ;;  %1958 = vst [vmem:[#allocation2] sm:$0xf] %v1957_v55  ;;  %2380 = vrot.lane.b32.xlu1 %v2321_v29, %s7559_s10  ;;  %2378 = vrot.lane.b32.xlu0 %v2312_v31, %s7559_s10  ;;  %v2465_v29 = vld [vmem:[%s8310_s26 + $0x20] sm:$0xf] }
 0x1cf   : > { %v2546_v1 = vshrl.u32 %v2465_v29, 16  ;;  %v2549_v43 = vshll.u32 %v2465_v29, 16  ;;  %v1983_v54 = vld [vmem:[#allocation2 + $0x24] sm:$0xf]  ;;  %v2539_v55 = vrot.slane %v2537_v35, 4 }
 0x1d0   : > { %v1913_v5 = vpop.permute.xlu1 %1912  ;;  %v1909_v6 = vpop.permute.xlu0 %1908  ;;  %v2472_v29 = vld [vmem:[%s8310_s26 + $0x3c] sm:$0xf] }
 0x1d1   : > { %v1966_v10 = vsel %vm8498_vm7, %v1913_v5, %v1965_v59  ;;  %v1960_v11 = vsel %vm8498_vm7, %v1909_v6, %v1959_v60  ;;  %v2533_v59 = vrot.slane %v2531_v39, 5  ;;  %v2557_v60 = vrot.slane %v2555_v40, 4  ;;  %v2470_v6 = vld [vmem:[%s8310_s26 + $0x34] sm:$0xf] }
 0x1d2   : > { %1967 = vst [vmem:[#allocation2 + $0xc] sm:$0xf] %v1966_v10  ;;  %1961 = vst [vmem:[#allocation2 + $0x4] sm:$0xf] %v1960_v11  ;;  %2384 = vrot.lane.b32.xlu1 %v2339_v61, %s7559_s10  ;;  %2382 = vrot.lane.b32.xlu0 %v2330_v62, %s7559_s10  ;;  %v2560_v61 = vrot.slane %v2558_v41, 5  ;;  %v2548_v62 = vrot.slane %v2546_v1, 4  ;;  %v2543_v9 = vor.u32 %v2542_v56, %v2539_v55 }
 0x1d3   : > { %v2551_v63 = vrot.slane %v2549_v43, 5  ;;  %v2567_v5 = vshll.u32 %v2467_v57, 16  ;;  %v1989_v10 = vld [vmem:[#allocation2 + $0x2c] sm:$0xf]  ;;  %v1986_v11 = vld [vmem:[#allocation2 + $0x28] sm:$0xf] }
 0x1d4   : > { %v1917_v23 = vpop.permute.xlu1 %1916  ;;  %v1915_v24 = vpop.permute.xlu0 %1914  ;;  %v2591_v19 = vshrl.u32 %v2470_v6, 16  ;;  %v2544_v28 = vrot.slane %v2543_v9, 4 }
 0x1d5   : > { %v1972_v31 = vsel %vm8498_vm7, %v1917_v23, %v1971_v14  ;;  %v1969_v30 = vsel %vm8498_vm7, %v1915_v24, %v1968_v15  ;;  %v2534_v14 = vor.u32 %v2533_v59, %v2530_v32  ;;  %v2561_v15 = vor.u32 %v2560_v61, %v2557_v60 }
 0x1d6   : > { %1973 = vst [vmem:[#allocation2 + $0x14] sm:$0xf] %v1972_v31  ;;  %1970 = vst [vmem:[#allocation2 + $0x10] sm:$0xf] %v1969_v30  ;;  %2388 = vrot.lane.b32.xlu1 %v2357_v12, %s7559_s10  ;;  %2386 = vrot.lane.b32.xlu0 %v2348_v13, %s7559_s10  ;;  %v2526_v12 = vrot.slane %v2525_v49, 4  ;;  %v2517_v13 = vrot.slane %v2516_v50, 4  ;;  %v2552_v16 = vor.u32 %v2551_v63, %v2548_v62 }
 0x1d7   : > { %v2569_v23 = vrot.slane %v2567_v5, 5  ;;  %v2594_v24 = vshll.u32 %v2470_v6, 16  ;;  %v2471_v31 = vld [vmem:[%s8310_s26 + $0x38] sm:$0xf]  ;;  %v1995_v30 = vld [vmem:[#allocation2 + $0x34] sm:$0xf] }
 0x1d8   : > { %v1921_v44 = vpop.permute.xlu1 %1920  ;;  %v1919_v45 = vpop.permute.xlu0 %1918  ;;  %v2535_v35 = vrot.slane %v2534_v14, 4  ;;  %v2553_v38 = vrot.slane %v2552_v16, 4  ;;  %v2593_v40 = vrot.slane %v2591_v19, 4  ;;  %v2612_v50 = vshll.u32 %v2472_v29, 16 }
 0x1d9   : > { %v1978_v52 = vsel %vm8498_vm7, %v1921_v44, %v1977_v34  ;;  %v1975_v53 = vsel %vm8498_vm7, %v1919_v45, %v1974_v37  ;;  %v1992_v34 = vld [vmem:[#allocation2 + $0x30] sm:$0xf]  ;;  %v2562_v37 = vrot.slane %v2561_v15, 4  ;;  %v2570_v43 = vor.u32 %v2569_v23, %v2566_v22 }
 0x1da   : > { %1979 = vst [vmem:[#allocation2 + $0x1c] sm:$0xf] %v1978_v52  ;;  %1976 = vst [vmem:[#allocation2 + $0x18] sm:$0xf] %v1975_v53  ;;  %2619 = vrot.lane.b32.xlu1 %v2490_v17, %s7560_s11  ;;  %2617 = vrot.lane.b32.xlu0 %v2481_v18, %s7560_s11  ;;  %v2575_v17 = vrot.slane %v2573_v0, 4  ;;  %v2578_v18 = vrot.slane %v2576_v2, 5 }
 0x1db   : > { %v2596_v44 = vrot.slane %v2594_v24, 5  ;;  %v2584_v45 = vrot.slane %v2582_v25, 4  ;;  %v2600_v51 = vshrl.u32 %v2471_v31, 16  ;;  %v2001_v52 = vld [vmem:[#allocation2 + $0x3c] sm:$0xf]  ;;  %v2603_v55 = vshll.u32 %v2471_v31, 16 }
 0x1dc   : > { %v1925_v48 = vpop.permute.xlu1 %1924  ;;  %v1923_v3 = vpop.permute.xlu0 %1922  ;;  %v2579_v39 = vor.u32 %v2578_v18, %v2575_v17  ;;  %v1998_v53 = vld [vmem:[#allocation2 + $0x38] sm:$0xf]  ;;  %v2571_v32 = vrot.slane %v2570_v43, 4  ;;  %v2614_v0 = vrot.slane %v2612_v50, 5 }
 0x1dd   : > { %v1984_v7 = vsel %vm8498_vm7, %v1925_v48, %v1983_v54  ;;  %v1981_v8 = vsel %vm8498_vm7, %v1923_v3, %v1980_v58  ;;  %v2587_v54 = vrot.slane %v2585_v36, 5  ;;  %v2597_v61 = vor.u32 %v2596_v44, %v2593_v40 }
 0x1de   : > { %1985 = vst [vmem:[#allocation2 + $0x24] sm:$0xf] %v1984_v7  ;;  %1982 = vst [vmem:[#allocation2 + $0x20] sm:$0xf] %v1981_v8  ;;  %2623 = vrot.lane.b32.xlu1 %v2508_v46, %s7560_s11  ;;  %2621 = vrot.lane.b32.xlu0 %v2499_v47, %s7560_s11  ;;  %v2609_v46 = vshrl.u32 %v2472_v29, 16  ;;  %v2580_v58 = vrot.slane %v2579_v39, 4 }
 0x1df   : > { %v2588_v63 = vor.u32 %v2587_v54, %v2584_v45  ;;  %v2602_v2 = vrot.slane %v2600_v51, 4  ;;  %v2605_v48 = vrot.slane %v2603_v55, 5  ;;  %v2598_v42 = vrot.slane %v2597_v61, 4 }
 0x1e0   : > { %v1929_v20 = vpop.permute.xlu1 %1928  ;;  %v1927_v21 = vpop.permute.xlu0 %1926  ;;  %v2611_v62 = vrot.slane %v2609_v46, 4 }
 0x1e1   : > { %v1990_v26 = vsel %vm8498_vm7, %v1929_v20, %v1989_v10  ;;  %v1987_v27 = vsel %vm8498_vm7, %v1927_v21, %v1986_v11  ;;  %v2589_v5 = vrot.slane %v2588_v63, 4  ;;  %v2606_v7 = vor.u32 %v2605_v48, %v2602_v2 }
 0x1e2   : > { %1991 = vst [vmem:[#allocation2 + $0x2c] sm:$0xf] %v1990_v26  ;;  %1988 = vst [vmem:[#allocation2 + $0x28] sm:$0xf] %v1987_v27  ;;  %2627 = vrot.lane.b32.xlu1 %v2526_v12, %s7560_s11  ;;  %2625 = vrot.lane.b32.xlu0 %v2517_v13, %s7560_s11  ;;  %v2615_v6 = vor.u32 %v2614_v0, %v2611_v62 }
 0x1e3   : > { %v2607_v10 = vrot.slane %v2606_v7, 4 }
 0x1e4   : > { %v1933_v41 = vpop.permute.xlu1 %1932  ;;  %v1931_v1 = vpop.permute.xlu0 %1930  ;;  %v2616_v33 = vrot.slane %v2615_v6, 4 }
 0x1e5   : > { %v1996_v47 = vsel %vm8498_vm7, %v1933_v41, %v1995_v30  ;;  %v1993_v49 = vsel %vm8498_vm7, %v1931_v1, %v1992_v34 }
 0x1e6   : > { %1997 = vst [vmem:[#allocation2 + $0x34] sm:$0xf] %v1996_v47  ;;  %1994 = vst [vmem:[#allocation2 + $0x30] sm:$0xf] %v1993_v49  ;;  %2631 = vrot.lane.b32.xlu1 %v2544_v28, %s7560_s11  ;;  %2629 = vrot.lane.b32.xlu0 %v2535_v35, %s7560_s11 }
 0x1e8   : > { %v1937_v56 = vpop.permute.xlu1 %1936  ;;  %v1935_v57 = vpop.permute.xlu0 %1934 }
 0x1e9   : > { %v2002_v59 = vsel %vm8498_vm7, %v1937_v56, %v2001_v52  ;;  %v1999_v60 = vsel %vm8498_vm7, %v1935_v57, %v1998_v53 }
 0x1ea   : > { %2003 = vst [vmem:[#allocation2 + $0x3c] sm:$0xf] %v2002_v59  ;;  %2000 = vst [vmem:[#allocation2 + $0x38] sm:$0xf] %v1999_v60  ;;  %2635 = vrot.lane.b32.xlu1 %v2562_v37, %s7560_s11  ;;  %2633 = vrot.lane.b32.xlu0 %v2553_v38, %s7560_s11 }
 0x1ec   : > { %v2039_v3 = vpop.permute.xlu1 %2038  ;;  %v2037_v4 = vpop.permute.xlu0 %2036 }
 0x1ed   : > { %2086 = vst.msk [vmem:[#allocation2 + $0x4] sm:$0xf] %vm2084_vm8, %v2039_v3  ;;  %2085 = vst.msk [vmem:[#allocation2] sm:$0xf] %vm2084_vm8, %v2037_v4 }
 0x1ee   : > { %2639 = vrot.lane.b32.xlu1 %v2580_v58, %s7560_s11  ;;  %2637 = vrot.lane.b32.xlu0 %v2571_v32, %s7560_s11 }
 0x1f0   : > { %v2043_v8 = vpop.permute.xlu1 %2042  ;;  %v2041_v9 = vpop.permute.xlu0 %2040 }
 0x1f1   : > { %2088 = vst.msk [vmem:[#allocation2 + $0xc] sm:$0xf] %vm2084_vm8, %v2043_v8  ;;  %2087 = vst.msk [vmem:[#allocation2 + $0x8] sm:$0xf] %vm2084_vm8, %v2041_v9 }
 0x1f2   : > { %2643 = vrot.lane.b32.xlu1 %v2598_v42, %s7560_s11  ;;  %2641 = vrot.lane.b32.xlu0 %v2589_v5, %s7560_s11 }
 0x1f4   : > { %v2047_v11 = vpop.permute.xlu1 %2046  ;;  %v2045_v12 = vpop.permute.xlu0 %2044 }
 0x1f5   : > { %2090 = vst.msk [vmem:[#allocation2 + $0x14] sm:$0xf] %vm2084_vm8, %v2047_v11  ;;  %2089 = vst.msk [vmem:[#allocation2 + $0x10] sm:$0xf] %vm2084_vm8, %v2045_v12 }
 0x1f6   : > { %2647 = vrot.lane.b32.xlu1 %v2616_v33, %s7560_s11  ;;  %2645 = vrot.lane.b32.xlu0 %v2607_v10, %s7560_s11 }
 0x1f8   : > { %v2051_v13 = vpop.permute.xlu1 %2050  ;;  %v2049_v14 = vpop.permute.xlu0 %2048 }
 0x1f9   : > { %2092 = vst.msk [vmem:[#allocation2 + $0x1c] sm:$0xf] %vm2084_vm8, %v2051_v13  ;;  %2091 = vst.msk [vmem:[#allocation2 + $0x18] sm:$0xf] %vm2084_vm8, %v2049_v14 }
 0x1fc   : > { %v2055_v15 = vpop.permute.xlu1 %2054  ;;  %v2053_v16 = vpop.permute.xlu0 %2052 }
 0x1fd   : > { %2094 = vst.msk [vmem:[#allocation2 + $0x24] sm:$0xf] %vm2084_vm8, %v2055_v15  ;;  %2093 = vst.msk [vmem:[#allocation2 + $0x20] sm:$0xf] %vm2084_vm8, %v2053_v16 }
 0x200   : > { %v2059_v17 = vpop.permute.xlu1 %2058  ;;  %v2057_v18 = vpop.permute.xlu0 %2056 }
 0x201   : > { %2096 = vst.msk [vmem:[#allocation2 + $0x2c] sm:$0xf] %vm2084_vm8, %v2059_v17  ;;  %2095 = vst.msk [vmem:[#allocation2 + $0x28] sm:$0xf] %vm2084_vm8, %v2057_v18 }
 0x204   : > { %v2063_v19 = vpop.permute.xlu1 %2062  ;;  %v2061_v20 = vpop.permute.xlu0 %2060 }
 0x205   : > { %2098 = vst.msk [vmem:[#allocation2 + $0x34] sm:$0xf] %vm2084_vm8, %v2063_v19  ;;  %2097 = vst.msk [vmem:[#allocation2 + $0x30] sm:$0xf] %vm2084_vm8, %v2061_v20 }
 0x208   : > { %v2067_v21 = vpop.permute.xlu1 %2066  ;;  %v2065_v22 = vpop.permute.xlu0 %2064 }
 0x209   : > { %2100 = vst.msk [vmem:[#allocation2 + $0x3c] sm:$0xf] %vm2084_vm8, %v2067_v21  ;;  %2099 = vst.msk [vmem:[#allocation2 + $0x38] sm:$0xf] %vm2084_vm8, %v2065_v22 }
 0x20c   : > { %v2136_v23 = vpop.permute.xlu1 %2135  ;;  %v2134_v24 = vpop.permute.xlu0 %2133 }
 0x20d   : > { %2183 = vst.msk [vmem:[#allocation2 + $0x4] sm:$0xf] %vm2181_vm9, %v2136_v23  ;;  %2182 = vst.msk [vmem:[#allocation2] sm:$0xf] %vm2181_vm9, %v2134_v24 }
 0x210   : > { %v2140_v25 = vpop.permute.xlu1 %2139  ;;  %v2138_v26 = vpop.permute.xlu0 %2137 }
 0x211   : > { %2185 = vst.msk [vmem:[#allocation2 + $0xc] sm:$0xf] %vm2181_vm9, %v2140_v25  ;;  %2184 = vst.msk [vmem:[#allocation2 + $0x8] sm:$0xf] %vm2181_vm9, %v2138_v26 }
 0x214   : > { %v2144_v27 = vpop.permute.xlu1 %2143  ;;  %v2142_v28 = vpop.permute.xlu0 %2141  ;;  %v2412_v43 = vld [vmem:[#allocation2 + $0x4] sm:$0xf]  ;;  %v2409_v45 = vld [vmem:[#allocation2] sm:$0xf] }
 0x215   : > { %2187 = vst.msk [vmem:[#allocation2 + $0x14] sm:$0xf] %vm2181_vm9, %v2144_v27  ;;  %2186 = vst.msk [vmem:[#allocation2 + $0x10] sm:$0xf] %vm2181_vm9, %v2142_v28 }
 0x218   : > { %v2148_v29 = vpop.permute.xlu1 %2147  ;;  %v2146_v31 = vpop.permute.xlu0 %2145  ;;  %v2418_v50 = vld [vmem:[#allocation2 + $0xc] sm:$0xf]  ;;  %v2415_v52 = vld [vmem:[#allocation2 + $0x8] sm:$0xf] }
 0x219   : > { %2189 = vst.msk [vmem:[#allocation2 + $0x1c] sm:$0xf] %vm2181_vm9, %v2148_v29  ;;  %2188 = vst.msk [vmem:[#allocation2 + $0x18] sm:$0xf] %vm2181_vm9, %v2146_v31 }
 0x21c   : > { %v2152_v30 = vpop.permute.xlu1 %2151  ;;  %v2150_v34 = vpop.permute.xlu0 %2149  ;;  %v2424_v56 = vld [vmem:[#allocation2 + $0x14] sm:$0xf]  ;;  %v2421_v58 = vld [vmem:[#allocation2 + $0x10] sm:$0xf] }
 0x21d   : > { %2191 = vst.msk [vmem:[#allocation2 + $0x24] sm:$0xf] %vm2181_vm9, %v2152_v30  ;;  %2190 = vst.msk [vmem:[#allocation2 + $0x20] sm:$0xf] %vm2181_vm9, %v2150_v34 }
 0x220   : > { %v2156_v35 = vpop.permute.xlu1 %2155  ;;  %v2154_v36 = vpop.permute.xlu0 %2153  ;;  %v2430_v61 = vld [vmem:[#allocation2 + $0x1c] sm:$0xf]  ;;  %v2427_v63 = vld [vmem:[#allocation2 + $0x18] sm:$0xf] }
 0x221   : > { %2193 = vst.msk [vmem:[#allocation2 + $0x2c] sm:$0xf] %vm2181_vm9, %v2156_v35  ;;  %2192 = vst.msk [vmem:[#allocation2 + $0x28] sm:$0xf] %vm2181_vm9, %v2154_v36 }
 0x224   : > { %v2160_v37 = vpop.permute.xlu1 %2159  ;;  %v2158_v38 = vpop.permute.xlu0 %2157  ;;  %v2436_v3 = vld [vmem:[#allocation2 + $0x24] sm:$0xf]  ;;  %v2433_v42 = vld [vmem:[#allocation2 + $0x20] sm:$0xf] }
 0x225   : > { %2195 = vst.msk [vmem:[#allocation2 + $0x34] sm:$0xf] %vm2181_vm9, %v2160_v37  ;;  %2194 = vst.msk [vmem:[#allocation2 + $0x30] sm:$0xf] %vm2181_vm9, %v2158_v38 }
 0x228   : > { %v2164_v39 = vpop.permute.xlu1 %2163  ;;  %v2162_v40 = vpop.permute.xlu0 %2161  ;;  %v2442_v8 = vld [vmem:[#allocation2 + $0x2c] sm:$0xf]  ;;  %v2439_v33 = vld [vmem:[#allocation2 + $0x28] sm:$0xf] }
 0x229   : > { %2197 = vst.msk [vmem:[#allocation2 + $0x3c] sm:$0xf] %vm2181_vm9, %v2164_v39  ;;  %2196 = vst.msk [vmem:[#allocation2 + $0x38] sm:$0xf] %vm2181_vm9, %v2162_v40 }
 0x22c   : > { %v2361_v1 = vpop.permute.xlu1 %2360  ;;  %v2359_v44 = vpop.permute.xlu0 %2358  ;;  %v2448_v13 = vld [vmem:[#allocation2 + $0x34] sm:$0xf]  ;;  %v2445_v15 = vld [vmem:[#allocation2 + $0x30] sm:$0xf] }
 0x22d   : > { %v2413_v46 = vsel %vm8604_vm12, %v2361_v1, %v2412_v43  ;;  %v2410_v47 = vsel %vm8604_vm12, %v2359_v44, %v2409_v45 }
 0x22e   : > { %2414 = vst [vmem:[#allocation2 + $0x4] sm:$0xf] %v2413_v46  ;;  %2411 = vst [vmem:[#allocation2] sm:$0xf] %v2410_v47 }
 0x230   : > { %v2365_v49 = vpop.permute.xlu1 %2364  ;;  %v2363_v51 = vpop.permute.xlu0 %2362  ;;  %v2454_v19 = vld [vmem:[#allocation2 + $0x3c] sm:$0xf]  ;;  %v2451_v21 = vld [vmem:[#allocation2 + $0x38] sm:$0xf] }
 0x231   : > { %v2419_v53 = vsel %vm8604_vm12, %v2365_v49, %v2418_v50  ;;  %v2416_v54 = vsel %vm8604_vm12, %v2363_v51, %v2415_v52 }
 0x232   : > { %2420 = vst [vmem:[#allocation2 + $0xc] sm:$0xf] %v2419_v53  ;;  %2417 = vst [vmem:[#allocation2 + $0x8] sm:$0xf] %v2416_v54 }
 0x234   : > { %v2369_v55 = vpop.permute.xlu1 %2368  ;;  %v2367_v57 = vpop.permute.xlu0 %2366 }
 0x235   : > { %v2425_v32 = vsel %vm8604_vm12, %v2369_v55, %v2424_v56  ;;  %v2422_v59 = vsel %vm8604_vm12, %v2367_v57, %v2421_v58  ;;  %v2670_v26 = vld [vmem:[#allocation2 + $0x4] sm:$0xf]  ;;  %v2667_v28 = vld [vmem:[#allocation2] sm:$0xf] }
 0x236   : > { %2426 = vst [vmem:[#allocation2 + $0x14] sm:$0xf] %v2425_v32  ;;  %2423 = vst [vmem:[#allocation2 + $0x10] sm:$0xf] %v2422_v59 }
 0x238   : > { %v2373_v60 = vpop.permute.xlu1 %2372  ;;  %v2371_v62 = vpop.permute.xlu0 %2370 }
 0x239   : > { %v2431_v0 = vsel %vm8604_vm12, %v2373_v60, %v2430_v61  ;;  %v2428_v2 = vsel %vm8604_vm12, %v2371_v62, %v2427_v63  ;;  %v2676_v34 = vld [vmem:[#allocation2 + $0xc] sm:$0xf]  ;;  %v2673_v36 = vld [vmem:[#allocation2 + $0x8] sm:$0xf] }
 0x23a   : > { %2432 = vst [vmem:[#allocation2 + $0x1c] sm:$0xf] %v2431_v0  ;;  %2429 = vst [vmem:[#allocation2 + $0x18] sm:$0xf] %v2428_v2 }
 0x23c   : > { %v2377_v48 = vpop.permute.xlu1 %2376  ;;  %v2375_v4 = vpop.permute.xlu0 %2374 }
 0x23d   : > { %v2437_v5 = vsel %vm8604_vm12, %v2377_v48, %v2436_v3  ;;  %v2434_v6 = vsel %vm8604_vm12, %v2375_v4, %v2433_v42  ;;  %v2682_v40 = vld [vmem:[#allocation2 + $0x14] sm:$0xf]  ;;  %v2679_v1 = vld [vmem:[#allocation2 + $0x10] sm:$0xf] }
 0x23e   : > { %2438 = vst [vmem:[#allocation2 + $0x24] sm:$0xf] %v2437_v5  ;;  %2435 = vst [vmem:[#allocation2 + $0x20] sm:$0xf] %v2434_v6 }
 0x240   : > { %v2381_v7 = vpop.permute.xlu1 %2380  ;;  %v2379_v9 = vpop.permute.xlu0 %2378 }
 0x241   : > { %v2443_v10 = vsel %vm8604_vm12, %v2381_v7, %v2442_v8  ;;  %v2440_v11 = vsel %vm8604_vm12, %v2379_v9, %v2439_v33  ;;  %v2688_v46 = vld [vmem:[#allocation2 + $0x1c] sm:$0xf]  ;;  %v2685_v49 = vld [vmem:[#allocation2 + $0x18] sm:$0xf] }
 0x242   : > { %2444 = vst [vmem:[#allocation2 + $0x2c] sm:$0xf] %v2443_v10  ;;  %2441 = vst [vmem:[#allocation2 + $0x28] sm:$0xf] %v2440_v11 }
 0x244   : > { %v2385_v12 = vpop.permute.xlu1 %2384  ;;  %v2383_v14 = vpop.permute.xlu0 %2382 }
 0x245   : > { %v2449_v16 = vsel %vm8604_vm12, %v2385_v12, %v2448_v13  ;;  %v2446_v17 = vsel %vm8604_vm12, %v2383_v14, %v2445_v15  ;;  %v2694_v53 = vld [vmem:[#allocation2 + $0x24] sm:$0xf]  ;;  %v2691_v55 = vld [vmem:[#allocation2 + $0x20] sm:$0xf] }
 0x246   : > { %2450 = vst [vmem:[#allocation2 + $0x34] sm:$0xf] %v2449_v16  ;;  %2447 = vst [vmem:[#allocation2 + $0x30] sm:$0xf] %v2446_v17 }
 0x248   : > { %v2389_v18 = vpop.permute.xlu1 %2388  ;;  %v2387_v20 = vpop.permute.xlu0 %2386 }
 0x249   : > { %v2455_v22 = vsel %vm8604_vm12, %v2389_v18, %v2454_v19  ;;  %v2452_v23 = vsel %vm8604_vm12, %v2387_v20, %v2451_v21  ;;  %v2700_v32 = vld [vmem:[#allocation2 + $0x2c] sm:$0xf]  ;;  %v2697_v60 = vld [vmem:[#allocation2 + $0x28] sm:$0xf] }
 0x24a   : > { %2456 = vst [vmem:[#allocation2 + $0x3c] sm:$0xf] %v2455_v22  ;;  %2453 = vst [vmem:[#allocation2 + $0x38] sm:$0xf] %v2452_v23 }
 0x24c   : > { %v2620_v25 = vpop.permute.xlu1 %2619  ;;  %v2618_v27 = vpop.permute.xlu0 %2617 }
 0x24d   : > { %v2671_v29 = vsel %vm8641_vm14, %v2620_v25, %v2670_v26  ;;  %v2668_v31 = vsel %vm8641_vm14, %v2618_v27, %v2667_v28  ;;  %v2706_v0 = vld [vmem:[#allocation2 + $0x34] sm:$0xf]  ;;  %v2703_v48 = vld [vmem:[#allocation2 + $0x30] sm:$0xf] }
 0x24e   : > { %2672 = vst [vmem:[#allocation2 + $0x4] sm:$0xf] %v2671_v29  ;;  %2669 = vst [vmem:[#allocation2] sm:$0xf] %v2668_v31 }
 0x250   : > { %v2624_v30 = vpop.permute.xlu1 %2623  ;;  %v2622_v35 = vpop.permute.xlu0 %2621 }
 0x251   : > { %v2677_v37 = vsel %vm8641_vm14, %v2624_v30, %v2676_v34  ;;  %v2674_v38 = vsel %vm8641_vm14, %v2622_v35, %v2673_v36  ;;  %v2712_v5 = vld [vmem:[#allocation2 + $0x3c] sm:$0xf]  ;;  %v2709_v7 = vld [vmem:[#allocation2 + $0x38] sm:$0xf] }
 0x252   : > { %2678 = vst [vmem:[#allocation2 + $0xc] sm:$0xf] %v2677_v37  ;;  %2675 = vst [vmem:[#allocation2 + $0x8] sm:$0xf] %v2674_v38 }
 0x254   : > { %v2628_v39 = vpop.permute.xlu1 %2627  ;;  %v2626_v41 = vpop.permute.xlu0 %2625 }
 0x255   : > { %v2683_v43 = vsel %vm8641_vm14, %v2628_v39, %v2682_v40  ;;  %v2680_v44 = vsel %vm8641_vm14, %v2626_v41, %v2679_v1 }
 0x256   : > { %2684 = vst [vmem:[#allocation2 + $0x14] sm:$0xf] %v2683_v43  ;;  %2681 = vst [vmem:[#allocation2 + $0x10] sm:$0xf] %v2680_v44 }
 0x258   : > { %v2632_v45 = vpop.permute.xlu1 %2631  ;;  %v2630_v47 = vpop.permute.xlu0 %2629 }
 0x259   : > { %v2689_v50 = vsel %vm8641_vm14, %v2632_v45, %v2688_v46  ;;  %v2686_v51 = vsel %vm8641_vm14, %v2630_v47, %v2685_v49 }
 0x25a   : > { %2690 = vst [vmem:[#allocation2 + $0x1c] sm:$0xf] %v2689_v50  ;;  %2687 = vst [vmem:[#allocation2 + $0x18] sm:$0xf] %v2686_v51 }
 0x25c   : > { %v2636_v52 = vpop.permute.xlu1 %2635  ;;  %v2634_v54 = vpop.permute.xlu0 %2633 }
 0x25d   : > { %v2695_v56 = vsel %vm8641_vm14, %v2636_v52, %v2694_v53  ;;  %v2692_v57 = vsel %vm8641_vm14, %v2634_v54, %v2691_v55 }
 0x25e   : > { %2696 = vst [vmem:[#allocation2 + $0x24] sm:$0xf] %v2695_v56  ;;  %2693 = vst [vmem:[#allocation2 + $0x20] sm:$0xf] %v2692_v57 }
 0x260   : > { %v2640_v58 = vpop.permute.xlu1 %2639  ;;  %v2638_v59 = vpop.permute.xlu0 %2637 }
 0x261   : > { %v2701_v61 = vsel %vm8641_vm14, %v2640_v58, %v2700_v32  ;;  %v2698_v62 = vsel %vm8641_vm14, %v2638_v59, %v2697_v60 }
 0x262   : > { %2702 = vst [vmem:[#allocation2 + $0x2c] sm:$0xf] %v2701_v61  ;;  %2699 = vst [vmem:[#allocation2 + $0x28] sm:$0xf] %v2698_v62 }
 0x264   : > { %v2644_v63 = vpop.permute.xlu1 %2643  ;;  %v2642_v2 = vpop.permute.xlu0 %2641 }
 0x265   : > { %v2707_v3 = vsel %vm8641_vm14, %v2644_v63, %v2706_v0  ;;  %v2704_v4 = vsel %vm8641_vm14, %v2642_v2, %v2703_v48 }
 0x266   : > { %2708 = vst [vmem:[#allocation2 + $0x34] sm:$0xf] %v2707_v3  ;;  %2705 = vst [vmem:[#allocation2 + $0x30] sm:$0xf] %v2704_v4 }
 0x268   : > { %v2648_v42 = vpop.permute.xlu1 %2647  ;;  %v2646_v6 = vpop.permute.xlu0 %2645 }
 0x269   : > { %v2713_v8 = vsel %vm8641_vm14, %v2648_v42, %v2712_v5  ;;  %v2710_v9 = vsel %vm8641_vm14, %v2646_v6, %v2709_v7 }
 0x26a   : > { %2714 = vst [vmem:[#allocation2 + $0x3c] sm:$0xf] %v2713_v8  ;;  %2711 = vst [vmem:[#allocation2 + $0x38] sm:$0xf] %v2710_v9 }
 0x26b PF: > { %s7256_s12 = sshll.u32 %s7540_s18, 6  ;;  %s7561_s23 = smov 12   ;;  %vm2883_vm15 = vsmask.f32 7938  ;;  %vm2882_vm0 = vcmask 35840   ;;  %vm3974_vm2 = vcmask 1041408  }
 0x26c   : > { %s8681_s15 = scalar_lea.vmem %s9972_s0, %s7256_s12  ;;  %s8686_s17 = scalar_lea.vmem %s9973_s1, %s7256_s12  ;;  %vm8742_vm1 = vmand %vm2882_vm0, %vm2883_vm15  ;;  %vm3111_vm3 = vcmask 93224   ;;  %vm3241_vm5 = vcmask 134240   ;;  %vm3338_vm6 = vcmask 191624   ;;  %vm3563_vm7 = vcmask 232640  }
 0x26d   : > { %v3162_v33 = vld [vmem:[%s8681_s15 + $0x4] sm:$0xf]  ;;  %v3161_v10 = vld [vmem:[%s8681_s15] sm:$0xf]  ;;  %v2937_v11 = vld [vmem:[%s8686_s17 + $0x8] sm:$0xf] }
 0x26e   : > { %3195 = vrot.lane.b32.xlu1 %v3162_v33, %s7561_s23  ;;  %3193 = vrot.lane.b32.xlu0 %v3161_v10, %s7561_s23  ;;  %v2966_v12 = vshrl.u32 %v2937_v11, 16  ;;  %v2969_v13 = vshll.u32 %v2937_v11, 16  ;;  %v2935_v14 = vld [vmem:[%s8686_s17] sm:$0xf]  ;;  %v2938_v17 = vld [vmem:[%s8686_s17 + $0xc] sm:$0xf]  ;;  %vm8918_vm4 = vmand %vm3111_vm3, %vm2883_vm15 }
 0x26f   : > { %v2952_v15 = vshrl.u32 %v2935_v14, 16  ;;  %v2955_v16 = vshll.u32 %v2935_v14, 16  ;;  %v2936_v18 = vld [vmem:[%s8686_s17 + $0x4] sm:$0xf]  ;;  %v2973_v20 = vshrl.u32 %v2938_v17, 16  ;;  %v2976_v21 = vshll.u32 %v2938_v17, 16 }
 0x270   : > { %v2968_v19 = vrot.slane %v2966_v12, 7  ;;  %v2959_v22 = vshrl.u32 %v2936_v18, 16  ;;  %v2962_v24 = vshll.u32 %v2936_v18, 16  ;;  %s7562_s24 = smov 5   ;;  %v3164_v30 = vld [vmem:[%s8681_s15 + $0xc] sm:$0xf] }
 0x271   : > { %v2954_v23 = vrot.slane %v2952_v15, 7  ;;  %v2975_v26 = vrot.slane %v2973_v20, 7  ;;  %v2940_v34 = vld [vmem:[%s8686_s17 + $0x14] sm:$0xf]  ;;  %v3163_v35 = vld [vmem:[%s8681_s15 + $0x8] sm:$0xf] }
 0x272   : > { %v2971_v25 = vor.u32 %v2969_v13, %v2968_v19  ;;  %v2961_v27 = vrot.slane %v2959_v22, 7  ;;  %v2939_v36 = vld [vmem:[%s8686_s17 + $0x10] sm:$0xf]  ;;  %v2987_v37 = vshrl.u32 %v2940_v34, 16  ;;  %v3259_v38 = vld [vmem:[%s8686_s17 + $0x4] sm:$0xf] }
 0x273   : > { %v2957_v28 = vor.u32 %v2955_v16, %v2954_v23  ;;  %v2978_v29 = vor.u32 %v2976_v21, %v2975_v26  ;;  %v2980_v39 = vshrl.u32 %v2939_v36, 16  ;;  %v2942_v40 = vld [vmem:[%s8686_s17 + $0x1c] sm:$0xf]  ;;  %v3258_v41 = vld [vmem:[%s8686_s17] sm:$0xf]  ;;  %s7563_s25 = smov 17  }
 0x274   : > { %3067 = vrot.lane.b32.xlu1 %v2971_v25, %s7562_s24  ;;  %v2964_v31 = vor.u32 %v2962_v24, %v2961_v27  ;;  %v2941_v1 = vld [vmem:[%s8686_s17 + $0x18] sm:$0xf]  ;;  %v2989_v43 = vrot.slane %v2987_v37, 7  ;;  %v2990_v44 = vshll.u32 %v2940_v34, 16  ;;  %v3001_v45 = vshrl.u32 %v2942_v40, 16  ;;  %s7564_s26 = smov 24  }
 0x275   : > { %3063 = vrot.lane.b32.xlu0 %v2957_v28, %s7562_s24  ;;  %v3261_v46 = vld [vmem:[%s8686_s17 + $0xc] sm:$0xf]  ;;  %v2982_v47 = vrot.slane %v2980_v39, 7  ;;  %v2983_v49 = vshll.u32 %v2939_v36, 16  ;;  %v2994_v50 = vshrl.u32 %v2941_v1, 16  ;;  %v3004_v54 = vshll.u32 %v2942_v40, 16 }
 0x276   : > { %v3260_v51 = vld [vmem:[%s8686_s17 + $0x8] sm:$0xf]  ;;  %v2992_v52 = vor.u32 %v2990_v44, %v2989_v43  ;;  %v3003_v53 = vrot.slane %v3001_v45, 7  ;;  %v2997_v57 = vshll.u32 %v2941_v1, 16  ;;  %v3356_v59 = vld [vmem:[%s8681_s15 + $0x4] sm:$0xf] }
 0x277   : > { %v2985_v55 = vor.u32 %v2983_v49, %v2982_v47  ;;  %v2996_v56 = vrot.slane %v2994_v50, 7  ;;  %v3355_v60 = vld [vmem:[%s8681_s15] sm:$0xf]  ;;  %v3381_v61 = vshrl.u32 %v3356_v59, 16  ;;  %v3384_v62 = vshll.u32 %v3356_v59, 16  ;;  %s7565_s10 = smov 29  }
 0x278   : > { %3069 = vrot.lane.b32.xlu1 %v2978_v29, %s7562_s24  ;;  %v3006_v58 = vor.u32 %v3004_v54, %v3003_v53  ;;  %v3166_v63 = vld [vmem:[%s8681_s15 + $0x14] sm:$0xf]  ;;  %v3372_v0 = vshrl.u32 %v3355_v60, 16  ;;  %v3375_v2 = vshll.u32 %v3355_v60, 16  ;;  %v3165_v48 = vld [vmem:[%s8681_s15 + $0x10] sm:$0xf] }
 0x279   : > { %3065 = vrot.lane.b32.xlu0 %v2964_v31, %s7562_s24  ;;  %v2999_v32 = vor.u32 %v2997_v57, %v2996_v56  ;;  %v3383_v3 = vrot.slane %v3381_v61, 4  ;;  %v3386_v4 = vrot.slane %v3384_v62, 5  ;;  %v3358_v42 = vld [vmem:[%s8681_s15 + $0xc] sm:$0xf]  ;;  %v3168_v5 = vld [vmem:[%s8681_s15 + $0x1c] sm:$0xf] }
 0x27a   : > { %v3374_v6 = vrot.slane %v3372_v0, 4  ;;  %v3377_v7 = vrot.slane %v3375_v2, 5  ;;  %v3357_v8 = vld [vmem:[%s8681_s15 + $0x8] sm:$0xf]  ;;  %v3167_v9 = vld [vmem:[%s8681_s15 + $0x18] sm:$0xf] }
 0x27b   : > { %v3399_v33 = vshrl.u32 %v3358_v42, 16  ;;  %v3387_v10 = vor.u32 %v3386_v4, %v3383_v3  ;;  %v3402_v11 = vshll.u32 %v3358_v42, 16  ;;  %v3390_v12 = vshrl.u32 %v3357_v8, 16  ;;  %v3263_v13 = vld [vmem:[%s8686_s17 + $0x14] sm:$0xf]  ;;  %p7033_p7 = scmp.ne.s32.totalorder %s7540_s18, 1 }
 0x27c   : > { %3199 = vrot.lane.b32.xlu1 %v3164_v30, %s7561_s23  ;;  %v3378_v14 = vor.u32 %v3377_v7, %v3374_v6  ;;  %v3393_v15 = vshll.u32 %v3357_v8, 16  ;;  %v3262_v16 = vld [vmem:[%s8686_s17 + $0x10] sm:$0xf]  ;;  %v2740_v17 = vld [vmem:[%s8681_s15 + $0x8] sm:$0xf]  ;;  %vm3822_vm10 = vcmask 290024  }
 0x27d   : > { %3197 = vrot.lane.b32.xlu0 %v3163_v35, %s7561_s23  ;;  %v3401_v18 = vrot.slane %v3399_v33, 4  ;;  %v2769_v19 = vshrl.u32 %v2740_v17, 16  ;;  %v2772_v20 = vshll.u32 %v2740_v17, 16  ;;  %v2738_v21 = vld [vmem:[%s8681_s15] sm:$0xf]  ;;  %v3388_v22 = vrot.slane %v3387_v10, 4 }
 0x27e   : > { %v3404_v23 = vrot.slane %v3402_v11, 5  ;;  %v3392_v24 = vrot.slane %v3390_v12, 4  ;;  %v2944_v25 = vld [vmem:[%s8686_s17 + $0x24] sm:$0xf]  ;;  %v2891_v26 = vld [vmem:[#allocation2 + $0x48] sm:$0xf] }
 0x27f   : > { %v2755_v27 = vshrl.u32 %v2738_v21, 16  ;;  %v3379_v28 = vrot.slane %v3378_v14, 4  ;;  %v3395_v29 = vrot.slane %v3393_v15, 5  ;;  %v2771_v31 = vrot.slane %v2769_v19, 7  ;;  %v2885_v30 = vld [vmem:[#allocation2 + $0x40] sm:$0xf] }
 0x280   : > { %3292 = vrot.lane.b32.xlu1 %v3259_v38, %s7563_s25  ;;  %v2758_v34 = vshll.u32 %v2738_v21, 16  ;;  %v2943_v35 = vld [vmem:[%s8686_s17 + $0x20] sm:$0xf]  ;;  %v2741_v38 = vld [vmem:[%s8681_s15 + $0xc] sm:$0xf]  ;;  %v3015_v39 = vshrl.u32 %v2944_v25, 16  ;;  %v3405_v45 = vor.u32 %v3404_v23, %v3401_v18 }
 0x281   : > { %3290 = vrot.lane.b32.xlu0 %v3258_v41, %s7563_s25  ;;  %v2757_v37 = vrot.slane %v2755_v27, 7  ;;  %v2774_v40 = vor.u32 %v2772_v20, %v2771_v31  ;;  %v2776_v41 = vshrl.u32 %v2741_v38, 16  ;;  %v2779_v1 = vshll.u32 %v2741_v38, 16  ;;  %v2739_v43 = vld [vmem:[%s8681_s15 + $0x4] sm:$0xf]  ;;  %s7570_s22 = smov (!%p7033_p7), 29  }
 0x282   : > { %v3265_v44 = vld [vmem:[%s8686_s17 + $0x1c] sm:$0xf]  ;;  %v2762_v47 = vshrl.u32 %v2739_v43, 16  ;;  %v2765_v49 = vshll.u32 %v2739_v43, 16  ;;  %v3264_v50 = vld [vmem:[%s8686_s17 + $0x18] sm:$0xf] }
 0x283   : > { %v2946_v53 = vld [vmem:[%s8686_s17 + $0x2c] sm:$0xf]  ;;  %v2892_v54 = vsel %vm8742_vm1, %v2774_v40, %v2891_v26  ;;  %v2945_v56 = vld [vmem:[%s8686_s17 + $0x28] sm:$0xf]  ;;  %v3017_v59 = vrot.slane %v3015_v39, 7  ;;  %v3018_v60 = vshll.u32 %v2944_v25, 16 }
 0x284   : > { %3296 = vrot.lane.b32.xlu1 %v3261_v46, %s7563_s25  ;;  %v2760_v46 = vor.u32 %v2758_v34, %v2757_v37  ;;  %2893 = vst [vmem:[#allocation2 + $0x48] sm:$0xf] %v2892_v54  ;;  %v2888_v62 = vld [vmem:[#allocation2 + $0x44] sm:$0xf]  ;;  %v3011_v0 = vshll.u32 %v2943_v35, 16  ;;  %v3029_v2 = vshrl.u32 %v2946_v53, 16 }
 0x285   : > { %3294 = vrot.lane.b32.xlu0 %v3260_v51, %s7563_s25  ;;  %v3396_v51 = vor.u32 %v3395_v29, %v3392_v24  ;;  %v3022_v42 = vshrl.u32 %v2945_v56, 16  ;;  %v3020_v7 = vor.u32 %v3018_v60, %v3017_v59  ;;  %v3025_v11 = vshll.u32 %v2945_v56, 16  ;;  %v3360_v12 = vld [vmem:[%s8681_s15 + $0x14] sm:$0xf]  ;;  %v3359_v14 = vld [vmem:[%s8681_s15 + $0x10] sm:$0xf] }
 0x286   : > { %v2886_v57 = vsel %vm8742_vm1, %v2760_v46, %v2885_v30  ;;  %v3031_v8 = vrot.slane %v3029_v2, 7  ;;  %v2742_v18 = vld [vmem:[%s8681_s15 + $0x10] sm:$0xf]  ;;  %v3420_v20 = vshll.u32 %v3360_v12, 16  ;;  %v3408_v21 = vshrl.u32 %v3359_v14, 16 }
 0x287   : > { %2887 = vst [vmem:[#allocation2 + $0x40] sm:$0xf] %v2886_v57  ;;  %v3397_v3 = vrot.slane %v3396_v51, 4  ;;  %v3024_v10 = vrot.slane %v3022_v42, 7  ;;  %v3362_v23 = vld [vmem:[%s8681_s15 + $0x1c] sm:$0xf] }
 0x288   : > { %3073 = vrot.lane.b32.xlu1 %v2992_v52, %s7562_s24  ;;  %v3008_v52 = vshrl.u32 %v2943_v35, 16  ;;  %v2783_v26 = vshrl.u32 %v2742_v18, 16  ;;  %v3170_v27 = vld [vmem:[%s8681_s15 + $0x24] sm:$0xf]  ;;  %v2900_v29 = vld [vmem:[#allocation2 + $0x54] sm:$0xf] }
 0x289   : > { %3071 = vrot.lane.b32.xlu0 %v2985_v55, %s7562_s24  ;;  %v2778_v55 = vrot.slane %v2776_v41, 7  ;;  %v3027_v19 = vor.u32 %v3025_v11, %v3024_v10  ;;  %v2786_v31 = vshll.u32 %v2742_v18, 16  ;;  %v3615_v34 = vld [vmem:[%s8686_s17 + $0x4] sm:$0xf]  ;;  %v2745_v38 = vld [vmem:[%s8681_s15 + $0x1c] sm:$0xf] }
 0x28a   : > { %v3010_v4 = vrot.slane %v3008_v52, 7  ;;  %v2785_v37 = vrot.slane %v2783_v26, 7  ;;  %v3422_v39 = vrot.slane %v3420_v20, 5  ;;  %v3410_v40 = vrot.slane %v3408_v21, 4  ;;  %v2897_v43 = vld [vmem:[#allocation2 + $0x50] sm:$0xf] }
 0x28b   : > { %v2781_v61 = vor.u32 %v2779_v1, %v2778_v55  ;;  %v3435_v41 = vshrl.u32 %v3362_v23, 16  ;;  %v3438_v1 = vshll.u32 %v3362_v23, 16  ;;  %v3640_v52 = vshrl.u32 %v3615_v34, 16  ;;  %v3614_v54 = vld [vmem:[%s8686_s17] sm:$0xf] }
 0x28c   : > { %3077 = vrot.lane.b32.xlu1 %v3006_v58, %s7562_s24  ;;  %v2894_v58 = vld [vmem:[#allocation2 + $0x4c] sm:$0xf]  ;;  %v3013_v33 = vor.u32 %v3011_v0, %v3010_v4  ;;  %v2804_v55 = vshrl.u32 %v2745_v38, 16  ;;  %v3171_v60 = vld [vmem:[%s8681_s15 + $0x28] sm:$0xf]  ;;  %v3631_v2 = vshrl.u32 %v3614_v54, 16 }
 0x28d   : > { %3075 = vrot.lane.b32.xlu0 %v2999_v32, %s7562_s24  ;;  %v2764_v32 = vrot.slane %v2762_v47, 7  ;;  %v3172_v56 = vld [vmem:[%s8681_s15 + $0x2c] sm:$0xf]  ;;  %v3437_v0 = vrot.slane %v3435_v41, 4  ;;  %v3440_v42 = vrot.slane %v3438_v1, 5  ;;  %vm3949_vm12 = vcmask 293888  }
 0x28e   : > { %v3633_v18 = vrot.slane %v3631_v2, 4  ;;  %v8802_v20 = vld [vmem:[%s8686_s17 + $0x34] sm:$0xf]  ;;  %v2747_v41 = vld [vmem:[%s8681_s15 + $0x24] sm:$0xf]  ;;  %vm4259_vm13 = vcmask (!%p7033_p7), 289792  }
 0x28f   : > { %vm3564_vm8 = vsmask.f32 3328 }
 0x290   : > { %3203 = vrot.lane.b32.xlu1 %v3166_v63, %s7561_s23  ;;  %v3406_v63 = vrot.slane %v3405_v45, 4  ;;  %vm9015_vm9 = vmand %vm3563_vm7, %vm3564_vm8 }
 0x291   : > { %3201 = vrot.lane.b32.xlu0 %v3165_v48, %s7561_s23  ;;  %v2767_v48 = vor.u32 %v2765_v49, %v2764_v32  ;;  %v2788_v49 = vor.u32 %v2786_v31, %v2785_v37  ;;  %v3269_v37 = vld [vmem:[%s8686_s17 + $0x2c] sm:$0xf]  ;;  %vm9055_vm11 = vmand %vm3822_vm10, %vm3564_vm8 }
 0x293   : > { %v2889_v6 = vsel %vm8742_vm1, %v2767_v48, %v2888_v62  ;;  %v2898_v57 = vsel %vm8742_vm1, %v2788_v49, %v2897_v43  ;;  %v3617_v62 = vld [vmem:[%s8686_s17 + $0xc] sm:$0xf]  ;;  %v3634_v48 = vshll.u32 %v3614_v54, 16 }
 0x294   : > { %3207 = vrot.lane.b32.xlu1 %v3168_v5, %s7561_s23  ;;  %v2895_v5 = vsel %vm8742_vm1, %v2781_v61, %v2894_v58  ;;  %2890 = vst [vmem:[#allocation2 + $0x44] sm:$0xf] %v2889_v6  ;;  %v2807_v58 = vshll.u32 %v2745_v38, 16  ;;  %2899 = vst [vmem:[#allocation2 + $0x50] sm:$0xf] %v2898_v57  ;;  %v2821_v57 = vshll.u32 %v2747_v41, 16 }
 0x295   : > { %3205 = vrot.lane.b32.xlu0 %v3167_v9, %s7561_s23  ;;  %2896 = vst [vmem:[#allocation2 + $0x4c] sm:$0xf] %v2895_v5  ;;  %v3032_v9 = vshll.u32 %v2946_v53, 16  ;;  %v3643_v53 = vshll.u32 %v3615_v34, 16 }
 0x297   : > { %v3034_v15 = vor.u32 %v3032_v9, %v3031_v8  ;;  %v2903_v8 = vld [vmem:[#allocation2 + $0x58] sm:$0xf]  ;;  %v3645_v10 = vrot.slane %v3643_v53, 5  ;;  %v3268_v53 = vld [vmem:[%s8686_s17 + $0x28] sm:$0xf] }
 0x298   : > { %3300 = vrot.lane.b32.xlu1 %v3263_v13, %s7563_s25  ;;  %v2743_v13 = vld [vmem:[%s8681_s15 + $0x14] sm:$0xf] }
 0x299   : > { %3298 = vrot.lane.b32.xlu0 %v3262_v16, %s7563_s25  ;;  %v3417_v16 = vshrl.u32 %v3360_v12, 16  ;;  %v2790_v17 = vshrl.u32 %v2743_v13, 16  ;;  %v2793_v25 = vshll.u32 %v2743_v13, 16  ;;  %v3267_v12 = vld [vmem:[%s8686_s17 + $0x24] sm:$0xf]  ;;  %v3658_v13 = vshrl.u32 %v3617_v62, 16 }
 0x29b   : > { %v2792_v24 = vrot.slane %v2790_v17, 7  ;;  %v8776_v30 = vrot.slane %v3417_v16, 4  ;;  %v3266_v17 = vld [vmem:[%s8686_s17 + $0x20] sm:$0xf] }
 0x29c   : > { %3517 = vrot.lane.b32.xlu1 %v3388_v22, %s7564_s26  ;;  %v3411_v22 = vshll.u32 %v3359_v14, 16  ;;  %v3661_v14 = vshll.u32 %v3617_v62, 16 }
 0x29d   : > { %3515 = vrot.lane.b32.xlu0 %v3379_v28, %s7564_s26  ;;  %v3361_v28 = vld [vmem:[%s8681_s15 + $0x18] sm:$0xf]  ;;  %v2795_v35 = vor.u32 %v2793_v25, %v2792_v24  ;;  %v3423_v61 = vor.u32 %v3422_v39, %v8776_v30  ;;  %v3043_v30 = vshrl.u32 %v8802_v20, 16 }
 0x29e   : > { %v3413_v45 = vrot.slane %v3411_v22, 5  ;;  %v3426_v46 = vshrl.u32 %v3361_v28, 16  ;;  %v3429_v51 = vshll.u32 %v3361_v28, 16  ;;  %v3441_v22 = vor.u32 %v3440_v42, %v3437_v0 }
 0x29f   : > { %v2901_v47 = vsel %vm8742_vm1, %v2795_v35, %v2900_v29  ;;  %v3424_v24 = vrot.slane %v3423_v61, 4  ;;  %v3660_v28 = vrot.slane %v3658_v13, 4  ;;  %v3663_v29 = vrot.slane %v3661_v14, 5  ;;  %v8810_v35 = vld [vmem:[%s8686_s17 + $0x30] sm:$0xf] }
 0x2a0   : > { %3304 = vrot.lane.b32.xlu1 %v3265_v44, %s7563_s25  ;;  %v3169_v44 = vld [vmem:[%s8681_s15 + $0x20] sm:$0xf]  ;;  %2902 = vst [vmem:[#allocation2 + $0x54] sm:$0xf] %v2901_v47  ;;  %v3428_v5 = vrot.slane %v3426_v46, 4  ;;  %v3431_v6 = vrot.slane %v3429_v51, 5  ;;  %v3414_v9 = vor.u32 %v3413_v45, %v3410_v40 }
 0x2a1   : > { %3302 = vrot.lane.b32.xlu0 %v3264_v50, %s7563_s25  ;;  %v2744_v50 = vld [vmem:[%s8681_s15 + $0x18] sm:$0xf]  ;;  %v3442_v38 = vrot.slane %v3441_v22, 4  ;;  %v8814_v40 = vld [vmem:[%s8686_s17 + $0x3c] sm:$0xf]  ;;  %v3664_v47 = vor.u32 %v3663_v29, %v3660_v28  ;;  %v3036_v51 = vshrl.u32 %v8810_v35, 16 }
 0x2a2   : > { %v2797_v32 = vshrl.u32 %v2744_v50, 16  ;;  %v2800_v59 = vshll.u32 %v2744_v50, 16  ;;  %v3432_v23 = vor.u32 %v3431_v6, %v3428_v5  ;;  %v3415_v25 = vrot.slane %v3414_v9, 4  ;;  %v2746_v45 = vld [vmem:[%s8681_s15 + $0x20] sm:$0xf]  ;;  %v7493_v46 = vld [vmem:[%s9974_s2 + $0x14] sm:$0xff]  }
 0x2a3   : > { %v8828_v50 = vrot.slane %v3043_v30, 7  ;;  %7334 = vmatprep.subr.bf16.mxu1 %v7493_v46  ;;  %v3057_v61 = vshrl.u32 %v8814_v40, 16  ;;  %v7494_v5 = vld [vmem:[%s9974_s2 + $0x1c] sm:$0xff]   ;;  %v3665_v6 = vrot.slane %v3664_v47, 4  ;;  %v2751_v13 = vld [vmem:[%s8681_s15 + $0x34] sm:$0xf] }
 0x2a4   : > { %3521 = vrot.lane.b32.xlu1 %v3406_v63, %s7564_s26  ;;  %v2806_v63 = vrot.slane %v2804_v55, 7  ;;  %v2799_v4 = vrot.slane %v2797_v32, 7  ;;  %v3433_v39 = vrot.slane %v3432_v23, 4  ;;  %v3039_v55 = vshll.u32 %v8810_v35, 16  ;;  %7335 = vmatpush3.bf16.msra.mxu1 %v7493_v46  ;;  %v2924_v23 = vld [vmem:[#allocation2 + $0x74] sm:$0xf] }
 0x2a5   : > { %3519 = vrot.lane.b32.xlu0 %v3397_v3, %s7564_s26  ;;  %v2906_v3 = vld [vmem:[#allocation2 + $0x5c] sm:$0xf]  ;;  %v2811_v32 = vshrl.u32 %v2746_v45, 16  ;;  %7336 = vmatprep.subr.bf16.mxu1 %v7494_v5  ;;  %v7495_v29 = vld [vmem:[%s9974_s2 + $0x24] ss:$0 sps:$4 sm:$0x33]  }
 0x2a6   : > { %v2802_v11 = vor.u32 %v2800_v59, %v2799_v4  ;;  %v2814_v59 = vshll.u32 %v2746_v45, 16  ;;  %v2752_v45 = vld [vmem:[%s8681_s15 + $0x38] sm:$0xf]  ;;  %v3976_v46 = vsel %vm3974_vm2, %v7495_v29, 0 }
 0x2a8   : > { %3081 = vrot.lane.b32.xlu1 %v3020_v7, %s7562_s24  ;;  %v2809_v7 = vor.u32 %v2807_v58, %v2806_v63  ;;  %v2904_v21 = vsel %vm8742_vm1, %v2802_v11, %v2903_v8  ;;  %v2912_v58 = vld [vmem:[#allocation2 + $0x64] sm:$0xf]  ;;  %v2909_v63 = vld [vmem:[#allocation2 + $0x60] sm:$0xf]  ;;  %v2918_v11 = vld [vmem:[#allocation2 + $0x6c] sm:$0xf]  ;;  %7337 = vmatpush3.bf16.msra.mxu1 %v7494_v5 }
 0x2a9   : > { %3079 = vrot.lane.b32.xlu0 %v3013_v33, %s7562_s24  ;;  %v3642_v33 = vrot.slane %v3640_v52, 4  ;;  %2905 = vst [vmem:[#allocation2 + $0x58] sm:$0xf] %v2904_v21  ;;  %v2749_v52 = vld [vmem:[%s8681_s15 + $0x2c] sm:$0xf]  ;;  %7438 = vmatprep.subr.msk.bf16.mxu1 %vm3974_vm2, %v7495_v29 }
 0x2aa   : > { %v2907_v16 = vsel %vm8742_vm1, %v2809_v7, %v2906_v3  ;;  %v2832_v0 = vshrl.u32 %v2749_v52, 16  ;;  %v2835_v2 = vshll.u32 %v2749_v52, 16  ;;  %v2813_v3 = vrot.slane %v2811_v32, 7  ;;  %v3173_v5 = vld [vmem:[%s8681_s15 + $0x30] sm:$0xf] }
 0x2ab   : > { %2908 = vst [vmem:[#allocation2 + $0x5c] sm:$0xf] %v2907_v16  ;;  %v3646_v26 = vor.u32 %v3645_v10, %v3642_v33  ;;  %v3038_v33 = vrot.slane %v3036_v51, 7  ;;  %v2915_v16 = vld [vmem:[#allocation2 + $0x68] sm:$0xf]  ;;  %v2853_v51 = vshrl.u32 %v2752_v45, 16 }
 0x2ac   : > { %3085 = vrot.lane.b32.xlu1 %v3034_v15, %s7562_s24  ;;  %v3616_v15 = vld [vmem:[%s8686_s17 + $0x8] sm:$0xf]  ;;  %v2834_v8 = vrot.slane %v2832_v0, 7  ;;  %v2816_v10 = vor.u32 %v2814_v59, %v2813_v3  ;;  %v2856_v52 = vshll.u32 %v2752_v45, 16  ;;  %7339 = vmatpush3.bf16.msra.mxu1 %v3976_v46  ;;  %v3174_v3 = vld [vmem:[%s8681_s15 + $0x34] sm:$0xf] }
 0x2ad   : > { %3083 = vrot.lane.b32.xlu0 %v3027_v19, %s7562_s24  ;;  %v3636_v19 = vrot.slane %v3634_v48, 5  ;;  %v3652_v31 = vshll.u32 %v3616_v15, 16  ;;  %v8818_v1 = vrot.slane %v3646_v26, 4  ;;  %v8841_v48 = vld [vmem:[%s8686_s17 + $0x38] sm:$0xf] }
 0x2ae   : > { %v2910_v21 = vsel %vm8742_vm1, %v2816_v10, %v2909_v63  ;;  %v3050_v26 = vshrl.u32 %v8841_v48, 16  ;;  %v3366_v10 = vld [vmem:[%s8681_s15 + $0x2c] sm:$0xf]  ;;  %v3621_v29 = vld [vmem:[%s8686_s17 + $0x1c] sm:$0xf] }
 0x2af   : > { %v3637_v34 = vor.u32 %v3636_v19, %v3633_v18  ;;  %v3654_v49 = vrot.slane %v3652_v31, 5  ;;  %v2849_v18 = vshll.u32 %v2751_v13, 16  ;;  %v2750_v19 = vld [vmem:[%s8681_s15 + $0x30] sm:$0xf]  ;;  %2911 = vst [vmem:[#allocation2 + $0x60] sm:$0xf] %v2910_v21 }
 0x2b0   : > { %3211 = vrot.lane.b32.xlu1 %v3170_v27, %s7561_s23  ;;  %v3649_v27 = vshrl.u32 %v3616_v15, 16  ;;  %v2837_v15 = vor.u32 %v2835_v2, %v2834_v8  ;;  %v3364_v2 = vld [vmem:[%s8681_s15 + $0x24] sm:$0xf]  ;;  %v3176_v8 = vld [vmem:[%s8681_s15 + $0x3c] sm:$0xf] }
 0x2b1   : > { %3209 = vrot.lane.b32.xlu0 %v3169_v44, %s7561_s23  ;;  %v3046_v44 = vshll.u32 %v8802_v20, 16  ;;  %v8833_v54 = vrot.slane %v3637_v34, 4  ;;  %v2921_v34 = vld [vmem:[#allocation2 + $0x70] sm:$0xf]  ;;  %v3271_v21 = vld [vmem:[%s8686_s17 + $0x34] sm:$0xf] }
 0x2b2   : > { %v8820_v43 = vrot.slane %v3649_v27, 4  ;;  %v2919_v27 = vsel %vm8742_vm1, %v2837_v15, %v2918_v11  ;;  %v3365_v11 = vld [vmem:[%s8681_s15 + $0x28] sm:$0xf]  ;;  %v3618_v15 = vld [vmem:[%s8686_s17 + $0x10] sm:$0xf] }
 0x2b3   : > { %2920 = vst [vmem:[#allocation2 + $0x6c] sm:$0xf] %v2919_v27  ;;  %v3048_v32 = vor.u32 %v3046_v44, %v8828_v50  ;;  %v3363_v50 = vld [vmem:[%s8681_s15 + $0x20] sm:$0xf]  ;;  %v3670_v27 = vshll.u32 %v3618_v15, 16 }
 0x2b4   : > { %3215 = vrot.lane.b32.xlu1 %v3172_v56, %s7561_s23  ;;  %v2818_v56 = vshrl.u32 %v2747_v41, 16  ;;  %v3655_v9 = vor.u32 %v3654_v49, %v8820_v43  ;;  %v2930_v49 = vld [vmem:[#allocation2 + $0x7c] sm:$0xf] }
 0x2b5   : > { %3213 = vrot.lane.b32.xlu0 %v3171_v60, %s7561_s23  ;;  %v2748_v60 = vld [vmem:[%s8681_s15 + $0x28] sm:$0xf] }
 0x2b6   : > { %v2820_v62 = vrot.slane %v2818_v56, 7  ;;  %v2825_v4 = vshrl.u32 %v2748_v60, 16  ;;  %v2828_v42 = vshll.u32 %v2748_v60, 16  ;;  %v3656_v31 = vrot.slane %v3655_v9, 4  ;;  %v2927_v60 = vld [vmem:[#allocation2 + $0x78] sm:$0xf] }
 0x2b8   : > { %3308 = vrot.lane.b32.xlu1 %v3267_v12, %s7563_s25  ;;  %v2823_v7 = vor.u32 %v2821_v57, %v2820_v62  ;;  %v2827_v12 = vrot.slane %v2825_v4, 7  ;;  %v3059_v57 = vrot.slane %v3057_v61, 7  ;;  %v3052_v61 = vrot.slane %v3050_v26, 7 }
 0x2b9   : > { %3306 = vrot.lane.b32.xlu0 %v3266_v17, %s7563_s25  ;;  %v2846_v17 = vshrl.u32 %v2751_v13, 16  ;;  %v3053_v62 = vshll.u32 %v8841_v48, 16  ;;  %v3456_v48 = vshll.u32 %v3364_v2, 16  ;;  %v3444_v4 = vshrl.u32 %v3363_v50, 16  ;;  %v3619_v13 = vld [vmem:[%s8686_s17 + $0x14] sm:$0xf] }
 0x2ba   : > { %v2913_v14 = vsel %vm8742_vm1, %v2823_v7, %v2912_v58  ;;  %v2830_v22 = vor.u32 %v2828_v42, %v2827_v12  ;;  %v3447_v42 = vshll.u32 %v3363_v50, 16  ;;  %v3175_v12 = vld [vmem:[%s8681_s15 + $0x38] sm:$0xf]  ;;  %v3667_v26 = vshrl.u32 %v3618_v15, 16 }
 0x2bb   : > { %2914 = vst [vmem:[#allocation2 + $0x64] sm:$0xf] %v2913_v14  ;;  %v2848_v28 = vrot.slane %v2846_v17, 7  ;;  %v3055_v35 = vor.u32 %v3053_v62, %v3052_v61  ;;  %v3458_v7 = vrot.slane %v3456_v48, 5  ;;  %v3446_v9 = vrot.slane %v3444_v4, 4 }
 0x2bc   : > { %3525 = vrot.lane.b32.xlu1 %v3424_v24, %s7564_s26  ;;  %v2839_v24 = vshrl.u32 %v2750_v19, 16  ;;  %v2916_v30 = vsel %vm8742_vm1, %v2830_v22, %v2915_v16  ;;  %v3471_v16 = vshrl.u32 %v3366_v10, 16  ;;  %v3474_v17 = vshll.u32 %v3366_v10, 16  ;;  %v3272_v61 = vld [vmem:[%s8686_s17 + $0x38] sm:$0xf] }
 0x2bd   : > { %3523 = vrot.lane.b32.xlu0 %v3415_v25, %s7564_s26  ;;  %v2842_v25 = vshll.u32 %v2750_v19, 16  ;;  %2917 = vst [vmem:[#allocation2 + $0x68] sm:$0xf] %v2916_v30  ;;  %v3465_v19 = vshll.u32 %v3365_v11, 16  ;;  %v3122_v4 = vld [vmem:[#allocation2 + $0x4c] sm:$0xf] }
 0x2be   : > { %v3473_v30 = vrot.slane %v3471_v16, 4 }
 0x2c0   : > { %3312 = vrot.lane.b32.xlu1 %v3269_v37, %s7563_s25  ;;  %v2841_v37 = vrot.slane %v2839_v24, 7  ;;  %v3679_v24 = vshll.u32 %v3619_v13, 16 }
 0x2c1   : > { %3310 = vrot.lane.b32.xlu0 %v3268_v53, %s7563_s25  ;;  %v3060_v53 = vshll.u32 %v8814_v40, 16  ;;  %v3041_v40 = vor.u32 %v3039_v55, %v3038_v33  ;;  %v3453_v55 = vshrl.u32 %v3364_v2, 16  ;;  %v3449_v33 = vrot.slane %v3447_v42, 5 }
 0x2c2   : > { %v2844_v47 = vor.u32 %v2842_v25, %v2841_v37  ;;  %v3270_v25 = vld [vmem:[%s8686_s17 + $0x30] sm:$0xf]  ;;  %v3681_v46 = vrot.slane %v3679_v24, 5 }
 0x2c3   : > { %v3062_v44 = vor.u32 %v3060_v53, %v3059_v57  ;;  %v3450_v22 = vor.u32 %v3449_v33, %v3446_v9  ;;  %v3119_v57 = vld [vmem:[#allocation2 + $0x48] sm:$0xf]  ;;  %v3370_v33 = vld [vmem:[%s8681_s15 + $0x3c] sm:$0xf] }
 0x2c4   : > { %3529 = vrot.lane.b32.xlu1 %v3442_v38, %s7564_s26  ;;  %v2753_v38 = vld [vmem:[%s8681_s15 + $0x3c] sm:$0xf]  ;;  %v2922_v58 = vsel %vm8742_vm1, %v2844_v47, %v2921_v34  ;;  %v3476_v34 = vrot.slane %v3474_v17, 5  ;;  %v3669_v47 = vrot.slane %v3667_v26, 4  ;;  %v3507_v24 = vshrl.u32 %v3370_v33, 16 }
 0x2c5   : > { %3527 = vrot.lane.b32.xlu0 %v3433_v39, %s7564_s26  ;;  %v2851_v39 = vor.u32 %v2849_v18, %v2848_v28  ;;  %v2860_v41 = vshrl.u32 %v2753_v38, 16  ;;  %v2863_v43 = vshll.u32 %v2753_v38, 16  ;;  %2923 = vst [vmem:[#allocation2 + $0x70] sm:$0xf] %v2922_v58  ;;  %v3462_v18 = vshrl.u32 %v3365_v11, 16 }
 0x2c6   : > { %v3467_v38 = vrot.slane %v3465_v19, 5  ;;  %v3477_v58 = vor.u32 %v3476_v34, %v3473_v30  ;;  %v3623_v19 = vld [vmem:[%s8686_s17 + $0x24] sm:$0xf] }
 0x2c7   : > { %v2862_v56 = vrot.slane %v2860_v41, 7  ;;  %v3464_v37 = vrot.slane %v3462_v18, 4  ;;  %v3712_v34 = vshrl.u32 %v3623_v19, 16 }
 0x2c8   : > { %3776 = vrot.lane.b32.xlu1 %v8818_v1, %s7565_s10  ;;  %v2925_v1 = vsel %vm8742_vm1, %v2851_v39, %v2924_v23  ;;  %v3676_v23 = vshrl.u32 %v3619_v13, 16  ;;  %v3620_v39 = vld [vmem:[%s8686_s17 + $0x18] sm:$0xf]  ;;  %v3478_v42 = vrot.slane %v3477_v58, 4 }
 0x2c9   : > { %3774 = vrot.lane.b32.xlu0 %v8833_v54, %s7565_s10  ;;  %2926 = vst [vmem:[#allocation2 + $0x74] sm:$0xf] %v2925_v1  ;;  %v2855_v54 = vrot.slane %v2853_v51, 7  ;;  %v2865_v59 = vor.u32 %v2863_v43, %v2862_v56  ;;  %v3451_v43 = vrot.slane %v3450_v22, 4  ;;  %v3694_v51 = vshrl.u32 %v3621_v29, 16 }
 0x2ca   : > { %v3678_v45 = vrot.slane %v3676_v23, 4  ;;  %v3685_v53 = vshrl.u32 %v3620_v39, 16  ;;  %v3688_v1 = vshll.u32 %v3620_v39, 16  ;;  %v3369_v13 = vld [vmem:[%s8681_s15 + $0x38] sm:$0xf]  ;;  %v3714_v58 = vrot.slane %v3712_v34, 4 }
 0x2cb   : > { %v2858_v63 = vor.u32 %v2856_v52, %v2855_v54  ;;  %v2931_v0 = vsel %vm8742_vm1, %v2865_v59, %v2930_v49  ;;  %v3672_v49 = vrot.slane %v3670_v27, 5  ;;  %v3697_v52 = vshll.u32 %v3621_v29, 16  ;;  %v3113_v59 = vld [vmem:[#allocation2 + $0x40] sm:$0xf] }
 0x2cc   : > { %3780 = vrot.lane.b32.xlu1 %v3665_v6, %s7565_s10  ;;  %2932 = vst [vmem:[#allocation2 + $0x7c] sm:$0xf] %v2931_v0  ;;  %v3455_v6 = vrot.slane %v3453_v55, 4  ;;  %v3468_v54 = vor.u32 %v3467_v38, %v3464_v37  ;;  %v3682_v62 = vor.u32 %v3681_v46, %v3678_v45  ;;  %v3696_v0 = vrot.slane %v3694_v51, 4 }
 0x2cd   : > { %3778 = vrot.lane.b32.xlu0 %v3656_v31, %s7565_s10  ;;  %v2928_v20 = vsel %vm8742_vm1, %v2858_v63, %v2927_v60  ;;  %v3273_v60 = vld [vmem:[%s8686_s17 + $0x3c] sm:$0xf]  ;;  %v3673_v63 = vor.u32 %v3672_v49, %v3669_v47  ;;  %v3699_v2 = vrot.slane %v3697_v52, 5  ;;  %v3687_v50 = vrot.slane %v3685_v53, 4  ;;  %v3625_v49 = vld [vmem:[%s8686_s17 + $0x2c] sm:$0xf] }
 0x2ce   : > { %2929 = vst [vmem:[#allocation2 + $0x78] sm:$0xf] %v2928_v20  ;;  %v3459_v14 = vor.u32 %v3458_v7, %v3455_v6  ;;  %v3367_v20 = vld [vmem:[%s8681_s15 + $0x30] sm:$0xf]  ;;  %v3690_v55 = vrot.slane %v3688_v1, 5  ;;  %v3683_v11 = vrot.slane %v3682_v62, 4 }
 0x2cf   : > { %v3116_v7 = vld [vmem:[#allocation2 + $0x44] sm:$0xf]  ;;  %v3483_v9 = vshll.u32 %v3367_v20, 16  ;;  %v3674_v16 = vrot.slane %v3673_v63, 4  ;;  %v3501_v29 = vshll.u32 %v3369_v13, 16  ;;  %v3715_v37 = vshll.u32 %v3623_v19, 16 }
 0x2d0   : > { %3089 = vrot.lane.b32.xlu1 %v3048_v32, %s7562_s24  ;;  %v3460_v28 = vrot.slane %v3459_v14, 4  ;;  %v3368_v32 = vld [vmem:[%s8681_s15 + $0x34] sm:$0xf]  ;;  %v3691_v17 = vor.u32 %v3690_v55, %v3687_v50  ;;  %v3509_v46 = vrot.slane %v3507_v24, 4  ;;  %v8954_v1 = vld [vmem:[%s9974_s2] sm:$0xff]   ;;  %v3733_v62 = vshll.u32 %v3625_v49, 16 }
 0x2d1   : > { %3087 = vrot.lane.b32.xlu0 %v3041_v40, %s7562_s24  ;;  %v3489_v48 = vshrl.u32 %v3368_v32, 16  ;;  %v3492_v6 = vshll.u32 %v3368_v32, 16  ;;  %v3485_v27 = vrot.slane %v3483_v9, 5  ;;  %v3503_v53 = vrot.slane %v3501_v29, 5  ;;  %7400 = vmatprep.subr.bf16.mxu1 %v8954_v1  ;;  %v3626_v55 = vld [vmem:[%s8686_s17 + $0x30] sm:$0xf] }
 0x2d2   : > { %7356 = vmatprep.subr.bf16.mxu0 %v8954_v1  ;;  %v3128_v9 = vld [vmem:[#allocation2 + $0x54] sm:$0xf] }
 0x2d3   : > { %v3491_v18 = vrot.slane %v3489_v48, 4  ;;  %v3494_v23 = vrot.slane %v3492_v6, 5  ;;  %7357 = vmatpush3.bf16.msra.mxu0 %v8954_v1  ;;  %v3735_v6 = vrot.slane %v3733_v62, 5 }
 0x2d4   : > { %3093 = vrot.lane.b32.xlu1 %v3062_v44, %s7562_s24 }
 0x2d5   : > { %3091 = vrot.lane.b32.xlu0 %v3055_v35, %s7562_s24  ;;  %v3495_v45 = vor.u32 %v3494_v23, %v3491_v18  ;;  %s7567_s24 = smov (!%p7033_p7), 12  }
 0x2d7   : > { %v3496_v63 = vrot.slane %v3495_v45, 4  ;;  %v8981_v45 = vld [vmem:[%s9974_s2 + $0x8] sm:$0xff]  }
 0x2d8   : > { %3219 = vrot.lane.b32.xlu1 %v3174_v3, %s7561_s23  ;;  %7358 = vmatprep.subr.bf16.mxu0 %v8981_v45 }
 0x2d9   : > { %3217 = vrot.lane.b32.xlu0 %v3173_v5, %s7561_s23  ;;  %v3469_v5 = vrot.slane %v3468_v54, 4  ;;  %v3717_v54 = vrot.slane %v3715_v37, 5  ;;  %v3131_v37 = vld [vmem:[#allocation2 + $0x58] sm:$0xf]  ;;  %7359 = vmatpush3.bf16.msra.mxu0 %v8981_v45 }
 0x2dc   : > { %3223 = vrot.lane.b32.xlu1 %v3176_v8, %s7561_s23  ;;  %v3480_v8 = vshrl.u32 %v3367_v20, 16 }
 0x2dd   : > { %3221 = vrot.lane.b32.xlu0 %v3175_v12, %s7561_s23  ;;  %v3700_v12 = vor.u32 %v3699_v2, %v3696_v0  ;;  %v3627_v2 = vld [vmem:[%s8686_s17 + $0x34] sm:$0xf]  ;;  %s7566_s23 = smov (!%p7033_p7), 5  }
 0x2de   : > { %v3482_v26 = vrot.slane %v3480_v8, 4  ;;  %v3751_v8 = vshll.u32 %v3627_v2, 16 }
 0x2e0   : > { %3316 = vrot.lane.b32.xlu1 %v3271_v21, %s7563_s25  ;;  %v8912_v31 = vpop.permute.xlu1 %3195  ;;  %v3194_v41 = vpop.permute.xlu0 %3193  ;;  %v3622_v21 = vld [vmem:[%s8686_s17 + $0x20] sm:$0xf]  ;;  %v3486_v51 = vor.u32 %v3485_v27, %v3482_v26  ;;  %v3753_v26 = vrot.slane %v3751_v8, 5 }
 0x2e1   : > { %3314 = vrot.lane.b32.xlu0 %v3270_v25, %s7563_s25  ;;  %v3510_v25 = vshll.u32 %v3370_v33, 16  ;;  %v3703_v38 = vshrl.u32 %v3622_v21, 16  ;;  %v3706_v39 = vshll.u32 %v3622_v21, 16  ;;  %v3628_v21 = vld [vmem:[%s8686_s17 + $0x38] sm:$0xf] }
 0x2e2   : > { %v3487_v20 = vrot.slane %v3486_v51, 4 }
 0x2e3   : > { %v3512_v47 = vrot.slane %v3510_v25, 5  ;;  %v3705_v32 = vrot.slane %v3703_v38, 4 }
 0x2e4   : > { %3533 = vrot.lane.b32.xlu1 %v3460_v28, %s7564_s26  ;;  %v3498_v28 = vshrl.u32 %v3369_v13, 16 }
 0x2e5   : > { %3531 = vrot.lane.b32.xlu0 %v3451_v43, %s7564_s26  ;;  %v3701_v43 = vrot.slane %v3700_v12, 4  ;;  %v3513_v0 = vor.u32 %v3512_v47, %v3509_v46  ;;  %v3125_v12 = vld [vmem:[#allocation2 + $0x50] sm:$0xf] }
 0x2e6   : > { %v3068_v40 = vpop.permute.xlu1 %3067  ;;  %v3500_v52 = vrot.slane %v3498_v28, 4  ;;  %v3134_v28 = vld [vmem:[#allocation2 + $0x5c] sm:$0xf] }
 0x2e7   : > { %v3120_v44 = vsel %vm8918_vm4, %v3068_v40, %v3119_v57  ;;  %v3064_v35 = vpop.permute.xlu0 %3063  ;;  %v3514_v33 = vrot.slane %v3513_v0, 4 }
 0x2e8   : > { %3121 = vst [vmem:[#allocation2 + $0x48] sm:$0xf] %v3120_v44  ;;  %v3114_v3 = vsel %vm8918_vm4, %v3064_v35, %v3113_v59  ;;  %3320 = vrot.lane.b32.xlu1 %v3273_v60, %s7563_s25  ;;  %v3708_v59 = vrot.slane %v3706_v39, 5  ;;  %v3624_v60 = vld [vmem:[%s8686_s17 + $0x28] sm:$0xf]  ;;  %v3504_v44 = vor.u32 %v3503_v53, %v3500_v52 }
 0x2e9   : > { %3115 = vst [vmem:[#allocation2 + $0x40] sm:$0xf] %v3114_v3  ;;  %3318 = vrot.lane.b32.xlu0 %v3272_v61, %s7563_s25  ;;  %v3730_v61 = vshrl.u32 %v3625_v49, 16  ;;  %v3721_v35 = vshrl.u32 %v3624_v60, 16  ;;  %v3724_v50 = vshll.u32 %v3624_v60, 16  ;;  %v3718_v3 = vor.u32 %v3717_v54, %v3714_v58  ;;  %s7568_s25 = smov (!%p7033_p7), 17  }
 0x2ea   : > { %v3070_v10 = vpop.permute.xlu1 %3069  ;;  %3242 = vst.msk [vmem:[#allocation2 + $0x40] sm:$0xf] %vm3241_vm5, %v3194_v41  ;;  %v3505_v13 = vrot.slane %v3504_v44, 4 }
 0x2eb   : > { %v3123_v14 = vsel %vm8918_vm4, %v3070_v10, %v3122_v4  ;;  %v3066_v15 = vpop.permute.xlu0 %3065  ;;  %v3709_v4 = vor.u32 %v3708_v59, %v3705_v32  ;;  %v3739_v10 = vshrl.u32 %v3626_v55, 16  ;;  %v3719_v18 = vrot.slane %v3718_v3, 4 }
 0x2ec   : > { %3124 = vst [vmem:[#allocation2 + $0x4c] sm:$0xf] %v3123_v14  ;;  %v3117_v22 = vsel %vm8918_vm4, %v3066_v15, %v3116_v7  ;;  %3537 = vrot.lane.b32.xlu1 %v3478_v42, %s7564_s26  ;;  %v3748_v7 = vshrl.u32 %v3627_v2, 16  ;;  %v3723_v14 = vrot.slane %v3721_v35, 4  ;;  %v3726_v15 = vrot.slane %v3724_v50, 5 }
 0x2ed   : > { %3118 = vst [vmem:[#allocation2 + $0x44] sm:$0xf] %v3117_v22  ;;  %3535 = vrot.lane.b32.xlu0 %v3469_v5, %s7564_s26  ;;  %v3732_v5 = vrot.slane %v3730_v61, 4  ;;  %v3710_v19 = vrot.slane %v3709_v4, 4  ;;  %v3741_v29 = vrot.slane %v3739_v10, 4 }
 0x2ee   : > { %v3200_v30 = vpop.permute.xlu1 %3199  ;;  %3243 = vst.msk [vmem:[#allocation2 + $0x44] sm:$0xf] %vm3241_vm5, %v8912_v31  ;;  %v3692_v31 = vrot.slane %v3691_v17, 4  ;;  %v3750_v25 = vrot.slane %v3748_v7, 4  ;;  %v3727_v38 = vor.u32 %v3726_v15, %v3723_v14 }
 0x2ef   : > { %3245 = vst.msk [vmem:[#allocation2 + $0x4c] sm:$0xf] %vm3241_vm5, %v3200_v30  ;;  %v3198_v41 = vpop.permute.xlu0 %3197  ;;  %v3736_v24 = vor.u32 %v3735_v6, %v3732_v5 }
 0x2f0   : > { %3244 = vst.msk [vmem:[#allocation2 + $0x48] sm:$0xf] %vm3241_vm5, %v3198_v41  ;;  %3784 = vrot.lane.b32.xlu1 %v3683_v11, %s7565_s10  ;;  %v3629_v11 = vld [vmem:[%s8686_s17 + $0x3c] sm:$0xf]  ;;  %v3757_v41 = vshrl.u32 %v3628_v21, 16  ;;  %v3754_v52 = vor.u32 %v3753_v26, %v3750_v25  ;;  %v3728_v58 = vrot.slane %v3727_v38, 4 }
 0x2f1   : > { %3782 = vrot.lane.b32.xlu0 %v3674_v16, %s7565_s10  ;;  %v3742_v16 = vshll.u32 %v3626_v55, 16  ;;  %v3766_v30 = vshrl.u32 %v3629_v11, 16  ;;  %v3769_v34 = vshll.u32 %v3629_v11, 16  ;;  %v3143_v25 = vld [vmem:[#allocation2 + $0x68] sm:$0xf] }
 0x2f2   : > { %v3293_v57 = vpop.permute.xlu1 %3292  ;;  %v3759_v32 = vrot.slane %v3757_v41, 4  ;;  %v3755_v61 = vrot.slane %v3754_v52, 4 }
 0x2f3   : > { %3340 = vst.msk [vmem:[#allocation2 + $0x44] sm:$0xf] %vm3338_vm6, %v3293_v57  ;;  %v3291_v40 = vpop.permute.xlu0 %3290  ;;  %v3744_v39 = vrot.slane %v3742_v16, 5  ;;  %v3768_v53 = vrot.slane %v3766_v30, 4  ;;  %v3771_v57 = vrot.slane %v3769_v34, 5 }
 0x2f4   : > { %3339 = vst.msk [vmem:[#allocation2 + $0x40] sm:$0xf] %vm3338_vm6, %v3291_v40  ;;  %3788 = vrot.lane.b32.xlu1 %v3701_v43, %s7565_s10  ;;  %v3760_v43 = vshll.u32 %v3628_v21, 16 }
 0x2f5   : > { %3786 = vrot.lane.b32.xlu0 %v3692_v31, %s7565_s10  ;;  %v3737_v31 = vrot.slane %v3736_v24, 4  ;;  %v3745_v54 = vor.u32 %v3744_v39, %v3741_v29  ;;  %v3772_v62 = vor.u32 %v3771_v57, %v3768_v53  ;;  %v3146_v24 = vld [vmem:[#allocation2 + $0x6c] sm:$0xf] }
 0x2f6   : > { %v3297_v48 = vpop.permute.xlu1 %3296  ;;  %v3762_v59 = vrot.slane %v3760_v43, 5 }
 0x2f7   : > { %3342 = vst.msk [vmem:[#allocation2 + $0x4c] sm:$0xf] %vm3338_vm6, %v3297_v48  ;;  %v3295_v42 = vpop.permute.xlu0 %3294  ;;  %v3773_v35 = vrot.slane %v3772_v62, 4 }
 0x2f8   : > { %3341 = vst.msk [vmem:[#allocation2 + $0x48] sm:$0xf] %vm3338_vm6, %v3295_v42  ;;  %3541 = vrot.lane.b32.xlu1 %v3496_v63, %s7564_s26  ;;  %v3746_v63 = vrot.slane %v3745_v54, 4  ;;  %v3763_v0 = vor.u32 %v3762_v59, %v3759_v32 }
 0x2f9   : > { %3539 = vrot.lane.b32.xlu0 %v3487_v20, %s7564_s26  ;;  %v8998_v20 = vld [vmem:[%s9974_s2 + $0x10] ss:$0 sps:$4 sm:$0x33]  }
 0x2fa   : > { %v3074_v17 = vpop.permute.xlu1 %3073  ;;  %v9005_v50 = vsel %vm3974_vm2, %v8998_v20, 0  ;;  %7439 = vmatprep.subr.msk.bf16.mxu0 %vm3974_vm2, %v8998_v20  ;;  %v3764_v55 = vrot.slane %v3763_v0, 4  ;;  %v3569_v5 = vld [vmem:[#allocation2 + $0x44] sm:$0xf] }
 0x2fb   : > { %v3129_v22 = vsel %vm8918_vm4, %v3074_v17, %v3128_v9  ;;  %v3072_v23 = vpop.permute.xlu0 %3071  ;;  %7361 = vmatpush3.bf16.msra.mxu0 %v9005_v50  ;;  %v3566_v8 = vld [vmem:[#allocation2 + $0x40] sm:$0xf]  ;;  %v3140_v17 = vld [vmem:[#allocation2 + $0x64] sm:$0xf] }
 0x2fc   : > { %3130 = vst [vmem:[#allocation2 + $0x54] sm:$0xf] %v3129_v22  ;;  %v3126_v27 = vsel %vm8918_vm4, %v3072_v23, %v3125_v12  ;;  %3545 = vrot.lane.b32.xlu1 %v3514_v33, %s7564_s26 }
 0x2fd   : > { %3127 = vst [vmem:[#allocation2 + $0x50] sm:$0xf] %v3126_v27  ;;  %3543 = vrot.lane.b32.xlu0 %v3505_v13, %s7564_s26  ;;  %s7569_s26 = smov (!%p7033_p7), 24  }
 0x2fe   : > { %v3078_v46 = vpop.permute.xlu1 %3077  ;;  %v3575_v12 = vld [vmem:[#allocation2 + $0x4c] sm:$0xf] }
 0x2ff   : > { %v3135_v47 = vsel %vm8918_vm4, %v3078_v46, %v3134_v28  ;;  %v3076_v49 = vpop.permute.xlu0 %3075  ;;  %v3572_v15 = vld [vmem:[#allocation2 + $0x48] sm:$0xf] }
 0x300   : > { %3136 = vst [vmem:[#allocation2 + $0x5c] sm:$0xf] %v3135_v47  ;;  %v3132_v51 = vsel %vm8918_vm4, %v3076_v49, %v3131_v37  ;;  %3792 = vrot.lane.b32.xlu1 %v3719_v18, %s7565_s10  ;;  %v3137_v18 = vld [vmem:[#allocation2 + $0x60] sm:$0xf] }
 0x301   : > { %3133 = vst [vmem:[#allocation2 + $0x58] sm:$0xf] %v3132_v51  ;;  %3790 = vrot.lane.b32.xlu0 %v3710_v19, %s7565_s10 }
 0x302   : > { %v3204_v60 = vpop.permute.xlu1 %3203 }
 0x303   : > { %3247 = vst.msk [vmem:[#allocation2 + $0x54] sm:$0xf] %vm3241_vm5, %v3204_v60  ;;  %v3202_v40 = vpop.permute.xlu0 %3201 }
 0x304   : > { %3246 = vst.msk [vmem:[#allocation2 + $0x50] sm:$0xf] %vm3241_vm5, %v3202_v40  ;;  %3796 = vrot.lane.b32.xlu1 %v3737_v31, %s7565_s10 }
 0x305   : > { %3794 = vrot.lane.b32.xlu0 %v3728_v58, %s7565_s10 }
 0x306   : > { %v3208_v2 = vpop.permute.xlu1 %3207 }
 0x307   : > { %3249 = vst.msk [vmem:[#allocation2 + $0x5c] sm:$0xf] %vm3241_vm5, %v3208_v2  ;;  %v3206_v44 = vpop.permute.xlu0 %3205 }
 0x308   : > { %3248 = vst.msk [vmem:[#allocation2 + $0x58] sm:$0xf] %vm3241_vm5, %v3206_v44  ;;  %3800 = vrot.lane.b32.xlu1 %v3755_v61, %s7565_s10 }
 0x309   : > { %3798 = vrot.lane.b32.xlu0 %v3746_v63, %s7565_s10 }
 0x30a   : > { %v3301_v48 = vpop.permute.xlu1 %3300 }
 0x30b   : > { %3344 = vst.msk [vmem:[#allocation2 + $0x54] sm:$0xf] %vm3338_vm6, %v3301_v48  ;;  %v3299_v3 = vpop.permute.xlu0 %3298 }
 0x30c   : > { %3343 = vst.msk [vmem:[#allocation2 + $0x50] sm:$0xf] %vm3338_vm6, %v3299_v3  ;;  %3804 = vrot.lane.b32.xlu1 %v3773_v35, %s7565_s10 }
 0x30d   : > { %3802 = vrot.lane.b32.xlu0 %v3764_v55, %s7565_s10 }
 0x30e   : > { %v3518_v42 = vpop.permute.xlu1 %3517 }
 0x30f   : > { %v3570_v6 = vsel %vm9015_vm9, %v3518_v42, %v3569_v5  ;;  %v3516_v7 = vpop.permute.xlu0 %3515 }
 0x310   : > { %3571 = vst [vmem:[#allocation2 + $0x44] sm:$0xf] %v3570_v6  ;;  %v3567_v9 = vsel %vm9015_vm9, %v3516_v7, %v3566_v8  ;;  %v3152_v6 = vld [vmem:[#allocation2 + $0x74] sm:$0xf]  ;;  %v3149_v7 = vld [vmem:[#allocation2 + $0x70] sm:$0xf] }
 0x311   : > { %3568 = vst [vmem:[#allocation2 + $0x40] sm:$0xf] %v3567_v9 }
 0x312   : > { %v3305_v33 = vpop.permute.xlu1 %3304  ;;  %v3581_v46 = vld [vmem:[#allocation2 + $0x54] sm:$0xf] }
 0x313   : > { %3346 = vst.msk [vmem:[#allocation2 + $0x5c] sm:$0xf] %vm3338_vm6, %v3305_v33  ;;  %v3303_v10 = vpop.permute.xlu0 %3302  ;;  %v3578_v31 = vld [vmem:[#allocation2 + $0x50] sm:$0xf] }
 0x314   : > { %3345 = vst.msk [vmem:[#allocation2 + $0x58] sm:$0xf] %vm3338_vm6, %v3303_v10 }
 0x316   : > { %v3522_v11 = vpop.permute.xlu1 %3521 }
 0x317   : > { %v3576_v13 = vsel %vm9015_vm9, %v3522_v11, %v3575_v12  ;;  %v3520_v14 = vpop.permute.xlu0 %3519  ;;  %v3827_v62 = vld [vmem:[#allocation2 + $0x44] sm:$0xf]  ;;  %v3158_v11 = vld [vmem:[#allocation2 + $0x7c] sm:$0xf] }
 0x318   : > { %3577 = vst [vmem:[#allocation2 + $0x4c] sm:$0xf] %v3576_v13  ;;  %v3573_v16 = vsel %vm9015_vm9, %v3520_v14, %v3572_v15  ;;  %v3824_v2 = vld [vmem:[#allocation2 + $0x40] sm:$0xf]  ;;  %v3155_v13 = vld [vmem:[#allocation2 + $0x78] sm:$0xf] }
 0x319   : > { %3574 = vst [vmem:[#allocation2 + $0x48] sm:$0xf] %v3573_v16 }
 0x31a   : > { %v3082_v19 = vpop.permute.xlu1 %3081  ;;  %v3587_v58 = vld [vmem:[#allocation2 + $0x5c] sm:$0xf] }
 0x31b   : > { %v3141_v21 = vsel %vm8918_vm4, %v3082_v19, %v3140_v17  ;;  %v3080_v22 = vpop.permute.xlu0 %3079  ;;  %v3584_v59 = vld [vmem:[#allocation2 + $0x58] sm:$0xf] }
 0x31c   : > { %3142 = vst [vmem:[#allocation2 + $0x64] sm:$0xf] %v3141_v21  ;;  %v3138_v23 = vsel %vm8918_vm4, %v3080_v22, %v3137_v18 }
 0x31d   : > { %3139 = vst [vmem:[#allocation2 + $0x60] sm:$0xf] %v3138_v23 }
 0x31e   : > { %v3086_v26 = vpop.permute.xlu1 %3085 }
 0x31f   : > { %v3147_v27 = vsel %vm8918_vm4, %v3086_v26, %v3146_v24  ;;  %v3084_v28 = vpop.permute.xlu0 %3083  ;;  %v3833_v55 = vld [vmem:[#allocation2 + $0x4c] sm:$0xf] }
 0x320   : > { %3148 = vst [vmem:[#allocation2 + $0x6c] sm:$0xf] %v3147_v27  ;;  %v3144_v29 = vsel %vm8918_vm4, %v3084_v28, %v3143_v25  ;;  %v3830_v42 = vld [vmem:[#allocation2 + $0x48] sm:$0xf] }
 0x321   : > { %3145 = vst [vmem:[#allocation2 + $0x68] sm:$0xf] %v3144_v29 }
 0x322   : > { %v3212_v30 = vpop.permute.xlu1 %3211 }
 0x323   : > { %3251 = vst.msk [vmem:[#allocation2 + $0x64] sm:$0xf] %vm3241_vm5, %v3212_v30  ;;  %v3210_v34 = vpop.permute.xlu0 %3209 }
 0x324   : > { %3250 = vst.msk [vmem:[#allocation2 + $0x60] sm:$0xf] %vm3241_vm5, %v3210_v34 }
 0x326   : > { %v3216_v37 = vpop.permute.xlu1 %3215 }
 0x327   : > { %3253 = vst.msk [vmem:[#allocation2 + $0x6c] sm:$0xf] %vm3241_vm5, %v3216_v37  ;;  %v3214_v38 = vpop.permute.xlu0 %3213 }
 0x328   : > { %3252 = vst.msk [vmem:[#allocation2 + $0x68] sm:$0xf] %vm3241_vm5, %v3214_v38 }
 0x32a   : > { %v3309_v39 = vpop.permute.xlu1 %3308 }
 0x32b   : > { %3348 = vst.msk [vmem:[#allocation2 + $0x64] sm:$0xf] %vm3338_vm6, %v3309_v39  ;;  %v3307_v41 = vpop.permute.xlu0 %3306 }
 0x32c   : > { %3347 = vst.msk [vmem:[#allocation2 + $0x60] sm:$0xf] %vm3338_vm6, %v3307_v41 }
 0x32e   : > { %v3526_v43 = vpop.permute.xlu1 %3525 }
 0x32f   : > { %v3582_v47 = vsel %vm9015_vm9, %v3526_v43, %v3581_v46  ;;  %v3524_v49 = vpop.permute.xlu0 %3523 }
 0x330   : > { %3583 = vst [vmem:[#allocation2 + $0x54] sm:$0xf] %v3582_v47  ;;  %v3579_v51 = vsel %vm9015_vm9, %v3524_v49, %v3578_v31 }
 0x331   : > { %3580 = vst [vmem:[#allocation2 + $0x50] sm:$0xf] %v3579_v51 }
 0x332   : > { %v3313_v52 = vpop.permute.xlu1 %3312  ;;  %v3593_v26 = vld [vmem:[#allocation2 + $0x64] sm:$0xf] }
 0x333   : > { %3350 = vst.msk [vmem:[#allocation2 + $0x6c] sm:$0xf] %vm3338_vm6, %v3313_v52  ;;  %v3311_v53 = vpop.permute.xlu0 %3310 }
 0x334   : > { %3349 = vst.msk [vmem:[#allocation2 + $0x68] sm:$0xf] %vm3338_vm6, %v3311_v53 }
 0x336   : > { %v3530_v57 = vpop.permute.xlu1 %3529 }
 0x337   : > { %v3588_v54 = vsel %vm9015_vm9, %v3530_v57, %v3587_v58  ;;  %v3528_v32 = vpop.permute.xlu0 %3527  ;;  %v3839_v46 = vld [vmem:[#allocation2 + $0x54] sm:$0xf] }
 0x338   : > { %3589 = vst [vmem:[#allocation2 + $0x5c] sm:$0xf] %v3588_v54  ;;  %v3585_v60 = vsel %vm9015_vm9, %v3528_v32, %v3584_v59  ;;  %v3836_v31 = vld [vmem:[#allocation2 + $0x50] sm:$0xf] }
 0x339   : > { %3586 = vst [vmem:[#allocation2 + $0x58] sm:$0xf] %v3585_v60 }
 0x33a   : > { %v3777_v61 = vpop.permute.xlu1 %3776  ;;  %v3599_v34 = vld [vmem:[#allocation2 + $0x6c] sm:$0xf] }
 0x33b   : > { %v3828_v63 = vsel %vm9055_vm11, %v3777_v61, %v3827_v62  ;;  %v3775_v0 = vpop.permute.xlu0 %3774  ;;  %v3596_v39 = vld [vmem:[#allocation2 + $0x68] sm:$0xf] }
 0x33c   : > { %3829 = vst [vmem:[#allocation2 + $0x44] sm:$0xf] %v3828_v63  ;;  %v3825_v44 = vsel %vm9055_vm11, %v3775_v0, %v3824_v2 }
 0x33d   : > { %3826 = vst [vmem:[#allocation2 + $0x40] sm:$0xf] %v3825_v44 }
 0x33e   : > { %v3781_v35 = vpop.permute.xlu1 %3780 }
 0x33f   : > { %v3834_v48 = vsel %vm9055_vm11, %v3781_v35, %v3833_v55  ;;  %v3779_v3 = vpop.permute.xlu0 %3778  ;;  %v3845_v53 = vld [vmem:[#allocation2 + $0x5c] sm:$0xf] }
 0x340   : > { %3835 = vst [vmem:[#allocation2 + $0x4c] sm:$0xf] %v3834_v48  ;;  %v3831_v5 = vsel %vm9055_vm11, %v3779_v3, %v3830_v42  ;;  %v3842_v54 = vld [vmem:[#allocation2 + $0x58] sm:$0xf] }
 0x341   : > { %3832 = vst [vmem:[#allocation2 + $0x48] sm:$0xf] %v3831_v5 }
 0x342   : > { %v3090_v8 = vpop.permute.xlu1 %3089 }
 0x343   : > { %v3153_v9 = vsel %vm8918_vm4, %v3090_v8, %v3152_v6  ;;  %v3088_v33 = vpop.permute.xlu0 %3087 }
 0x344   : > { %3154 = vst [vmem:[#allocation2 + $0x74] sm:$0xf] %v3153_v9  ;;  %v3150_v10 = vsel %vm8918_vm4, %v3088_v33, %v3149_v7  ;;  %v7496_v12 = vld [vmem:[#allocation2 + $0x40] sm:$0xff]  }
 0x345   : > { %3151 = vst [vmem:[#allocation2 + $0x70] sm:$0xf] %v3150_v10  ;;  %7340 = vmatprep.mubr.msk.bf16.mxu1 %vm3949_vm12, %v7496_v12 }
 0x346   : > { %v3094_v14 = vpop.permute.xlu1 %3093 }
 0x347   : > { %v3159_v15 = vsel %vm8918_vm4, %v3094_v14, %v3158_v11  ;;  %v3092_v16 = vpop.permute.xlu0 %3091 }
 0x348   : > { %3160 = vst [vmem:[#allocation2 + $0x7c] sm:$0xf] %v3159_v15  ;;  %v3156_v17 = vsel %vm8918_vm4, %v3092_v16, %v3155_v13  ;;  %v7497_v18 = vld [vmem:[#allocation2 + $0x48] sm:$0xff]  }
 0x349   : > { %3157 = vst [vmem:[#allocation2 + $0x78] sm:$0xf] %v3156_v17  ;;  %7341 = vmatmul.mubr.msk.bf16.vlgmr.msra.gmra.mrb[0].mxu1 %vm3949_vm12, %v7497_v18 }
 0x34a   : > { %v3220_v19 = vpop.permute.xlu1 %3219  ;;  %7403 = vmatpush3.bf16.msra.mxu1 %v8954_v1 }
 0x34b   : > { %3255 = vst.msk [vmem:[#allocation2 + $0x74] sm:$0xf] %vm3241_vm5, %v3220_v19  ;;  %v3218_v21 = vpop.permute.xlu0 %3217  ;;  %7401 = vmatprep.subr.bf16.mxu1 %v8981_v45 }
 0x34c   : > { %3254 = vst.msk [vmem:[#allocation2 + $0x70] sm:$0xf] %vm3241_vm5, %v3218_v21 }
 0x34e   : > { %v3224_v22 = vpop.permute.xlu1 %3223  ;;  %7404 = vmatpush3.bf16.msra.mxu1 %v8981_v45  ;;  %v3590_v45 = vld [vmem:[#allocation2 + $0x60] sm:$0xf] }
 0x34f   : > { %3257 = vst.msk [vmem:[#allocation2 + $0x7c] sm:$0xf] %vm3241_vm5, %v3224_v22  ;;  %v3222_v23 = vpop.permute.xlu0 %3221  ;;  %7440 = vmatprep.subr.msk.bf16.mxu1 %vm3974_vm2, %v8998_v20 }
 0x350   : > { %3256 = vst.msk [vmem:[#allocation2 + $0x78] sm:$0xf] %vm3241_vm5, %v3222_v23 }
 0x352   : > { %v3317_v24 = vpop.permute.xlu1 %3316  ;;  %7405 = vmatpush3.bf16.msra.mxu1 %v9005_v50 }
 0x353   : > { %3352 = vst.msk [vmem:[#allocation2 + $0x74] sm:$0xf] %vm3338_vm6, %v3317_v24  ;;  %v3315_v25 = vpop.permute.xlu0 %3314 }
 0x354   : > { %3351 = vst.msk [vmem:[#allocation2 + $0x70] sm:$0xf] %vm3338_vm6, %v3315_v25 }
 0x356   : > { %v3534_v1 = vpop.permute.xlu1 %3533 }
 0x357   : > { %v3594_v27 = vsel %vm9015_vm9, %v3534_v1, %v3593_v26  ;;  %v3532_v28 = vpop.permute.xlu0 %3531 }
 0x358   : > { %3595 = vst [vmem:[#allocation2 + $0x64] sm:$0xf] %v3594_v27  ;;  %v3591_v29 = vsel %vm9015_vm9, %v3532_v28, %v3590_v45 }
 0x359   : > { %3592 = vst [vmem:[#allocation2 + $0x60] sm:$0xf] %v3591_v29 }
 0x35a   : > { %v3321_v20 = vpop.permute.xlu1 %3320  ;;  %v3605_v60 = vld [vmem:[#allocation2 + $0x74] sm:$0xf] }
 0x35b   : > { %3354 = vst.msk [vmem:[#allocation2 + $0x7c] sm:$0xf] %vm3338_vm6, %v3321_v20  ;;  %v3319_v30 = vpop.permute.xlu0 %3318  ;;  %v3602_v63 = vld [vmem:[#allocation2 + $0x70] sm:$0xf] }
 0x35c   : > { %3353 = vst.msk [vmem:[#allocation2 + $0x78] sm:$0xf] %vm3338_vm6, %v3319_v30  ;;  %v7507_v30 = vld [vmem:[#allocation2 + $0x20] sm:$0xff]  }
 0x35e   : > { %v3538_v50 = vpop.permute.xlu1 %3537 }
 0x35f   : > { %v3600_v37 = vsel %vm9015_vm9, %v3538_v50, %v3599_v34  ;;  %v3536_v38 = vpop.permute.xlu0 %3535  ;;  %v3851_v7 = vld [vmem:[#allocation2 + $0x64] sm:$0xf]  ;;  %v7508_v34 = vld [vmem:[#allocation2 + $0x28] sm:$0xff]  }
 0x360   : > { %3601 = vst [vmem:[#allocation2 + $0x6c] sm:$0xf] %v3600_v37  ;;  %v3597_v41 = vsel %vm9015_vm9, %v3536_v38, %v3596_v39  ;;  %v3848_v33 = vld [vmem:[#allocation2 + $0x60] sm:$0xf]  ;;  %v7509_v37 = vld [vmem:[#allocation2 + $0x30] sm:$0xff]   ;;  %v7510_v38 = vld [vmem:[#allocation2 + $0x38] sm:$0xff]  }
 0x361   : > { %3598 = vst [vmem:[#allocation2 + $0x68] sm:$0xf] %v3597_v41  ;;  %v7511_v39 = vld [vmem:[#allocation2] sm:$0xff]   ;;  %v7512_v41 = vld [vmem:[#allocation2 + $0x8] sm:$0xff]  }
 0x362   : > { %v3785_v43 = vpop.permute.xlu1 %3784  ;;  %v3611_v35 = vld [vmem:[#allocation2 + $0x7c] sm:$0xf]  ;;  %7362 = vmatprep.mubr.msk.bf16.mxu0 %vm3949_vm12, %v7511_v39 }
 0x363   : > { %v3840_v47 = vsel %vm9055_vm11, %v3785_v43, %v3839_v46  ;;  %v3783_v49 = vpop.permute.xlu0 %3782  ;;  %v3608_v3 = vld [vmem:[#allocation2 + $0x78] sm:$0xf]  ;;  %7363 = vmatmul.mubr.msk.bf16.vlgmr.msra.gmra.mrb[0].mxu0 %vm3949_vm12, %v7512_v41  ;;  %v7513_v43 = vld [vmem:[#allocation2 + $0x10] sm:$0xff]  }
 0x364   : > { %3841 = vst [vmem:[#allocation2 + $0x54] sm:$0xf] %v3840_v47  ;;  %v3837_v51 = vsel %vm9055_vm11, %v3783_v49, %v3836_v31  ;;  %v7514_v46 = vld [vmem:[#allocation2 + $0x18] sm:$0xff]   ;;  %7366 = vmatprep.mubr.msk.bf16.mxu0 %vm3949_vm12, %v7513_v43  ;;  %v7064_v43 = vld [vmem:[%s8686_s17 + $0x30] sm:$0xf] (!%p7033_p7) }
 0x365   : > { %3838 = vst [vmem:[#allocation2 + $0x50] sm:$0xf] %v3837_v51 }
 0x366   : > { %v3789_v52 = vpop.permute.xlu1 %3788 }
 0x367   : > { %v3846_v57 = vsel %vm9055_vm11, %v3789_v52, %v3845_v53  ;;  %v3787_v58 = vpop.permute.xlu0 %3786  ;;  %v3857_v12 = vld [vmem:[#allocation2 + $0x6c] sm:$0xf] }
 0x368   : > { %3847 = vst [vmem:[#allocation2 + $0x5c] sm:$0xf] %v3846_v57  ;;  %v3843_v32 = vsel %vm9055_vm11, %v3787_v58, %v3842_v54  ;;  %v3854_v15 = vld [vmem:[#allocation2 + $0x68] sm:$0xf] }
 0x369   : > { %3844 = vst [vmem:[#allocation2 + $0x58] sm:$0xf] %v3843_v32 }
 0x36a   : > { %v3542_v59 = vpop.permute.xlu1 %3541 }
 0x36b   : > { %v3606_v61 = vsel %vm9015_vm9, %v3542_v59, %v3605_v60  ;;  %v3540_v62 = vpop.permute.xlu0 %3539  ;;  %7367 = vmatmul.mubr.msk.bf16.gmra.mrb[4].mxu0 %vm3949_vm12, %v7514_v46  ;;  %v7063_v46 = vld [vmem:[%s8686_s17 + $0x2c] sm:$0xf] (!%p7033_p7) }
 0x36c   : > { %3607 = vst [vmem:[#allocation2 + $0x74] sm:$0xf] %v3606_v61  ;;  %v3603_v0 = vsel %vm9015_vm9, %v3540_v62, %v3602_v63  ;;  %v7498_v2 = vld [vmem:[#allocation2 + $0x50] sm:$0xff]  }
 0x36d   : > { %3604 = vst [vmem:[#allocation2 + $0x70] sm:$0xf] %v3603_v0  ;;  %7344 = vmatprep.mubr.msk.bf16.mxu1 %vm3949_vm12, %v7498_v2  ;;  %v7055_v2 = vld [vmem:[%s8686_s17 + $0xc] sm:$0xf] (!%p7033_p7) }
 0x36e   : > { %v3546_v44 = vpop.permute.xlu1 %3545 }
 0x36f   : > { %v3612_v55 = vsel %vm9015_vm9, %v3546_v44, %v3611_v35  ;;  %v3544_v48 = vpop.permute.xlu0 %3543  ;;  %v7053_v44 = vld [vmem:[%s8686_s17 + $0x4] sm:$0xf] (!%p7033_p7)  ;;  %v4476_v35 = vshrl.u32 (!%p7033_p7), %v7055_v2, 16 }
 0x370   : > { %3613 = vst [vmem:[#allocation2 + $0x7c] sm:$0xf] %v3612_v55  ;;  %v3609_v42 = vsel %vm9015_vm9, %v3544_v48, %v3608_v3  ;;  %v7500_v5 = vld [vmem:[#allocation2 + $0x58] sm:$0xff]   ;;  %v4479_v55 = vshll.u32 (!%p7033_p7), %v7055_v2, 16  ;;  %v4462_v48 = vshrl.u32 (!%p7033_p7), %v7053_v44, 16  ;;  %v4465_v3 = vshll.u32 (!%p7033_p7), %v7053_v44, 16 }
 0x371   : > { %3610 = vst [vmem:[#allocation2 + $0x78] sm:$0xf] %v3609_v42  ;;  %7345 = vmatmul.mubr.msk.bf16.gmra.mrb[4].mxu1 %vm3949_vm12, %v7500_v5  ;;  %v7056_v42 = vld [vmem:[%s8686_s17 + $0x10] sm:$0xf] (!%p7033_p7) }
 0x372   : > { %v3793_v6 = vpop.permute.xlu1 %3792  ;;  %v4483_v5 = vshrl.u32 (!%p7033_p7), %v7056_v42, 16 }
 0x373   : > { %v3852_v8 = vsel %vm9055_vm11, %v3793_v6, %v3851_v7  ;;  %v3791_v9 = vpop.permute.xlu0 %3790  ;;  %v3863_v18 = vld [vmem:[#allocation2 + $0x74] sm:$0xf]  ;;  %v4486_v6 = vshll.u32 (!%p7033_p7), %v7056_v42, 16  ;;  %v7054_v7 = vld [vmem:[%s8686_s17 + $0x8] sm:$0xf] (!%p7033_p7) }
 0x374   : > { %3853 = vst [vmem:[#allocation2 + $0x64] sm:$0xf] %v3852_v8  ;;  %v3849_v10 = vsel %vm9055_vm11, %v3791_v9, %v3848_v33  ;;  %v3860_v22 = vld [vmem:[#allocation2 + $0x70] sm:$0xf]  ;;  %v7058_v8 = vld [vmem:[%s8686_s17 + $0x18] sm:$0xf] (!%p7033_p7) }
 0x375   : > { %3850 = vst [vmem:[#allocation2 + $0x60] sm:$0xf] %v3849_v10  ;;  %v4478_v9 = vrot.slane (!%p7033_p7), %v4476_v35, 7  ;;  %v4464_v33 = vrot.slane (!%p7033_p7), %v4462_v48, 7  ;;  %v4469_v10 = vshrl.u32 (!%p7033_p7), %v7054_v7, 16 }
 0x376   : > { %v3797_v11 = vpop.permute.xlu1 %3796 }
 0x377   : > { %v3858_v13 = vsel %vm9055_vm11, %v3797_v11, %v3857_v12  ;;  %v3795_v14 = vpop.permute.xlu0 %3794  ;;  %v3869_v1 = vld [vmem:[#allocation2 + $0x7c] sm:$0xf]  ;;  %v4472_v11 = vshll.u32 (!%p7033_p7), %v7054_v7, 16  ;;  %v7057_v12 = vld [vmem:[%s8686_s17 + $0x14] sm:$0xf] (!%p7033_p7) }
 0x378   : > { %3859 = vst [vmem:[#allocation2 + $0x6c] sm:$0xf] %v3858_v13  ;;  %v3855_v16 = vsel %vm9055_vm11, %v3795_v14, %v3854_v15  ;;  %v3866_v28 = vld [vmem:[#allocation2 + $0x78] sm:$0xf]  ;;  %v4485_v13 = vrot.slane (!%p7033_p7), %v4483_v5, 7  ;;  %v4497_v14 = vshrl.u32 (!%p7033_p7), %v7058_v8, 16 }
 0x379   : > { %3856 = vst [vmem:[#allocation2 + $0x68] sm:$0xf] %v3855_v16  ;;  %v4490_v15 = vshrl.u32 (!%p7033_p7), %v7057_v12, 16  ;;  %v7060_v16 = vld [vmem:[%s8686_s17 + $0x20] sm:$0xf] (!%p7033_p7)  ;;  %v4532_v5 = vshrl.u32 (!%p7033_p7), %v7063_v46, 16 }
 0x37a   : > { %v3801_v17 = vpop.permute.xlu1 %3800  ;;  %v7065_v7 = vld [vmem:[%s8686_s17 + $0x34] sm:$0xf] (!%p7033_p7) }
 0x37b   : > { %v3864_v19 = vsel %vm9055_vm11, %v3801_v17, %v3863_v18  ;;  %v3799_v21 = vpop.permute.xlu0 %3798  ;;  %v4481_v17 = vor.u32 (!%p7033_p7), %v4479_v55, %v4478_v9  ;;  %v4467_v18 = vor.u32 (!%p7033_p7), %v4465_v3, %v4464_v33  ;;  %v4539_v55 = vshrl.u32 (!%p7033_p7), %v7064_v43, 16 }
 0x37c   : > { %3865 = vst [vmem:[#allocation2 + $0x74] sm:$0xf] %v3864_v19  ;;  %v3861_v23 = vsel %vm9055_vm11, %v3799_v21, %v3860_v22  ;;  %v7502_v24 = vld [vmem:[#allocation2 + $0x60] sm:$0xff]   ;;  %v4471_v19 = vrot.slane (!%p7033_p7), %v4469_v10, 7  ;;  %v7059_v21 = vld [vmem:[%s8686_s17 + $0x1c] sm:$0xf] (!%p7033_p7)  ;;  %v4488_v22 = vor.u32 (!%p7033_p7), %v4486_v6, %v4485_v13 }
 0x37d   : > { %3862 = vst [vmem:[#allocation2 + $0x70] sm:$0xf] %v3861_v23  ;;  %7348 = vmatprep.mubr.msk.bf16.mxu1 %vm3949_vm12, %v7502_v24  ;;  %v4499_v23 = vrot.slane (!%p7033_p7), %v4497_v14, 7  ;;  %v4500_v24 = vshll.u32 (!%p7033_p7), %v7058_v8, 16  ;;  %4570 = vrot.lane.b32.xlu1 (!%p7033_p7), %v4481_v17, %s7566_s23  ;;  %v7066_v6 = vld [vmem:[%s8686_s17 + $0x38] sm:$0xf] (!%p7033_p7) }
 0x37e   : > { %v3805_v25 = vpop.permute.xlu1 %3804  ;;  %4566 = vrot.lane.b32.xlu0 (!%p7033_p7), %v4467_v18, %s7566_s23  ;;  %v4541_v9 = vrot.slane (!%p7033_p7), %v4539_v55, 7  ;;  %v4542_v33 = vshll.u32 (!%p7033_p7), %v7064_v43, 16  ;;  %v4535_v10 = vshll.u32 (!%p7033_p7), %v7063_v46, 16  ;;  %v4553_v13 = vshrl.u32 (!%p7033_p7), %v7066_v6, 16  ;;  %v7039_v55 = vld [vmem:[%s8681_s15 + $0x10] sm:$0xf] (!%p7033_p7) }
 0x37f   : > { %v3870_v26 = vsel %vm9055_vm11, %v3805_v25, %v3869_v1  ;;  %v3803_v27 = vpop.permute.xlu0 %3802  ;;  %v4493_v25 = vshll.u32 (!%p7033_p7), %v7057_v12, 16  ;;  %v4474_v1 = vor.u32 (!%p7033_p7), %v4472_v11, %v4471_v19  ;;  %v4534_v12 = vrot.slane (!%p7033_p7), %v4532_v5, 7  ;;  %v7076_v5 = vld [vmem:[%s8681_s15 + $0x24] sm:$0xf] (!%p7033_p7) }
 0x380   : > { %3871 = vst [vmem:[#allocation2 + $0x7c] sm:$0xf] %v3870_v26  ;;  %v3867_v45 = vsel %vm9055_vm11, %v3803_v27, %v3866_v28  ;;  %v7503_v29 = vld [vmem:[#allocation2 + $0x68] sm:$0xff]   ;;  %v4492_v26 = vrot.slane (!%p7033_p7), %v4490_v15, 7  ;;  %v4511_v27 = vshrl.u32 (!%p7033_p7), %v7060_v16, 16  ;;  %v4504_v28 = vshrl.u32 (!%p7033_p7), %v7059_v21, 16 }
 0x381   : > { %3868 = vst [vmem:[#allocation2 + $0x78] sm:$0xf] %v3867_v45  ;;  %7349 = vmatmul.mubr.msk.bf16.gmra.mrb[8].mxu1 %vm3949_vm12, %v7503_v29  ;;  %v7062_v45 = vld [vmem:[%s8686_s17 + $0x28] sm:$0xf] (!%p7033_p7)  ;;  %v7061_v29 = vld [vmem:[%s8686_s17 + $0x24] sm:$0xf] (!%p7033_p7)  ;;  %4572 = vrot.lane.b32.xlu1 (!%p7033_p7), %v4488_v22, %s7566_s23  ;;  %v4537_v19 = vor.u32 (!%p7033_p7), %v4535_v10, %v4534_v12 }
 0x382   : > { %4568 = vrot.lane.b32.xlu0 (!%p7033_p7), %v4474_v1, %s7566_s23  ;;  %v4506_v39 = vrot.slane (!%p7033_p7), %v4504_v28, 7  ;;  %v4518_v41 = vshrl.u32 (!%p7033_p7), %v7061_v29, 16  ;;  %v4528_v44 = vshll.u32 (!%p7033_p7), %v7062_v45, 16  ;;  %v4521_v35 = vshll.u32 (!%p7033_p7), %v7061_v29, 16  ;;  %v7067_v15 = vld [vmem:[%s8686_s17 + $0x3c] sm:$0xf] (!%p7033_p7) }
 0x383   : > { %v4546_v14 = vshrl.u32 (!%p7033_p7), %v7065_v7, 16  ;;  %v4556_v17 = vshll.u32 (!%p7033_p7), %v7066_v6, 16  ;;  %v4549_v18 = vshll.u32 (!%p7033_p7), %v7065_v7, 16  ;;  %v7068_v28 = vld [vmem:[%s8681_s15 + $0x4] sm:$0xf] (!%p7033_p7) }
 0x384   : > { %v7504_v20 = vld [vmem:[#allocation2 + $0x70] sm:$0xff]   ;;  %v4520_v42 = vrot.slane (!%p7033_p7), %v4518_v41, 7  ;;  %v7069_v29 = vld [vmem:[%s8681_s15 + $0x8] sm:$0xf] (!%p7033_p7)  ;;  %v7075_v6 = vld [vmem:[%s8681_s15 + $0x20] sm:$0xf] (!%p7033_p7) }
 0x385   : > { %7352 = vmatprep.mubr.msk.bf16.mxu1 %vm3949_vm12, %v7504_v20  ;;  %v4502_v20 = vor.u32 (!%p7033_p7), %v4500_v24, %v4499_v23  ;;  %v4548_v22 = vrot.slane (!%p7033_p7), %v4546_v14, 7  ;;  %v4560_v23 = vshrl.u32 (!%p7033_p7), %v7067_v15, 16 }
 0x386   : > { %v4523_v11 = vor.u32 (!%p7033_p7), %v4521_v35, %v4520_v42  ;;  %v7037_v42 = vld [vmem:[%s8681_s15 + $0x8] sm:$0xf] (!%p7033_p7) }
 0x387   : > { %4576 = vrot.lane.b32.xlu1 (!%p7033_p7), %v4502_v20, %s7566_s23  ;;  %v4562_v1 = vrot.slane (!%p7033_p7), %v4560_v23, 7  ;;  %v7072_v20 = vld [vmem:[%s8681_s15 + $0x14] sm:$0xf] (!%p7033_p7)  ;;  %v4287_v12 = vshrl.u32 (!%p7033_p7), %v7037_v42, 16 }
 0x388   : > { %v7506_v50 = vld [vmem:[#allocation2 + $0x78] sm:$0xff]  }
 0x389   : > { %7353 = vmatmul.mubr.msk.bf16.gmra.mrb[12].mxu1 %vm3949_vm12, %v7506_v50  ;;  %v4507_v50 = vshll.u32 (!%p7033_p7), %v7059_v21, 16  ;;  %v4555_v21 = vrot.slane (!%p7033_p7), %v4553_v13, 7  ;;  %v7077_v13 = vld [vmem:[%s8681_s15 + $0x28] sm:$0xf] (!%p7033_p7) }
 0x38a   : > { %7370 = vmatprep.mubr.msk.bf16.mxu1 %vm3949_vm12, %v7507_v30  ;;  %v4514_v30 = vshll.u32 (!%p7033_p7), %v7060_v16, 16  ;;  %v4544_v16 = vor.u32 (!%p7033_p7), %v4542_v33, %v4541_v9  ;;  %v4301_v9 = vshrl.u32 (!%p7033_p7), %v7039_v55, 16  ;;  %v7078_v33 = vld [vmem:[%s8681_s15 + $0x2c] sm:$0xf] (!%p7033_p7) }
 0x38b   : > { %v4509_v3 = vor.u32 (!%p7033_p7), %v4507_v50, %v4506_v39  ;;  %v4558_v24 = vor.u32 (!%p7033_p7), %v4556_v17, %v4555_v21  ;;  %v7038_v50 = vld [vmem:[%s8681_s15 + $0xc] sm:$0xf] (!%p7033_p7)  ;;  %v7073_v39 = vld [vmem:[%s8681_s15 + $0x18] sm:$0xf] (!%p7033_p7) }
 0x38c   : > { %v4297_v41 = vshll.u32 (!%p7033_p7), %v7038_v50, 16  ;;  %v4303_v14 = vrot.slane (!%p7033_p7), %v4301_v9, 7  ;;  %v4408_v17 = vld [vmem:[#allocation2 + $0xc] sm:$0xf] (!%p7033_p7)  ;;  %v7084_v9 = vld [vmem:[%s8686_s17 + $0x8] sm:$0xf] (!%p7033_p7) }
 0x391   : > { %7371 = vmatmul.mubr.msk.bf16.vlgmr.msra.gmra.mrb[8].mxu1 %vm3949_vm12, %v7508_v34  ;;  %v4525_v34 = vshrl.u32 (!%p7033_p7), %v7062_v45, 16  ;;  %v7070_v45 = vld [vmem:[%s8681_s15 + $0xc] sm:$0xf] (!%p7033_p7) }
 0x392   : > { %7374 = vmatprep.mubr.msk.bf16.mxu1 %vm3949_vm12, %v7509_v37  ;;  %v4495_v37 = vor.u32 (!%p7033_p7), %v4493_v25, %v4492_v26  ;;  %v4551_v25 = vor.u32 (!%p7033_p7), %v4549_v18, %v4548_v22  ;;  %v4563_v26 = vshll.u32 (!%p7033_p7), %v7067_v15, 16  ;;  %v4290_v15 = vshll.u32 (!%p7033_p7), %v7037_v42, 16  ;;  %v4402_v22 = vld [vmem:[#allocation2 + $0x4] sm:$0xf] (!%p7033_p7) }
 0x393   : > { %v4527_v2 = vrot.slane (!%p7033_p7), %v4525_v34, 7  ;;  %v7036_v34 = vld [vmem:[%s8681_s15 + $0x4] sm:$0xf] (!%p7033_p7)  ;;  %v4289_v18 = vrot.slane (!%p7033_p7), %v4287_v12, 7 }
 0x394   : > { %4574 = vrot.lane.b32.xlu0 (!%p7033_p7), %v4495_v37, %s7566_s23  ;;  %v4294_v37 = vshrl.u32 (!%p7033_p7), %v7038_v50, 16  ;;  %v4280_v43 = vshrl.u32 (!%p7033_p7), %v7036_v34, 16 }
 0x395   : > { %v4530_v8 = vor.u32 (!%p7033_p7), %v4528_v44, %v4527_v2  ;;  %v4283_v2 = vshll.u32 (!%p7033_p7), %v7036_v34, 16  ;;  %v4405_v44 = vld [vmem:[#allocation2 + $0x8] sm:$0xf] (!%p7033_p7)  ;;  %v4292_v23 = vor.u32 (!%p7033_p7), %v4290_v15, %v4289_v18  ;;  %v7043_v34 = vld [vmem:[%s8681_s15 + $0x20] sm:$0xf] (!%p7033_p7) }
 0x396   : > { %v4296_v46 = vrot.slane (!%p7033_p7), %v4294_v37, 7  ;;  %v4282_v35 = vrot.slane (!%p7033_p7), %v4280_v43, 7  ;;  %v7082_v43 = vld [vmem:[%s8681_s15 + $0x3c] sm:$0xf] (!%p7033_p7)  ;;  %v7085_v18 = vld [vmem:[%s8686_s17 + $0xc] sm:$0xf] (!%p7033_p7) }
 0x398   : > { %4578 = vrot.lane.b32.xlu0 (!%p7033_p7), %v4509_v3, %s7566_s23  ;;  %v4399_v3 = vld [vmem:[#allocation2] sm:$0xf] (!%p7033_p7)  ;;  %v4285_v7 = vor.u32 (!%p7033_p7), %v4283_v2, %v4282_v35 }
 0x399   : > { %7375 = vmatmul.mubr.msk.bf16.gmra.mrb[12].mxu1 %vm3949_vm12, %v7510_v38  ;;  %v4513_v38 = vrot.slane (!%p7033_p7), %v4511_v27, 7  ;;  %v4565_v27 = vor.u32 (!%p7033_p7), %v4563_v26, %v4562_v1 }
 0x39a   : > { %v4400_v10 = vsel (!%p7033_p7), %vm8742_vm1, %v4285_v7, %v4399_v3 }
 0x39b   : > { %v4516_v48 = vor.u32 (!%p7033_p7), %v4514_v30, %v4513_v38  ;;  %v7071_v30 = vld [vmem:[%s8681_s15 + $0x10] sm:$0xf] (!%p7033_p7)  ;;  %v7074_v38 = vld [vmem:[%s8681_s15 + $0x1c] sm:$0xf] (!%p7033_p7)  ;;  %4401 = vst [vmem:[#allocation2] sm:$0xf] (!%p7033_p7), %v4400_v10 }
 0x39c   : > { %4582 = vrot.lane.b32.xlu0 (!%p7033_p7), %v4523_v11, %s7566_s23  ;;  %v4304_v11 = vshll.u32 (!%p7033_p7), %v7039_v55, 16  ;;  %v4332_v55 = vshll.u32 (!%p7033_p7), %v7043_v34, 16 }
 0x39d   : > { %4580 = vrot.lane.b32.xlu1 (!%p7033_p7), %v4516_v48, %s7566_s23  ;;  %v4299_v48 = vor.u32 (!%p7033_p7), %v4297_v41, %v4296_v46  ;;  %v7081_v46 = vld [vmem:[%s8681_s15 + $0x38] sm:$0xf] (!%p7033_p7) }
 0x39e   : > { %v4306_v21 = vor.u32 (!%p7033_p7), %v4304_v11, %v4303_v14  ;;  %v4417_v11 = vld [vmem:[#allocation2 + $0x18] sm:$0xf] (!%p7033_p7) }
 0x3a0   : > { %4586 = vrot.lane.b32.xlu0 (!%p7033_p7), %v4537_v19, %s7566_s23  ;;  %v7040_v19 = vld [vmem:[%s8681_s15 + $0x14] sm:$0xf] (!%p7033_p7) }
 0x3a1   : > { %4584 = vrot.lane.b32.xlu1 (!%p7033_p7), %v4530_v8, %s7566_s23  ;;  %v4406_v8 = vsel (!%p7033_p7), %vm8742_vm1, %v4299_v48, %v4405_v44  ;;  %v4308_v26 = vshrl.u32 (!%p7033_p7), %v7040_v19, 16  ;;  %v4329_v44 = vshrl.u32 (!%p7033_p7), %v7043_v34, 16 }
 0x3a2   : > { %4407 = vst [vmem:[#allocation2 + $0x8] sm:$0xf] (!%p7033_p7), %v4406_v8  ;;  %v7044_v8 = vld [vmem:[%s8681_s15 + $0x24] sm:$0xf] (!%p7033_p7) }
 0x3a3   : > { %v4310_v50 = vrot.slane (!%p7033_p7), %v4308_v26, 7  ;;  %v4331_v3 = vrot.slane (!%p7033_p7), %v4329_v44, 7  ;;  %v4423_v26 = vld [vmem:[#allocation2 + $0x20] sm:$0xf] (!%p7033_p7)  ;;  %v7048_v44 = vld [vmem:[%s8681_s15 + $0x34] sm:$0xf] (!%p7033_p7) }
 0x3a4   : > { %4590 = vrot.lane.b32.xlu0 (!%p7033_p7), %v4551_v25, %s7566_s23  ;;  %v4409_v25 = vsel (!%p7033_p7), %vm8742_vm1, %v4306_v21, %v4408_v17  ;;  %v7086_v17 = vld [vmem:[%s8686_s17 + $0x10] sm:$0xf] (!%p7033_p7) }
 0x3a5   : > { %4588 = vrot.lane.b32.xlu1 (!%p7033_p7), %v4544_v16, %s7566_s23  ;;  %v7041_v16 = vld [vmem:[%s8681_s15 + $0x18] sm:$0xf] (!%p7033_p7)  ;;  %4410 = vst [vmem:[#allocation2 + $0xc] sm:$0xf] (!%p7033_p7), %v4409_v25  ;;  %v4334_v10 = vor.u32 (!%p7033_p7), %v4332_v55, %v4331_v3  ;;  %v7047_v25 = vld [vmem:[%s8681_s15 + $0x30] sm:$0xf] (!%p7033_p7) }
 0x3a6   : > { %v4318_v1 = vshll.u32 (!%p7033_p7), %v7041_v16, 16  ;;  %v4360_v34 = vshll.u32 (!%p7033_p7), %v7047_v25, 16  ;;  %v4429_v55 = vld [vmem:[#allocation2 + $0x28] sm:$0xf] (!%p7033_p7)  ;;  %v7089_v3 = vld [vmem:[%s8686_s17 + $0x1c] sm:$0xf] (!%p7033_p7) }
 0x3a8   : > { %4594 = vrot.lane.b32.xlu0 (!%p7033_p7), %v4565_v27, %s7566_s23  ;;  %v7080_v27 = vld [vmem:[%s8681_s15 + $0x34] sm:$0xf] (!%p7033_p7) }
 0x3a9   : > { %4592 = vrot.lane.b32.xlu1 (!%p7033_p7), %v4558_v24, %s7566_s23  ;;  %v4315_v24 = vshrl.u32 (!%p7033_p7), %v7041_v16, 16  ;;  %v4336_v16 = vshrl.u32 (!%p7033_p7), %v7044_v8, 16 }
 0x3ac   : > { %4688 = vrot.lane.b32.xlu0 (!%p7033_p7), %v7069_v29, %s7567_s24  ;;  %v4317_v29 = vrot.slane (!%p7033_p7), %v4315_v24, 7  ;;  %v4338_v24 = vrot.slane (!%p7033_p7), %v4336_v16, 7 }
 0x3ad   : > { %4686 = vrot.lane.b32.xlu1 (!%p7033_p7), %v7068_v28, %s7567_s24  ;;  %v7079_v28 = vld [vmem:[%s8681_s15 + $0x30] sm:$0xf] (!%p7033_p7) }
 0x3ae   : > { %v4320_v37 = vor.u32 (!%p7033_p7), %v4318_v1, %v4317_v29  ;;  %v4357_v29 = vshrl.u32 (!%p7033_p7), %v7047_v25, 16  ;;  %v7102_v25 = vld [vmem:[%s8681_s15 + $0x14] sm:$0xf] (!%p7033_p7) }
 0x3b0   : > { %4692 = vrot.lane.b32.xlu0 (!%p7033_p7), %v7071_v30, %s7567_s24  ;;  %v4414_v30 = vld [vmem:[#allocation2 + $0x14] sm:$0xf] (!%p7033_p7) }
 0x3b1   : > { %4690 = vrot.lane.b32.xlu1 (!%p7033_p7), %v7070_v45, %s7567_s24  ;;  %v4403_v45 = vsel (!%p7033_p7), %vm8742_vm1, %v4292_v23, %v4402_v22  ;;  %v4415_v2 = vsel (!%p7033_p7), %vm8742_vm1, %v4320_v37, %v4414_v30  ;;  %v4339_v22 = vshll.u32 (!%p7033_p7), %v7044_v8, 16  ;;  %v4426_v23 = vld [vmem:[#allocation2 + $0x24] sm:$0xf] (!%p7033_p7)  ;;  %v7087_v30 = vld [vmem:[%s8686_s17 + $0x14] sm:$0xf] (!%p7033_p7) }
 0x3b2   : > { %4404 = vst [vmem:[#allocation2 + $0x4] sm:$0xf] (!%p7033_p7), %v4403_v45  ;;  %4416 = vst [vmem:[#allocation2 + $0x14] sm:$0xf] (!%p7033_p7), %v4415_v2 }
 0x3b4   : > { %4696 = vrot.lane.b32.xlu0 (!%p7033_p7), %v7073_v39, %s7567_s24  ;;  %v7042_v39 = vld [vmem:[%s8681_s15 + $0x1c] sm:$0xf] (!%p7033_p7) }
 0x3b5   : > { %4694 = vrot.lane.b32.xlu1 (!%p7033_p7), %v7072_v20, %s7567_s24  ;;  %v4311_v20 = vshll.u32 (!%p7033_p7), %v7040_v19, 16  ;;  %v4322_v48 = vshrl.u32 (!%p7033_p7), %v7042_v39, 16  ;;  %v4325_v42 = vshll.u32 (!%p7033_p7), %v7042_v39, 16  ;;  %v4359_v39 = vrot.slane (!%p7033_p7), %v4357_v29, 7 }
 0x3b7   : > { %v4313_v41 = vor.u32 (!%p7033_p7), %v4311_v20, %v4310_v50  ;;  %v4324_v7 = vrot.slane (!%p7033_p7), %v4322_v48, 7  ;;  %v7088_v20 = vld [vmem:[%s8686_s17 + $0x18] sm:$0xf] (!%p7033_p7)  ;;  %v7090_v48 = vld [vmem:[%s8686_s17 + $0x20] sm:$0xf] (!%p7033_p7) }
 0x3b8   : > { %4700 = vrot.lane.b32.xlu0 (!%p7033_p7), %v7075_v6, %s7567_s24  ;;  %v4420_v6 = vld [vmem:[#allocation2 + $0x1c] sm:$0xf] (!%p7033_p7) }
 0x3b9   : > { %4698 = vrot.lane.b32.xlu1 (!%p7033_p7), %v7074_v38, %s7567_s24  ;;  %v4411_v38 = vld [vmem:[#allocation2 + $0x10] sm:$0xf] (!%p7033_p7)  ;;  %v4327_v12 = vor.u32 (!%p7033_p7), %v4325_v42, %v4324_v7  ;;  %v4421_v14 = vsel (!%p7033_p7), %vm8742_vm1, %v4334_v10, %v4420_v6 }
 0x3ba   : > { %v4412_v35 = vsel (!%p7033_p7), %vm8742_vm1, %v4313_v41, %v4411_v38  ;;  %4422 = vst [vmem:[#allocation2 + $0x1c] sm:$0xf] (!%p7033_p7), %v4421_v14  ;;  %v7098_v38 = vld [vmem:[%s8681_s15 + $0x4] sm:$0xf] (!%p7033_p7)  ;;  %v4367_v14 = vshll.u32 (!%p7033_p7), %v7048_v44, 16 }
 0x3bb   : > { %4413 = vst [vmem:[#allocation2 + $0x10] sm:$0xf] (!%p7033_p7), %v4412_v35  ;;  %v4418_v19 = vsel (!%p7033_p7), %vm8742_vm1, %v4327_v12, %v4417_v11  ;;  %v4362_v35 = vor.u32 (!%p7033_p7), %v4360_v34, %v4359_v39  ;;  %v4852_v6 = vshrl.u32 (!%p7033_p7), %v7098_v38, 16  ;;  %v4855_v10 = vshll.u32 (!%p7033_p7), %v7098_v38, 16  ;;  %v7100_v11 = vld [vmem:[%s8681_s15 + $0xc] sm:$0xf] (!%p7033_p7) }
 0x3bc   : > { %4704 = vrot.lane.b32.xlu0 (!%p7033_p7), %v7077_v13, %s7567_s24  ;;  %4419 = vst [vmem:[#allocation2 + $0x18] sm:$0xf] (!%p7033_p7), %v4418_v19  ;;  %v7099_v19 = vld [vmem:[%s8681_s15 + $0x8] sm:$0xf] (!%p7033_p7)  ;;  %v7093_v38 = vld [vmem:[%s8686_s17 + $0x2c] sm:$0xf] (!%p7033_p7) }
 0x3bd   : > { %4702 = vrot.lane.b32.xlu1 (!%p7033_p7), %v7076_v5, %s7567_s24  ;;  %v7045_v5 = vld [vmem:[%s8681_s15 + $0x28] sm:$0xf] (!%p7033_p7)  ;;  %v4888_v39 = vshrl.u32 (!%p7033_p7), %v7102_v25, 16 }
 0x3be   : > { %v4343_v13 = vshrl.u32 (!%p7033_p7), %v7045_v5, 16  ;;  %v4346_v15 = vshll.u32 (!%p7033_p7), %v7045_v5, 16 }
 0x3c0   : > { %4708 = vrot.lane.b32.xlu0 (!%p7033_p7), %v7079_v28, %s7567_s24  ;;  %v4345_v21 = vrot.slane (!%p7033_p7), %v4343_v13, 7  ;;  %v4341_v28 = vor.u32 (!%p7033_p7), %v4339_v22, %v4338_v24  ;;  %v4435_v22 = vld [vmem:[#allocation2 + $0x30] sm:$0xf] (!%p7033_p7)  ;;  %v4873_v24 = vshll.u32 (!%p7033_p7), %v7100_v11, 16 }
 0x3c1   : > { %4706 = vrot.lane.b32.xlu1 (!%p7033_p7), %v7078_v33, %s7567_s24  ;;  %v7083_v33 = vld [vmem:[%s8686_s17 + $0x4] sm:$0xf] (!%p7033_p7) }
 0x3c2   : > { %v4348_v1 = vor.u32 (!%p7033_p7), %v4346_v15, %v4345_v21  ;;  %v4424_v50 = vsel (!%p7033_p7), %vm8742_vm1, %v4341_v28, %v4423_v26  ;;  %v4438_v15 = vld [vmem:[#allocation2 + $0x34] sm:$0xf] (!%p7033_p7)  ;;  %v4854_v26 = vrot.slane (!%p7033_p7), %v4852_v6, 4  ;;  %v7101_v28 = vld [vmem:[%s8681_s15 + $0x10] sm:$0xf] (!%p7033_p7) }
 0x3c3   : > { %4425 = vst [vmem:[#allocation2 + $0x20] sm:$0xf] (!%p7033_p7), %v4424_v50  ;;  %v4864_v50 = vshll.u32 (!%p7033_p7), %v7099_v19, 16 }
 0x3c4   : > { %4712 = vrot.lane.b32.xlu0 (!%p7033_p7), %v7081_v46, %s7567_s24  ;;  %v4427_v45 = vsel (!%p7033_p7), %vm8742_vm1, %v4348_v1, %v4426_v23  ;;  %v4432_v46 = vld [vmem:[#allocation2 + $0x2c] sm:$0xf] (!%p7033_p7)  ;;  %v4870_v23 = vshrl.u32 (!%p7033_p7), %v7100_v11, 16 }
 0x3c5   : > { %4710 = vrot.lane.b32.xlu1 (!%p7033_p7), %v7080_v27, %s7567_s24  ;;  %v7046_v27 = vld [vmem:[%s8681_s15 + $0x2c] sm:$0xf] (!%p7033_p7)  ;;  %4428 = vst [vmem:[#allocation2 + $0x24] sm:$0xf] (!%p7033_p7), %v4427_v45  ;;  %v4433_v7 = vsel (!%p7033_p7), %vm8742_vm1, %v4362_v35, %v4432_v46  ;;  %v4879_v46 = vshrl.u32 (!%p7033_p7), %v7101_v28, 16  ;;  %v4866_v6 = vrot.slane (!%p7033_p7), %v4864_v50, 5 }
 0x3c6   : > { %v4350_v37 = vshrl.u32 (!%p7033_p7), %v7046_v27, 16  ;;  %v4353_v41 = vshll.u32 (!%p7033_p7), %v7046_v27, 16  ;;  %4434 = vst [vmem:[#allocation2 + $0x2c] sm:$0xf] (!%p7033_p7), %v4433_v7  ;;  %v4857_v27 = vrot.slane (!%p7033_p7), %v4855_v10, 5  ;;  %v4872_v35 = vrot.slane (!%p7033_p7), %v4870_v23, 4 }
 0x3c7   : > { %v7103_v7 = vld [vmem:[%s8681_s15 + $0x18] sm:$0xf] (!%p7033_p7)  ;;  %v7105_v23 = vld [vmem:[%s8681_s15 + $0x20] sm:$0xf] (!%p7033_p7) }
 0x3c8   : > { %4776 = vrot.lane.b32.xlu0 (!%p7033_p7), %v7083_v33, %s7568_s25  ;;  %v4352_v2 = vrot.slane (!%p7033_p7), %v4350_v37, 7  ;;  %v7092_v33 = vld [vmem:[%s8686_s17 + $0x28] sm:$0xf] (!%p7033_p7) }
 0x3c9   : > { %4714 = vrot.lane.b32.xlu1 (!%p7033_p7), %v7082_v43, %s7567_s24  ;;  %v7049_v43 = vld [vmem:[%s8681_s15 + $0x38] sm:$0xf] (!%p7033_p7) }
 0x3ca   : > { %v4355_v42 = vor.u32 (!%p7033_p7), %v4353_v41, %v4352_v2  ;;  %v4371_v5 = vshrl.u32 (!%p7033_p7), %v7049_v43, 16  ;;  %v4374_v8 = vshll.u32 (!%p7033_p7), %v7049_v43, 16  ;;  %v4891_v41 = vshll.u32 (!%p7033_p7), %v7102_v25, 16 }
 0x3cb   : > { %v4882_v2 = vshll.u32 (!%p7033_p7), %v7101_v28, 16 }
 0x3cc   : > { %4780 = vrot.lane.b32.xlu0 (!%p7033_p7), %v7085_v18, %s7568_s25  ;;  %v4430_v12 = vsel (!%p7033_p7), %vm8742_vm1, %v4355_v42, %v4429_v55  ;;  %v4373_v13 = vrot.slane (!%p7033_p7), %v4371_v5, 7  ;;  %v7091_v18 = vld [vmem:[%s8686_s17 + $0x24] sm:$0xf] (!%p7033_p7)  ;;  %v7104_v55 = vld [vmem:[%s8681_s15 + $0x1c] sm:$0xf] (!%p7033_p7)  ;;  %v4875_v42 = vrot.slane (!%p7033_p7), %v4873_v24, 5 }
 0x3cd   : > { %4778 = vrot.lane.b32.xlu1 (!%p7033_p7), %v7084_v9, %s7568_s25  ;;  %v4364_v9 = vshrl.u32 (!%p7033_p7), %v7048_v44, 16  ;;  %4431 = vst [vmem:[#allocation2 + $0x28] sm:$0xf] (!%p7033_p7), %v4430_v12  ;;  %v4441_v44 = vld [vmem:[#allocation2 + $0x38] sm:$0xf] (!%p7033_p7)  ;;  %v4893_v10 = vrot.slane (!%p7033_p7), %v4891_v41, 5 }
 0x3ce   : > { %v4376_v21 = vor.u32 (!%p7033_p7), %v4374_v8, %v4373_v13  ;;  %v7096_v8 = vld [vmem:[%s8686_s17 + $0x38] sm:$0xf] (!%p7033_p7)  ;;  %v4881_v12 = vrot.slane (!%p7033_p7), %v4879_v46, 4  ;;  %v4884_v13 = vrot.slane (!%p7033_p7), %v4882_v2, 5  ;;  %v7097_v24 = vld [vmem:[%s8686_s17 + $0x3c] sm:$0xf] (!%p7033_p7) }
 0x3cf   : > { %v4366_v16 = vrot.slane (!%p7033_p7), %v4364_v9, 7  ;;  %v7095_v9 = vld [vmem:[%s8686_s17 + $0x34] sm:$0xf] (!%p7033_p7) }
 0x3d0   : > { %4784 = vrot.lane.b32.xlu0 (!%p7033_p7), %v7087_v30, %s7568_s25  ;;  %v4439_v45 = vsel (!%p7033_p7), %vm8742_vm1, %v4376_v21, %v4438_v15  ;;  %v4861_v30 = vshrl.u32 (!%p7033_p7), %v7099_v19, 16  ;;  %v4909_v15 = vshll.u32 (!%p7033_p7), %v7104_v55, 16  ;;  %v4876_v21 = vor.u32 (!%p7033_p7), %v4875_v42, %v4872_v35  ;;  %v7109_v42 = vld [vmem:[%s8681_s15 + $0x30] sm:$0xf] (!%p7033_p7) }
 0x3d1   : > { %4782 = vrot.lane.b32.xlu1 (!%p7033_p7), %v7086_v17, %s7568_s25  ;;  %v7050_v17 = vld [vmem:[%s8681_s15 + $0x3c] sm:$0xf] (!%p7033_p7)  ;;  %v4369_v1 = vor.u32 (!%p7033_p7), %v4367_v14, %v4366_v16  ;;  %4440 = vst [vmem:[#allocation2 + $0x34] sm:$0xf] (!%p7033_p7), %v4439_v45  ;;  %v4906_v14 = vshrl.u32 (!%p7033_p7), %v7104_v55, 16  ;;  %v4897_v16 = vshrl.u32 (!%p7033_p7), %v7103_v7, 16 }
 0x3d2   : > { %v4378_v29 = vshrl.u32 (!%p7033_p7), %v7050_v17, 16  ;;  %v4381_v37 = vshll.u32 (!%p7033_p7), %v7050_v17, 16  ;;  %v4863_v5 = vrot.slane (!%p7033_p7), %v4861_v30, 4  ;;  %v4900_v17 = vshll.u32 (!%p7033_p7), %v7103_v7, 16 }
 0x3d3   : > { %v4436_v34 = vsel (!%p7033_p7), %vm8742_vm1, %v4369_v1, %v4435_v22  ;;  %v4885_v1 = vor.u32 (!%p7033_p7), %v4884_v13, %v4881_v12  ;;  %v4899_v45 = vrot.slane (!%p7033_p7), %v4897_v16, 4  ;;  %v4915_v30 = vshrl.u32 (!%p7033_p7), %v7105_v23, 16  ;;  %v7112_v16 = vld [vmem:[%s8681_s15 + $0x3c] sm:$0xf] (!%p7033_p7) }
 0x3d4   : > { %4788 = vrot.lane.b32.xlu0 (!%p7033_p7), %v7089_v3, %s7568_s25  ;;  %4437 = vst [vmem:[#allocation2 + $0x30] sm:$0xf] (!%p7033_p7), %v4436_v34  ;;  %v4380_v43 = vrot.slane (!%p7033_p7), %v4378_v29, 7  ;;  %v4858_v3 = vor.u32 (!%p7033_p7), %v4857_v27, %v4854_v26  ;;  %v4867_v22 = vor.u32 (!%p7033_p7), %v4866_v6, %v4863_v5  ;;  %v4908_v26 = vrot.slane (!%p7033_p7), %v4906_v14, 4 }
 0x3d5   : > { %4786 = vrot.lane.b32.xlu1 (!%p7033_p7), %v7088_v20, %s7568_s25  ;;  %v7094_v20 = vld [vmem:[%s8686_s17 + $0x30] sm:$0xf] (!%p7033_p7)  ;;  %v4911_v27 = vrot.slane (!%p7033_p7), %v4909_v15, 5  ;;  %v4902_v29 = vrot.slane (!%p7033_p7), %v4900_v17, 5  ;;  %v4877_v50 = vrot.slane (!%p7033_p7), %v4876_v21, 4 }
 0x3d6   : > { %v4859_v19 = vrot.slane (!%p7033_p7), %v4858_v3, 4  ;;  %v4868_v34 = vrot.slane (!%p7033_p7), %v4867_v22, 4  ;;  %v7111_v22 = vld [vmem:[%s8681_s15 + $0x38] sm:$0xf] (!%p7033_p7) }
 0x3d7   : > { %v4912_v46 = vor.u32 (!%p7033_p7), %v4911_v27, %v4908_v26  ;;  %v4903_v35 = vor.u32 (!%p7033_p7), %v4902_v29, %v4899_v45  ;;  %v7114_v26 = vld [vmem:[%s8686_s17 + $0x8] sm:$0xf] (!%p7033_p7)  ;;  %v7113_v27 = vld [vmem:[%s8686_s17 + $0x4] sm:$0xf] (!%p7033_p7)  ;;  %v4981_v45 = vshll.u32 (!%p7033_p7), %v7112_v16, 16  ;;  %v4969_v29 = vshrl.u32 (!%p7033_p7), %v7111_v22, 16 }
 0x3d8   : > { %4792 = vrot.lane.b32.xlu0 (!%p7033_p7), %v7091_v18, %s7568_s25  ;;  %v7106_v18 = vld [vmem:[%s8681_s15 + $0x24] sm:$0xf] (!%p7033_p7) }
 0x3d9   : > { %4790 = vrot.lane.b32.xlu1 (!%p7033_p7), %v7090_v48, %s7568_s25  ;;  %v4383_v48 = vor.u32 (!%p7033_p7), %v4381_v37, %v4380_v43  ;;  %v4924_v28 = vshrl.u32 (!%p7033_p7), %v7106_v18, 16  ;;  %v4918_v37 = vshll.u32 (!%p7033_p7), %v7105_v23, 16  ;;  %v4886_v43 = vrot.slane (!%p7033_p7), %v4885_v1, 4 }
 0x3da   : > { %v4913_v12 = vrot.slane (!%p7033_p7), %v4912_v46, 4  ;;  %v4904_v13 = vrot.slane (!%p7033_p7), %v4903_v35, 4  ;;  %v4983_v35 = vrot.slane (!%p7033_p7), %v4981_v45, 5  ;;  %v4611_v45 = vld [vmem:[#allocation2] sm:$0xf] (!%p7033_p7) }
 0x3db   : > { %v4442_v11 = vsel (!%p7033_p7), %vm8742_vm1, %v4383_v48, %v4441_v44  ;;  %v4926_v2 = vrot.slane (!%p7033_p7), %v4924_v28, 4  ;;  %v7110_v44 = vld [vmem:[%s8681_s15 + $0x34] sm:$0xf] (!%p7033_p7)  ;;  %v4917_v48 = vrot.slane (!%p7033_p7), %v4915_v30, 4  ;;  %v4920_v5 = vrot.slane (!%p7033_p7), %v4918_v37, 5 }
 0x3dc   : > { %4796 = vrot.lane.b32.xlu0 (!%p7033_p7), %v7093_v38, %s7568_s25  ;;  %4443 = vst [vmem:[#allocation2 + $0x38] sm:$0xf] (!%p7033_p7), %v4442_v11  ;;  %v7108_v38 = vld [vmem:[%s8681_s15 + $0x2c] sm:$0xf] (!%p7033_p7)  ;;  %v4954_v11 = vshll.u32 (!%p7033_p7), %v7109_v42, 16  ;;  %v4978_v28 = vshrl.u32 (!%p7033_p7), %v7112_v16, 16 }
 0x3dd   : > { %4794 = vrot.lane.b32.xlu1 (!%p7033_p7), %v7092_v33, %s7568_s25  ;;  %v4890_v33 = vrot.slane (!%p7033_p7), %v4888_v39, 4  ;;  %v7107_v39 = vld [vmem:[%s8681_s15 + $0x28] sm:$0xf] (!%p7033_p7)  ;;  %v4942_v3 = vshrl.u32 (!%p7033_p7), %v7108_v38, 16  ;;  %v4945_v6 = vshll.u32 (!%p7033_p7), %v7108_v38, 16  ;;  %v4921_v17 = vor.u32 (!%p7033_p7), %v4920_v5, %v4917_v48 }
 0x3de   : > { %v4933_v7 = vshrl.u32 (!%p7033_p7), %v7107_v39, 16  ;;  %v4956_v1 = vrot.slane (!%p7033_p7), %v4954_v11, 5  ;;  %v5101_v38 = vshrl.u32 (!%p7033_p7), %v7114_v26, 16 }
 0x3df   : > { %v4894_v25 = vor.u32 (!%p7033_p7), %v4893_v10, %v4890_v33  ;;  %v4963_v33 = vshll.u32 (!%p7033_p7), %v7110_v44, 16  ;;  %v4951_v10 = vshrl.u32 (!%p7033_p7), %v7109_v42, 16  ;;  %v4944_v15 = vrot.slane (!%p7033_p7), %v4942_v3, 4  ;;  %v7116_v3 = vld [vmem:[%s8686_s17 + $0x10] sm:$0xf] (!%p7033_p7) }
 0x3e0   : > { %4800 = vrot.lane.b32.xlu0 (!%p7033_p7), %v7095_v9, %s7568_s25  ;;  %v4960_v9 = vshrl.u32 (!%p7033_p7), %v7110_v44, 16  ;;  %v4980_v44 = vrot.slane (!%p7033_p7), %v4978_v28, 4  ;;  %v5119_v11 = vshrl.u32 (!%p7033_p7), %v7116_v3, 16  ;;  %v4617_v28 = vld [vmem:[#allocation2 + $0x8] sm:$0xf] (!%p7033_p7) }
 0x3e1   : > { %4798 = vrot.lane.b32.xlu1 (!%p7033_p7), %v7094_v20, %s7568_s25  ;;  %v4927_v20 = vshll.u32 (!%p7033_p7), %v7106_v18, 16  ;;  %v4895_v41 = vrot.slane (!%p7033_p7), %v4894_v25, 4  ;;  %v4947_v18 = vrot.slane (!%p7033_p7), %v4945_v6, 5  ;;  %v4953_v25 = vrot.slane (!%p7033_p7), %v4951_v10, 4  ;;  %v7115_v6 = vld [vmem:[%s8686_s17 + $0xc] sm:$0xf] (!%p7033_p7) }
 0x3e2   : > { %v4962_v23 = vrot.slane (!%p7033_p7), %v4960_v9, 4  ;;  %v7118_v10 = vld [vmem:[%s8686_s17 + $0x18] sm:$0xf] (!%p7033_p7) }
 0x3e3   : > { %v4929_v55 = vrot.slane (!%p7033_p7), %v4927_v20, 5  ;;  %v4972_v20 = vshll.u32 (!%p7033_p7), %v7111_v22, 16  ;;  %v5140_v22 = vshll.u32 (!%p7033_p7), %v7118_v10, 16 }
 0x3e4   : > { %4804 = vrot.lane.b32.xlu0 (!%p7033_p7), %v7097_v24, %s7568_s25  ;;  %v4965_v24 = vrot.slane (!%p7033_p7), %v4963_v33, 5 }
 0x3e5   : > { %4802 = vrot.lane.b32.xlu1 (!%p7033_p7), %v7096_v8, %s7568_s25  ;;  %v4936_v8 = vshll.u32 (!%p7033_p7), %v7107_v39, 16  ;;  %v4930_v14 = vor.u32 (!%p7033_p7), %v4929_v55, %v4926_v2  ;;  %v5104_v39 = vshll.u32 (!%p7033_p7), %v7114_v26, 16  ;;  %v4957_v2 = vor.u32 (!%p7033_p7), %v4956_v1, %v4953_v25 }
 0x3e6   : > { %v4966_v46 = vor.u32 (!%p7033_p7), %v4965_v24, %v4962_v23  ;;  %v4971_v55 = vrot.slane (!%p7033_p7), %v4969_v29, 4  ;;  %v4974_v48 = vrot.slane (!%p7033_p7), %v4972_v20, 5  ;;  %v5121_v25 = vrot.slane (!%p7033_p7), %v5119_v11, 4 }
 0x3e7   : > { %v4938_v21 = vrot.slane (!%p7033_p7), %v4936_v8, 5  ;;  %v4931_v30 = vrot.slane (!%p7033_p7), %v4930_v14, 4  ;;  %v5106_v8 = vrot.slane (!%p7033_p7), %v5104_v39, 5  ;;  %v4958_v14 = vrot.slane (!%p7033_p7), %v4957_v2, 4 }
 0x3e8   : > { %4988 = vrot.lane.b32.xlu0 (!%p7033_p7), %v4868_v34, %s7569_s26  ;;  %v4948_v34 = vor.u32 (!%p7033_p7), %v4947_v18, %v4944_v15  ;;  %v4984_v15 = vor.u32 (!%p7033_p7), %v4983_v35, %v4980_v44  ;;  %v4975_v16 = vor.u32 (!%p7033_p7), %v4974_v48, %v4971_v55  ;;  %v5110_v18 = vshrl.u32 (!%p7033_p7), %v7115_v6, 16  ;;  %v7122_v48 = vld [vmem:[%s8686_s17 + $0x28] sm:$0xf] (!%p7033_p7) }
 0x3e9   : > { %4986 = vrot.lane.b32.xlu1 (!%p7033_p7), %v4859_v19, %s7569_s26  ;;  %v4935_v19 = vrot.slane (!%p7033_p7), %v4933_v7, 4  ;;  %v5103_v7 = vrot.slane (!%p7033_p7), %v5101_v38, 4  ;;  %v7120_v38 = vld [vmem:[%s8686_s17 + $0x20] sm:$0xf] (!%p7033_p7) }
 0x3ea   : > { %v4949_v42 = vrot.slane (!%p7033_p7), %v4948_v34, 4  ;;  %v4985_v29 = vrot.slane (!%p7033_p7), %v4984_v15, 4  ;;  %v4976_v20 = vrot.slane (!%p7033_p7), %v4975_v16, 4 }
 0x3eb   : > { %v4939_v37 = vor.u32 (!%p7033_p7), %v4938_v21, %v4935_v19  ;;  %v5113_v19 = vshll.u32 (!%p7033_p7), %v7115_v6, 16  ;;  %v5137_v21 = vshrl.u32 (!%p7033_p7), %v7118_v10, 16  ;;  %v5107_v23 = vor.u32 (!%p7033_p7), %v5106_v8, %v5103_v7  ;;  %v4620_v8 = vld [vmem:[#allocation2 + $0xc] sm:$0xf] (!%p7033_p7) }
 0x3ec   : > { %4992 = vrot.lane.b32.xlu0 (!%p7033_p7), %v4886_v43, %s7569_s26  ;;  %v5095_v43 = vshll.u32 (!%p7033_p7), %v7113_v27, 16  ;;  %v5155_v6 = vshrl.u32 (!%p7033_p7), %v7120_v38, 16  ;;  %v5158_v7 = vshll.u32 (!%p7033_p7), %v7120_v38, 16 }
 0x3ed   : > { %4990 = vrot.lane.b32.xlu1 (!%p7033_p7), %v4877_v50, %s7569_s26  ;;  %v4922_v50 = vrot.slane (!%p7033_p7), %v4921_v17, 4  ;;  %v4940_v5 = vrot.slane (!%p7033_p7), %v4939_v37, 4  ;;  %v7117_v17 = vld [vmem:[%s8686_s17 + $0x14] sm:$0xf] (!%p7033_p7)  ;;  %v5139_v34 = vrot.slane (!%p7033_p7), %v5137_v21, 4  ;;  %v5142_v37 = vrot.slane (!%p7033_p7), %v5140_v22, 5 }
 0x3ee   : > { %v5097_v33 = vrot.slane (!%p7033_p7), %v5095_v43, 5  ;;  %v5128_v26 = vshrl.u32 (!%p7033_p7), %v7117_v17, 16  ;;  %v5108_v39 = vrot.slane (!%p7033_p7), %v5107_v23, 4  ;;  %v7119_v43 = vld [vmem:[%s8686_s17 + $0x1c] sm:$0xf] (!%p7033_p7) }
 0x3ef   : > { %v5143_v10 = vor.u32 (!%p7033_p7), %v5142_v37, %v5139_v34  ;;  %v5146_v11 = vshrl.u32 (!%p7033_p7), %v7119_v43, 16 }
 0x3f0   : > { %4996 = vrot.lane.b32.xlu0 (!%p7033_p7), %v4904_v13, %s7569_s26  ;;  %v4967_v13 = vrot.slane (!%p7033_p7), %v4966_v46, 4  ;;  %v4571_v46 = vpop.permute.xlu1 (!%p7033_p7), %4570  ;;  %v4567_v2 = vpop.permute.xlu0 (!%p7033_p7), %4566  ;;  %v5130_v35 = vrot.slane (!%p7033_p7), %v5128_v26, 4  ;;  %v7124_v26 = vld [vmem:[%s8686_s17 + $0x30] sm:$0xf] (!%p7033_p7) }
 0x3f1   : > { %4994 = vrot.lane.b32.xlu1 (!%p7033_p7), %v4895_v41, %s7569_s26  ;;  %v5092_v41 = vshrl.u32 (!%p7033_p7), %v7113_v27, 16  ;;  %v5131_v27 = vshll.u32 (!%p7033_p7), %v7117_v17, 16 }
 0x3f3   : > { %v5094_v9 = vrot.slane (!%p7033_p7), %v5092_v41, 4  ;;  %v5133_v55 = vrot.slane (!%p7033_p7), %v5131_v27, 5  ;;  %v7123_v27 = vld [vmem:[%s8686_s17 + $0x2c] sm:$0xf] (!%p7033_p7) }
 0x3f4   : > { %5000 = vrot.lane.b32.xlu0 (!%p7033_p7), %v4922_v50, %s7569_s26  ;;  %v5115_v50 = vrot.slane (!%p7033_p7), %v5113_v19, 5  ;;  %v4573_v17 = vpop.permute.xlu1 (!%p7033_p7), %4572  ;;  %v4626_v19 = vld [vmem:[#allocation2 + $0x14] sm:$0xf] (!%p7033_p7) }
 0x3f5   : > { %4998 = vrot.lane.b32.xlu1 (!%p7033_p7), %v4913_v12, %s7569_s26  ;;  %v5122_v12 = vshll.u32 (!%p7033_p7), %v7116_v3, 16  ;;  %v5098_v24 = vor.u32 (!%p7033_p7), %v5097_v33, %v5094_v9  ;;  %v7121_v3 = vld [vmem:[%s8686_s17 + $0x24] sm:$0xf] (!%p7033_p7)  ;;  %v5134_v22 = vor.u32 (!%p7033_p7), %v5133_v55, %v5130_v35  ;;  %v4621_v23 = vsel (!%p7033_p7), %vm8918_vm4, %v4573_v17, %v4620_v8 }
 0x3f6   : > { %v4614_v9 = vld [vmem:[#allocation2 + $0x4] sm:$0xf] (!%p7033_p7)  ;;  %v5164_v15 = vshrl.u32 (!%p7033_p7), %v7121_v3, 16  ;;  %v5167_v16 = vshll.u32 (!%p7033_p7), %v7121_v3, 16  ;;  %4622 = vst [vmem:[#allocation2 + $0xc] sm:$0xf] (!%p7033_p7), %v4621_v23 }
 0x3f7   : > { %v5124_v1 = vrot.slane (!%p7033_p7), %v5122_v12, 5  ;;  %v5099_v41 = vrot.slane (!%p7033_p7), %v5098_v24, 4  ;;  %v5149_v12 = vshll.u32 (!%p7033_p7), %v7119_v43, 16  ;;  %v5182_v35 = vshrl.u32 (!%p7033_p7), %v7123_v27, 16 }
 0x3f8   : > { %5004 = vrot.lane.b32.xlu0 (!%p7033_p7), %v4940_v5, %s7569_s26  ;;  %v4612_v5 = vsel (!%p7033_p7), %vm8918_vm4, %v4567_v2, %v4611_v45  ;;  %v5166_v37 = vrot.slane (!%p7033_p7), %v5164_v15, 4  ;;  %v5169_v38 = vrot.slane (!%p7033_p7), %v5167_v16, 5  ;;  %v5191_v2 = vshrl.u32 (!%p7033_p7), %v7124_v26, 16 }
 0x3f9   : > { %5002 = vrot.lane.b32.xlu1 (!%p7033_p7), %v4931_v30, %s7569_s26  ;;  %v5112_v30 = vrot.slane (!%p7033_p7), %v5110_v18, 4  ;;  %v5125_v44 = vor.u32 (!%p7033_p7), %v5124_v1, %v5121_v25  ;;  %4613 = vst [vmem:[#allocation2] sm:$0xf] (!%p7033_p7), %v4612_v5  ;;  %v4569_v18 = vpop.permute.xlu0 (!%p7033_p7), %4568  ;;  %v5157_v25 = vrot.slane (!%p7033_p7), %v5155_v6, 4  ;;  %v5160_v1 = vrot.slane (!%p7033_p7), %v5158_v7, 5  ;;  %v4577_v43 = vpop.permute.xlu1 (!%p7033_p7), %4576 }
 0x3fa   : > { %v4615_v24 = vsel (!%p7033_p7), %vm8918_vm4, %v4569_v18, %v4614_v9  ;;  %v5185_v55 = vshll.u32 (!%p7033_p7), %v7123_v27, 16  ;;  %v4629_v5 = vld [vmem:[#allocation2 + $0x18] sm:$0xf] (!%p7033_p7)  ;;  %v5170_v9 = vor.u32 (!%p7033_p7), %v5169_v38, %v5166_v37  ;;  %v4638_v18 = vld [vmem:[#allocation2 + $0x24] sm:$0xf] (!%p7033_p7) }
 0x3fb   : > { %v5116_v33 = vor.u32 (!%p7033_p7), %v5115_v50, %v5112_v30  ;;  %v5126_v21 = vrot.slane (!%p7033_p7), %v5125_v44, 4  ;;  %4616 = vst [vmem:[#allocation2 + $0x4] sm:$0xf] (!%p7033_p7), %v4615_v24  ;;  %v5151_v30 = vrot.slane (!%p7033_p7), %v5149_v12, 5  ;;  %v5194_v44 = vshll.u32 (!%p7033_p7), %v7124_v26, 16 }
 0x3fc   : > { %5008 = vrot.lane.b32.xlu0 (!%p7033_p7), %v4958_v14, %s7569_s26  ;;  %v5176_v14 = vshll.u32 (!%p7033_p7), %v7122_v48, 16  ;;  %v5161_v3 = vor.u32 (!%p7033_p7), %v5160_v1, %v5157_v25  ;;  %v7126_v7 = vld [vmem:[%s8686_s17 + $0x38] sm:$0xf] (!%p7033_p7)  ;;  %v5193_v12 = vrot.slane (!%p7033_p7), %v5191_v2, 4  ;;  %v5187_v15 = vrot.slane (!%p7033_p7), %v5185_v55, 5 }
 0x3fd   : > { %5006 = vrot.lane.b32.xlu1 (!%p7033_p7), %v4949_v42, %s7569_s26  ;;  %v4618_v42 = vsel (!%p7033_p7), %vm8918_vm4, %v4571_v46, %v4617_v28  ;;  %v4623_v28 = vld [vmem:[#allocation2 + $0x10] sm:$0xf] (!%p7033_p7)  ;;  %v5117_v45 = vrot.slane (!%p7033_p7), %v5116_v33, 4  ;;  %v7125_v33 = vld [vmem:[%s8686_s17 + $0x34] sm:$0xf] (!%p7033_p7)  ;;  %v5212_v24 = vshll.u32 (!%p7033_p7), %v7126_v7, 16 }
 0x3fe   : > { %4619 = vst [vmem:[#allocation2 + $0x8] sm:$0xf] (!%p7033_p7), %v4618_v42  ;;  %v5178_v34 = vrot.slane (!%p7033_p7), %v5176_v14, 5  ;;  %v4632_v42 = vld [vmem:[#allocation2 + $0x1c] sm:$0xf] (!%p7033_p7)  ;;  %v5184_v14 = vrot.slane (!%p7033_p7), %v5182_v35, 4 }
 0x3ff   : > { %v5200_v25 = vshrl.u32 (!%p7033_p7), %v7125_v33, 16  ;;  %v5203_v1 = vshll.u32 (!%p7033_p7), %v7125_v33, 16  ;;  %v7127_v26 = vld [vmem:[%s8686_s17 + $0x3c] sm:$0xf] (!%p7033_p7)  ;;  %v5214_v2 = vrot.slane (!%p7033_p7), %v5212_v24, 5 }
 0x400   : > { %5012 = vrot.lane.b32.xlu0 (!%p7033_p7), %v4976_v20, %s7569_s26  ;;  %v5148_v20 = vrot.slane (!%p7033_p7), %v5146_v11, 4  ;;  %v5221_v55 = vshll.u32 (!%p7033_p7), %v7127_v26, 16 }
 0x401   : > { %5010 = vrot.lane.b32.xlu1 (!%p7033_p7), %v4967_v13, %s7569_s26  ;;  %v5173_v13 = vshrl.u32 (!%p7033_p7), %v7122_v48, 16  ;;  %v5135_v48 = vrot.slane (!%p7033_p7), %v5134_v22, 4  ;;  %v5209_v22 = vshrl.u32 (!%p7033_p7), %v7126_v7, 16  ;;  %v5205_v35 = vrot.slane (!%p7033_p7), %v5203_v1, 5  ;;  %v4647_v7 = vld [vmem:[#allocation2 + $0x30] sm:$0xf] (!%p7033_p7) }
 0x402   : > { %v5152_v6 = vor.u32 (!%p7033_p7), %v5151_v30, %v5148_v20  ;;  %v5171_v20 = vrot.slane (!%p7033_p7), %v5170_v9, 4 }
 0x403   : > { %v5175_v50 = vrot.slane (!%p7033_p7), %v5173_v13, 4  ;;  %v5196_v13 = vrot.slane (!%p7033_p7), %v5194_v44, 5  ;;  %v5211_v38 = vrot.slane (!%p7033_p7), %v5209_v22, 4  ;;  %v5202_v44 = vrot.slane (!%p7033_p7), %v5200_v25, 4 }
 0x404   : > { %5226 = vrot.lane.b32.xlu0 (!%p7033_p7), %v5099_v41, %s7570_s22  ;;  %v5153_v23 = vrot.slane (!%p7033_p7), %v5152_v6, 4  ;;  %v4650_v6 = vld [vmem:[#allocation2 + $0x34] sm:$0xf] (!%p7033_p7) }
 0x405   : > { %5014 = vrot.lane.b32.xlu1 (!%p7033_p7), %v4985_v29, %s7569_s26  ;;  %v5144_v29 = vrot.slane (!%p7033_p7), %v5143_v10, 4  ;;  %v5179_v8 = vor.u32 (!%p7033_p7), %v5178_v34, %v5175_v50  ;;  %v5197_v30 = vor.u32 (!%p7033_p7), %v5196_v13, %v5193_v12  ;;  %v5188_v50 = vor.u32 (!%p7033_p7), %v5187_v15, %v5184_v14 }
 0x406   : > { %v4575_v46 = vpop.permute.xlu0 (!%p7033_p7), %4574  ;;  %v5206_v9 = vor.u32 (!%p7033_p7), %v5205_v35, %v5202_v44 }
 0x407   : > { %v4624_v41 = vsel (!%p7033_p7), %vm8918_vm4, %v4575_v46, %v4623_v28  ;;  %v4641_v46 = vld [vmem:[#allocation2 + $0x28] sm:$0xf] (!%p7033_p7) }
 0x408   : > { %4625 = vst [vmem:[#allocation2 + $0x10] sm:$0xf] (!%p7033_p7), %v4624_v41  ;;  %5230 = vrot.lane.b32.xlu0 (!%p7033_p7), %v5117_v45, %s7570_s22  ;;  %v5180_v45 = vrot.slane (!%p7033_p7), %v5179_v8, 4  ;;  %v5215_v8 = vor.u32 (!%p7033_p7), %v5214_v2, %v5211_v38 }
 0x409   : > { %5228 = vrot.lane.b32.xlu1 (!%p7033_p7), %v5108_v39, %s7570_s22  ;;  %v4627_v39 = vsel (!%p7033_p7), %vm8918_vm4, %v4577_v43, %v4626_v19  ;;  %v4635_v19 = vld [vmem:[#allocation2 + $0x20] sm:$0xf] (!%p7033_p7)  ;;  %v5218_v43 = vshrl.u32 (!%p7033_p7), %v7127_v26, 16 }
 0x40a   : > { %4628 = vst [vmem:[#allocation2 + $0x14] sm:$0xf] (!%p7033_p7), %v4627_v39  ;;  %v4579_v11 = vpop.permute.xlu0 (!%p7033_p7), %4578 }
 0x40b   : > { %v4630_v17 = vsel (!%p7033_p7), %vm8918_vm4, %v4579_v11, %v4629_v5  ;;  %v5220_v33 = vrot.slane (!%p7033_p7), %v5218_v43, 4  ;;  %v7571_v11 = vmov (!%p7033_p7), 0  }
 0x40c   : > { %4631 = vst [vmem:[#allocation2 + $0x18] sm:$0xf] (!%p7033_p7), %v4630_v17  ;;  %5234 = vrot.lane.b32.xlu0 (!%p7033_p7), %v5135_v48, %s7570_s22  ;;  %v5198_v48 = vrot.slane (!%p7033_p7), %v5197_v30, 4  ;;  %4260 = vst.msk [vmem:[#allocation2 + $0x3c] sm:$0xf] (!%p7033_p7), %vm4259_vm13, %v7571_v11  ;;  %v5216_v17 = vrot.slane (!%p7033_p7), %v5215_v8, 4 }
 0x40d   : > { %5232 = vrot.lane.b32.xlu1 (!%p7033_p7), %v5126_v21, %s7570_s22  ;;  %v5162_v21 = vrot.slane (!%p7033_p7), %v5161_v3, 4  ;;  %v5189_v3 = vrot.slane (!%p7033_p7), %v5188_v50, 4 }
 0x40e   : > { %v4583_v28 = vpop.permute.xlu0 (!%p7033_p7), %4582 }
 0x40f   : > { %v4581_v10 = vpop.permute.xlu1 (!%p7033_p7), %4580  ;;  %v4636_v37 = vsel (!%p7033_p7), %vm8918_vm4, %v4583_v28, %v4635_v19 }
 0x410   : > { %v4633_v16 = vsel (!%p7033_p7), %vm8918_vm4, %v4581_v10, %v4632_v42  ;;  %4637 = vst [vmem:[#allocation2 + $0x20] sm:$0xf] (!%p7033_p7), %v4636_v37  ;;  %5238 = vrot.lane.b32.xlu0 (!%p7033_p7), %v5153_v23, %s7570_s22  ;;  %v5223_v10 = vrot.slane (!%p7033_p7), %v5221_v55, 5 }
 0x411   : > { %4634 = vst [vmem:[#allocation2 + $0x1c] sm:$0xf] (!%p7033_p7), %v4633_v16  ;;  %5236 = vrot.lane.b32.xlu1 (!%p7033_p7), %v5144_v29, %s7570_s22  ;;  %v4644_v29 = vld [vmem:[#allocation2 + $0x2c] sm:$0xf] (!%p7033_p7)  ;;  %v4653_v16 = vld [vmem:[#allocation2 + $0x38] sm:$0xf] (!%p7033_p7) }
 0x412   : > { %v4587_v41 = vpop.permute.xlu0 (!%p7033_p7), %4586  ;;  %v5224_v19 = vor.u32 (!%p7033_p7), %v5223_v10, %v5220_v33 }
 0x413   : > { %v4585_v27 = vpop.permute.xlu1 (!%p7033_p7), %4584  ;;  %v4642_v5 = vsel (!%p7033_p7), %vm8918_vm4, %v4587_v41, %v4641_v46 }
 0x414   : > { %v4639_v34 = vsel (!%p7033_p7), %vm8918_vm4, %v4585_v27, %v4638_v18  ;;  %4643 = vst [vmem:[#allocation2 + $0x28] sm:$0xf] (!%p7033_p7), %v4642_v5  ;;  %5242 = vrot.lane.b32.xlu0 (!%p7033_p7), %v5171_v20, %s7570_s22  ;;  %v5207_v18 = vrot.slane (!%p7033_p7), %v5206_v9, 4  ;;  %v5225_v24 = vrot.slane (!%p7033_p7), %v5224_v19, 4 }
 0x415   : > { %4640 = vst [vmem:[#allocation2 + $0x24] sm:$0xf] (!%p7033_p7), %v4639_v34  ;;  %5240 = vrot.lane.b32.xlu1 (!%p7033_p7), %v5162_v21, %s7570_s22 }
 0x416   : > { %v4591_v13 = vpop.permute.xlu0 (!%p7033_p7), %4590 }
 0x417   : > { %v4589_v39 = vpop.permute.xlu1 (!%p7033_p7), %4588  ;;  %v4648_v15 = vsel (!%p7033_p7), %vm8918_vm4, %v4591_v13, %v4647_v7 }
 0x418   : > { %v4645_v42 = vsel (!%p7033_p7), %vm8918_vm4, %v4589_v39, %v4644_v29  ;;  %4649 = vst [vmem:[#allocation2 + $0x30] sm:$0xf] (!%p7033_p7), %v4648_v15  ;;  %5246 = vrot.lane.b32.xlu0 (!%p7033_p7), %v5189_v3, %s7570_s22 }
 0x419   : > { %4646 = vst [vmem:[#allocation2 + $0x2c] sm:$0xf] (!%p7033_p7), %v4645_v42  ;;  %5244 = vrot.lane.b32.xlu1 (!%p7033_p7), %v5180_v45, %s7570_s22 }
 0x41a   : > { %v4595_v22 = vpop.permute.xlu0 (!%p7033_p7), %4594 }
 0x41b   : > { %v4593_v12 = vpop.permute.xlu1 (!%p7033_p7), %4592  ;;  %v4654_v23 = vsel (!%p7033_p7), %vm8918_vm4, %v4595_v22, %v4653_v16 }
 0x41c   : > { %v9145_v47 = vpop.f32.mrb[0].mxu1  ;;  %v4651_v14 = vsel (!%p7033_p7), %vm8918_vm4, %v4593_v12, %v4650_v6  ;;  %4655 = vst [vmem:[#allocation2 + $0x38] sm:$0xf] (!%p7033_p7), %v4654_v23  ;;  %5250 = vrot.lane.b32.xlu0 (!%p7033_p7), %v5207_v18, %s7570_s22 }
 0x41d   : > { %v9147_v49 = vpop.f32.mrb[1].mxu1  ;;  %4652 = vst [vmem:[#allocation2 + $0x34] sm:$0xf] (!%p7033_p7), %v4651_v14  ;;  %5248 = vrot.lane.b32.xlu1 (!%p7033_p7), %v5198_v48, %s7570_s22 }
 0x41e   : > { %v9149_v31 = vpop.f32.mrb[2].mxu1  ;;  %v4689_v1 = vpop.permute.xlu0 (!%p7033_p7), %4688 }
 0x41f   : > { %v9151_v51 = vpop.f32.mrb[3].mxu1  ;;  %v4687_v21 = vpop.permute.xlu1 (!%p7033_p7), %4686  ;;  %4732 = vst.msk [vmem:[#allocation2 + $0x4] sm:$0xf] (!%p7033_p7), %vm3241_vm5, %v4689_v1 }
 0x420   : > { %4731 = vst.msk [vmem:[#allocation2] sm:$0xf] (!%p7033_p7), %vm3241_vm5, %v4687_v21  ;;  %5254 = vrot.lane.b32.xlu0 (!%p7033_p7), %v5225_v24, %s7570_s22 }
 0x421   : > { %5252 = vrot.lane.b32.xlu1 (!%p7033_p7), %v5216_v17, %s7570_s22 }
 0x422   : > { %v4693_v27 = vpop.permute.xlu0 (!%p7033_p7), %4692 }
 0x423   : > { %v4691_v25 = vpop.permute.xlu1 (!%p7033_p7), %4690  ;;  %4734 = vst.msk [vmem:[#allocation2 + $0xc] sm:$0xf] (!%p7033_p7), %vm3241_vm5, %v4693_v27 }
 0x424   : > { %4733 = vst.msk [vmem:[#allocation2 + $0x8] sm:$0xf] (!%p7033_p7), %vm3241_vm5, %v4691_v25 }
 0x426   : > { %v4697_v45 = vpop.permute.xlu0 (!%p7033_p7), %4696 }
 0x427   : > { %v4695_v26 = vpop.permute.xlu1 (!%p7033_p7), %4694  ;;  %4736 = vst.msk [vmem:[#allocation2 + $0x14] sm:$0xf] (!%p7033_p7), %vm3241_vm5, %v4697_v45 }
 0x428   : > { %4735 = vst.msk [vmem:[#allocation2 + $0x10] sm:$0xf] (!%p7033_p7), %vm3241_vm5, %v4695_v26 }
 0x42a   : > { %v4701_v30 = vpop.permute.xlu0 (!%p7033_p7), %4700 }
 0x42b   : > { %v4699_v28 = vpop.permute.xlu1 (!%p7033_p7), %4698  ;;  %4738 = vst.msk [vmem:[#allocation2 + $0x1c] sm:$0xf] (!%p7033_p7), %vm3241_vm5, %v4701_v30 }
 0x42c   : > { %4737 = vst.msk [vmem:[#allocation2 + $0x18] sm:$0xf] (!%p7033_p7), %vm3241_vm5, %v4699_v28 }
 0x42e   : > { %v4705_v34 = vpop.permute.xlu0 (!%p7033_p7), %4704 }
 0x42f   : > { %v4703_v20 = vpop.permute.xlu1 (!%p7033_p7), %4702  ;;  %4740 = vst.msk [vmem:[#allocation2 + $0x24] sm:$0xf] (!%p7033_p7), %vm3241_vm5, %v4705_v34 }
 0x430   : > { %4739 = vst.msk [vmem:[#allocation2 + $0x20] sm:$0xf] (!%p7033_p7), %vm3241_vm5, %v4703_v20 }
 0x432   : > { %v4709_v29 = vpop.permute.xlu0 (!%p7033_p7), %4708 }
 0x433   : > { %v4707_v50 = vpop.permute.xlu1 (!%p7033_p7), %4706  ;;  %4742 = vst.msk [vmem:[#allocation2 + $0x2c] sm:$0xf] (!%p7033_p7), %vm3241_vm5, %v4709_v29 }
 0x434   : > { %4741 = vst.msk [vmem:[#allocation2 + $0x28] sm:$0xf] (!%p7033_p7), %vm3241_vm5, %v4707_v50 }
 0x436   : > { %v4713_v43 = vpop.permute.xlu0 (!%p7033_p7), %4712 }
 0x437   : > { %v4711_v37 = vpop.permute.xlu1 (!%p7033_p7), %4710  ;;  %4744 = vst.msk [vmem:[#allocation2 + $0x34] sm:$0xf] (!%p7033_p7), %vm3241_vm5, %v4713_v43 }
 0x438   : > { %4743 = vst.msk [vmem:[#allocation2 + $0x30] sm:$0xf] (!%p7033_p7), %vm3241_vm5, %v4711_v37 }
 0x43a   : > { %v4777_v2 = vpop.permute.xlu0 (!%p7033_p7), %4776 }
 0x43b   : > { %v4715_v38 = vpop.permute.xlu1 (!%p7033_p7), %4714  ;;  %4821 = vst.msk [vmem:[#allocation2] sm:$0xf] (!%p7033_p7), %vm3338_vm6, %v4777_v2 }
 0x43c   : > { %4745 = vst.msk [vmem:[#allocation2 + $0x38] sm:$0xf] (!%p7033_p7), %vm3241_vm5, %v4715_v38 }
 0x43e   : > { %v4781_v35 = vpop.permute.xlu0 (!%p7033_p7), %4780 }
 0x43f   : > { %v4779_v46 = vpop.permute.xlu1 (!%p7033_p7), %4778  ;;  %4823 = vst.msk [vmem:[#allocation2 + $0x8] sm:$0xf] (!%p7033_p7), %vm3338_vm6, %v4781_v35 }
 0x440   : > { %4822 = vst.msk [vmem:[#allocation2 + $0x4] sm:$0xf] (!%p7033_p7), %vm3338_vm6, %v4779_v46 }
 0x442   : > { %v4785_v39 = vpop.permute.xlu0 (!%p7033_p7), %4784  ;;  %v5031_v33 = vld [vmem:[#allocation2] sm:$0xf] (!%p7033_p7) }
 0x443   : > { %v4783_v44 = vpop.permute.xlu1 (!%p7033_p7), %4782  ;;  %4825 = vst.msk [vmem:[#allocation2 + $0x10] sm:$0xf] (!%p7033_p7), %vm3338_vm6, %v4785_v39 }
 0x444   : > { %v9153_v52 = vpop.f32.mrb[4].mxu1  ;;  %4824 = vst.msk [vmem:[#allocation2 + $0xc] sm:$0xf] (!%p7033_p7), %vm3338_vm6, %v4783_v44 }
 0x445   : > { %v9155_v53 = vpop.f32.mrb[5].mxu1 }
 0x446   : > { %v9157_v57 = vpop.f32.mrb[6].mxu1  ;;  %v4789_v48 = vpop.permute.xlu0 (!%p7033_p7), %4788  ;;  %v5037_v13 = vld [vmem:[#allocation2 + $0x8] sm:$0xf] (!%p7033_p7) }
 0x447   : > { %v9159_v58 = vpop.f32.mrb[7].mxu1  ;;  %v4787_v55 = vpop.permute.xlu1 (!%p7033_p7), %4786  ;;  %4827 = vst.msk [vmem:[#allocation2 + $0x18] sm:$0xf] (!%p7033_p7), %vm3338_vm6, %v4789_v48  ;;  %v5034_v15 = vld [vmem:[#allocation2 + $0x4] sm:$0xf] (!%p7033_p7) }
 0x448   : > { %4826 = vst.msk [vmem:[#allocation2 + $0x14] sm:$0xf] (!%p7033_p7), %vm3338_vm6, %v4787_v55 }
 0x44a   : > { %v4793_v42 = vpop.permute.xlu0 (!%p7033_p7), %4792  ;;  %v5043_v19 = vld [vmem:[#allocation2 + $0x10] sm:$0xf] (!%p7033_p7) }
 0x44b   : > { %v4791_v41 = vpop.permute.xlu1 (!%p7033_p7), %4790  ;;  %4829 = vst.msk [vmem:[#allocation2 + $0x20] sm:$0xf] (!%p7033_p7), %vm3338_vm6, %v4793_v42  ;;  %v5040_v22 = vld [vmem:[#allocation2 + $0xc] sm:$0xf] (!%p7033_p7) }
 0x44c   : > { %4828 = vst.msk [vmem:[#allocation2 + $0x1c] sm:$0xf] (!%p7033_p7), %vm3338_vm6, %v4791_v41 }
 0x44e   : > { %v4797_v6 = vpop.permute.xlu0 (!%p7033_p7), %4796  ;;  %v5049_v1 = vld [vmem:[#allocation2 + $0x18] sm:$0xf] (!%p7033_p7) }
 0x44f   : > { %v4795_v3 = vpop.permute.xlu1 (!%p7033_p7), %4794  ;;  %4831 = vst.msk [vmem:[#allocation2 + $0x28] sm:$0xf] (!%p7033_p7), %vm3338_vm6, %v4797_v6  ;;  %v5046_v27 = vld [vmem:[#allocation2 + $0x14] sm:$0xf] (!%p7033_p7) }
 0x450   : > { %4830 = vst.msk [vmem:[#allocation2 + $0x24] sm:$0xf] (!%p7033_p7), %vm3338_vm6, %v4795_v3 }
 0x452   : > { %v4801_v8 = vpop.permute.xlu0 (!%p7033_p7), %4800  ;;  %v5055_v30 = vld [vmem:[#allocation2 + $0x20] sm:$0xf] (!%p7033_p7) }
 0x453   : > { %v4799_v5 = vpop.permute.xlu1 (!%p7033_p7), %4798  ;;  %4833 = vst.msk [vmem:[#allocation2 + $0x30] sm:$0xf] (!%p7033_p7), %vm3338_vm6, %v4801_v8  ;;  %v5052_v34 = vld [vmem:[#allocation2 + $0x1c] sm:$0xf] (!%p7033_p7) }
 0x454   : > { %4832 = vst.msk [vmem:[#allocation2 + $0x2c] sm:$0xf] (!%p7033_p7), %vm3338_vm6, %v4799_v5 }
 0x456   : > { %v4805_v10 = vpop.permute.xlu0 (!%p7033_p7), %4804  ;;  %v5061_v43 = vld [vmem:[#allocation2 + $0x28] sm:$0xf] (!%p7033_p7) }
 0x457   : > { %v4803_v7 = vpop.permute.xlu1 (!%p7033_p7), %4802  ;;  %4835 = vst.msk [vmem:[#allocation2 + $0x38] sm:$0xf] (!%p7033_p7), %vm3338_vm6, %v4805_v10  ;;  %v5058_v2 = vld [vmem:[#allocation2 + $0x24] sm:$0xf] (!%p7033_p7) }
 0x458   : > { %4834 = vst.msk [vmem:[#allocation2 + $0x34] sm:$0xf] (!%p7033_p7), %vm3338_vm6, %v4803_v7 }
 0x45a   : > { %v4989_v14 = vpop.permute.xlu0 (!%p7033_p7), %4988  ;;  %v5067_v39 = vld [vmem:[#allocation2 + $0x30] sm:$0xf] (!%p7033_p7) }
 0x45b   : > { %v4987_v9 = vpop.permute.xlu1 (!%p7033_p7), %4986  ;;  %v5035_v17 = vsel (!%p7033_p7), %vm9015_vm9, %v4989_v14, %v5034_v15  ;;  %v5064_v48 = vld [vmem:[#allocation2 + $0x2c] sm:$0xf] (!%p7033_p7) }
 0x45c   : > { %v5032_v11 = vsel (!%p7033_p7), %vm9015_vm9, %v4987_v9, %v5031_v33  ;;  %5036 = vst [vmem:[#allocation2 + $0x4] sm:$0xf] (!%p7033_p7), %v5035_v17 }
 0x45d   : > { %5033 = vst [vmem:[#allocation2] sm:$0xf] (!%p7033_p7), %v5032_v11 }
 0x45e   : > { %v4993_v21 = vpop.permute.xlu0 (!%p7033_p7), %4992  ;;  %v5073_v6 = vld [vmem:[#allocation2 + $0x38] sm:$0xf] (!%p7033_p7) }
 0x45f   : > { %v4991_v12 = vpop.permute.xlu1 (!%p7033_p7), %4990  ;;  %v5041_v24 = vsel (!%p7033_p7), %vm9015_vm9, %v4993_v21, %v5040_v22  ;;  %v5070_v8 = vld [vmem:[#allocation2 + $0x34] sm:$0xf] (!%p7033_p7) }
 0x460   : > { %v5038_v16 = vsel (!%p7033_p7), %vm9015_vm9, %v4991_v12, %v5037_v13  ;;  %5042 = vst [vmem:[#allocation2 + $0xc] sm:$0xf] (!%p7033_p7), %v5041_v24 }
 0x461   : > { %5039 = vst [vmem:[#allocation2 + $0x8] sm:$0xf] (!%p7033_p7), %v5038_v16 }
 0x462   : > { %v4997_v26 = vpop.permute.xlu0 (!%p7033_p7), %4996 }
 0x463   : > { %v4995_v18 = vpop.permute.xlu1 (!%p7033_p7), %4994  ;;  %v5047_v45 = vsel (!%p7033_p7), %vm9015_vm9, %v4997_v26, %v5046_v27  ;;  %v5274_v11 = vld [vmem:[#allocation2 + $0x4] sm:$0xf] (!%p7033_p7) }
 0x464   : > { %v9161_v54 = vpop.f32.mrb[8].mxu1  ;;  %v5044_v23 = vsel (!%p7033_p7), %vm9015_vm9, %v4995_v18, %v5043_v19  ;;  %5048 = vst [vmem:[#allocation2 + $0x14] sm:$0xf] (!%p7033_p7), %v5047_v45  ;;  %v5271_v13 = vld [vmem:[#allocation2] sm:$0xf] (!%p7033_p7) }
 0x465   : > { %v9163_v32 = vpop.f32.mrb[9].mxu1  ;;  %5045 = vst [vmem:[#allocation2 + $0x10] sm:$0xf] (!%p7033_p7), %v5044_v23 }
 0x466   : > { %v9165_v59 = vpop.f32.mrb[10].mxu1  ;;  %v5001_v50 = vpop.permute.xlu0 (!%p7033_p7), %5000 }
 0x467   : > { %v9167_v60 = vpop.f32.mrb[11].mxu1  ;;  %v4999_v25 = vpop.permute.xlu1 (!%p7033_p7), %4998  ;;  %v5053_v29 = vsel (!%p7033_p7), %vm9015_vm9, %v5001_v50, %v5052_v34  ;;  %v5280_v17 = vld [vmem:[#allocation2 + $0xc] sm:$0xf] (!%p7033_p7) }
 0x468   : > { %v5050_v28 = vsel (!%p7033_p7), %vm9015_vm9, %v4999_v25, %v5049_v1  ;;  %5054 = vst [vmem:[#allocation2 + $0x1c] sm:$0xf] (!%p7033_p7), %v5053_v29  ;;  %v5277_v19 = vld [vmem:[#allocation2 + $0x8] sm:$0xf] (!%p7033_p7) }
 0x469   : > { %4257 = sbr.rel (%p7033_p7) target bundleno = 1174 (0x496), region = 52  ;;  %5051 = vst [vmem:[#allocation2 + $0x18] sm:$0xf] (!%p7033_p7), %v5050_v28 }
 0x46a   : > { %v5005_v46 = vpop.permute.xlu0 (!%p7033_p7), %5004 }
 0x46b   : > { %v5003_v20 = vpop.permute.xlu1 (!%p7033_p7), %5002  ;;  %v5059_v35 = vsel (!%p7033_p7), %vm9015_vm9, %v5005_v46, %v5058_v2  ;;  %v5286_v24 = vld [vmem:[#allocation2 + $0x14] sm:$0xf] (!%p7033_p7) }
 0x46c   : > { %v9169_v61 = vpop.f32.mrb[12].mxu1  ;;  %v5056_v37 = vsel (!%p7033_p7), %vm9015_vm9, %v5003_v20, %v5055_v30  ;;  %5060 = vst [vmem:[#allocation2 + $0x24] sm:$0xf] (!%p7033_p7), %v5059_v35  ;;  %v5283_v1 = vld [vmem:[#allocation2 + $0x10] sm:$0xf] (!%p7033_p7) }
 0x46d   : > { %v9171_v62 = vpop.f32.mrb[13].mxu1  ;;  %5057 = vst [vmem:[#allocation2 + $0x20] sm:$0xf] (!%p7033_p7), %v5056_v37 }
 0x46e   : > { %v9173_v63 = vpop.f32.mrb[14].mxu1  ;;  %v5009_v41 = vpop.permute.xlu0 (!%p7033_p7), %5008 }
 0x46f   : > { %v9175_v0 = vpop.f32.mrb[15].mxu1  ;;  %v5007_v38 = vpop.permute.xlu1 (!%p7033_p7), %5006  ;;  %v5065_v42 = vsel (!%p7033_p7), %vm9015_vm9, %v5009_v41, %v5064_v48  ;;  %v5292_v45 = vld [vmem:[#allocation2 + $0x1c] sm:$0xf] (!%p7033_p7) }
 0x470   : > { %v5062_v44 = vsel %vm9015_vm9, %v5007_v38, %v5061_v43  ;;  %5066 = vst [vmem:[#allocation2 + $0x2c] sm:$0xf] %v5065_v42  ;;  %v5289_v30 = vld [vmem:[#allocation2 + $0x18] sm:$0xf] }
 0x471   : > { %5063 = vst [vmem:[#allocation2 + $0x28] sm:$0xf] %v5062_v44 }
 0x472   : > { %v5013_v7 = vpop.permute.xlu0 %5012 }
 0x473   : > { %v5011_v55 = vpop.permute.xlu1 %5010  ;;  %v5071_v33 = vsel %vm9015_vm9, %v5013_v7, %v5070_v8  ;;  %v5298_v29 = vld [vmem:[#allocation2 + $0x24] sm:$0xf] }
 0x474   : > { %v5068_v3 = vsel %vm9015_vm9, %v5011_v55, %v5067_v39  ;;  %5072 = vst [vmem:[#allocation2 + $0x34] sm:$0xf] %v5071_v33  ;;  %v5295_v43 = vld [vmem:[#allocation2 + $0x20] sm:$0xf] }
 0x475   : > { %5069 = vst [vmem:[#allocation2 + $0x30] sm:$0xf] %v5068_v3 }
 0x476   : > { %v5227_v12 = vpop.permute.xlu0 %5226 }
 0x477   : > { %v5015_v5 = vpop.permute.xlu1 %5014  ;;  %v5272_v15 = vsel %vm9055_vm11, %v5227_v12, %v5271_v13  ;;  %v5304_v35 = vld [vmem:[#allocation2 + $0x2c] sm:$0xf] }
 0x478   : > { %v5074_v9 = vsel %vm9015_vm9, %v5015_v5, %v5073_v6  ;;  %5273 = vst [vmem:[#allocation2] sm:$0xf] %v5272_v15  ;;  %v5301_v39 = vld [vmem:[#allocation2 + $0x28] sm:$0xf] }
 0x479   : > { %5075 = vst [vmem:[#allocation2 + $0x38] sm:$0xf] %v5074_v9 }
 0x47a   : > { %v5231_v18 = vpop.permute.xlu0 %5230 }
 0x47b   : > { %v5229_v10 = vpop.permute.xlu1 %5228  ;;  %v5278_v22 = vsel %vm9055_vm11, %v5231_v18, %v5277_v19  ;;  %v5310_v42 = vld [vmem:[#allocation2 + $0x34] sm:$0xf] }
 0x47c   : > { %v5275_v14 = vsel %vm9055_vm11, %v5229_v10, %v5274_v11  ;;  %5279 = vst [vmem:[#allocation2 + $0x8] sm:$0xf] %v5278_v22  ;;  %v5307_v6 = vld [vmem:[#allocation2 + $0x30] sm:$0xf] }
 0x47d   : > { %5276 = vst [vmem:[#allocation2 + $0x4] sm:$0xf] %v5275_v14 }
 0x47e   : > { %v5235_v25 = vpop.permute.xlu0 %5234 }
 0x47f   : > { %v5233_v16 = vpop.permute.xlu1 %5232  ;;  %v5284_v27 = vsel %vm9055_vm11, %v5235_v25, %v5283_v1 }
 0x480   : > { %v5281_v21 = vsel %vm9055_vm11, %v5233_v16, %v5280_v17  ;;  %5285 = vst [vmem:[#allocation2 + $0x10] sm:$0xf] %v5284_v27  ;;  %v5313_v33 = vld [vmem:[#allocation2 + $0x38] sm:$0xf] }
 0x481   : > { %5282 = vst [vmem:[#allocation2 + $0xc] sm:$0xf] %v5281_v21 }
 0x482   : > { %v5239_v20 = vpop.permute.xlu0 %5238 }
 0x483   : > { %v5237_v23 = vpop.permute.xlu1 %5236  ;;  %v5290_v34 = vsel %vm9055_vm11, %v5239_v20, %v5289_v30 }
 0x484   : > { %v5287_v26 = vsel %vm9055_vm11, %v5237_v23, %v5286_v24  ;;  %5291 = vst [vmem:[#allocation2 + $0x18] sm:$0xf] %v5290_v34 }
 0x485   : > { %5288 = vst [vmem:[#allocation2 + $0x14] sm:$0xf] %v5287_v26 }
 0x486   : > { %v5243_v38 = vpop.permute.xlu0 %5242 }
 0x487   : > { %v5241_v28 = vpop.permute.xlu1 %5240  ;;  %v5296_v2 = vsel %vm9055_vm11, %v5243_v38, %v5295_v43 }
 0x488   : > { %v5293_v50 = vsel %vm9055_vm11, %v5241_v28, %v5292_v45  ;;  %5297 = vst [vmem:[#allocation2 + $0x20] sm:$0xf] %v5296_v2 }
 0x489   : > { %5294 = vst [vmem:[#allocation2 + $0x1c] sm:$0xf] %v5293_v50 }
 0x48a   : > { %v5247_v55 = vpop.permute.xlu0 %5246 }
 0x48b   : > { %v5245_v37 = vpop.permute.xlu1 %5244  ;;  %v5302_v48 = vsel %vm9055_vm11, %v5247_v55, %v5301_v39 }
 0x48c   : > { %v5299_v46 = vsel %vm9055_vm11, %v5245_v37, %v5298_v29  ;;  %5303 = vst [vmem:[#allocation2 + $0x28] sm:$0xf] %v5302_v48 }
 0x48d   : > { %5300 = vst [vmem:[#allocation2 + $0x24] sm:$0xf] %v5299_v46 }
 0x48e   : > { %v5251_v5 = vpop.permute.xlu0 %5250 }
 0x48f   : > { %v5249_v44 = vpop.permute.xlu1 %5248  ;;  %v5308_v8 = vsel %vm9055_vm11, %v5251_v5, %v5307_v6 }
 0x490   : > { %v5305_v41 = vsel %vm9055_vm11, %v5249_v44, %v5304_v35  ;;  %5309 = vst [vmem:[#allocation2 + $0x30] sm:$0xf] %v5308_v8 }
 0x491   : > { %5306 = vst [vmem:[#allocation2 + $0x2c] sm:$0xf] %v5305_v41 }
 0x492   : > { %v5255_v9 = vpop.permute.xlu0 %5254 }
 0x493   : > { %v5253_v3 = vpop.permute.xlu1 %5252  ;;  %v5314_v10 = vsel %vm9055_vm11, %v5255_v9, %v5313_v33 }
 0x494   : > { %v5311_v7 = vsel %vm9055_vm11, %v5253_v3, %v5310_v42  ;;  %5315 = vst [vmem:[#allocation2 + $0x38] sm:$0xf] %v5314_v10 }
 0x495   : > { %5312 = vst [vmem:[#allocation2 + $0x34] sm:$0xf] %v5311_v7 }
 0x496 PF: > { %p7128_p8 = scmp.ge.s32.totalorder %s7540_s18, 1 }
 0x497   : > { %v7151_v11 = vld [vmem:[%s8686_s17 + $0xc] sm:$0xf] (!%p7128_p8)  ;;  %v7149_v12 = vld [vmem:[%s8686_s17 + $0x4] sm:$0xf] (!%p7128_p8)  ;;  %v7152_v17 = vld [vmem:[%s8686_s17 + $0x10] sm:$0xf] (!%p7128_p8) }
 0x498   : > { %5319 = sbr.rel (%p7128_p8) target bundleno = 1455 (0x5af), region = 56  ;;  %v5548_v13 = vshrl.u32 (!%p7128_p8), %v7151_v11, 16  ;;  %v5551_v14 = vshll.u32 (!%p7128_p8), %v7151_v11, 16  ;;  %v5534_v15 = vshrl.u32 (!%p7128_p8), %v7149_v12, 16  ;;  %v5537_v16 = vshll.u32 (!%p7128_p8), %v7149_v12, 16  ;;  %s7572_s18 = smov (!%p7128_p8), 5  }
 0x499   : > { %v5555_v18 = vshrl.u32 (!%p7128_p8), %v7152_v17, 16  ;;  %v5558_v19 = vshll.u32 (!%p7128_p8), %v7152_v17, 16  ;;  %v7150_v21 = vld [vmem:[%s8686_s17 + $0x8] sm:$0xf] (!%p7128_p8)  ;;  %v7154_v22 = vld [vmem:[%s8686_s17 + $0x18] sm:$0xf] (!%p7128_p8) }
 0x49a   : > { %v5550_v23 = vrot.slane (!%p7128_p8), %v5548_v13, 7  ;;  %v5536_v24 = vrot.slane (!%p7128_p8), %v5534_v15, 7  ;;  %v5541_v25 = vshrl.u32 (!%p7128_p8), %v7150_v21, 16  ;;  %v5544_v1 = vshll.u32 (!%p7128_p8), %v7150_v21, 16  ;;  %v7153_v26 = vld [vmem:[%s8686_s17 + $0x14] sm:$0xf] (!%p7128_p8) }
 0x49b   : > { %v5557_v27 = vrot.slane (!%p7128_p8), %v5555_v18, 7  ;;  %v5569_v28 = vshrl.u32 (!%p7128_p8), %v7154_v22, 16  ;;  %v5562_v45 = vshrl.u32 (!%p7128_p8), %v7153_v26, 16  ;;  %v7156_v20 = vld [vmem:[%s8686_s17 + $0x20] sm:$0xf] (!%p7128_p8)  ;;  %v5572_v38 = vshll.u32 (!%p7128_p8), %v7154_v22, 16 }
 0x49c   : > { %v5553_v30 = vor.u32 (!%p7128_p8), %v5551_v14, %v5550_v23  ;;  %v5539_v50 = vor.u32 (!%p7128_p8), %v5537_v16, %v5536_v24  ;;  %v5543_v34 = vrot.slane (!%p7128_p8), %v5541_v25, 7  ;;  %v7155_v37 = vld [vmem:[%s8686_s17 + $0x1c] sm:$0xf] (!%p7128_p8)  ;;  %v5565_v43 = vshll.u32 (!%p7128_p8), %v7153_v26, 16  ;;  %v7158_v39 = vld [vmem:[%s8686_s17 + $0x28] sm:$0xf] (!%p7128_p8) }
 0x49d   : > { %v5571_v29 = vrot.slane (!%p7128_p8), %v5569_v28, 7  ;;  %v5583_v46 = vshrl.u32 (!%p7128_p8), %v7156_v20, 16  ;;  %v5560_v2 = vor.u32 (!%p7128_p8), %v5558_v19, %v5557_v27  ;;  %v5564_v35 = vrot.slane (!%p7128_p8), %v5562_v45, 7  ;;  %v7157_v41 = vld [vmem:[%s8686_s17 + $0x24] sm:$0xf] (!%p7128_p8)  ;;  %s7573_s30 = smov (!%p7128_p8), 12  }
 0x49e   : > { %5649 = vrot.lane.b32.xlu1 (!%p7128_p8), %v5553_v30, %s7572_s18  ;;  %5645 = vrot.lane.b32.xlu0 (!%p7128_p8), %v5539_v50, %s7572_s18  ;;  %v5546_v44 = vor.u32 (!%p7128_p8), %v5544_v1, %v5543_v34  ;;  %v5576_v55 = vshrl.u32 (!%p7128_p8), %v7155_v37, 16  ;;  %v5586_v42 = vshll.u32 (!%p7128_p8), %v7156_v20, 16  ;;  %v5579_v5 = vshll.u32 (!%p7128_p8), %v7155_v37, 16  ;;  %v7160_v33 = vld [vmem:[%s8686_s17 + $0x30] sm:$0xf] (!%p7128_p8)  ;;  %s7574_s7 = smov (!%p7128_p8), 17  }
 0x49f   : > { %v5574_v48 = vor.u32 %v5572_v38, %v5571_v29  ;;  %v5585_v3 = vrot.slane %v5583_v46, 7  ;;  %v5567_v6 = vor.u32 %v5565_v43, %v5564_v35  ;;  %v5597_v8 = vshrl.u32 %v7158_v39, 16  ;;  %v7159_v10 = vld [vmem:[%s8686_s17 + $0x2c] sm:$0xf]  ;;  %v7162_v19 = vld [vmem:[%s8686_s17 + $0x38] sm:$0xf] }
 0x4a0   : > { %v5578_v7 = vrot.slane %v5576_v55, 7  ;;  %v5590_v9 = vshrl.u32 %v7157_v41, 16  ;;  %v5600_v12 = vshll.u32 %v7158_v39, 16  ;;  %v5593_v13 = vshll.u32 %v7157_v41, 16  ;;  %v7161_v21 = vld [vmem:[%s8686_s17 + $0x34] sm:$0xf] }
 0x4a1   : > { %v5588_v11 = vor.u32 %v5586_v42, %v5585_v3  ;;  %v5611_v14 = vshrl.u32 %v7160_v33, 16  ;;  %v5599_v16 = vrot.slane %v5597_v8, 7  ;;  %v5604_v18 = vshrl.u32 %v7159_v10, 16  ;;  %v7164_v45 = vld [vmem:[%s8686_s17 + $0x40] sm:$0xf]  ;;  %s7575_s29 = smov 24  }
 0x4a2   : > { %5651 = vrot.lane.b32.xlu1 %v5560_v2, %s7572_s18  ;;  %5647 = vrot.lane.b32.xlu0 %v5546_v44, %s7572_s18  ;;  %v5581_v15 = vor.u32 %v5579_v5, %v5578_v7  ;;  %v5592_v17 = vrot.slane %v5590_v9, 7  ;;  %v5614_v23 = vshll.u32 %v7160_v33, 16  ;;  %v5607_v24 = vshll.u32 %v7159_v10, 16  ;;  %v7163_v20 = vld [vmem:[%s8686_s17 + $0x3c] sm:$0xf] }
 0x4a3   : > { %v5613_v22 = vrot.slane %v5611_v14, 7  ;;  %v5625_v25 = vshrl.u32 %v7162_v19, 16  ;;  %v5602_v1 = vor.u32 %v5600_v12, %v5599_v16  ;;  %v5606_v27 = vrot.slane %v5604_v18, 7  ;;  %v7166_v42 = vld [vmem:[%s8681_s15 + $0x8] sm:$0xf] }
 0x4a4   : > { %v5595_v26 = vor.u32 %v5593_v13, %v5592_v17  ;;  %v5618_v28 = vshrl.u32 %v7161_v21, 16  ;;  %v5628_v34 = vshll.u32 %v7162_v19, 16  ;;  %v5621_v37 = vshll.u32 %v7161_v21, 16  ;;  %v7165_v5 = vld [vmem:[%s8681_s15 + $0x4] sm:$0xf] }
 0x4a5   : > { %v5616_v30 = vor.u32 %v5614_v23, %v5613_v22  ;;  %v5627_v50 = vrot.slane %v5625_v25, 7  ;;  %v5609_v29 = vor.u32 %v5607_v24, %v5606_v27  ;;  %v5639_v43 = vshrl.u32 %v7164_v45, 16  ;;  %v7131_v7 = vld [vmem:[%s8681_s15 + $0x4] sm:$0xf]  ;;  %v7168_v8 = vld [vmem:[%s8681_s15 + $0x10] sm:$0xf] }
 0x4a6   : > { %5655 = vrot.lane.b32.xlu1 %v5574_v48, %s7572_s18  ;;  %5653 = vrot.lane.b32.xlu0 %v5567_v6, %s7572_s18  ;;  %v5620_v38 = vrot.slane %v5618_v28, 7  ;;  %v5632_v46 = vshrl.u32 %v7163_v20, 16  ;;  %v5642_v2 = vshll.u32 %v7164_v45, 16  ;;  %v5635_v44 = vshll.u32 %v7163_v20, 16  ;;  %v7133_v6 = vld [vmem:[%s8681_s15 + $0xc] sm:$0xf] }
 0x4a7   : > { %v5630_v35 = vor.u32 %v5628_v34, %v5627_v50  ;;  %v5641_v39 = vrot.slane %v5639_v43, 7  ;;  %v7167_v9 = vld [vmem:[%s8681_s15 + $0xc] sm:$0xf]  ;;  %v5354_v33 = vshrl.u32 %v7133_v6, 16  ;;  %v5357_v10 = vshll.u32 %v7133_v6, 16 }
 0x4a8   : > { %v5623_v55 = vor.u32 %v5621_v37, %v5620_v38  ;;  %v5634_v41 = vrot.slane %v5632_v46, 7  ;;  %v5343_v13 = vshll.u32 %v7131_v7, 16  ;;  %v7134_v14 = vld [vmem:[%s8681_s15 + $0x10] sm:$0xf]  ;;  %v7170_v17 = vld [vmem:[%s8681_s15 + $0x18] sm:$0xf] }
 0x4a9   : > { %v5644_v48 = vor.u32 %v5642_v2, %v5641_v39  ;;  %v5356_v12 = vrot.slane %v5354_v33, 7  ;;  %v7169_v18 = vld [vmem:[%s8681_s15 + $0x14] sm:$0xf]  ;;  %v5467_v21 = vld [vmem:[#allocation2] sm:$0xf]  ;;  %v5361_v23 = vshrl.u32 %v7134_v14, 16 }
 0x4aa   : > { %5659 = vrot.lane.b32.xlu1 %v5588_v11, %s7572_s18  ;;  %5657 = vrot.lane.b32.xlu0 %v5581_v15, %s7572_s18  ;;  %v5637_v3 = vor.u32 %v5635_v44, %v5634_v41  ;;  %v5340_v11 = vshrl.u32 %v7131_v7, 16  ;;  %v5473_v15 = vld [vmem:[#allocation2 + $0x8] sm:$0xf]  ;;  %v5364_v45 = vshll.u32 %v7134_v14, 16  ;;  %v5476_v20 = vld [vmem:[#allocation2 + $0xc] sm:$0xf] }
 0x4ab   : > { %v5359_v19 = vor.u32 %v5357_v10, %v5356_v12  ;;  %v7132_v24 = vld [vmem:[%s8681_s15 + $0x8] sm:$0xf]  ;;  %v5363_v28 = vrot.slane %v5361_v23, 7  ;;  %v7136_v34 = vld [vmem:[%s8681_s15 + $0x18] sm:$0xf] }
 0x4ac   : > { %v5342_v16 = vrot.slane %v5340_v11, 7  ;;  %v5350_v50 = vshll.u32 %v7132_v24, 16  ;;  %v5470_v46 = vld [vmem:[#allocation2 + $0x4] sm:$0xf]  ;;  %v5375_v2 = vshrl.u32 %v7136_v34, 16  ;;  %v5378_v39 = vshll.u32 %v7136_v34, 16 }
 0x4ad   : > { %v5474_v25 = vsel %vm8742_vm1, %v5359_v19, %v5473_v15  ;;  %v5366_v37 = vor.u32 %v5364_v45, %v5363_v28  ;;  %v7174_v44 = vld [vmem:[%s8681_s15 + $0x28] sm:$0xf]  ;;  %v7138_v7 = vld [vmem:[%s8681_s15 + $0x20] sm:$0xf]  ;;  %v7137_v33 = vld [vmem:[%s8681_s15 + $0x1c] sm:$0xf] }
 0x4ae   : > { %5663 = vrot.lane.b32.xlu1 %v5602_v1, %s7572_s18  ;;  %5661 = vrot.lane.b32.xlu0 %v5595_v26, %s7572_s18  ;;  %v5345_v22 = vor.u32 %v5343_v13, %v5342_v16  ;;  %v7172_v1 = vld [vmem:[%s8681_s15 + $0x20] sm:$0xf]  ;;  %v7171_v26 = vld [vmem:[%s8681_s15 + $0x1c] sm:$0xf]  ;;  %5475 = vst [vmem:[#allocation2 + $0x8] sm:$0xf] %v5474_v25 }
 0x4af   : > { %v5477_v43 = vsel %vm8742_vm1, %v5366_v37, %v5476_v20  ;;  %v7176_v10 = vld [vmem:[%s8681_s15 + $0x30] sm:$0xf]  ;;  %v7175_v11 = vld [vmem:[%s8681_s15 + $0x2c] sm:$0xf]  ;;  %v5389_v14 = vshrl.u32 %v7138_v7, 16  ;;  %v5392_v15 = vshll.u32 %v7138_v7, 16 }
 0x4b0   : > { %v5468_v27 = vsel %vm8742_vm1, %v5345_v22, %v5467_v21  ;;  %5478 = vst [vmem:[#allocation2 + $0xc] sm:$0xf] %v5477_v43  ;;  %v5385_v21 = vshll.u32 %v7137_v33, 16  ;;  %v7140_v22 = vld [vmem:[%s8681_s15 + $0x28] sm:$0xf] }
 0x4b1   : > { %5469 = vst [vmem:[#allocation2] sm:$0xf] %v5468_v27  ;;  %v5391_v19 = vrot.slane %v5389_v14, 7  ;;  %v7177_v23 = vld [vmem:[%s8681_s15 + $0x34] sm:$0xf]  ;;  %v5403_v45 = vshrl.u32 %v7140_v22, 16 }
 0x4b2   : > { %5667 = vrot.lane.b32.xlu1 %v5616_v30, %s7572_s18  ;;  %5665 = vrot.lane.b32.xlu0 %v5609_v29, %s7572_s18  ;;  %v5347_v30 = vshrl.u32 %v7132_v24, 16  ;;  %v7135_v29 = vld [vmem:[%s8681_s15 + $0x14] sm:$0xf]  ;;  %v5488_v24 = vld [vmem:[#allocation2 + $0x1c] sm:$0xf]  ;;  %v5406_v34 = vshll.u32 %v7140_v22, 16 }
 0x4b3   : > { %v5368_v41 = vshrl.u32 %v7135_v29, 16  ;;  %v7139_v27 = vld [vmem:[%s8681_s15 + $0x24] sm:$0xf]  ;;  %v7180_v20 = vld [vmem:[%s8681_s15 + $0x40] sm:$0xf] }
 0x4b4   : > { %v5349_v38 = vrot.slane %v5347_v30, 7  ;;  %v7179_v30 = vld [vmem:[%s8681_s15 + $0x3c] sm:$0xf]  ;;  %v5399_v43 = vshll.u32 %v7139_v27, 16  ;;  %v7143_v14 = vld [vmem:[%s8681_s15 + $0x34] sm:$0xf] }
 0x4b5   : > { %v5370_v6 = vrot.slane %v5368_v41, 7  ;;  %v7202_v36 = vld [vmem:[%s8681_s15 + $0x18] sm:$0xf] }
 0x4b6   : > { %5671 = vrot.lane.b32.xlu1 %v5630_v35, %s7572_s18  ;;  %5669 = vrot.lane.b32.xlu0 %v5623_v55, %s7572_s18  ;;  %v7173_v35 = vld [vmem:[%s8681_s15 + $0x24] sm:$0xf]  ;;  %v5352_v55 = vor.u32 %v5350_v50, %v5349_v38  ;;  %v5396_v38 = vshrl.u32 %v7139_v27, 16  ;;  %v5427_v27 = vshll.u32 %v7143_v14, 16 }
 0x4ba   : > { %5675 = vrot.lane.b32.xlu1 %v5644_v48, %s7572_s18  ;;  %5673 = vrot.lane.b32.xlu0 %v5637_v3, %s7572_s18  ;;  %v5377_v48 = vrot.slane %v5375_v2, 7  ;;  %v5371_v3 = vshll.u32 %v7135_v29, 16  ;;  %v5405_v29 = vrot.slane %v5403_v45, 7  ;;  %v5494_v2 = vld [vmem:[#allocation2 + $0x24] sm:$0xf] }
 0x4bc   : > { %v5373_v12 = vor.u32 %v5371_v3, %v5370_v6  ;;  %v7181_v3 = vld [vmem:[%s8686_s17 + $0x4] sm:$0xf] }
 0x4be   : > { %5775 = vrot.lane.b32.xlu1 %v7166_v42, %s7573_s30  ;;  %5773 = vrot.lane.b32.xlu0 %v7165_v5, %s7573_s30  ;;  %v5471_v42 = vsel %vm8742_vm1, %v5352_v55, %v5470_v46  ;;  %v5482_v5 = vld [vmem:[#allocation2 + $0x14] sm:$0xf]  ;;  %v7142_v46 = vld [vmem:[%s8681_s15 + $0x30] sm:$0xf]  ;;  %v7141_v55 = vld [vmem:[%s8681_s15 + $0x2c] sm:$0xf] }
 0x4bf   : > { %5472 = vst [vmem:[#allocation2 + $0x4] sm:$0xf] %v5471_v42  ;;  %v5417_v41 = vshrl.u32 %v7142_v46, 16  ;;  %v5420_v7 = vshll.u32 %v7142_v46, 16  ;;  %v7187_v46 = vld [vmem:[%s8686_s17 + $0x1c] sm:$0xf] }
 0x4c1   : > { %v5419_v6 = vrot.slane %v5417_v41, 7 }
 0x4c2   : > { %5779 = vrot.lane.b32.xlu1 %v7168_v8, %s7573_s30  ;;  %5777 = vrot.lane.b32.xlu0 %v7167_v9, %s7573_s30  ;;  %v5380_v8 = vor.u32 %v5378_v39, %v5377_v48  ;;  %v5479_v9 = vld [vmem:[#allocation2 + $0x10] sm:$0xf]  ;;  %v5491_v39 = vld [vmem:[#allocation2 + $0x20] sm:$0xf]  ;;  %v7182_v48 = vld [vmem:[%s8686_s17 + $0x8] sm:$0xf] }
 0x4c3   : > { %v5480_v16 = vsel %vm8742_vm1, %v5373_v12, %v5479_v9  ;;  %v5422_v12 = vor.u32 %v5420_v7, %v5419_v6  ;;  %v5509_v7 = vld [vmem:[#allocation2 + $0x38] sm:$0xf] }
 0x4c4   : > { %v5483_v13 = vsel %vm8742_vm1, %v5380_v8, %v5482_v5  ;;  %5481 = vst [vmem:[#allocation2 + $0x10] sm:$0xf] %v5480_v16  ;;  %v5410_v8 = vshrl.u32 %v7141_v55, 16  ;;  %v7183_v16 = vld [vmem:[%s8686_s17 + $0xc] sm:$0xf] }
 0x4c5   : > { %5484 = vst [vmem:[#allocation2 + $0x14] sm:$0xf] %v5483_v13 }
 0x4c6   : > { %5783 = vrot.lane.b32.xlu1 %v7170_v17, %s7573_s30  ;;  %5781 = vrot.lane.b32.xlu0 %v7169_v18, %s7573_s30  ;;  %v5382_v17 = vshrl.u32 %v7137_v33, 16  ;;  %v7178_v18 = vld [vmem:[%s8681_s15 + $0x38] sm:$0xf]  ;;  %v5500_v33 = vld [vmem:[#allocation2 + $0x2c] sm:$0xf]  ;;  %v5412_v13 = vrot.slane %v5410_v8, 7 }
 0x4c7   : > { %v7189_v8 = vld [vmem:[%s8686_s17 + $0x24] sm:$0xf] }
 0x4c8   : > { %v5384_v25 = vrot.slane %v5382_v17, 7  ;;  %v5497_v17 = vld [vmem:[#allocation2 + $0x28] sm:$0xf] }
 0x4ca   : > { %5787 = vrot.lane.b32.xlu1 %v7172_v1, %s7573_s30  ;;  %5785 = vrot.lane.b32.xlu0 %v7171_v26, %s7573_s30  ;;  %v5394_v1 = vor.u32 %v5392_v15, %v5391_v19  ;;  %v5485_v26 = vld [vmem:[#allocation2 + $0x18] sm:$0xf]  ;;  %v5387_v28 = vor.u32 %v5385_v21, %v5384_v25  ;;  %v7184_v15 = vld [vmem:[%s8686_s17 + $0x10] sm:$0xf]  ;;  %v7185_v25 = vld [vmem:[%s8686_s17 + $0x14] sm:$0xf] }
 0x4cc   : > { %v5489_v50 = vsel %vm8742_vm1, %v5394_v1, %v5488_v24  ;;  %v5486_v37 = vsel %vm8742_vm1, %v5387_v28, %v5485_v26  ;;  %v7186_v24 = vld [vmem:[%s8686_s17 + $0x18] sm:$0xf]  ;;  %v5506_v28 = vld [vmem:[#allocation2 + $0x34] sm:$0xf] }
 0x4cd   : > { %5490 = vst [vmem:[#allocation2 + $0x1c] sm:$0xf] %v5489_v50  ;;  %5487 = vst [vmem:[#allocation2 + $0x18] sm:$0xf] %v5486_v37  ;;  %v5503_v50 = vld [vmem:[#allocation2 + $0x30] sm:$0xf] }
 0x4ce   : > { %5791 = vrot.lane.b32.xlu1 %v7174_v44, %s7573_s30  ;;  %5789 = vrot.lane.b32.xlu0 %v7173_v35, %s7573_s30  ;;  %v5408_v44 = vor.u32 %v5406_v34, %v5405_v29  ;;  %v5398_v35 = vrot.slane %v5396_v38, 7  ;;  %v7145_v34 = vld [vmem:[%s8681_s15 + $0x3c] sm:$0xf] }
 0x4cf   : > { %v5441_v41 = vshll.u32 %v7145_v34, 16 }
 0x4d0   : > { %v5495_v42 = vsel %vm8742_vm1, %v5408_v44, %v5494_v2  ;;  %v5401_v5 = vor.u32 %v5399_v43, %v5398_v35  ;;  %v7188_v43 = vld [vmem:[%s8686_s17 + $0x20] sm:$0xf]  ;;  %v5438_v35 = vshrl.u32 %v7145_v34, 16 }
 0x4d1   : > { %5496 = vst [vmem:[#allocation2 + $0x24] sm:$0xf] %v5495_v42 }
 0x4d2   : > { %5795 = vrot.lane.b32.xlu1 %v7176_v10, %s7573_s30  ;;  %5793 = vrot.lane.b32.xlu0 %v7175_v11, %s7573_s30  ;;  %v5492_v9 = vsel %vm8742_vm1, %v5401_v5, %v5491_v39  ;;  %v5413_v10 = vshll.u32 %v7141_v55, 16  ;;  %v7144_v11 = vld [vmem:[%s8681_s15 + $0x38] sm:$0xf]  ;;  %v7198_v55 = vld [vmem:[%s8681_s15 + $0x8] sm:$0xf]  ;;  %v5440_v42 = vrot.slane %v5438_v35, 7 }
 0x4d3   : > { %5493 = vst [vmem:[#allocation2 + $0x20] sm:$0xf] %v5492_v9  ;;  %v5431_v21 = vshrl.u32 %v7144_v11, 16  ;;  %v5434_v22 = vshll.u32 %v7144_v11, 16  ;;  %v7190_v5 = vld [vmem:[%s8686_s17 + $0x28] sm:$0xf] }
 0x4d4   : > { %v5415_v19 = vor.u32 %v5413_v10, %v5412_v13  ;;  %v5959_v9 = vshrl.u32 %v7198_v55, 16  ;;  %v7200_v10 = vld [vmem:[%s8681_s15 + $0x10] sm:$0xf]  ;;  %v5443_v11 = vor.u32 %v5441_v41, %v5440_v42  ;;  %v7195_v35 = vld [vmem:[%s8686_s17 + $0x3c] sm:$0xf] }
 0x4d5   : > { %v5433_v26 = vrot.slane %v5431_v21, 7  ;;  %v7191_v21 = vld [vmem:[%s8686_s17 + $0x2c] sm:$0xf] }
 0x4d6   : > { %5799 = vrot.lane.b32.xlu1 %v7178_v18, %s7573_s30  ;;  %5797 = vrot.lane.b32.xlu0 %v7177_v23, %s7573_s30  ;;  %v5501_v18 = vsel %vm8742_vm1, %v5422_v12, %v5500_v33  ;;  %v5424_v23 = vshrl.u32 %v7143_v14, 16  ;;  %v5498_v1 = vsel %vm8742_vm1, %v5415_v19, %v5497_v17  ;;  %v5962_v33 = vshll.u32 %v7198_v55, 16  ;;  %v7199_v14 = vld [vmem:[%s8681_s15 + $0xc] sm:$0xf]  ;;  %v7192_v17 = vld [vmem:[%s8686_s17 + $0x30] sm:$0xf] }
 0x4d7   : > { %5502 = vst [vmem:[#allocation2 + $0x2c] sm:$0xf] %v5501_v18  ;;  %5499 = vst [vmem:[#allocation2 + $0x28] sm:$0xf] %v5498_v1  ;;  %v5977_v18 = vshrl.u32 %v7200_v10, 16  ;;  %v5980_v19 = vshll.u32 %v7200_v10, 16 }
 0x4d8   : > { %v5426_v45 = vrot.slane %v5424_v23, 7  ;;  %v5964_v23 = vrot.slane %v5962_v33, 5  ;;  %v7204_v55 = vld [vmem:[%s8681_s15 + $0x20] sm:$0xf] }
 0x4d9   : > { %v6013_v10 = vshrl.u32 %v7204_v55, 16 }
 0x4da   : > { %5803 = vrot.lane.b32.xlu1 %v7180_v20, %s7573_s30  ;;  %5801 = vrot.lane.b32.xlu0 %v7179_v30, %s7573_s30  ;;  %v7146_v20 = vld [vmem:[%s8681_s15 + $0x40] sm:$0xf]  ;;  %v5436_v30 = vor.u32 %v5434_v22, %v5433_v26  ;;  %v5429_v37 = vor.u32 %v5427_v27, %v5426_v45  ;;  %v5961_v22 = vrot.slane %v5959_v9, 4  ;;  %v7201_v27 = vld [vmem:[%s8681_s15 + $0x14] sm:$0xf]  ;;  %v5979_v45 = vrot.slane %v5977_v18, 4 }
 0x4db   : > { %v5445_v38 = vshrl.u32 %v7146_v20, 16  ;;  %v5448_v44 = vshll.u32 %v7146_v20, 16  ;;  %v5982_v20 = vrot.slane %v5980_v19, 5 }
 0x4dc   : > { %v5507_v29 = vsel %vm8742_vm1, %v5436_v30, %v5506_v28  ;;  %v5504_v2 = vsel %vm8742_vm1, %v5429_v37, %v5503_v50  ;;  %v7194_v28 = vld [vmem:[%s8686_s17 + $0x38] sm:$0xf]  ;;  %v7193_v30 = vld [vmem:[%s8686_s17 + $0x34] sm:$0xf]  ;;  %v5965_v50 = vor.u32 %v5964_v23, %v5961_v22  ;;  %v7208_v23 = vld [vmem:[%s8681_s15 + $0x30] sm:$0xf] }
 0x4dd   : > { %5508 = vst [vmem:[#allocation2 + $0x34] sm:$0xf] %v5507_v29  ;;  %5505 = vst [vmem:[#allocation2 + $0x30] sm:$0xf] %v5504_v2  ;;  %v5447_v39 = vrot.slane %v5445_v38, 7  ;;  %v5995_v29 = vshrl.u32 %v7202_v36, 16 }
 0x4de   : > { %5871 = vrot.lane.b32.xlu1 %v7182_v48, %s7574_s7  ;;  %5869 = vrot.lane.b32.xlu0 %v7181_v3, %s7574_s7  ;;  %v7197_v48 = vld [vmem:[%s8681_s15 + $0x4] sm:$0xf]  ;;  %v5512_v3 = vld [vmem:[#allocation2 + $0x3c] sm:$0xf]  ;;  %v5989_v2 = vshll.u32 %v7201_v27, 16  ;;  %v5966_v41 = vrot.slane %v5965_v50, 4 }
 0x4df   : > { %v5450_v6 = vor.u32 %v5448_v44, %v5447_v39  ;;  %v5950_v12 = vshrl.u32 %v7197_v48, 16  ;;  %v5953_v13 = vshll.u32 %v7197_v48, 16  ;;  %v7196_v44 = vld [vmem:[%s8686_s17 + $0x40] sm:$0xf]  ;;  %v7203_v39 = vld [vmem:[%s8681_s15 + $0x1c] sm:$0xf]  ;;  %v5983_v48 = vor.u32 %v5982_v20, %v5979_v45 }
 0x4e0   : > { %v5997_v42 = vrot.slane %v5995_v29, 4  ;;  %v5991_v33 = vrot.slane %v5989_v2, 5  ;;  %v6052_v50 = vshll.u32 %v7208_v23, 16 }
 0x4e1   : > { %v5952_v1 = vrot.slane %v5950_v12, 4  ;;  %v5955_v26 = vrot.slane %v5953_v13, 5  ;;  %v6004_v12 = vshrl.u32 %v7203_v39, 16  ;;  %v6007_v13 = vshll.u32 %v7203_v39, 16 }
 0x4e2   : > { %5875 = vrot.lane.b32.xlu1 %v7184_v15, %s7574_s7  ;;  %5873 = vrot.lane.b32.xlu0 %v7183_v16, %s7574_s7  ;;  %v5513_v15 = vsel %vm8742_vm1, %v5450_v6, %v5512_v3  ;;  %v5510_v16 = vsel %vm8742_vm1, %v5443_v11, %v5509_v7  ;;  %v7205_v6 = vld [vmem:[%s8681_s15 + $0x24] sm:$0xf]  ;;  %v6016_v11 = vshll.u32 %v7204_v55, 16  ;;  %v5984_v18 = vrot.slane %v5983_v48, 4 }
 0x4e3   : > { %5514 = vst [vmem:[#allocation2 + $0x3c] sm:$0xf] %v5513_v15  ;;  %5511 = vst [vmem:[#allocation2 + $0x38] sm:$0xf] %v5510_v16  ;;  %v5956_v38 = vor.u32 %v5955_v26, %v5952_v1  ;;  %v6022_v16 = vshrl.u32 %v7205_v6, 16  ;;  %v6006_v26 = vrot.slane %v6004_v12, 4 }
 0x4e4   : > { %v6018_v1 = vrot.slane %v6016_v11, 5 }
 0x4e5   : > { %v5957_v7 = vrot.slane %v5956_v38, 4  ;;  %v6024_v45 = vrot.slane %v6022_v16, 4  ;;  %v7213_v16 = vld [vmem:[%s8686_s17 + $0x4] sm:$0xf] }
 0x4e6   : > { %5879 = vrot.lane.b32.xlu1 %v7186_v24, %s7574_s7  ;;  %5877 = vrot.lane.b32.xlu0 %v7185_v25, %s7574_s7  ;;  %v5968_v24 = vshrl.u32 %v7199_v14, 16  ;;  %v5971_v25 = vshll.u32 %v7199_v14, 16 }
 0x4e8   : > { %v5970_v34 = vrot.slane %v5968_v24, 4  ;;  %v5973_v37 = vrot.slane %v5971_v25, 5  ;;  %v7207_v24 = vld [vmem:[%s8681_s15 + $0x2c] sm:$0xf]  ;;  %v6015_v25 = vrot.slane %v6013_v10, 4 }
 0x4e9   : > { %v7211_v10 = vld [vmem:[%s8681_s15 + $0x3c] sm:$0xf] }
 0x4ea   : > { %5883 = vrot.lane.b32.xlu1 %v7188_v43, %s7574_s7  ;;  %5881 = vrot.lane.b32.xlu0 %v7187_v46, %s7574_s7  ;;  %v5998_v43 = vshll.u32 %v7202_v36, 16  ;;  %v5986_v46 = vshrl.u32 %v7201_v27, 16  ;;  %v5974_v3 = vor.u32 %v5973_v37, %v5970_v34  ;;  %v6009_v36 = vrot.slane %v6007_v13, 5 }
 0x4eb   : > { %v6040_v34 = vshrl.u32 %v7207_v24, 16  ;;  %v6043_v37 = vshll.u32 %v7207_v24, 16  ;;  %v6019_v38 = vor.u32 %v6018_v1, %v6015_v25  ;;  %v6076_v24 = vshrl.u32 %v7211_v10, 16 }
 0x4ec   : > { %v5988_v9 = vrot.slane %v5986_v46, 4  ;;  %v5975_v19 = vrot.slane %v5974_v3, 4  ;;  %v7209_v46 = vld [vmem:[%s8681_s15 + $0x34] sm:$0xf]  ;;  %v6079_v25 = vshll.u32 %v7211_v10, 16 }
 0x4ed   : > { %v6042_v48 = vrot.slane %v6040_v34, 4  ;;  %v6045_v3 = vrot.slane %v6043_v37, 5  ;;  %v7215_v34 = vld [vmem:[%s8686_s17 + $0xc] sm:$0xf]  ;;  %v5699_v37 = vld [vmem:[#allocation2 + $0x8] sm:$0xf] }
 0x4ee   : > { %5887 = vrot.lane.b32.xlu1 %v7190_v5, %s7574_s7  ;;  %5885 = vrot.lane.b32.xlu0 %v7189_v8, %s7574_s7  ;;  %v7206_v5 = vld [vmem:[%s8681_s15 + $0x28] sm:$0xf]  ;;  %v6000_v8 = vrot.slane %v5998_v43, 5  ;;  %v5992_v22 = vor.u32 %v5991_v33, %v5988_v9  ;;  %v7210_v43 = vld [vmem:[%s8681_s15 + $0x38] sm:$0xf] }
 0x4ef   : > { %v6031_v14 = vshrl.u32 %v7206_v5, 16  ;;  %v6034_v15 = vshll.u32 %v7206_v5, 16  ;;  %v6070_v5 = vshll.u32 %v7210_v43, 16  ;;  %v7212_v33 = vld [vmem:[%s8681_s15 + $0x40] sm:$0xf]  ;;  %s7576_s15 = smov 29  }
 0x4f0   : > { %v5993_v2 = vrot.slane %v5992_v22, 4  ;;  %v6085_v22 = vshrl.u32 %v7212_v33, 16  ;;  %v7218_v10 = vld [vmem:[%s8686_s17 + $0x18] sm:$0xf] }
 0x4f1   : > { %v6033_v27 = vrot.slane %v6031_v14, 4  ;;  %v6046_v14 = vor.u32 %v6045_v3, %v6042_v48  ;;  %v6224_v3 = vshrl.u32 %v7215_v34, 16 }
 0x4f2   : > { %5891 = vrot.lane.b32.xlu1 %v7192_v17, %s7574_s7  ;;  %5889 = vrot.lane.b32.xlu0 %v7191_v21, %s7574_s7  ;;  %v6025_v17 = vshll.u32 %v7205_v6, 16  ;;  %v6001_v21 = vor.u32 %v6000_v8, %v5997_v42  ;;  %v6067_v42 = vshrl.u32 %v7210_v43, 16  ;;  %v6058_v6 = vshrl.u32 %v7209_v46, 16 }
 0x4f3   : > { %v6020_v8 = vrot.slane %v6019_v38, 4  ;;  %v6078_v43 = vrot.slane %v6076_v24, 4 }
 0x4f4   : > { %v6027_v20 = vrot.slane %v6025_v17, 5  ;;  %v6002_v29 = vrot.slane %v6001_v21, 4  ;;  %v6069_v17 = vrot.slane %v6067_v42, 4  ;;  %v6227_v42 = vshll.u32 %v7215_v34, 16  ;;  %v7220_v34 = vld [vmem:[%s8686_s17 + $0x20] sm:$0xf] }
 0x4f6   : > { %5895 = vrot.lane.b32.xlu1 %v7194_v28, %s7574_s7  ;;  %5893 = vrot.lane.b32.xlu0 %v7193_v30, %s7574_s7  ;;  %v6036_v28 = vrot.slane %v6034_v15, 5  ;;  %v6049_v30 = vshrl.u32 %v7208_v23, 16  ;;  %v6028_v55 = vor.u32 %v6027_v20, %v6024_v45  ;;  %v7214_v15 = vld [vmem:[%s8686_s17 + $0x8] sm:$0xf]  ;;  %v6088_v23 = vshll.u32 %v7212_v33, 16 }
 0x4f7   : > { %v6215_v1 = vshrl.u32 %v7214_v15, 16  ;;  %v6047_v45 = vrot.slane %v6046_v14, 4 }
 0x4f8   : > { %v6051_v39 = vrot.slane %v6049_v30, 4  ;;  %v6029_v12 = vrot.slane %v6028_v55, 4  ;;  %v6090_v38 = vrot.slane %v6088_v23, 5 }
 0x4fa   : > { %5899 = vrot.lane.b32.xlu1 %v7196_v44, %s7574_s7  ;;  %5897 = vrot.lane.b32.xlu0 %v7195_v35, %s7574_s7  ;;  %v6010_v44 = vor.u32 %v6009_v36, %v6006_v26  ;;  %v6037_v35 = vor.u32 %v6036_v28, %v6033_v27  ;;  %v6218_v26 = vshll.u32 %v7214_v15, 16  ;;  %v6206_v36 = vshrl.u32 %v7213_v16, 16 }
 0x4fb   : > { %v6209_v27 = vshll.u32 %v7213_v16, 16 }
 0x4fc   : > { %v6011_v9 = vrot.slane %v6010_v44, 4  ;;  %v6038_v11 = vrot.slane %v6037_v35, 4  ;;  %v6217_v44 = vrot.slane %v6215_v1, 4  ;;  %v6220_v35 = vrot.slane %v6218_v26, 5 }
 0x4fd   : > { %v6208_v55 = vrot.slane %v6206_v36, 4  ;;  %v6254_v1 = vshll.u32 %v7218_v10, 16 }
 0x4fe   : > { %6095 = vrot.lane.b32.xlu1 %v5966_v41, %s7575_s29  ;;  %6093 = vrot.lane.b32.xlu0 %v5957_v7, %s7575_s29  ;;  %v6054_v41 = vrot.slane %v6052_v50, 5  ;;  %v6061_v7 = vshll.u32 %v7209_v46, 16  ;;  %v7216_v50 = vld [vmem:[%s8686_s17 + $0x10] sm:$0xf]  ;;  %v6081_v46 = vrot.slane %v6079_v25, 5  ;;  %v6221_v16 = vor.u32 %v6220_v35, %v6217_v44 }
 0x4ff   : > { %v6236_v48 = vshll.u32 %v7216_v50, 16  ;;  %v6251_v25 = vshrl.u32 %v7218_v10, 16 }
 0x500   : > { %v6055_v13 = vor.u32 %v6054_v41, %v6051_v39  ;;  %v6063_v21 = vrot.slane %v6061_v7, 5  ;;  %v6211_v39 = vrot.slane %v6209_v27, 5  ;;  %v6233_v41 = vshrl.u32 %v7216_v50, 16  ;;  %v5705_v50 = vld [vmem:[#allocation2 + $0x10] sm:$0xf] }
 0x501   : > { %v6082_v33 = vor.u32 %v6081_v46, %v6078_v43  ;;  %v7219_v46 = vld [vmem:[%s8686_s17 + $0x1c] sm:$0xf] }
 0x502   : > { %6099 = vrot.lane.b32.xlu1 %v5984_v18, %s7575_s29  ;;  %6097 = vrot.lane.b32.xlu0 %v5975_v19, %s7575_s29  ;;  %v6072_v18 = vrot.slane %v6070_v5, 5  ;;  %v6060_v19 = vrot.slane %v6058_v6, 4  ;;  %v6056_v28 = vrot.slane %v6055_v13, 4  ;;  %v5696_v13 = vld [vmem:[#allocation2 + $0x4] sm:$0xf]  ;;  %v6263_v10 = vshll.u32 %v7219_v46, 16 }
 0x504   : > { %v6073_v20 = vor.u32 %v6072_v18, %v6069_v17  ;;  %v6064_v30 = vor.u32 %v6063_v21, %v6060_v19  ;;  %v6212_v17 = vor.u32 %v6211_v39, %v6208_v55  ;;  %v6235_v18 = vrot.slane %v6233_v41, 4 }
 0x505   : > { %v6238_v19 = vrot.slane %v6236_v48, 5  ;;  %v6226_v21 = vrot.slane %v6224_v3, 4  ;;  %v6253_v55 = vrot.slane %v6251_v25, 4  ;;  %v6256_v39 = vrot.slane %v6254_v1, 5  ;;  %v7221_v3 = vld [vmem:[%s8686_s17 + $0x24] sm:$0xf] }
 0x506   : > { %6103 = vrot.lane.b32.xlu1 %v6002_v29, %s7575_s29  ;;  %6101 = vrot.lane.b32.xlu0 %v5993_v2, %s7575_s29  ;;  %v6087_v29 = vrot.slane %v6085_v22, 4  ;;  %v5693_v2 = vld [vmem:[#allocation2] sm:$0xf]  ;;  %v6074_v14 = vrot.slane %v6073_v20, 4  ;;  %v6065_v15 = vrot.slane %v6064_v30, 4  ;;  %v6229_v22 = vrot.slane %v6227_v42, 5 }
 0x507   : > { %v6083_v20 = vrot.slane %v6082_v33, 4  ;;  %v5708_v30 = vld [vmem:[#allocation2 + $0x14] sm:$0xf]  ;;  %v6260_v33 = vshrl.u32 %v7219_v46, 16  ;;  %v5720_v25 = vld [vmem:[#allocation2 + $0x24] sm:$0xf] }
 0x508   : > { %v6230_v43 = vor.u32 %v6229_v22, %v6226_v21  ;;  %v7224_v22 = vld [vmem:[%s8686_s17 + $0x30] sm:$0xf] }
 0x50a   : > { %6107 = vrot.lane.b32.xlu1 %v6020_v8, %s7575_s29  ;;  %6105 = vrot.lane.b32.xlu0 %v6011_v9, %s7575_s29  ;;  %v6091_v9 = vor.u32 %v6090_v38, %v6087_v29  ;;  %v6213_v29 = vrot.slane %v6212_v17, 4  ;;  %v6239_v38 = vor.u32 %v6238_v19, %v6235_v18  ;;  %v6231_v18 = vrot.slane %v6230_v43, 4 }
 0x50b   : > { %v6257_v19 = vor.u32 %v6256_v39, %v6253_v55  ;;  %v6308_v43 = vshll.u32 %v7224_v22, 16  ;;  %v7226_v55 = vld [vmem:[%s8686_s17 + $0x38] sm:$0xf] }
 0x50c   : > { %v6240_v17 = vrot.slane %v6239_v38, 4  ;;  %v6305_v38 = vshrl.u32 %v7224_v22, 16  ;;  %v5732_v22 = vld [vmem:[#allocation2 + $0x34] sm:$0xf] }
 0x50d   : > { %v6258_v39 = vrot.slane %v6257_v19, 4 }
 0x50e   : > { %6111 = vrot.lane.b32.xlu1 %v6038_v11, %s7575_s29  ;;  %6109 = vrot.lane.b32.xlu0 %v6029_v12, %s7575_s29  ;;  %v7217_v11 = vld [vmem:[%s8686_s17 + $0x14] sm:$0xf]  ;;  %v5702_v12 = vld [vmem:[#allocation2 + $0xc] sm:$0xf] }
 0x50f   : > { %v6242_v26 = vshrl.u32 %v7217_v11, 16  ;;  %v6245_v36 = vshll.u32 %v7217_v11, 16 }
 0x510   : > { %v5650_v5 = vpop.permute.xlu1 %5649  ;;  %v5646_v6 = vpop.permute.xlu0 %5645 }
 0x511   : > { %v5700_v7 = vsel %vm8918_vm4, %v5650_v5, %v5699_v37  ;;  %v5694_v8 = vsel %vm8918_vm4, %v5646_v6, %v5693_v2  ;;  %v6222_v37 = vrot.slane %v6221_v16, 4  ;;  %v7222_v2 = vld [vmem:[%s8686_s17 + $0x28] sm:$0xf]  ;;  %v6244_v41 = vrot.slane %v6242_v26, 4  ;;  %v5714_v6 = vld [vmem:[#allocation2 + $0x1c] sm:$0xf] }
 0x512   : > { %5701 = vst [vmem:[#allocation2 + $0x8] sm:$0xf] %v5700_v7  ;;  %5695 = vst [vmem:[#allocation2] sm:$0xf] %v5694_v8  ;;  %6115 = vrot.lane.b32.xlu1 %v6056_v28, %s7575_s29  ;;  %6113 = vrot.lane.b32.xlu0 %v6047_v45, %s7575_s29  ;;  %v6092_v45 = vrot.slane %v6091_v9, 4  ;;  %v6247_v48 = vrot.slane %v6245_v36, 5 }
 0x513   : > { %v6269_v7 = vshrl.u32 %v7220_v34, 16  ;;  %v6272_v8 = vshll.u32 %v7220_v34, 16  ;;  %v5711_v9 = vld [vmem:[#allocation2 + $0x18] sm:$0xf]  ;;  %v6287_v11 = vshrl.u32 %v7222_v2, 16 }
 0x514   : > { %v5652_v23 = vpop.permute.xlu1 %5651  ;;  %v5648_v24 = vpop.permute.xlu0 %5647  ;;  %v6248_v21 = vor.u32 %v6247_v48, %v6244_v41  ;;  %v7223_v36 = vld [vmem:[%s8686_s17 + $0x2c] sm:$0xf]  ;;  %v7225_v41 = vld [vmem:[%s8686_s17 + $0x34] sm:$0xf] }
 0x515   : > { %v5703_v27 = vsel %vm8918_vm4, %v5652_v23, %v5702_v12  ;;  %v5697_v28 = vsel %vm8918_vm4, %v5648_v24, %v5696_v13  ;;  %v6290_v12 = vshll.u32 %v7222_v2, 16  ;;  %v6278_v13 = vshrl.u32 %v7221_v3, 16  ;;  %v5726_v48 = vld [vmem:[#allocation2 + $0x2c] sm:$0xf] }
 0x516   : > { %5704 = vst [vmem:[#allocation2 + $0xc] sm:$0xf] %v5703_v27  ;;  %5698 = vst [vmem:[#allocation2 + $0x4] sm:$0xf] %v5697_v28  ;;  %6119 = vrot.lane.b32.xlu1 %v6074_v14, %s7575_s29  ;;  %6117 = vrot.lane.b32.xlu0 %v6065_v15, %s7575_s29  ;;  %v6281_v14 = vshll.u32 %v7221_v3, 16  ;;  %v6271_v1 = vrot.slane %v6269_v7, 4 }
 0x517   : > { %v6274_v26 = vrot.slane %v6272_v8, 5  ;;  %v5717_v27 = vld [vmem:[#allocation2 + $0x20] sm:$0xf]  ;;  %v6262_v28 = vrot.slane %v6260_v33, 4  ;;  %v5723_v3 = vld [vmem:[#allocation2 + $0x28] sm:$0xf] }
 0x518   : > { %v5656_v44 = vpop.permute.xlu1 %5655  ;;  %v5654_v35 = vpop.permute.xlu0 %5653  ;;  %v6283_v34 = vrot.slane %v6281_v14, 5  ;;  %v6310_v33 = vrot.slane %v6308_v43, 5  ;;  %v6317_v19 = vshll.u32 %v7225_v41, 16 }
 0x519   : > { %v5709_v42 = vsel %vm8918_vm4, %v5656_v44, %v5708_v30  ;;  %v5706_v5 = vsel %vm8918_vm4, %v5654_v35, %v5705_v50  ;;  %v6292_v30 = vrot.slane %v6290_v12, 5  ;;  %v6280_v50 = vrot.slane %v6278_v13, 4 }
 0x51a   : > { %5710 = vst [vmem:[#allocation2 + $0x14] sm:$0xf] %v5709_v42  ;;  %5707 = vst [vmem:[#allocation2 + $0x10] sm:$0xf] %v5706_v5  ;;  %6123 = vrot.lane.b32.xlu1 %v6092_v45, %s7575_s29  ;;  %6121 = vrot.lane.b32.xlu0 %v6083_v20, %s7575_s29  ;;  %v6265_v45 = vrot.slane %v6263_v10, 5  ;;  %v6289_v20 = vrot.slane %v6287_v11, 4  ;;  %v6275_v5 = vor.u32 %v6274_v26, %v6271_v1 }
 0x51b   : > { %v6296_v44 = vshrl.u32 %v7223_v36, 16  ;;  %v6299_v35 = vshll.u32 %v7223_v36, 16  ;;  %v6249_v42 = vrot.slane %v6248_v21, 4  ;;  %v6284_v8 = vor.u32 %v6283_v34, %v6280_v50  ;;  %v7228_v21 = vld [vmem:[%s8686_s17 + $0x40] sm:$0xf] }
 0x51c   : > { %v5660_v15 = vpop.permute.xlu1 %5659  ;;  %v5658_v16 = vpop.permute.xlu0 %5657  ;;  %v6293_v7 = vor.u32 %v6292_v30, %v6289_v20  ;;  %v6323_v10 = vshrl.u32 %v7226_v55, 16 }
 0x51d   : > { %v5715_v23 = vsel %vm8918_vm4, %v5660_v15, %v5714_v6  ;;  %v5712_v24 = vsel %vm8918_vm4, %v5658_v16, %v5711_v9  ;;  %v6266_v6 = vor.u32 %v6265_v45, %v6262_v28  ;;  %v6307_v9 = vrot.slane %v6305_v38, 4  ;;  %v7227_v28 = vld [vmem:[%s8686_s17 + $0x3c] sm:$0xf] }
 0x51e   : > { %5716 = vst [vmem:[#allocation2 + $0x1c] sm:$0xf] %v5715_v23  ;;  %5713 = vst [vmem:[#allocation2 + $0x18] sm:$0xf] %v5712_v24  ;;  %6351 = vrot.lane.b32.xlu1 %v6222_v37, %s7576_s15  ;;  %6349 = vrot.lane.b32.xlu0 %v6213_v29, %s7576_s15  ;;  %v6298_v13 = vrot.slane %v6296_v44, 4  ;;  %v6301_v14 = vrot.slane %v6299_v35, 5 }
 0x51f   : > { %v6326_v15 = vshll.u32 %v7226_v55, 16  ;;  %v6314_v16 = vshrl.u32 %v7225_v41, 16  ;;  %v5729_v23 = vld [vmem:[#allocation2 + $0x30] sm:$0xf]  ;;  %v6276_v24 = vrot.slane %v6275_v5, 4  ;;  %v6294_v1 = vrot.slane %v6293_v7, 4 }
 0x520   : > { %v5664_v46 = vpop.permute.xlu1 %5663  ;;  %v5662_v2 = vpop.permute.xlu0 %5661  ;;  %v6285_v26 = vrot.slane %v6284_v8, 4  ;;  %v6311_v36 = vor.u32 %v6310_v33, %v6307_v9  ;;  %v6302_v30 = vor.u32 %v6301_v14, %v6298_v13  ;;  %v6341_v38 = vshrl.u32 %v7228_v21, 16  ;;  %v5738_v35 = vld [vmem:[#allocation2 + $0x3c] sm:$0xf]  ;;  %v5735_v55 = vld [vmem:[#allocation2 + $0x38] sm:$0xf] }
 0x521   : > { %v5721_v37 = vsel %vm8918_vm4, %v5664_v46, %v5720_v25  ;;  %v5718_v29 = vsel %vm8918_vm4, %v5662_v2, %v5717_v27  ;;  %v6267_v25 = vrot.slane %v6266_v6, 4  ;;  %v6325_v27 = vrot.slane %v6323_v10, 4 }
 0x522   : > { %5722 = vst [vmem:[#allocation2 + $0x24] sm:$0xf] %v5721_v37  ;;  %5719 = vst [vmem:[#allocation2 + $0x20] sm:$0xf] %v5718_v29  ;;  %6355 = vrot.lane.b32.xlu1 %v6240_v17, %s7576_s15  ;;  %6353 = vrot.lane.b32.xlu0 %v6231_v18, %s7576_s15  ;;  %v6328_v50 = vrot.slane %v6326_v15, 5  ;;  %v6316_v34 = vrot.slane %v6314_v16, 4 }
 0x523   : > { %v6319_v2 = vrot.slane %v6317_v19, 5  ;;  %v6344_v44 = vshll.u32 %v7228_v21, 16  ;;  %v6332_v37 = vshrl.u32 %v7227_v28, 16  ;;  %v6335_v29 = vshll.u32 %v7227_v28, 16 }
 0x524   : > { %v5668_v11 = vpop.permute.xlu1 %5667  ;;  %v5666_v12 = vpop.permute.xlu0 %5665  ;;  %v6329_v6 = vor.u32 %v6328_v50, %v6325_v27  ;;  %v6343_v7 = vrot.slane %v6341_v38, 4 }
 0x525   : > { %v5727_v17 = vsel %vm8918_vm4, %v5668_v11, %v5726_v48  ;;  %v5724_v18 = vsel %vm8918_vm4, %v5666_v12, %v5723_v3  ;;  %v6312_v48 = vrot.slane %v6311_v36, 4  ;;  %v6303_v3 = vrot.slane %v6302_v30, 4 }
 0x526   : > { %5728 = vst [vmem:[#allocation2 + $0x2c] sm:$0xf] %v5727_v17  ;;  %5725 = vst [vmem:[#allocation2 + $0x28] sm:$0xf] %v5724_v18  ;;  %6359 = vrot.lane.b32.xlu1 %v6258_v39, %s7576_s15  ;;  %6357 = vrot.lane.b32.xlu0 %v6249_v42, %s7576_s15  ;;  %v6320_v8 = vor.u32 %v6319_v2, %v6316_v34  ;;  %v6346_v9 = vrot.slane %v6344_v44, 5  ;;  %v6334_v33 = vrot.slane %v6332_v37, 4 }
 0x527   : > { %v6337_v10 = vrot.slane %v6335_v29, 5  ;;  %v6330_v56 = vrot.slane %v6329_v6, 4 }
 0x528   : > { %v5672_v45 = vpop.permute.xlu1 %5671  ;;  %v5670_v20 = vpop.permute.xlu0 %5669  ;;  %v6321_v13 = vrot.slane %v6320_v8, 4  ;;  %v6347_v14 = vor.u32 %v6346_v9, %v6343_v7 }
 0x529   : > { %v5733_v43 = vsel %vm8918_vm4, %v5672_v45, %v5732_v22  ;;  %v5730_v46 = vsel %vm8918_vm4, %v5670_v20, %v5729_v23  ;;  %v6338_v15 = vor.u32 %v6337_v10, %v6334_v33 }
 0x52a   : > { %5734 = vst [vmem:[#allocation2 + $0x34] sm:$0xf] %v5733_v43  ;;  %5731 = vst [vmem:[#allocation2 + $0x30] sm:$0xf] %v5730_v46  ;;  %6363 = vrot.lane.b32.xlu1 %v6276_v24, %s7576_s15  ;;  %6361 = vrot.lane.b32.xlu0 %v6267_v25, %s7576_s15  ;;  %v6348_v18 = vrot.slane %v6347_v14, 4 }
 0x52b   : > { %v6339_v19 = vrot.slane %v6338_v15, 4 }
 0x52c   : > { %v5676_v39 = vpop.permute.xlu1 %5675  ;;  %v5674_v41 = vpop.permute.xlu0 %5673 }
 0x52d   : > { %v5739_v42 = vsel %vm8918_vm4, %v5676_v39, %v5738_v35  ;;  %v5736_v5 = vsel %vm8918_vm4, %v5674_v41, %v5735_v55 }
 0x52e   : > { %5740 = vst [vmem:[#allocation2 + $0x3c] sm:$0xf] %v5739_v42  ;;  %5737 = vst [vmem:[#allocation2 + $0x38] sm:$0xf] %v5736_v5  ;;  %6367 = vrot.lane.b32.xlu1 %v6294_v1, %s7576_s15  ;;  %6365 = vrot.lane.b32.xlu0 %v6285_v26, %s7576_s15 }
 0x530   : > { %v5776_v11 = vpop.permute.xlu1 %5775  ;;  %v5774_v12 = vpop.permute.xlu0 %5773 }
 0x531   : > { %5822 = vst.msk [vmem:[#allocation2 + $0x4] sm:$0xf] %vm3241_vm5, %v5776_v11  ;;  %5821 = vst.msk [vmem:[#allocation2] sm:$0xf] %vm3241_vm5, %v5774_v12 }
 0x532   : > { %6371 = vrot.lane.b32.xlu1 %v6312_v48, %s7576_s15  ;;  %6369 = vrot.lane.b32.xlu0 %v6303_v3, %s7576_s15 }
 0x534   : > { %v5780_v16 = vpop.permute.xlu1 %5779  ;;  %v5778_v17 = vpop.permute.xlu0 %5777 }
 0x535   : > { %5824 = vst.msk [vmem:[#allocation2 + $0xc] sm:$0xf] %vm3241_vm5, %v5780_v16  ;;  %5823 = vst.msk [vmem:[#allocation2 + $0x8] sm:$0xf] %vm3241_vm5, %v5778_v17 }
 0x536   : > { %6375 = vrot.lane.b32.xlu1 %v6330_v56, %s7576_s15  ;;  %6373 = vrot.lane.b32.xlu0 %v6321_v13, %s7576_s15 }
 0x538   : > { %v5784_v21 = vpop.permute.xlu1 %5783  ;;  %v5782_v22 = vpop.permute.xlu0 %5781 }
 0x539   : > { %5826 = vst.msk [vmem:[#allocation2 + $0x14] sm:$0xf] %vm3241_vm5, %v5784_v21  ;;  %5825 = vst.msk [vmem:[#allocation2 + $0x10] sm:$0xf] %vm3241_vm5, %v5782_v22 }
 0x53a   : > { %6379 = vrot.lane.b32.xlu1 %v6348_v18, %s7576_s15  ;;  %6377 = vrot.lane.b32.xlu0 %v6339_v19, %s7576_s15 }
 0x53c   : > { %v5788_v23 = vpop.permute.xlu1 %5787  ;;  %v5786_v24 = vpop.permute.xlu0 %5785 }
 0x53d   : > { %5828 = vst.msk [vmem:[#allocation2 + $0x1c] sm:$0xf] %vm3241_vm5, %v5788_v23  ;;  %5827 = vst.msk [vmem:[#allocation2 + $0x18] sm:$0xf] %vm3241_vm5, %v5786_v24 }
 0x540   : > { %v5792_v25 = vpop.permute.xlu1 %5791  ;;  %v5790_v1 = vpop.permute.xlu0 %5789 }
 0x541   : > { %5830 = vst.msk [vmem:[#allocation2 + $0x24] sm:$0xf] %vm3241_vm5, %v5792_v25  ;;  %5829 = vst.msk [vmem:[#allocation2 + $0x20] sm:$0xf] %vm3241_vm5, %v5790_v1 }
 0x544   : > { %v5796_v26 = vpop.permute.xlu1 %5795  ;;  %v5794_v36 = vpop.permute.xlu0 %5793 }
 0x545   : > { %5832 = vst.msk [vmem:[#allocation2 + $0x2c] sm:$0xf] %vm3241_vm5, %v5796_v26  ;;  %5831 = vst.msk [vmem:[#allocation2 + $0x28] sm:$0xf] %vm3241_vm5, %v5794_v36 }
 0x548   : > { %v5800_v27 = vpop.permute.xlu1 %5799  ;;  %v5798_v28 = vpop.permute.xlu0 %5797 }
 0x549   : > { %5834 = vst.msk [vmem:[#allocation2 + $0x34] sm:$0xf] %vm3241_vm5, %v5800_v27  ;;  %5833 = vst.msk [vmem:[#allocation2 + $0x30] sm:$0xf] %vm3241_vm5, %v5798_v28 }
 0x54c   : > { %v5804_v45 = vpop.permute.xlu1 %5803  ;;  %v5802_v20 = vpop.permute.xlu0 %5801 }
 0x54d   : > { %5836 = vst.msk [vmem:[#allocation2 + $0x3c] sm:$0xf] %vm3241_vm5, %v5804_v45  ;;  %5835 = vst.msk [vmem:[#allocation2 + $0x38] sm:$0xf] %vm3241_vm5, %v5802_v20 }
 0x550   : > { %v5872_v30 = vpop.permute.xlu1 %5871  ;;  %v5870_v50 = vpop.permute.xlu0 %5869 }
 0x551   : > { %5918 = vst.msk [vmem:[#allocation2 + $0x4] sm:$0xf] %vm3338_vm6, %v5872_v30  ;;  %5917 = vst.msk [vmem:[#allocation2] sm:$0xf] %vm3338_vm6, %v5870_v50 }
 0x554   : > { %v5876_v34 = vpop.permute.xlu1 %5875  ;;  %v5874_v38 = vpop.permute.xlu0 %5873 }
 0x555   : > { %5920 = vst.msk [vmem:[#allocation2 + $0xc] sm:$0xf] %vm3338_vm6, %v5876_v34  ;;  %5919 = vst.msk [vmem:[#allocation2 + $0x8] sm:$0xf] %vm3338_vm6, %v5874_v38 }
 0x558   : > { %v5880_v43 = vpop.permute.xlu1 %5879  ;;  %v5878_v46 = vpop.permute.xlu0 %5877  ;;  %v6144_v5 = vld [vmem:[#allocation2 + $0x4] sm:$0xf]  ;;  %v6141_v7 = vld [vmem:[#allocation2] sm:$0xf] }
 0x559   : > { %5922 = vst.msk [vmem:[#allocation2 + $0x14] sm:$0xf] %vm3338_vm6, %v5880_v43  ;;  %5921 = vst.msk [vmem:[#allocation2 + $0x10] sm:$0xf] %vm3338_vm6, %v5878_v46 }
 0x55c   : > { %v5884_v2 = vpop.permute.xlu1 %5883  ;;  %v5882_v44 = vpop.permute.xlu0 %5881  ;;  %v6150_v10 = vld [vmem:[#allocation2 + $0xc] sm:$0xf]  ;;  %v6147_v12 = vld [vmem:[#allocation2 + $0x8] sm:$0xf] }
 0x55d   : > { %5924 = vst.msk [vmem:[#allocation2 + $0x1c] sm:$0xf] %vm3338_vm6, %v5884_v2  ;;  %5923 = vst.msk [vmem:[#allocation2 + $0x18] sm:$0xf] %vm3338_vm6, %v5882_v44 }
 0x560   : > { %v5888_v35 = vpop.permute.xlu1 %5887  ;;  %v5886_v55 = vpop.permute.xlu0 %5885  ;;  %v6156_v15 = vld [vmem:[#allocation2 + $0x14] sm:$0xf]  ;;  %v6153_v17 = vld [vmem:[#allocation2 + $0x10] sm:$0xf] }
 0x561   : > { %5926 = vst.msk [vmem:[#allocation2 + $0x24] sm:$0xf] %vm3338_vm6, %v5888_v35  ;;  %5925 = vst.msk [vmem:[#allocation2 + $0x20] sm:$0xf] %vm3338_vm6, %v5886_v55 }
 0x564   : > { %v5892_v37 = vpop.permute.xlu1 %5891  ;;  %v5890_v29 = vpop.permute.xlu0 %5889  ;;  %v6162_v22 = vld [vmem:[#allocation2 + $0x1c] sm:$0xf]  ;;  %v6159_v24 = vld [vmem:[#allocation2 + $0x18] sm:$0xf] }
 0x565   : > { %5928 = vst.msk [vmem:[#allocation2 + $0x2c] sm:$0xf] %vm3338_vm6, %v5892_v37  ;;  %5927 = vst.msk [vmem:[#allocation2 + $0x28] sm:$0xf] %vm3338_vm6, %v5890_v29 }
 0x568   : > { %v5896_v39 = vpop.permute.xlu1 %5895  ;;  %v5894_v41 = vpop.permute.xlu0 %5893  ;;  %v6168_v36 = vld [vmem:[#allocation2 + $0x24] sm:$0xf]  ;;  %v6165_v28 = vld [vmem:[#allocation2 + $0x20] sm:$0xf] }
 0x569   : > { %5930 = vst.msk [vmem:[#allocation2 + $0x34] sm:$0xf] %vm3338_vm6, %v5896_v39  ;;  %5929 = vst.msk [vmem:[#allocation2 + $0x30] sm:$0xf] %vm3338_vm6, %v5894_v41 }
 0x56c   : > { %v5900_v48 = vpop.permute.xlu1 %5899  ;;  %v5898_v3 = vpop.permute.xlu0 %5897  ;;  %v6174_v50 = vld [vmem:[#allocation2 + $0x2c] sm:$0xf]  ;;  %v6171_v38 = vld [vmem:[#allocation2 + $0x28] sm:$0xf] }
 0x56d   : > { %5932 = vst.msk [vmem:[#allocation2 + $0x3c] sm:$0xf] %vm3338_vm6, %v5900_v48  ;;  %5931 = vst.msk [vmem:[#allocation2 + $0x38] sm:$0xf] %vm3338_vm6, %v5898_v3 }
 0x570   : > { %v6096_v42 = vpop.permute.xlu1 %6095  ;;  %v6094_v6 = vpop.permute.xlu0 %6093  ;;  %v6180_v44 = vld [vmem:[#allocation2 + $0x34] sm:$0xf]  ;;  %v6177_v55 = vld [vmem:[#allocation2 + $0x30] sm:$0xf] }
 0x571   : > { %v6145_v8 = vsel %vm9015_vm9, %v6096_v42, %v6144_v5  ;;  %v6142_v9 = vsel %vm9015_vm9, %v6094_v6, %v6141_v7 }
 0x572   : > { %6146 = vst [vmem:[#allocation2 + $0x4] sm:$0xf] %v6145_v8  ;;  %6143 = vst [vmem:[#allocation2] sm:$0xf] %v6142_v9 }
 0x574   : > { %v6100_v33 = vpop.permute.xlu1 %6099  ;;  %v6098_v11 = vpop.permute.xlu0 %6097  ;;  %v6186_v41 = vld [vmem:[#allocation2 + $0x3c] sm:$0xf]  ;;  %v6183_v3 = vld [vmem:[#allocation2 + $0x38] sm:$0xf] }
 0x575   : > { %v6151_v56 = vsel %vm9015_vm9, %v6100_v33, %v6150_v10  ;;  %v6148_v13 = vsel %vm9015_vm9, %v6098_v11, %v6147_v12 }
 0x576   : > { %6152 = vst [vmem:[#allocation2 + $0xc] sm:$0xf] %v6151_v56  ;;  %6149 = vst [vmem:[#allocation2 + $0x8] sm:$0xf] %v6148_v13 }
 0x578   : > { %v6104_v14 = vpop.permute.xlu1 %6103  ;;  %v6102_v16 = vpop.permute.xlu0 %6101 }
 0x579   : > { %v6157_v18 = vsel %vm9015_vm9, %v6104_v14, %v6156_v15  ;;  %v6154_v19 = vsel %vm9015_vm9, %v6102_v16, %v6153_v17  ;;  %v6400_v7 = vld [vmem:[#allocation2 + $0x4] sm:$0xf]  ;;  %v6397_v9 = vld [vmem:[#allocation2] sm:$0xf] }
 0x57a   : > { %6158 = vst [vmem:[#allocation2 + $0x14] sm:$0xf] %v6157_v18  ;;  %6155 = vst [vmem:[#allocation2 + $0x10] sm:$0xf] %v6154_v19 }
 0x57c   : > { %v6108_v21 = vpop.permute.xlu1 %6107  ;;  %v6106_v23 = vpop.permute.xlu0 %6105 }
 0x57d   : > { %v6163_v25 = vsel %vm9015_vm9, %v6108_v21, %v6162_v22  ;;  %v6160_v1 = vsel %vm9015_vm9, %v6106_v23, %v6159_v24  ;;  %v6406_v12 = vld [vmem:[#allocation2 + $0xc] sm:$0xf]  ;;  %v6403_v13 = vld [vmem:[#allocation2 + $0x8] sm:$0xf] }
 0x57e   : > { %6164 = vst [vmem:[#allocation2 + $0x1c] sm:$0xf] %v6163_v25  ;;  %6161 = vst [vmem:[#allocation2 + $0x18] sm:$0xf] %v6160_v1 }
 0x580   : > { %v6112_v26 = vpop.permute.xlu1 %6111  ;;  %v6110_v27 = vpop.permute.xlu0 %6109 }
 0x581   : > { %v6169_v45 = vsel %vm9015_vm9, %v6112_v26, %v6168_v36  ;;  %v6166_v20 = vsel %vm9015_vm9, %v6110_v27, %v6165_v28  ;;  %v6412_v16 = vld [vmem:[#allocation2 + $0x14] sm:$0xf]  ;;  %v6409_v18 = vld [vmem:[#allocation2 + $0x10] sm:$0xf] }
 0x582   : > { %6170 = vst [vmem:[#allocation2 + $0x24] sm:$0xf] %v6169_v45  ;;  %6167 = vst [vmem:[#allocation2 + $0x20] sm:$0xf] %v6166_v20 }
 0x584   : > { %v6116_v30 = vpop.permute.xlu1 %6115  ;;  %v6114_v34 = vpop.permute.xlu0 %6113 }
 0x585   : > { %v6175_v43 = vsel %vm9015_vm9, %v6116_v30, %v6174_v50  ;;  %v6172_v46 = vsel %vm9015_vm9, %v6114_v34, %v6171_v38  ;;  %v6418_v23 = vld [vmem:[#allocation2 + $0x1c] sm:$0xf]  ;;  %v6415_v25 = vld [vmem:[#allocation2 + $0x18] sm:$0xf] }
 0x586   : > { %6176 = vst [vmem:[#allocation2 + $0x2c] sm:$0xf] %v6175_v43  ;;  %6173 = vst [vmem:[#allocation2 + $0x28] sm:$0xf] %v6172_v46 }
 0x588   : > { %v6120_v2 = vpop.permute.xlu1 %6119  ;;  %v6118_v35 = vpop.permute.xlu0 %6117 }
 0x589   : > { %v6181_v37 = vsel %vm9015_vm9, %v6120_v2, %v6180_v44  ;;  %v6178_v29 = vsel %vm9015_vm9, %v6118_v35, %v6177_v55  ;;  %v6424_v27 = vld [vmem:[#allocation2 + $0x24] sm:$0xf]  ;;  %v6421_v45 = vld [vmem:[#allocation2 + $0x20] sm:$0xf] }
 0x58a   : > { %6182 = vst [vmem:[#allocation2 + $0x34] sm:$0xf] %v6181_v37  ;;  %6179 = vst [vmem:[#allocation2 + $0x30] sm:$0xf] %v6178_v29 }
 0x58c   : > { %v6124_v39 = vpop.permute.xlu1 %6123  ;;  %v6122_v48 = vpop.permute.xlu0 %6121 }
 0x58d   : > { %v6187_v42 = vsel %vm9015_vm9, %v6124_v39, %v6186_v41  ;;  %v6184_v5 = vsel %vm9015_vm9, %v6122_v48, %v6183_v3  ;;  %v6430_v34 = vld [vmem:[#allocation2 + $0x2c] sm:$0xf]  ;;  %v6427_v43 = vld [vmem:[#allocation2 + $0x28] sm:$0xf] }
 0x58e   : > { %6188 = vst [vmem:[#allocation2 + $0x3c] sm:$0xf] %v6187_v42  ;;  %6185 = vst [vmem:[#allocation2 + $0x38] sm:$0xf] %v6184_v5 }
 0x590   : > { %v6352_v6 = vpop.permute.xlu1 %6351  ;;  %v6350_v8 = vpop.permute.xlu0 %6349 }
 0x591   : > { %v6401_v33 = vsel %vm9055_vm11, %v6352_v6, %v6400_v7  ;;  %v6398_v10 = vsel %vm9055_vm11, %v6350_v8, %v6397_v9  ;;  %v6436_v35 = vld [vmem:[#allocation2 + $0x34] sm:$0xf]  ;;  %v6433_v37 = vld [vmem:[#allocation2 + $0x30] sm:$0xf] }
 0x592   : > { %6402 = vst [vmem:[#allocation2 + $0x4] sm:$0xf] %v6401_v33  ;;  %6399 = vst [vmem:[#allocation2] sm:$0xf] %v6398_v10 }
 0x594   : > { %v6356_v11 = vpop.permute.xlu1 %6355  ;;  %v6354_v56 = vpop.permute.xlu0 %6353 }
 0x595   : > { %v6407_v4 = vsel %vm9055_vm11, %v6356_v11, %v6406_v12  ;;  %v6404_v14 = vsel %vm9055_vm11, %v6354_v56, %v6403_v13  ;;  %v6442_v48 = vld [vmem:[#allocation2 + $0x3c] sm:$0xf]  ;;  %v6439_v42 = vld [vmem:[#allocation2 + $0x38] sm:$0xf] }
 0x596   : > { %6408 = vst [vmem:[#allocation2 + $0xc] sm:$0xf] %v6407_v4  ;;  %6405 = vst [vmem:[#allocation2 + $0x8] sm:$0xf] %v6404_v14 }
 0x598   : > { %v6360_v15 = vpop.permute.xlu1 %6359  ;;  %v6358_v17 = vpop.permute.xlu0 %6357 }
 0x599   : > { %v6413_v19 = vsel %vm9055_vm11, %v6360_v15, %v6412_v16  ;;  %v6410_v21 = vsel %vm9055_vm11, %v6358_v17, %v6409_v18 }
 0x59a   : > { %6414 = vst [vmem:[#allocation2 + $0x14] sm:$0xf] %v6413_v19  ;;  %6411 = vst [vmem:[#allocation2 + $0x10] sm:$0xf] %v6410_v21 }
 0x59c   : > { %v6364_v22 = vpop.permute.xlu1 %6363  ;;  %v6362_v24 = vpop.permute.xlu0 %6361 }
 0x59d   : > { %v6419_v1 = vsel %vm9055_vm11, %v6364_v22, %v6418_v23  ;;  %v6416_v26 = vsel %vm9055_vm11, %v6362_v24, %v6415_v25 }
 0x59e   : > { %6420 = vst [vmem:[#allocation2 + $0x1c] sm:$0xf] %v6419_v1  ;;  %6417 = vst [vmem:[#allocation2 + $0x18] sm:$0xf] %v6416_v26 }
 0x5a0   : > { %v6368_v36 = vpop.permute.xlu1 %6367  ;;  %v6366_v28 = vpop.permute.xlu0 %6365 }
 0x5a1   : > { %v6425_v20 = vsel %vm9055_vm11, %v6368_v36, %v6424_v27  ;;  %v6422_v30 = vsel %vm9055_vm11, %v6366_v28, %v6421_v45 }
 0x5a2   : > { %6426 = vst [vmem:[#allocation2 + $0x24] sm:$0xf] %v6425_v20  ;;  %6423 = vst [vmem:[#allocation2 + $0x20] sm:$0xf] %v6422_v30 }
 0x5a4   : > { %v6372_v50 = vpop.permute.xlu1 %6371  ;;  %v6370_v38 = vpop.permute.xlu0 %6369 }
 0x5a5   : > { %v6431_v46 = vsel %vm9055_vm11, %v6372_v50, %v6430_v34  ;;  %v6428_v2 = vsel %vm9055_vm11, %v6370_v38, %v6427_v43 }
 0x5a6   : > { %6432 = vst [vmem:[#allocation2 + $0x2c] sm:$0xf] %v6431_v46  ;;  %6429 = vst [vmem:[#allocation2 + $0x28] sm:$0xf] %v6428_v2 }
 0x5a8   : > { %v6376_v44 = vpop.permute.xlu1 %6375  ;;  %v6374_v55 = vpop.permute.xlu0 %6373 }
 0x5a9   : > { %v6437_v29 = vsel %vm9055_vm11, %v6376_v44, %v6436_v35  ;;  %v6434_v39 = vsel %vm9055_vm11, %v6374_v55, %v6433_v37 }
 0x5aa   : > { %6438 = vst [vmem:[#allocation2 + $0x34] sm:$0xf] %v6437_v29  ;;  %6435 = vst [vmem:[#allocation2 + $0x30] sm:$0xf] %v6434_v39 }
 0x5ac   : > { %v6380_v41 = vpop.permute.xlu1 %6379  ;;  %v6378_v3 = vpop.permute.xlu0 %6377 }
 0x5ad   : > { %v6443_v5 = vsel %vm9055_vm11, %v6380_v41, %v6442_v48  ;;  %v6440_v6 = vsel %vm9055_vm11, %v6378_v3, %v6439_v42 }
 0x5ae   : > { %6444 = vst [vmem:[#allocation2 + $0x3c] sm:$0xf] %v6443_v5  ;;  %6441 = vst [vmem:[#allocation2 + $0x38] sm:$0xf] %v6440_v6 }
 0x5af PF: > { %v7515_v7 = vld [vmem:[%s9974_s2 + $0x28] sm:$0xff]   ;;  %v7516_v8 = vld [vmem:[%s9974_s2 + $0x30] sm:$0xff]   ;;  %v7517_v9 = vld [vmem:[%s9974_s2 + $0x38] ss:$0 sps:$4 sm:$0x33]   ;;  %vm6813_vm14 = vcmask 89088  }
 0x5b0   : > { %7378 = vmatprep.subr.bf16.mxu0 %v7515_v7  ;;  %v7518_v33 = vld [vmem:[#allocation2] sm:$0xff]   ;;  %v6547_v40 = vsel %vm3974_vm2, %v7517_v9, 0  ;;  %v7519_v10 = vld [vmem:[#allocation2 + $0x8] sm:$0xff]   ;;  %v7520_v11 = vld [vmem:[#allocation2 + $0x10] sm:$0xff]  }
 0x5b1   : > { %7379 = vmatpush3.bf16.msra.mxu0 %v7515_v7  ;;  %7384 = vmatprep.mubr.msk.bf16.mxu0 %vm3949_vm12, %v7518_v33  ;;  %v7521_v12 = vld [vmem:[#allocation2 + $0x18] sm:$0xff]   ;;  %v7522_v56 = vld [vmem:[#allocation2 + $0x20] sm:$0xff]   ;;  %v7523_v13 = vld [vmem:[#allocation2 + $0x28] sm:$0xff]  }
 0x5b2   : > { %7380 = vmatprep.subr.bf16.mxu0 %v7516_v8  ;;  %v7524_v4 = vld [vmem:[#allocation2 + $0x30] sm:$0xff]   ;;  %v7294_v15 = vld [vmem:[%s7655_s28 + $0x8] sm:$0xff]   ;;  %v7263_v16 = vld [vmem:[%s7655_s28] sm:$0xff]  }
 0x5b3   : > { %v7296_v17 = vld [vmem:[%s7655_s28 + $0x18] sm:$0xff]   ;;  %v7268_v18 = vunpack.c.l.bf16 %v7294_v15  ;;  %v7264_v19 = vunpack.c.l.bf16 %v7263_v16  ;;  %v7295_v21 = vld [vmem:[%s7655_s28 + $0x10] sm:$0xff]   ;;  %v7269_v22 = vunpack.c.h.bf16 %v7294_v15  ;;  %v7265_v23 = vunpack.c.h.bf16 %v7263_v16  ;;  %v9856_v1 = vld [vmem:[%s9975_s3] ss:$0 sm:$0xff] }
 0x5b4   : > { %v7276_v24 = vunpack.c.l.bf16 %v7296_v17  ;;  %v7272_v26 = vunpack.c.l.bf16 %v7295_v21  ;;  %v7277_v36 = vunpack.c.h.bf16 %v7296_v17  ;;  %v9859_v27 = vld [vmem:[%s7655_s28 + $0x28] sm:$0xff]   ;;  %v7273_v50 = vunpack.c.h.bf16 %v7295_v21 }
 0x5b5   : > { %7381 = vmatpush3.bf16.msra.mxu0 %v7516_v8  ;;  %v7525_v14 = vld [vmem:[#allocation2 + $0x38] sm:$0xff]   ;;  %v6783_v45 = vmul.f32 0.7, %v7268_v18  ;;  %v6781_v30 = vmul.f32 0.7, %v7264_v19  ;;  %v7284_v37 = vunpack.c.l.bf16 %v9859_v27 }
 0x5b6   : > { %7441 = vmatprep.subr.msk.bf16.mxu0 %vm3974_vm2, %v7517_v9  ;;  %v6784_v43 = vmul.f32 0.7, %v7269_v22  ;;  %v6782_v46 = vmul.f32 0.7, %v7265_v23  ;;  %v9865_v55 = vmul.f32 0.7, %v7276_v24 }
 0x5b7   : > { %v9873_v41 = vmul.f32 0.7, %v7272_v26 }
 0x5b9   : > { %7383 = vmatpush3.bf16.msra.mxu0 %v6547_v40 }
 0x5bc   : > { %7385 = vmatmul.mubr.msk.bf16.vlgmr.msra.gmra.mrb[0].mxu0 %vm3949_vm12, %v7519_v10 }
 0x5bd   : > { %7388 = vmatprep.mubr.msk.bf16.mxu0 %vm3949_vm12, %v7520_v11 }
 0x5c4   : > { %7389 = vmatmul.mubr.msk.bf16.gmra.mrb[4].mxu0 %vm3949_vm12, %v7521_v12 }
 0x5c5   : > { %7392 = vmatprep.mubr.msk.bf16.mxu0 %vm3949_vm12, %v7522_v56 }
 0x5cc   : > { %7393 = vmatmul.mubr.msk.bf16.gmra.mrb[8].mxu0 %vm3949_vm12, %v7523_v13 }
 0x5cd   : > { %7396 = vmatprep.mubr.msk.bf16.mxu0 %vm3949_vm12, %v7524_v4  ;;  %v7285_v4 = vunpack.c.h.bf16 %v9859_v27 }
 0x5d4   : > { %7397 = vmatmul.mubr.msk.bf16.gmra.mrb[12].mxu0 %vm3949_vm12, %v7525_v14 }
 0x68f   : > { %v7386_v25 = vpop.f32.mrb[0].mxu0 }
 0x690   : > { %v7406_v28 = vadd.f32 %v7386_v25, %v9145_v47  ;;  %v6583_v20 = vpop.f32.mrb[1].mxu0  ;;  %v9869_v47 = vld [vmem:[%s7655_s28 + $0x20] sm:$0xff]  }
 0x691   : > { %v7407_v34 = vadd.f32 %v6583_v20, %v9147_v49  ;;  %v7387_v38 = vpop.f32.mrb[2].mxu0  ;;  %v9875_v49 = vmul.f32 0.7, %v7277_v36  ;;  %v7280_v6 = vunpack.c.l.bf16 %v9869_v47  ;;  %v7281_v20 = vunpack.c.h.bf16 %v9869_v47 }
 0x692   : > { %v6671_v2 = vadd.f32 %v7406_v28, %v9856_v1  ;;  %v7408_v44 = vadd.f32 %v7387_v38, %v9149_v31  ;;  %v6586_v35 = vpop.f32.mrb[3].mxu0  ;;  %v9878_v31 = vmul.f32 0.7, %v7273_v50 }
 0x693   : > { %v6669_v29 = vadd.f32 %v7407_v34, %v9856_v1  ;;  %v7409_v39 = vadd.f32 %v6586_v35, %v9151_v51  ;;  %v9882_v51 = vmul.f32 0.7, %v7284_v37  ;;  %v9893_v36 = vmul.f32 0.7, %v7280_v6 }
 0x694   : > { %vm6687_vm15 = vcmp.gt.f32.partialorder %v6671_v2, 0.0  ;;  %v6703_v48 = vmul.f32 0.2, %v6671_v2  ;;  %v6672_v3 = vadd.f32 %v7408_v44, %v9856_v1  ;;  %v9907_v34 = vmul.f32 0.7, %v7285_v4 }
 0x695   : > { %vm6685_vm0 = vcmp.gt.f32.partialorder %v6669_v29, 0.0  ;;  %v6701_v42 = vmul.f32 0.2, %v6669_v29  ;;  %v6670_v5 = vadd.f32 %v7409_v39, %v9856_v1 }
 0x696   : > { %v6719_v7 = vsel %vm6687_vm15, %v6671_v2, %v6703_v48  ;;  %vm6688_vm1 = vcmp.gt.f32.partialorder %v6672_v3, 0.0  ;;  %v6704_v8 = vmul.f32 0.2, %v6672_v3 }
 0x697   : > { %v6735_v9 = vmul.f32 0.3, %v6719_v7  ;;  %v6717_v33 = vsel %vm6685_vm0, %v6669_v29, %v6701_v42  ;;  %vm6686_vm2 = vcmp.gt.f32.partialorder %v6670_v5, 0.0  ;;  %v6702_v40 = vmul.f32 0.2, %v6670_v5  ;;  %v7390_v10 = vpop.f32.mrb[4].mxu0 }
 0x698   : > { %v6733_v11 = vmul.f32 0.3, %v6717_v33  ;;  %v6720_v12 = vsel %vm6688_vm1, %v6672_v3, %v6704_v8  ;;  %v7410_v56 = vadd.f32 %v7390_v10, %v9153_v52  ;;  %v6599_v13 = vpop.f32.mrb[5].mxu0  ;;  %v9917_v33 = vld [vmem:[%s7655_s28 + $0x30] sm:$0xff]   ;;  %v6790_v10 = vmul.f32 0.7, %v7281_v20 }
 0x699   : > { %v6799_v14 = vadd.f32 %v6783_v45, %v6735_v9  ;;  %v6736_v15 = vmul.f32 0.3, %v6720_v12  ;;  %v6718_v16 = vsel %vm6686_vm2, %v6670_v5, %v6702_v40  ;;  %v7411_v17 = vadd.f32 %v6599_v13, %v9155_v53  ;;  %v7391_v18 = vpop.f32.mrb[6].mxu0 }
 0x69a   : > { %v6797_v19 = vadd.f32 %v6781_v30, %v6733_v11  ;;  %v6734_v21 = vmul.f32 0.3, %v6718_v16  ;;  %v6675_v22 = vadd.f32 %v7410_v56, %v9856_v1  ;;  %v7412_v23 = vadd.f32 %v7391_v18, %v9157_v57  ;;  %v6602_v24 = vpop.f32.mrb[7].mxu0  ;;  %v9903_v30 = vld [vmem:[%s7655_s28 + $0x38] sm:$0xff]  }
 0x69b   : > { %6816 = vst.msk [vmem:[%s7660_s6 + $0x10] sm:$0xff] %vm6813_vm14, %v6799_v14  ;;  %v6800_v52 = vadd.f32 %v6784_v43, %v6736_v15  ;;  %v6673_v25 = vadd.f32 %v7411_v17, %v9856_v1  ;;  %v7413_v26 = vadd.f32 %v6602_v24, %v9159_v58  ;;  %v7292_v29 = vunpack.c.l.bf16 %v9903_v30 }
 0x69c   : > { %6814 = vst.msk [vmem:[%s7660_s6] sm:$0xff] %vm6813_vm14, %v6797_v19  ;;  %v6798_v53 = vadd.f32 %v6782_v46, %v6734_v21  ;;  %vm6691_vm3 = vcmp.gt.f32.partialorder %v6675_v22, 0.0  ;;  %v6707_v27 = vmul.f32 0.2, %v6675_v22  ;;  %v6676_v28 = vadd.f32 %v7412_v23, %v9856_v1 }
 0x69d   : > { %6817 = vst.msk [vmem:[%s7660_s6 + $0x18] sm:$0xff] %vm6813_vm14, %v6800_v52  ;;  %vm6689_vm4 = vcmp.gt.f32.partialorder %v6673_v25, 0.0  ;;  %v6705_v57 = vmul.f32 0.2, %v6673_v25  ;;  %v6674_v45 = vadd.f32 %v7413_v26, %v9856_v1  ;;  %v6795_v4 = vmul.f32 0.7, %v7292_v29 }
 0x69e   : > { %6815 = vst.msk [vmem:[%s7660_s6 + $0x8] sm:$0xff] %vm6813_vm14, %v6798_v53  ;;  %v6723_v58 = vsel %vm6691_vm3, %v6675_v22, %v6707_v27  ;;  %vm6692_vm5 = vcmp.gt.f32.partialorder %v6676_v28, 0.0  ;;  %v6708_v50 = vmul.f32 0.2, %v6676_v28  ;;  %v7293_v22 = vunpack.c.h.bf16 %v9903_v30 }
 0x69f   : > { %v6739_v38 = vmul.f32 0.3, %v6723_v58  ;;  %v6721_v43 = vsel %vm6689_vm4, %v6673_v25, %v6705_v57  ;;  %vm6690_vm6 = vcmp.gt.f32.partialorder %v6674_v45, 0.0  ;;  %v6706_v46 = vmul.f32 0.2, %v6674_v45  ;;  %v7394_v2 = vpop.f32.mrb[8].mxu0 }
 0x6a0   : > { %v6737_v44 = vmul.f32 0.3, %v6721_v43  ;;  %v6724_v35 = vsel %vm6692_vm5, %v6676_v28, %v6708_v50  ;;  %v7414_v37 = vadd.f32 %v7394_v2, %v9161_v54  ;;  %v6615_v47 = vpop.f32.mrb[9].mxu0  ;;  %v6796_v43 = vmul.f32 0.7, %v7293_v22 }
 0x6a1   : > { %v6803_v39 = vadd.f32 %v9865_v55, %v6739_v38  ;;  %v6740_v48 = vmul.f32 0.3, %v6724_v35  ;;  %v6722_v3 = vsel %vm6690_vm6, %v6674_v45, %v6706_v46  ;;  %v7415_v42 = vadd.f32 %v6615_v47, %v9163_v32  ;;  %v7395_v5 = vpop.f32.mrb[10].mxu0 }
 0x6a2   : > { %v6801_v6 = vadd.f32 %v9873_v41, %v6737_v44  ;;  %v6738_v7 = vmul.f32 0.3, %v6722_v3  ;;  %v6679_v8 = vadd.f32 %v7414_v37, %v9856_v1  ;;  %v7416_v9 = vadd.f32 %v7395_v5, %v9165_v59  ;;  %v6618_v54 = vpop.f32.mrb[11].mxu0 }
 0x6a3   : > { %6820 = vst.msk [vmem:[%s7660_s6 + $0x30] sm:$0xff] %vm6813_vm14, %v6803_v39  ;;  %v6804_v55 = vadd.f32 %v9875_v49, %v6740_v48  ;;  %v6677_v40 = vadd.f32 %v7415_v42, %v9856_v1  ;;  %v7417_v32 = vadd.f32 %v6618_v54, %v9167_v60  ;;  %v7288_v49 = vunpack.c.l.bf16 %v9917_v33 }
 0x6a4   : > { %6818 = vst.msk [vmem:[%s7660_s6 + $0x20] sm:$0xff] %vm6813_vm14, %v6801_v6  ;;  %v6802_v41 = vadd.f32 %v9878_v31, %v6738_v7  ;;  %vm6695_vm7 = vcmp.gt.f32.partialorder %v6679_v8, 0.0  ;;  %v6711_v11 = vmul.f32 0.2, %v6679_v8  ;;  %v6680_v59 = vadd.f32 %v7416_v9, %v9856_v1 }
 0x6a5   : > { %6821 = vst.msk [vmem:[%s7660_s6 + $0x38] sm:$0xff] %vm6813_vm14, %v6804_v55  ;;  %vm6693_vm8 = vcmp.gt.f32.partialorder %v6677_v40, 0.0  ;;  %v6709_v12 = vmul.f32 0.2, %v6677_v40  ;;  %v6678_v56 = vadd.f32 %v7417_v32, %v9856_v1  ;;  %v6793_v50 = vmul.f32 0.7, %v7288_v49 }
 0x6a6   : > { %6819 = vst.msk [vmem:[%s7660_s6 + $0x28] sm:$0xff] %vm6813_vm14, %v6802_v41  ;;  %v6727_v60 = vsel %vm6695_vm7, %v6679_v8, %v6711_v11  ;;  %vm6696_vm9 = vcmp.gt.f32.partialorder %v6680_v59, 0.0  ;;  %v6712_v13 = vmul.f32 0.2, %v6680_v59 }
 0x6a7   : > { %v6743_v14 = vmul.f32 0.3, %v6727_v60  ;;  %v6725_v31 = vsel %vm6693_vm8, %v6677_v40, %v6709_v12  ;;  %vm6694_vm10 = vcmp.gt.f32.partialorder %v6678_v56, 0.0  ;;  %v6710_v15 = vmul.f32 0.2, %v6678_v56  ;;  %v7398_v16 = vpop.f32.mrb[12].mxu0 }
 0x6a8   : > { %v6741_v17 = vmul.f32 0.3, %v6725_v31  ;;  %v6728_v18 = vsel %vm6696_vm9, %v6680_v59, %v6712_v13  ;;  %v7418_v19 = vadd.f32 %v7398_v16, %v9169_v61  ;;  %v6631_v21 = vpop.f32.mrb[13].mxu0 }
 0x6a9   : > { %v6807_v23 = vadd.f32 %v9882_v51, %v6743_v14  ;;  %v6744_v24 = vmul.f32 0.3, %v6728_v18  ;;  %v6726_v52 = vsel %vm6694_vm10, %v6678_v56, %v6710_v15  ;;  %v7419_v25 = vadd.f32 %v6631_v21, %v9171_v62  ;;  %v7399_v26 = vpop.f32.mrb[14].mxu0 }
 0x6aa   : > { %v6805_v53 = vadd.f32 %v9893_v36, %v6741_v17  ;;  %v6742_v27 = vmul.f32 0.3, %v6726_v52  ;;  %v6683_v28 = vadd.f32 %v7418_v19, %v9856_v1  ;;  %v7420_v57 = vadd.f32 %v7399_v26, %v9173_v63  ;;  %v6634_v61 = vpop.f32.mrb[15].mxu0 }
 0x6ab   : > { %6824 = vst.msk [vmem:[%s7660_s6 + $0x50] sm:$0xff] %vm6813_vm14, %v6807_v23  ;;  %v6808_v45 = vadd.f32 %v9907_v34, %v6744_v24  ;;  %v6681_v51 = vadd.f32 %v7419_v25, %v9856_v1  ;;  %v7421_v20 = vadd.f32 %v6634_v61, %v9175_v0  ;;  %v7289_v62 = vunpack.c.h.bf16 %v9917_v33 }
 0x6ac   : > { %6822 = vst.msk [vmem:[%s7660_s6 + $0x40] sm:$0xff] %vm6813_vm14, %v6805_v53  ;;  %v6806_v36 = vadd.f32 %v6790_v10, %v6742_v27  ;;  %vm6699_vm11 = vcmp.gt.f32.partialorder %v6683_v28, 0.0  ;;  %v6715_v30 = vmul.f32 0.2, %v6683_v28  ;;  %v6684_v58 = vadd.f32 %v7420_v57, %v9856_v1 }
 0x6ad   : > { %6825 = vst.msk [vmem:[%s7660_s6 + $0x58] sm:$0xff] %vm6813_vm14, %v6808_v45  ;;  %vm6697_vm12 = vcmp.gt.f32.partialorder %v6681_v51, 0.0  ;;  %v6713_v63 = vmul.f32 0.2, %v6681_v51  ;;  %v6682_v34 = vadd.f32 %v7421_v20, %v9856_v1  ;;  %v6794_v47 = vmul.f32 0.7, %v7289_v62 }
 0x6ae   : > { %6823 = vst.msk [vmem:[%s7660_s6 + $0x48] sm:$0xff] %vm6813_vm14, %v6806_v36  ;;  %v6731_v38 = vsel %vm6699_vm11, %v6683_v28, %v6715_v30  ;;  %vm6700_vm13 = vcmp.gt.f32.partialorder %v6684_v58, 0.0  ;;  %v6716_v0 = vmul.f32 0.2, %v6684_v58 }
 0x6af   : > { %v6747_v46 = vmul.f32 0.3, %v6731_v38  ;;  %v6729_v2 = vsel %vm6697_vm12, %v6681_v51, %v6713_v63  ;;  %vm6698_vm15 = vcmp.gt.f32.partialorder %v6682_v34, 0.0  ;;  %v6714_v44 = vmul.f32 0.2, %v6682_v34 }
 0x6b0   : > { %v6745_v35 = vmul.f32 0.3, %v6729_v2  ;;  %v6732_v37 = vsel %vm6700_vm13, %v6684_v58, %v6716_v0 }
 0x6b1   : > { %v6811_v29 = vadd.f32 %v6795_v4, %v6747_v46  ;;  %v6748_v39 = vmul.f32 0.3, %v6732_v37  ;;  %v6730_v1 = vsel %vm6698_vm15, %v6682_v34, %v6714_v44 }
 0x6b2   : > { %v6809_v48 = vadd.f32 %v6793_v50, %v6745_v35  ;;  %v6746_v3 = vmul.f32 0.3, %v6730_v1 }
 0x6b3   : > { %6828 = vst.msk [vmem:[%s7660_s6 + $0x70] sm:$0xff] %vm6813_vm14, %v6811_v29  ;;  %v6812_v42 = vadd.f32 %v6796_v43, %v6748_v39 }
 0x6b4   : > { %6826 = vst.msk [vmem:[%s7660_s6 + $0x60] sm:$0xff] %vm6813_vm14, %v6809_v48  ;;  %v6810_v5 = vadd.f32 %v6794_v47, %v6746_v3 }
 0x6b5   : > { %6829 = vst.msk [vmem:[%s7660_s6 + $0x78] sm:$0xff] %vm6813_vm14, %v6812_v42 }
 0x6b6   : > { %6827 = vst.msk [vmem:[%s7660_s6 + $0x68] sm:$0xff] %vm6813_vm14, %v6810_v5 }
 0x6b7 PF: > { %s15_s20 = sadd.s32 1, %s7548_s20   ;;  %s10006_s18 = smov %s7544_s19 }
 0x6b8   : > { %p12_p9 = scmp.ge.s32.totalorder %s15_s20, 4   ;;  %s10007_s19 = smov %s10009_s21 }
 0x6ba   :  { %14 = sbr.rel (!%p12_p9) target bundleno = 2 (0x2), region = 105 }

</bundles_post_ra>
